<compile_context>
chip_gen: v7x
topology: tpu7x:2x2x1
jax: 0.10.0
libtpu: 0.0.40
codegen_flags: <defaults>
</compile_context>

<pallas_src>
import jax
import jax.numpy as jnp
from jax.experimental import pallas as pl
from jax.experimental.pallas import tpu as pltpu


# ---------------------------------------------------------------------------
# Prologue kernel (one shot): SE gate  g = sigmoid(W2 @ relu(W1 @ xv + b1) + b2)
# ---------------------------------------------------------------------------
def se_gate_kernel(xv_ref, w1_ref, b1_ref, w2_ref, b2_ref, g_ref):
    h = jnp.dot(xv_ref[...], w1_ref[...], preferred_element_type=jnp.float32)
    h = jnp.maximum(h + b1_ref[...], 0.0)                          # ReLU
    z = jnp.dot(h, w2_ref[...], preferred_element_type=jnp.float32) + b2_ref[...]
    g_ref[...] = jax.nn.sigmoid(z)                                  # [1, Cin]


# ---------------------------------------------------------------------------
# Hot kernel: out[Cout_tile, HW] = (W3_tile * g) @ X   (NCHW-native layout)
# ---------------------------------------------------------------------------
def gated_conv1x1_kernel(g_ref, w3_ref, x_ref, o_ref):
    # fold the SE gate into this Cout-tile of W3 (lane broadcast over Cin),
    # then one plain MXU matmul: [tco, Cin] @ [Cin, HW]
    w3g = w3_ref[...] * g_ref[...]
    o_ref[...] = jnp.dot(w3g, x_ref[...], preferred_element_type=jnp.float32)


def se_module_forward(x110, x109, w1, b1, w2, b2, w3, *, n_cout_tiles=4):
    """Implements M.forward.  x110: [1,Cin,1,1], x109: [1,Cin,H,W]."""
    N, C, H, W = x109.shape
    assert N == 1
    Cmid = w1.shape[0]
    HW = H * W

    # --- glue reshapes (views / small one-time XLA ops only) ---
    xv = x110.reshape(1, C)                      # [1, Cin]
    x_mat = x109.reshape(C, HW)                  # [Cin, HW]   (pure view)
    w3m = w3.reshape(C, C)                       # [Cout, Cin] (natural layout)
    w1t = w1.reshape(Cmid, C).T                  # small, feeds one-shot gate only
    w2t = w2.reshape(C, Cmid).T                  # small, feeds one-shot gate only
    b1r = b1.reshape(1, Cmid)
    b2r = b2.reshape(1, C)

    # --- 1) one-shot SE gate (tiny; off the hot path) ---
    g = pl.pallas_call(
        se_gate_kernel,
        out_shape=jax.ShapeDtypeStruct((1, C), jnp.float32),
        grid=(1,),
        in_specs=[
            pl.BlockSpec((1, C), lambda i: (0, 0)),        # xv
            pl.BlockSpec((C, Cmid), lambda i: (0, 0)),     # W1^T
            pl.BlockSpec((1, Cmid), lambda i: (0, 0)),     # b1
            pl.BlockSpec((Cmid, C), lambda i: (0, 0)),     # W2^T
            pl.BlockSpec((1, C), lambda i: (0, 0)),        # b2
        ],
        out_specs=pl.BlockSpec((1, C), lambda i: (0, 0)),
    )(xv, w1t, b1r, w2t, b2r)

    # --- 2) hot gated 1x1 conv, tiled over Cout ---
    assert C % n_cout_tiles == 0
    tco = C // n_cout_tiles
    assert tco % 8 == 0

    y = pl.pallas_call(
        gated_conv1x1_kernel,
        out_shape=jax.ShapeDtypeStruct((C, HW), jnp.float32),
        grid=(n_cout_tiles,),
        in_specs=[
            pl.BlockSpec((1, C), lambda i: (0, 0)),        # g (tiny, grid-invariant)
            pl.BlockSpec((tco, C), lambda i: (i, 0)),      # W3 tile (Cout rows)
            pl.BlockSpec((C, HW), lambda i: (0, 0),        # X: resident, single-buffered
                         pipeline_mode=pl.Buffered(1)),
        ],
        out_specs=pl.BlockSpec((tco, HW), lambda i: (i, 0)),
        compiler_params=pltpu.CompilerParams(
            dimension_semantics=("parallel",),
            vmem_limit_bytes=32 << 20,
        ),
    )(g, w3m, x_mat)

    # [Cout, HW] -> [1, Cout, H, W]  (pure view, no transpose)
    return y.reshape(1, C, H, W)


if __name__ == "__main__":
    key = jax.random.PRNGKey(0)
    kx1, kx2, kw1, kb1, kw2, kb2, kw3 = jax.random.split(key, 7)

    C, Cmid, H, W = 1056, 264, 28, 28   # shapes implied by the module

    # module inputs (deterministic)
    x109 = jax.random.normal(kx1, (1, C, H, W), jnp.float32)
    x110 = jax.random.normal(kx2, (1, C, 1, 1), jnp.float32)

    # deterministic parameter init (uniform +-1/sqrt(fan_in), like torch Conv2d)
    def u(k, shape, fan_in):
        b = 1.0 / jnp.sqrt(fan_in)
        return jax.random.uniform(k, shape, jnp.float32, -b, b)

    w1 = u(kw1, (Cmid, C, 1, 1), C)     # conv2d35 weight
    b1 = u(kb1, (Cmid,), C)             # conv2d35 bias
    w2 = u(kw2, (C, Cmid, 1, 1), Cmid)  # conv2d36 weight
    b2 = u(kb2, (C,), Cmid)             # conv2d36 bias
    w3 = u(kw3, (C, C, 1, 1), C)        # conv2d37 weight (no bias)

    fwd = jax.jit(se_module_forward)
    out = jax.block_until_ready(fwd(x110, x109, w1, b1, w2, b2, w3))
    assert out.shape == (1, C, H, W), out.shape

    # pure-JAX reference for sanity
    xv = x110.reshape(1, C)
    h = jnp.maximum(xv @ w1.reshape(Cmid, C).T + b1, 0.0)
    g = jax.nn.sigmoid(h @ w2.reshape(C, Cmid).T + b2)          # [1, C]
    gated = x109 * g.reshape(1, C, 1, 1)
    ref = jnp.einsum("nchw,oc->nohw", gated, w3.reshape(C, C))
    assert jnp.allclose(out, ref, rtol=1e-4, atol=1e-4), float(
        jnp.max(jnp.abs(out - ref))
    )

    print("KERNEL_OK")
</pallas_src>

<mosaic_0001>
module attributes {stable_mosaic.version = 11 : i64} {
  func.func @se_gate_kernel(%arg0: i32, %arg1: memref<1x1056xf32, #tpu.memory_space<vmem>>, %arg2: memref<1056x264xf32, #tpu.memory_space<vmem>>, %arg3: memref<1x264xf32, #tpu.memory_space<vmem>>, %arg4: memref<264x1056xf32, #tpu.memory_space<vmem>>, %arg5: memref<1x1056xf32, #tpu.memory_space<vmem>>, %arg6: memref<1x1056xf32, #tpu.memory_space<vmem>>) attributes {dimension_semantics = [#tpu.dimension_semantics<arbitrary>], iteration_bounds = array<i64: 1>, scalar_prefetch = 0 : i64, scratch_operands = 0 : i64, tpu.core_type = #tpu.core_type<tc>, window_params = [{pipeline_mode = #tpu.pipeline_mode<synchronous>, transform_indices = @transform_0, window_bounds = array<i64: 1, 1056>}, {pipeline_mode = #tpu.pipeline_mode<synchronous>, transform_indices = @transform_1, window_bounds = array<i64: 1056, 264>}, {pipeline_mode = #tpu.pipeline_mode<synchronous>, transform_indices = @transform_2, window_bounds = array<i64: 1, 264>}, {pipeline_mode = #tpu.pipeline_mode<synchronous>, transform_indices = @transform_3, window_bounds = array<i64: 264, 1056>}, {pipeline_mode = #tpu.pipeline_mode<synchronous>, transform_indices = @transform_4, window_bounds = array<i64: 1, 1056>}, {pipeline_mode = #tpu.pipeline_mode<synchronous>, transform_indices = @transform_5, window_bounds = array<i64: 1, 1056>}]} {
    %c0 = arith.constant 0 : index
    %c0_0 = arith.constant 0 : index
    %0 = vector.load %arg1[%c0, %c0_0] : memref<1x1056xf32, #tpu.memory_space<vmem>>, vector<1x1056xf32>
    %c0_1 = arith.constant 0 : index
    %c0_2 = arith.constant 0 : index
    %1 = vector.load %arg2[%c0_1, %c0_2] : memref<1056x264xf32, #tpu.memory_space<vmem>>, vector<1056x264xf32>
    %cst = arith.constant dense<0.000000e+00> : vector<1x264xf32>
    %2 = tpu.matmul %0, %1, %cst {dimension_numbers = #tpu.dot_dimension_numbers<[1], [0], [0], [1], [0, 0, 1, 1], [], []>} : vector<1x1056xf32>, vector<1056x264xf32>, vector<1x264xf32> -> vector<1x264xf32>
    %c0_3 = arith.constant 0 : index
    %c0_4 = arith.constant 0 : index
    %3 = vector.load %arg3[%c0_3, %c0_4] : memref<1x264xf32, #tpu.memory_space<vmem>>, vector<1x264xf32>
    %4 = arith.addf %2, %3 : vector<1x264xf32>
    %cst_5 = arith.constant 0.000000e+00 : f32
    %5 = vector.broadcast %cst_5 : f32 to vector<1x264xf32>
    %6 = arith.maximumf %4, %5 : vector<1x264xf32>
    %c0_6 = arith.constant 0 : index
    %c0_7 = arith.constant 0 : index
    %7 = vector.load %arg4[%c0_6, %c0_7] : memref<264x1056xf32, #tpu.memory_space<vmem>>, vector<264x1056xf32>
    %cst_8 = arith.constant dense<0.000000e+00> : vector<1x1056xf32>
    %8 = tpu.matmul %6, %7, %cst_8 {dimension_numbers = #tpu.dot_dimension_numbers<[1], [0], [0], [1], [0, 0, 1, 1], [], []>} : vector<1x264xf32>, vector<264x1056xf32>, vector<1x1056xf32> -> vector<1x1056xf32>
    %c0_9 = arith.constant 0 : index
    %c0_10 = arith.constant 0 : index
    %9 = vector.load %arg5[%c0_9, %c0_10] : memref<1x1056xf32, #tpu.memory_space<vmem>>, vector<1x1056xf32>
    %10 = arith.addf %8, %9 : vector<1x1056xf32>
    %11 = arith.negf %10 : vector<1x1056xf32>
    %12 = math.exp %11 : vector<1x1056xf32>
    %cst_11 = arith.constant 1.000000e+00 : f32
    %13 = vector.broadcast %cst_11 : f32 to vector<1x1056xf32>
    %14 = arith.addf %13, %12 : vector<1x1056xf32>
    %15 = arith.divf %13, %14 : vector<1x1056xf32>
    %c0_12 = arith.constant 0 : index
    %c0_13 = arith.constant 0 : index
    %16 = vector.load %arg6[%c0_12, %c0_13] : memref<1x1056xf32, #tpu.memory_space<vmem>>, vector<1x1056xf32>
    tpu.vector_store %arg6[%c0_12, %c0_13], %15 {strides = array<i32>} : memref<1x1056xf32, #tpu.memory_space<vmem>>, vector<1x1056xf32>,
    return
  }
  func.func @transform_0(%arg0: i32) -> (i32, i32) {
    %c0_i32 = arith.constant 0 : i32
    %c0_i32_0 = arith.constant 0 : i32
    %c0_i32_1 = arith.constant 0 : i32
    return %c0_i32, %c0_i32_0 : i32, i32
  }
  func.func @transform_1(%arg0: i32) -> (i32, i32) {
    %c0_i32 = arith.constant 0 : i32
    %c0_i32_0 = arith.constant 0 : i32
    %c0_i32_1 = arith.constant 0 : i32
    return %c0_i32, %c0_i32_0 : i32, i32
  }
  func.func @transform_2(%arg0: i32) -> (i32, i32) {
    %c0_i32 = arith.constant 0 : i32
    %c0_i32_0 = arith.constant 0 : i32
    %c0_i32_1 = arith.constant 0 : i32
    return %c0_i32, %c0_i32_0 : i32, i32
  }
  func.func @transform_3(%arg0: i32) -> (i32, i32) {
    %c0_i32 = arith.constant 0 : i32
    %c0_i32_0 = arith.constant 0 : i32
    %c0_i32_1 = arith.constant 0 : i32
    return %c0_i32, %c0_i32_0 : i32, i32
  }
  func.func @transform_4(%arg0: i32) -> (i32, i32) {
    %c0_i32 = arith.constant 0 : i32
    %c0_i32_0 = arith.constant 0 : i32
    %c0_i32_1 = arith.constant 0 : i32
    return %c0_i32, %c0_i32_0 : i32, i32
  }
  func.func @transform_5(%arg0: i32) -> (i32, i32) {
    %c0_i32 = arith.constant 0 : i32
    %c0_i32_0 = arith.constant 0 : i32
    %c0_i32_1 = arith.constant 0 : i32
    return %c0_i32, %c0_i32_0 : i32, i32
  }
}

module attributes {stable_mosaic.version = 11 : i64} {
  func.func @gated_conv1x1_kernel(%arg0: i32, %arg1: memref<1x1056xf32, #tpu.memory_space<vmem>>, %arg2: memref<264x1056xf32, #tpu.memory_space<vmem>>, %arg3: memref<1056x784xf32, #tpu.memory_space<vmem>>, %arg4: memref<264x784xf32, #tpu.memory_space<vmem>>) attributes {dimension_semantics = [#tpu.dimension_semantics<parallel>], iteration_bounds = array<i64: 4>, scalar_prefetch = 0 : i64, scratch_operands = 0 : i64, tpu.core_type = #tpu.core_type<tc>, window_params = [{pipeline_mode = #tpu.pipeline_mode<synchronous>, transform_indices = @transform_0, window_bounds = array<i64: 1, 1056>}, {transform_indices = @transform_1, window_bounds = array<i64: 264, 1056>}, {pipeline_mode = #tpu.pipeline_mode<synchronous>, transform_indices = @transform_2, window_bounds = array<i64: 1056, 784>}, {transform_indices = @transform_3, window_bounds = array<i64: 264, 784>}]} {
    %c0 = arith.constant 0 : index
    %c0_0 = arith.constant 0 : index
    %0 = vector.load %arg2[%c0, %c0_0] : memref<264x1056xf32, #tpu.memory_space<vmem>>, vector<264x1056xf32>
    %c0_1 = arith.constant 0 : index
    %c0_2 = arith.constant 0 : index
    %1 = vector.load %arg1[%c0_1, %c0_2] : memref<1x1056xf32, #tpu.memory_space<vmem>>, vector<1x1056xf32>
    %2 = vector.broadcast %1 : vector<1x1056xf32> to vector<264x1056xf32>
    %3 = arith.mulf %0, %2 : vector<264x1056xf32>
    %c0_3 = arith.constant 0 : index
    %c0_4 = arith.constant 0 : index
    %4 = vector.load %arg3[%c0_3, %c0_4] : memref<1056x784xf32, #tpu.memory_space<vmem>>, vector<1056x784xf32>
    %cst = arith.constant dense<0.000000e+00> : vector<264x784xf32>
    %5 = tpu.matmul %3, %4, %cst {dimension_numbers = #tpu.dot_dimension_numbers<[1], [0], [0], [1], [0, 0, 1, 1], [], []>} : vector<264x1056xf32>, vector<1056x784xf32>, vector<264x784xf32> -> vector<264x784xf32>
    %c0_5 = arith.constant 0 : index
    %c0_6 = arith.constant 0 : index
    %6 = vector.load %arg4[%c0_5, %c0_6] : memref<264x784xf32, #tpu.memory_space<vmem>>, vector<264x784xf32>
    tpu.vector_store %arg4[%c0_5, %c0_6], %5 {strides = array<i32>} : memref<264x784xf32, #tpu.memory_space<vmem>>, vector<264x784xf32>,
    return
  }
  func.func @transform_0(%arg0: i32) -> (i32, i32) {
    %c0_i32 = arith.constant 0 : i32
    %c0_i32_0 = arith.constant 0 : i32
    %c0_i32_1 = arith.constant 0 : i32
    return %c0_i32, %c0_i32_0 : i32, i32
  }
  func.func @transform_1(%arg0: i32) -> (i32, i32) {
    %c0_i32 = arith.constant 0 : i32
    %c0_i32_0 = arith.constant 0 : i32
    return %arg0, %c0_i32 : i32, i32
  }
  func.func @transform_2(%arg0: i32) -> (i32, i32) {
    %c0_i32 = arith.constant 0 : i32
    %c0_i32_0 = arith.constant 0 : i32
    %c0_i32_1 = arith.constant 0 : i32
    return %c0_i32, %c0_i32_0 : i32, i32
  }
  func.func @transform_3(%arg0: i32) -> (i32, i32) {
    %c0_i32 = arith.constant 0 : i32
    %c0_i32_0 = arith.constant 0 : i32
    return %arg0, %c0_i32 : i32, i32
  }
}

</mosaic_0001>

<bundles_post_ra>
// kernel: se_module_forward.2
= control target key start
LH: loop header
LB: loop body
LE: loop exit
PB: predicated region body
PF: predicated region fallthrough
CT: control target
= control target key end

     0   :  { %v3358_v3 = vmov 0.0   ;;  %v421_v20 = vlaneseq  ;;  %vm481_vm0 = vcmask 261120   ;;  %vm3360_vm1 = vmmov 0   ;;  %s5647_s1 = inlined_call_operand.vmem [shape: f32[1056,264], index: 1, kind: input, shape index: {}]   ;;  %s5648_s0 = inlined_call_operand.vmem [shape: f32[1,1056], index: 0, kind: input, shape index: {}]   ;;  %s5649_s3 = inlined_call_operand.vmem [shape: f32[264,1056], index: 3, kind: input, shape index: {}]   ;;  %s5650_s2 = inlined_call_operand.vmem [shape: f32[1,264], index: 2, kind: input, shape index: {}]   ;;  %s5651_s4 = inlined_call_operand.vmem [shape: f32[1,1056], index: 4, kind: input, shape index: {}]   ;;  %s5652_s5 = inlined_call_operand.vmem [shape: f32[1,1056], index: 5, kind: output, shape index: {}]  }
   0x1   :  { %v23_v0 = vld [vmem:[%s5647_s1 + $0x8] sm:$0xff]  ;;  %v26_v1 = vld [vmem:[%s5647_s1 + $0x20] sm:$0xff]  ;;  %832 = vmatprep.mubr.f32.mxu1 %v3358_v3  ;;  %v25_v5 = vld [vmem:[%s5647_s1 + $0x18] sm:$0xff]  ;;  %vm1538_vm2 = vcmask 64512  }
   0x2   :  { %v22_v2 = vld [vmem:[%s5647_s1] sm:$0xff]  ;;  %v2604_v4 = vpack.c.bf16 %v26_v1, %v23_v0  ;;  %v29_v6 = vld [vmem:[%s5647_s1 + $0x38] sm:$0xff]  ;;  %v32_v7 = vld [vmem:[%s5647_s1 + $0x50] sm:$0xff]  ;;  %v3451_v28 = vshrl.u32 %v421_v20, 7  ;;  %vm2381_vm3 = vcmp.lt.s32.totalorder %v421_v20, 32 }
   0x3   :  { %v2606_v8 = vpack.c.bf16 %v25_v5, %v22_v2  ;;  %v2608_v9 = vpack.c.bf16 %v32_v7, %v29_v6  ;;  %v28_v10 = vld [vmem:[%s5647_s1 + $0x30] sm:$0xff]  ;;  %v31_v11 = vld [vmem:[%s5647_s1 + $0x48] sm:$0xff]  ;;  %v38_v13 = vld [vmem:[%s5647_s1 + $0x80] sm:$0xff] }
   0x4   :  { %v35_v12 = vld [vmem:[%s5647_s1 + $0x68] sm:$0xff]  ;;  %2605 = vmatprep.subr.bf16.mxu0 %v2604_v4  ;;  %v2610_v14 = vpack.c.bf16 %v31_v11, %v28_v10  ;;  %v34_v16 = vld [vmem:[%s5647_s1 + $0x60] sm:$0xff]  ;;  %v37_v17 = vld [vmem:[%s5647_s1 + $0x78] sm:$0xff]  ;;  %v3484_v44 = vsub.s32 1, %v3451_v28 }
   0x5   :  { %2607 = vmatpush1.bf16.msra.mxu0 %v2606_v8  ;;  %v2612_v15 = vpack.c.bf16 %v38_v13, %v35_v12  ;;  %v41_v18 = vld [vmem:[%s5647_s1 + $0x98] sm:$0xff]  ;;  %v44_v19 = vld [vmem:[%s5647_s1 + $0xb0] sm:$0xff]  ;;  %v2614_v21 = vpack.c.bf16 %v37_v17, %v34_v16  ;;  %v43_v24 = vld [vmem:[%s5647_s1 + $0xa8] sm:$0xff] }
   0x6   :  { %2609 = vmatprep.subr.bf16.mxu0 %v2608_v9  ;;  %v2616_v22 = vpack.c.bf16 %v44_v19, %v41_v18  ;;  %v40_v23 = vld [vmem:[%s5647_s1 + $0x90] sm:$0xff]  ;;  %v47_v25 = vld [vmem:[%s5647_s1 + $0xc8] sm:$0xff]  ;;  %v50_v26 = vld [vmem:[%s5647_s1 + $0xe0] sm:$0xff] }
   0x7   :  { %v407_v27 = vld [vmem:[%s5647_s1 + $0xc08] sm:$0xff]  ;;  %v410_v29 = vld [vmem:[%s5647_s1 + $0xc20] sm:$0xff]  ;;  %v2618_v30 = vpack.c.bf16 %v43_v24, %v40_v23  ;;  %v409_v34 = vld [vmem:[%s5647_s1 + $0xc18] sm:$0xff]  ;;  %v2620_v35 = vpack.c.bf16 %v50_v26, %v47_v25 }
   0x8   :  { %v46_v31 = vld [vmem:[%s5647_s1 + $0xc0] sm:$0xff]  ;;  %v2860_v32 = vpack.c.bf16 %v410_v29, %v407_v27  ;;  %v49_v36 = vld [vmem:[%s5647_s1 + $0xd8] sm:$0xff]  ;;  %v416_v39 = vld [vmem:[%s5647_s1 + $0xc50] sm:$0xff] }
   0x9   :  { %2611 = vmatpush1.bf16.msra.mxu0 %v2610_v14  ;;  %v406_v33 = vld [vmem:[%s5647_s1 + $0xc00] sm:$0xff]  ;;  %v413_v38 = vld [vmem:[%s5647_s1 + $0xc38] sm:$0xff]  ;;  %v56_v41 = vld [vmem:[%s5647_s1 + $0x110] sm:$0xff]  ;;  %v2622_v46 = vpack.c.bf16 %v49_v36, %v46_v31 }
   0xa   :  { %2613 = vmatprep.subr.bf16.mxu0 %v2612_v15  ;;  %v2862_v37 = vpack.c.bf16 %v409_v34, %v406_v33  ;;  %v53_v40 = vld [vmem:[%s5647_s1 + $0xf8] sm:$0xff]  ;;  %2861 = vmatprep.subr.bf16.mxu1 %v2860_v32  ;;  %v2864_v42 = vpack.c.bf16 %v416_v39, %v413_v38  ;;  %v412_v43 = vld [vmem:[%s5647_s1 + $0xc30] sm:$0xff]  ;;  %v415_v45 = vld [vmem:[%s5647_s1 + $0xc48] sm:$0xff] }
   0xb   :  { %v52_v47 = vld [vmem:[%s5647_s1 + $0xf0] sm:$0xff]  ;;  %v2866_v48 = vpack.c.bf16 %v415_v45, %v412_v43  ;;  %v75_v50 = vld [vmem:[%s5647_s1 + $0x1a8] sm:$0xff]  ;;  %v2624_v51 = vpack.c.bf16 %v56_v41, %v53_v40  ;;  %v3507_v55 = vld [vmem:[%s5648_s0] sm:$0xff] }
   0xc   :  { %2863 = vmatpush1.bf16.msra.mxu1 %v2862_v37  ;;  %v72_v49 = vld [vmem:[%s5647_s1 + $0x190] sm:$0xff]  ;;  %v55_v52 = vld [vmem:[%s5647_s1 + $0x108] sm:$0xff]  ;;  %v62_v56 = vld [vmem:[%s5647_s1 + $0x140] sm:$0xff]  ;;  %v428_v59 = vrot.slane %v3507_v55, %v3484_v44 }
   0xd   :  { %2615 = vmatpush1.bf16.msra.mxu0 %v2614_v21  ;;  %2865 = vmatprep.subr.bf16.mxu1 %v2864_v42  ;;  %v59_v53 = vld [vmem:[%s5647_s1 + $0x128] sm:$0xff]  ;;  %v2868_v54 = vpack.c.bf16 %v75_v50, %v72_v49  ;;  %v24_v57 = vld [vmem:[%s5647_s1 + $0x10] sm:$0xff]  ;;  %v78_v62 = vld [vmem:[%s5647_s1 + $0x1c0] sm:$0xff]  ;;  %v2626_v0 = vpack.c.bf16 %v55_v52, %v52_v47 }
   0xe   :  { %2617 = vmatprep.subr.bf16.mxu0 %v2616_v22  ;;  %v27_v58 = vld [vmem:[%s5647_s1 + $0x28] sm:$0xff]  ;;  %v81_v63 = vld [vmem:[%s5647_s1 + $0x1d8] sm:$0xff]  ;;  %v58_v1 = vld [vmem:[%s5647_s1 + $0x120] sm:$0xff]  ;;  %v2628_v5 = vpack.c.bf16 %v62_v56, %v59_v53  ;;  %548 = vmatprep.mubr.f32.mxu0 %v428_v59 }
   0xf   :  { %v2388_v60 = vld [vmem:[%s5648_s0 + $0x8] ss:$0 sm:$0xff]  ;;  %v2870_v61 = vpack.c.bf16 %v27_v58, %v24_v57  ;;  %v2872_v2 = vpack.c.bf16 %v81_v63, %v78_v62  ;;  %v30_v4 = vld [vmem:[%s5647_s1 + $0x40] sm:$0xff]  ;;  %v61_v6 = vld [vmem:[%s5647_s1 + $0x138] sm:$0xff] }
  0x10   :  { %2867 = vmatpush1.bf16.msra.mxu1 %v2866_v48  ;;  %v65_v7 = vld [vmem:[%s5647_s1 + $0x158] sm:$0xff]  ;;  %v68_v9 = vld [vmem:[%s5647_s1 + $0x170] sm:$0xff]  ;;  %v87_v11 = vld [vmem:[%s5647_s1 + $0x208] sm:$0xff]  ;;  %v2630_v13 = vpack.c.bf16 %v61_v6, %v58_v1 }
  0x11   :  { %2619 = vmatpush1.bf16.msra.mxu0 %v2618_v30  ;;  %2869 = vmatprep.subr.bf16.mxu1 %v2868_v54  ;;  %v33_v8 = vld [vmem:[%s5647_s1 + $0x58] sm:$0xff]  ;;  %v84_v10 = vld [vmem:[%s5647_s1 + $0x1f0] sm:$0xff]  ;;  %v39_v17 = vld [vmem:[%s5647_s1 + $0x88] sm:$0xff]  ;;  %v2632_v18 = vpack.c.bf16 %v68_v9, %v65_v7 }
  0x12   :  { %2621 = vmatprep.subr.bf16.mxu0 %v2620_v35  ;;  %v2874_v12 = vpack.c.bf16 %v33_v8, %v30_v4  ;;  %v64_v14 = vld [vmem:[%s5647_s1 + $0x150] sm:$0xff]  ;;  %v2876_v15 = vpack.c.bf16 %v87_v11, %v84_v10  ;;  %v67_v19 = vld [vmem:[%s5647_s1 + $0x168] sm:$0xff]  ;;  %v90_v21 = vld [vmem:[%s5647_s1 + $0x220] sm:$0xff] }
  0x13   :  { %2389 = vmatmul.mubr.msk.f32.vlgmr.msra.gmra.mrb[0].mxu1 %vm481_vm0, %v2388_v60  ;;  %v36_v16 = vld [vmem:[%s5647_s1 + $0x70] sm:$0xff]  ;;  %v93_v22 = vld [vmem:[%s5647_s1 + $0x238] sm:$0xff]  ;;  %v71_v23 = vld [vmem:[%s5647_s1 + $0x188] sm:$0xff]  ;;  %v2634_v26 = vpack.c.bf16 %v67_v19, %v64_v14 }
  0x14   :  { %2871 = vmatpush3.bf16.msra.mxu1 %v2870_v61  ;;  %903 = vmatprep.mubr.f32.mxu1 %v428_v59  ;;  %v74_v24 = vld [vmem:[%s5647_s1 + $0x1a0] sm:$0xff]  ;;  %v2878_v25 = vpack.c.bf16 %v39_v17, %v36_v16  ;;  %v2880_v29 = vpack.c.bf16 %v93_v22, %v90_v21  ;;  %v45_v31 = vld [vmem:[%s5647_s1 + $0xb8] sm:$0xff]  ;;  %v96_v34 = vld [vmem:[%s5647_s1 + $0x250] sm:$0xff] }
  0x15   :  { %2623 = vmatpush1.bf16.msra.mxu0 %v2622_v46  ;;  %2873 = vmatprep.subr.bf16.mxu1 %v2872_v2  ;;  %v70_v27 = vld [vmem:[%s5647_s1 + $0x180] sm:$0xff]  ;;  %v2636_v32 = vpack.c.bf16 %v74_v24, %v71_v23  ;;  %v73_v33 = vld [vmem:[%s5647_s1 + $0x198] sm:$0xff]  ;;  %v99_v35 = vld [vmem:[%s5647_s1 + $0x268] sm:$0xff] }
  0x16   :  { %2625 = vmatprep.subr.bf16.mxu0 %v2624_v51  ;;  %v42_v30 = vld [vmem:[%s5647_s1 + $0xa0] sm:$0xff]  ;;  %v77_v36 = vld [vmem:[%s5647_s1 + $0x1b8] sm:$0xff]  ;;  %v80_v37 = vld [vmem:[%s5647_s1 + $0x1d0] sm:$0xff]  ;;  %v2638_v39 = vpack.c.bf16 %v73_v33, %v70_v27  ;;  %v2884_v41 = vpack.c.bf16 %v99_v35, %v96_v34  ;;  %v435_v27 = vsub.s32 3, %v3451_v28 }
  0x17   :  { %v2882_v38 = vpack.c.bf16 %v45_v31, %v42_v30  ;;  %v76_v40 = vld [vmem:[%s5647_s1 + $0x1b0] sm:$0xff]  ;;  %v51_v43 = vld [vmem:[%s5647_s1 + $0xe8] sm:$0xff]  ;;  %v2640_v45 = vpack.c.bf16 %v80_v37, %v77_v36  ;;  %v102_v47 = vld [vmem:[%s5647_s1 + $0x280] sm:$0xff]  ;;  %v3703_v31 = vsub.s32 0, %v3451_v28 }
  0x18   :  { %2875 = vmatpush3.bf16.msra.mxu1 %v2874_v12  ;;  %v48_v42 = vld [vmem:[%s5647_s1 + $0xd0] sm:$0xff]  ;;  %v79_v46 = vld [vmem:[%s5647_s1 + $0x1c8] sm:$0xff]  ;;  %v105_v48 = vld [vmem:[%s5647_s1 + $0x298] sm:$0xff] }
  0x19   :  { %2627 = vmatpush1.bf16.msra.mxu0 %v2626_v0  ;;  %2877 = vmatprep.subr.bf16.mxu1 %v2876_v15  ;;  %v83_v49 = vld [vmem:[%s5647_s1 + $0x1e8] sm:$0xff]  ;;  %v86_v50 = vld [vmem:[%s5647_s1 + $0x200] sm:$0xff]  ;;  %v2886_v51 = vpack.c.bf16 %v51_v43, %v48_v42  ;;  %v2642_v52 = vpack.c.bf16 %v79_v46, %v76_v40  ;;  %v2888_v54 = vpack.c.bf16 %v105_v48, %v102_v47  ;;  %v57_v57 = vld [vmem:[%s5647_s1 + $0x118] sm:$0xff] }
  0x1a   :  { %2629 = vmatprep.subr.bf16.mxu0 %v2628_v5  ;;  %v82_v53 = vld [vmem:[%s5647_s1 + $0x1e0] sm:$0xff]  ;;  %v2644_v58 = vpack.c.bf16 %v86_v50, %v83_v49  ;;  %v85_v59 = vld [vmem:[%s5647_s1 + $0x1f8] sm:$0xff]  ;;  %v108_v60 = vld [vmem:[%s5647_s1 + $0x2b0] sm:$0xff]  ;;  %v3729_v42 = vrot.slane %v3507_v55, %v435_v27  ;;  %v424_v46 = vrot.slane %v3507_v55, %v3703_v31 }
  0x1b   :  { %v54_v56 = vld [vmem:[%s5647_s1 + $0x100] sm:$0xff]  ;;  %v111_v61 = vld [vmem:[%s5647_s1 + $0x2c8] sm:$0xff]  ;;  %v89_v62 = vld [vmem:[%s5647_s1 + $0x218] sm:$0xff]  ;;  %v2646_v1 = vpack.c.bf16 %v85_v59, %v82_v53 }
  0x1c   :  { %2879 = vmatpush3.bf16.msra.mxu1 %v2878_v25  ;;  %v92_v63 = vld [vmem:[%s5647_s1 + $0x230] sm:$0xff]  ;;  %v2890_v0 = vpack.c.bf16 %v57_v57, %v54_v56  ;;  %v2892_v4 = vpack.c.bf16 %v111_v61, %v108_v60  ;;  %v63_v6 = vld [vmem:[%s5647_s1 + $0x148] sm:$0xff]  ;;  %v114_v9 = vld [vmem:[%s5647_s1 + $0x2e0] sm:$0xff] }
  0x1d   :  { %2631 = vmatpush1.bf16.msra.mxu0 %v2630_v13  ;;  %2881 = vmatprep.subr.bf16.mxu1 %v2880_v29  ;;  %v88_v2 = vld [vmem:[%s5647_s1 + $0x210] sm:$0xff]  ;;  %v2648_v7 = vpack.c.bf16 %v92_v63, %v89_v62  ;;  %v91_v8 = vld [vmem:[%s5647_s1 + $0x228] sm:$0xff]  ;;  %v117_v10 = vld [vmem:[%s5647_s1 + $0x2f8] sm:$0xff] }
  0x1e   :  { %2633 = vmatprep.subr.bf16.mxu0 %v2632_v18  ;;  %v60_v5 = vld [vmem:[%s5647_s1 + $0x130] sm:$0xff]  ;;  %v95_v11 = vld [vmem:[%s5647_s1 + $0x248] sm:$0xff]  ;;  %v98_v12 = vld [vmem:[%s5647_s1 + $0x260] sm:$0xff]  ;;  %v2650_v14 = vpack.c.bf16 %v91_v8, %v88_v2  ;;  %v2896_v16 = vpack.c.bf16 %v117_v10, %v114_v9 }
  0x1f   :  { %v2894_v13 = vpack.c.bf16 %v63_v6, %v60_v5  ;;  %v94_v15 = vld [vmem:[%s5647_s1 + $0x240] sm:$0xff]  ;;  %v69_v18 = vld [vmem:[%s5647_s1 + $0x178] sm:$0xff]  ;;  %v2652_v19 = vpack.c.bf16 %v98_v12, %v95_v11  ;;  %v168_v22 = vld [vmem:[%s5647_s1 + $0x490] sm:$0xff] }
  0x20   :  { %2883 = vmatpush3.bf16.msra.mxu1 %v2882_v38  ;;  %v66_v17 = vld [vmem:[%s5647_s1 + $0x160] sm:$0xff]  ;;  %v97_v21 = vld [vmem:[%s5647_s1 + $0x258] sm:$0xff]  ;;  %v171_v23 = vld [vmem:[%s5647_s1 + $0x4a8] sm:$0xff] }
  0x21   :  { %2635 = vmatpush1.bf16.msra.mxu0 %v2634_v26  ;;  %2885 = vmatprep.subr.bf16.mxu1 %v2884_v41  ;;  %v101_v24 = vld [vmem:[%s5647_s1 + $0x278] sm:$0xff]  ;;  %v104_v25 = vld [vmem:[%s5647_s1 + $0x290] sm:$0xff]  ;;  %v2898_v26 = vpack.c.bf16 %v69_v18, %v66_v17  ;;  %v2654_v29 = vpack.c.bf16 %v97_v21, %v94_v15  ;;  %v123_v34 = vld [vmem:[%s5647_s1 + $0x328] sm:$0xff] }
  0x22   :  { %2637 = vmatprep.subr.bf16.mxu0 %v2636_v32  ;;  %v100_v30 = vld [vmem:[%s5647_s1 + $0x270] sm:$0xff]  ;;  %v2900_v32 = vpack.c.bf16 %v171_v23, %v168_v22  ;;  %v2656_v35 = vpack.c.bf16 %v104_v25, %v101_v24  ;;  %v103_v36 = vld [vmem:[%s5647_s1 + $0x288] sm:$0xff]  ;;  %v174_v37 = vld [vmem:[%s5647_s1 + $0x4c0] sm:$0xff] }
  0x23   :  { %v120_v33 = vld [vmem:[%s5647_s1 + $0x310] sm:$0xff]  ;;  %v177_v38 = vld [vmem:[%s5647_s1 + $0x4d8] sm:$0xff]  ;;  %v110_v40 = vld [vmem:[%s5647_s1 + $0x2c0] sm:$0xff]  ;;  %v2658_v43 = vpack.c.bf16 %v103_v36, %v100_v30 }
  0x24   :  { %2887 = vmatpush3.bf16.msra.mxu1 %v2886_v51  ;;  %v2902_v41 = vpack.c.bf16 %v123_v34, %v120_v33  ;;  %v2904_v47 = vpack.c.bf16 %v177_v38, %v174_v37  ;;  %v126_v48 = vld [vmem:[%s5647_s1 + $0x340] sm:$0xff]  ;;  %v129_v49 = vld [vmem:[%s5647_s1 + $0x358] sm:$0xff]  ;;  %v183_v53 = vld [vmem:[%s5647_s1 + $0x508] sm:$0xff] }
  0x25   :  { %2639 = vmatpush1.bf16.msra.mxu0 %v2638_v39  ;;  %2889 = vmatprep.subr.bf16.mxu1 %v2888_v54  ;;  %v107_v39 = vld [vmem:[%s5647_s1 + $0x2a8] sm:$0xff]  ;;  %v109_v51 = vld [vmem:[%s5647_s1 + $0x2b8] sm:$0xff]  ;;  %v116_v56 = vld [vmem:[%s5647_s1 + $0x2f0] sm:$0xff]  ;;  %v2906_v57 = vpack.c.bf16 %v129_v49, %v126_v48 }
  0x26   :  { %2641 = vmatprep.subr.bf16.mxu0 %v2640_v45  ;;  %v106_v45 = vld [vmem:[%s5647_s1 + $0x2a0] sm:$0xff]  ;;  %v2660_v50 = vpack.c.bf16 %v110_v40, %v107_v39  ;;  %v113_v54 = vld [vmem:[%s5647_s1 + $0x2d8] sm:$0xff]  ;;  %v112_v59 = vld [vmem:[%s5647_s1 + $0x2d0] sm:$0xff] }
  0x27   :  { %v132_v61 = vld [vmem:[%s5647_s1 + $0x370] sm:$0xff]  ;;  %v135_v62 = vld [vmem:[%s5647_s1 + $0x388] sm:$0xff]  ;;  %v2664_v63 = vpack.c.bf16 %v116_v56, %v113_v54  ;;  %v189_v2 = vld [vmem:[%s5647_s1 + $0x538] sm:$0xff] }
  0x28   :  { %2891 = vmatpush3.bf16.msra.mxu1 %v2890_v0  ;;  %v115_v0 = vld [vmem:[%s5647_s1 + $0x2e8] sm:$0xff]  ;;  %v122_v5 = vld [vmem:[%s5647_s1 + $0x320] sm:$0xff]  ;;  %v2910_v6 = vpack.c.bf16 %v135_v62, %v132_v61  ;;  %v141_v11 = vld [vmem:[%s5647_s1 + $0x3b8] sm:$0xff] }
  0x29   :  { %2643 = vmatpush1.bf16.msra.mxu0 %v2642_v52  ;;  %2893 = vmatprep.subr.bf16.mxu1 %v2892_v4  ;;  %v180_v52 = vld [vmem:[%s5647_s1 + $0x4f0] sm:$0xff]  ;;  %v119_v4 = vld [vmem:[%s5647_s1 + $0x308] sm:$0xff]  ;;  %v118_v8 = vld [vmem:[%s5647_s1 + $0x300] sm:$0xff] }
  0x2a   :  { %2645 = vmatprep.subr.bf16.mxu0 %v2644_v58  ;;  %v2662_v58 = vpack.c.bf16 %v109_v51, %v106_v45  ;;  %v2908_v60 = vpack.c.bf16 %v183_v53, %v180_v52  ;;  %v138_v10 = vld [vmem:[%s5647_s1 + $0x3a0] sm:$0xff]  ;;  %v2668_v12 = vpack.c.bf16 %v122_v5, %v119_v4  ;;  %v195_v15 = vld [vmem:[%s5647_s1 + $0x568] sm:$0xff]  ;;  %v128_v17 = vld [vmem:[%s5647_s1 + $0x350] sm:$0xff] }
  0x2b   :  { %v2914_v18 = vpack.c.bf16 %v141_v11, %v138_v10  ;;  %v124_v21 = vld [vmem:[%s5647_s1 + $0x330] sm:$0xff]  ;;  %v147_v24 = vld [vmem:[%s5647_s1 + $0x3e8] sm:$0xff]  ;;  %v201_v30 = vld [vmem:[%s5647_s1 + $0x598] sm:$0xff]  ;;  %v443_v11 = vsub.s32 5, %v3451_v28 }
  0x2c   :  { %2895 = vmatpush3.bf16.msra.mxu1 %v2894_v13  ;;  %v121_v13 = vld [vmem:[%s5647_s1 + $0x318] sm:$0xff]  ;;  %v144_v23 = vld [vmem:[%s5647_s1 + $0x3d0] sm:$0xff]  ;;  %v134_v33 = vld [vmem:[%s5647_s1 + $0x380] sm:$0xff] }
  0x2d   :  { %2647 = vmatpush1.bf16.msra.mxu0 %v2646_v1  ;;  %2897 = vmatprep.subr.bf16.mxu1 %v2896_v16  ;;  %v186_v1 = vld [vmem:[%s5647_s1 + $0x520] sm:$0xff]  ;;  %v125_v16 = vld [vmem:[%s5647_s1 + $0x338] sm:$0xff]  ;;  %v2918_v34 = vpack.c.bf16 %v147_v24, %v144_v23  ;;  %v207_v45 = vld [vmem:[%s5647_s1 + $0x5c8] sm:$0xff] }
  0x2e   :  { %2649 = vmatprep.subr.bf16.mxu0 %v2648_v7  ;;  %v2666_v7 = vpack.c.bf16 %v115_v0, %v112_v59  ;;  %v2912_v9 = vpack.c.bf16 %v189_v2, %v186_v1  ;;  %v2672_v25 = vpack.c.bf16 %v128_v17, %v125_v16  ;;  %v130_v36 = vld [vmem:[%s5647_s1 + $0x360] sm:$0xff]  ;;  %v153_v39 = vld [vmem:[%s5647_s1 + $0x418] sm:$0xff]  ;;  %v159_v52 = vld [vmem:[%s5647_s1 + $0x448] sm:$0xff] }
  0x2f   :  { %v150_v38 = vld [vmem:[%s5647_s1 + $0x400] sm:$0xff]  ;;  %v139_v54 = vld [vmem:[%s5647_s1 + $0x3a8] sm:$0xff]  ;;  %v165_v1 = vld [vmem:[%s5647_s1 + $0x478] sm:$0xff] }
  0x30   :  { %2899 = vmatpush3.bf16.msra.mxu1 %v2898_v26  ;;  %v127_v26 = vld [vmem:[%s5647_s1 + $0x348] sm:$0xff]  ;;  %v2922_v48 = vpack.c.bf16 %v153_v39, %v150_v38  ;;  %v210_v56 = vld [vmem:[%s5647_s1 + $0x5e0] sm:$0xff]  ;;  %v145_v4 = vld [vmem:[%s5647_s1 + $0x3d8] sm:$0xff] }
  0x31   :  { %2651 = vmatpush1.bf16.msra.mxu0 %v2650_v14  ;;  %2901 = vmatprep.subr.bf16.mxu1 %v2900_v32  ;;  %v192_v14 = vld [vmem:[%s5647_s1 + $0x550] sm:$0xff]  ;;  %v131_v32 = vld [vmem:[%s5647_s1 + $0x368] sm:$0xff]  ;;  %v146_v59 = vld [vmem:[%s5647_s1 + $0x3e0] sm:$0xff] }
  0x32   :  { %2653 = vmatprep.subr.bf16.mxu0 %v2652_v19  ;;  %v2670_v19 = vpack.c.bf16 %v121_v13, %v118_v8  ;;  %v2916_v22 = vpack.c.bf16 %v195_v15, %v192_v14  ;;  %v2676_v40 = vpack.c.bf16 %v134_v33, %v131_v32  ;;  %v142_v62 = vld [vmem:[%s5647_s1 + $0x3c0] sm:$0xff]  ;;  %v264_v5 = vld [vmem:[%s5647_s1 + $0x790] sm:$0xff]  ;;  %v219_v16 = vld [vmem:[%s5647_s1 + $0x628] sm:$0xff] }
  0x33   :  { %904 = vmatmul.mubr.f32.vlgmr.msra.gmra.mrb[2].mxu1 %v424_v46  ;;  %v162_v0 = vld [vmem:[%s5647_s1 + $0x460] sm:$0xff]  ;;  %v152_v8 = vld [vmem:[%s5647_s1 + $0x410] sm:$0xff]  ;;  %v279_v38 = vld [vmem:[%s5647_s1 + $0x808] sm:$0xff] }
  0x34   :  { %2903 = vmatpush3.bf16.msra.mxu1 %v2902_v41  ;;  %973 = vmatprep.mubr.f32.mxu1 %v3729_v42  ;;  %v133_v41 = vld [vmem:[%s5647_s1 + $0x378] sm:$0xff]  ;;  %v2930_v10 = vpack.c.bf16 %v165_v1, %v162_v0  ;;  %v148_v13 = vld [vmem:[%s5647_s1 + $0x3f0] sm:$0xff]  ;;  %v158_v23 = vld [vmem:[%s5647_s1 + $0x440] sm:$0xff] }
  0x35   :  { %2655 = vmatpush1.bf16.msra.mxu0 %v2654_v29  ;;  %2905 = vmatprep.subr.bf16.mxu1 %v2904_v47  ;;  %v198_v29 = vld [vmem:[%s5647_s1 + $0x580] sm:$0xff]  ;;  %v140_v47 = vld [vmem:[%s5647_s1 + $0x3b0] sm:$0xff]  ;;  %v2678_v49 = vpack.c.bf16 %v133_v41, %v130_v36  ;;  %v157_v36 = vld [vmem:[%s5647_s1 + $0x438] sm:$0xff] }
  0x36   :  { %2657 = vmatprep.subr.bf16.mxu0 %v2656_v35  ;;  %v2674_v35 = vpack.c.bf16 %v127_v26, %v124_v21  ;;  %v2920_v37 = vpack.c.bf16 %v201_v30, %v198_v29  ;;  %v216_v15 = vld [vmem:[%s5647_s1 + $0x610] sm:$0xff]  ;;  %v273_v21 = vld [vmem:[%s5647_s1 + $0x7d8] sm:$0xff]  ;;  %v3938_v26 = vrot.slane %v3507_v55, %v443_v11  ;;  %v154_v30 = vld [vmem:[%s5647_s1 + $0x420] sm:$0xff] }
  0x37   :  { %v222_v33 = vld [vmem:[%s5647_s1 + $0x640] sm:$0xff]  ;;  %v161_v39 = vld [vmem:[%s5647_s1 + $0x458] sm:$0xff]  ;;  %v291_v0 = vld [vmem:[%s5647_s1 + $0x868] sm:$0xff] }
  0x38   :  { %2907 = vmatpush3.bf16.msra.mxu1 %v2906_v57  ;;  %v213_v57 = vld [vmem:[%s5647_s1 + $0x5f8] sm:$0xff] }
  0x39   :  { %2659 = vmatpush1.bf16.msra.mxu0 %v2658_v43  ;;  %2909 = vmatprep.subr.bf16.mxu1 %v2908_v60  ;;  %v204_v43 = vld [vmem:[%s5647_s1 + $0x5b0] sm:$0xff]  ;;  %v173_v1 = vld [vmem:[%s5647_s1 + $0x4b8] sm:$0xff] }
  0x3a   :  { %2661 = vmatprep.subr.bf16.mxu0 %v2660_v50  ;;  %v136_v50 = vld [vmem:[%s5647_s1 + $0x390] sm:$0xff]  ;;  %v2924_v51 = vpack.c.bf16 %v207_v45, %v204_v43  ;;  %v2694_v43 = vpack.c.bf16 %v157_v36, %v154_v30  ;;  %v181_v30 = vld [vmem:[%s5647_s1 + $0x4f8] sm:$0xff] }
  0x3b   :  { %v2682_v61 = vpack.c.bf16 %v139_v54, %v136_v50  ;;  %v160_v45 = vld [vmem:[%s5647_s1 + $0x450] sm:$0xff]  ;;  %v163_v50 = vld [vmem:[%s5647_s1 + $0x468] sm:$0xff] }
  0x3c   :  { %2911 = vmatpush3.bf16.msra.mxu1 %v2910_v6  ;;  %v267_v6 = vld [vmem:[%s5647_s1 + $0x7a8] sm:$0xff] }
  0x3d   :  { %2663 = vmatpush1.bf16.msra.mxu0 %v2662_v58  ;;  %2913 = vmatprep.subr.bf16.mxu1 %v2912_v9  ;;  %v143_v58 = vld [vmem:[%s5647_s1 + $0x3c8] sm:$0xff]  ;;  %v3904_v9 = vsub.s32 2, %v3451_v28  ;;  %v2932_v14 = vpack.c.bf16 %v267_v6, %v264_v5  ;;  %v172_v6 = vld [vmem:[%s5647_s1 + $0x4b0] sm:$0xff] }
  0x3e   :  { %2665 = vmatprep.subr.bf16.mxu0 %v2664_v63  ;;  %v2928_v63 = vpack.c.bf16 %v213_v57, %v210_v56  ;;  %v2684_v2 = vpack.c.bf16 %v146_v59, %v143_v58  ;;  %v2698_v56 = vpack.c.bf16 %v163_v50, %v160_v45  ;;  %v166_v57 = vld [vmem:[%s5647_s1 + $0x480] sm:$0xff]  ;;  %v187_v45 = vld [vmem:[%s5647_s1 + $0x528] sm:$0xff] }
  0x3f   :  { %v3933_v24 = vrot.slane %v3507_v55, %v3904_v9  ;;  %v234_v59 = vld [vmem:[%s5647_s1 + $0x6a0] sm:$0xff] }
  0x40   :  { %2915 = vmatpush3.bf16.msra.mxu1 %v2914_v18  ;;  %v151_v18 = vld [vmem:[%s5647_s1 + $0x408] sm:$0xff] }
  0x41   :  { %2667 = vmatpush1.bf16.msra.mxu0 %v2666_v7  ;;  %2917 = vmatprep.subr.bf16.mxu1 %v2916_v22  ;;  %v149_v7 = vld [vmem:[%s5647_s1 + $0x3f8] sm:$0xff]  ;;  %v155_v22 = vld [vmem:[%s5647_s1 + $0x428] sm:$0xff]  ;;  %v2690_v29 = vpack.c.bf16 %v151_v18, %v148_v13 }
  0x42   :  { %2669 = vmatprep.subr.bf16.mxu0 %v2668_v12  ;;  %v2686_v12 = vpack.c.bf16 %v145_v4, %v142_v62  ;;  %v2688_v17 = vpack.c.bf16 %v152_v8, %v149_v7  ;;  %v169_v62 = vld [vmem:[%s5647_s1 + $0x498] sm:$0xff]  ;;  %v240_v8 = vld [vmem:[%s5647_s1 + $0x6d0] sm:$0xff]  ;;  %v175_v13 = vld [vmem:[%s5647_s1 + $0x4c8] sm:$0xff] }
  0x43   :  { %v2702_v5 = vpack.c.bf16 %v169_v62, %v166_v57  ;;  %v193_v57 = vld [vmem:[%s5647_s1 + $0x558] sm:$0xff]  ;;  %v439_v62 = vsub.s32 4, %v3451_v28 }
  0x44   :  { %549 = vmatmul.mubr.f32.vlgmr.msra.gmra.mrb[0].mxu0 %v424_v46  ;;  %v137_v46 = vld [vmem:[%s5647_s1 + $0x398] sm:$0xff]  ;;  %2919 = vmatpush3.bf16.msra.mxu1 %v2918_v34 }
  0x45   :  { %2671 = vmatpush1.bf16.msra.mxu0 %v2670_v19  ;;  %619 = vmatprep.mubr.f32.mxu0 %v3729_v42  ;;  %v156_v42 = vld [vmem:[%s5647_s1 + $0x430] sm:$0xff]  ;;  %v2680_v53 = vpack.c.bf16 %v140_v47, %v137_v46  ;;  %v270_v19 = vld [vmem:[%s5647_s1 + $0x7c0] sm:$0xff]  ;;  %v225_v34 = vld [vmem:[%s5647_s1 + $0x658] sm:$0xff] }
  0x46   :  { %2673 = vmatprep.subr.bf16.mxu0 %v2672_v25  ;;  %2921 = vmatprep.subr.bf16.mxu1 %v2920_v37  ;;  %v2926_v60 = vpack.c.bf16 %v159_v52, %v156_v42  ;;  %v2934_v25 = vpack.c.bf16 %v219_v16, %v216_v15  ;;  %v2936_v32 = vpack.c.bf16 %v273_v21, %v270_v19  ;;  %v276_v37 = vld [vmem:[%s5647_s1 + $0x7f0] sm:$0xff]  ;;  %v285_v42 = vld [vmem:[%s5647_s1 + $0x838] sm:$0xff]  ;;  %v167_v52 = vld [vmem:[%s5647_s1 + $0x488] sm:$0xff] }
  0x47   :  { %v2938_v41 = vpack.c.bf16 %v225_v34, %v222_v33  ;;  %v2940_v46 = vpack.c.bf16 %v279_v38, %v276_v37  ;;  %v228_v47 = vld [vmem:[%s5647_s1 + $0x670] sm:$0xff]  ;;  %v297_v15 = vld [vmem:[%s5647_s1 + $0x898] sm:$0xff]  ;;  %v179_v16 = vld [vmem:[%s5647_s1 + $0x4e8] sm:$0xff]  ;;  %v2706_v19 = vpack.c.bf16 %v175_v13, %v172_v6 }
  0x48   :  { %2923 = vmatpush3.bf16.msra.mxu1 %v2922_v48  ;;  %v231_v48 = vld [vmem:[%s5647_s1 + $0x688] sm:$0xff]  ;;  %v178_v21 = vld [vmem:[%s5647_s1 + $0x4e0] sm:$0xff]  ;;  %v185_v34 = vld [vmem:[%s5647_s1 + $0x518] sm:$0xff] }
  0x49   :  { %2675 = vmatpush1.bf16.msra.mxu0 %v2674_v35  ;;  %2925 = vmatprep.subr.bf16.mxu1 %v2924_v51  ;;  %v2692_v35 = vpack.c.bf16 %v158_v23, %v155_v22  ;;  %v282_v51 = vld [vmem:[%s5647_s1 + $0x820] sm:$0xff]  ;;  %v2942_v54 = vpack.c.bf16 %v231_v48, %v228_v47  ;;  %v303_v33 = vld [vmem:[%s5647_s1 + $0x8c8] sm:$0xff]  ;;  %v2710_v37 = vpack.c.bf16 %v181_v30, %v178_v21  ;;  %v184_v38 = vld [vmem:[%s5647_s1 + $0x510] sm:$0xff] }
  0x4a   :  { %2677 = vmatprep.subr.bf16.mxu0 %v2676_v40  ;;  %v164_v40 = vld [vmem:[%s5647_s1 + $0x470] sm:$0xff]  ;;  %v2944_v58 = vpack.c.bf16 %v285_v42, %v282_v51  ;;  %v246_v23 = vld [vmem:[%s5647_s1 + $0x700] sm:$0xff]  ;;  %v309_v47 = vld [vmem:[%s5647_s1 + $0x8f8] sm:$0xff]  ;;  %v2714_v51 = vpack.c.bf16 %v187_v45, %v184_v38 }
  0x4b   :  { %v191_v48 = vld [vmem:[%s5647_s1 + $0x548] sm:$0xff]  ;;  %v190_v42 = vld [vmem:[%s5647_s1 + $0x540] sm:$0xff]  ;;  %v324_v38 = vld [vmem:[%s5647_s1 + $0x970] sm:$0xff] }
  0x4c   :  { %2927 = vmatpush3.bf16.msra.mxu1 %v2926_v60  ;;  %v237_v60 = vld [vmem:[%s5647_s1 + $0x6b8] sm:$0xff]  ;;  %v315_v6 = vld [vmem:[%s5647_s1 + $0x928] sm:$0xff] }
  0x4d   :  { %2679 = vmatpush1.bf16.msra.mxu0 %v2678_v49  ;;  %2929 = vmatprep.subr.bf16.mxu1 %v2928_v63  ;;  %v2696_v49 = vpack.c.bf16 %v164_v40, %v161_v39  ;;  %v288_v63 = vld [vmem:[%s5647_s1 + $0x850] sm:$0xff]  ;;  %v2946_v4 = vpack.c.bf16 %v237_v60, %v234_v59  ;;  %v363_v59 = vld [vmem:[%s5647_s1 + $0xaa8] sm:$0xff]  ;;  %v197_v60 = vld [vmem:[%s5647_s1 + $0x578] sm:$0xff] }
  0x4e   :  { %2681 = vmatprep.subr.bf16.mxu0 %v2680_v53  ;;  %v170_v53 = vld [vmem:[%s5647_s1 + $0x4a0] sm:$0xff]  ;;  %v2948_v7 = vpack.c.bf16 %v291_v0, %v288_v63  ;;  %v252_v40 = vld [vmem:[%s5647_s1 + $0x730] sm:$0xff]  ;;  %v451_v0 = vsub.s32 7, %v3451_v28  ;;  %v203_v13 = vld [vmem:[%s5647_s1 + $0x5a8] sm:$0xff] }
  0x4f   :  { %v375_v30 = vld [vmem:[%s5647_s1 + $0xb08] sm:$0xff]  ;;  %v381_v45 = vld [vmem:[%s5647_s1 + $0xb38] sm:$0xff] }
  0x50   :  { %2931 = vmatpush3.bf16.msra.mxu1 %v2930_v10  ;;  %v243_v10 = vld [vmem:[%s5647_s1 + $0x6e8] sm:$0xff] }
  0x51   :  { %2683 = vmatpush1.bf16.msra.mxu0 %v2682_v61  ;;  %2933 = vmatprep.subr.bf16.mxu1 %v2932_v14  ;;  %v2700_v61 = vpack.c.bf16 %v170_v53, %v167_v52  ;;  %v294_v14 = vld [vmem:[%s5647_s1 + $0x880] sm:$0xff]  ;;  %v2950_v18 = vpack.c.bf16 %v243_v10, %v240_v8  ;;  %v199_v8 = vld [vmem:[%s5647_s1 + $0x588] sm:$0xff] }
  0x52   :  { %2685 = vmatprep.subr.bf16.mxu0 %v2684_v2  ;;  %v176_v2 = vld [vmem:[%s5647_s1 + $0x4d0] sm:$0xff]  ;;  %v2952_v22 = vpack.c.bf16 %v297_v15, %v294_v14  ;;  %v258_v53 = vld [vmem:[%s5647_s1 + $0x760] sm:$0xff]  ;;  %v4139_v15 = vrot.slane %v3507_v55, %v439_v62 }
  0x53   :  { %974 = vmatmul.mubr.f32.vlgmr.msra.gmra.mrb[4].mxu1 %v3933_v24  ;;  %v366_v10 = vld [vmem:[%s5647_s1 + $0xac0] sm:$0xff] }
  0x54   :  { %2935 = vmatpush3.bf16.msra.mxu1 %v2934_v25  ;;  %1043 = vmatprep.mubr.f32.mxu1 %v3938_v26  ;;  %v249_v25 = vld [vmem:[%s5647_s1 + $0x718] sm:$0xff]  ;;  %v206_v14 = vld [vmem:[%s5647_s1 + $0x5c0] sm:$0xff] }
  0x55   :  { %2687 = vmatpush1.bf16.msra.mxu0 %v2686_v12  ;;  %2937 = vmatprep.subr.bf16.mxu1 %v2936_v32  ;;  %v2704_v12 = vpack.c.bf16 %v176_v2, %v173_v1  ;;  %v300_v32 = vld [vmem:[%s5647_s1 + $0x8b0] sm:$0xff]  ;;  %v2954_v36 = vpack.c.bf16 %v249_v25, %v246_v23  ;;  %v2718_v1 = vpack.c.bf16 %v193_v57, %v190_v42  ;;  %v321_v23 = vld [vmem:[%s5647_s1 + $0x958] sm:$0xff]  ;;  %v330_v42 = vld [vmem:[%s5647_s1 + $0x9a0] sm:$0xff] }
  0x56   :  { %2689 = vmatprep.subr.bf16.mxu0 %v2688_v17  ;;  %v182_v17 = vld [vmem:[%s5647_s1 + $0x500] sm:$0xff]  ;;  %v2956_v39 = vpack.c.bf16 %v303_v33, %v300_v32  ;;  %v196_v2 = vld [vmem:[%s5647_s1 + $0x570] sm:$0xff]  ;;  %v2724_v25 = vpack.c.bf16 %v206_v14, %v203_v13  ;;  %v209_v32 = vld [vmem:[%s5647_s1 + $0x5d8] sm:$0xff] }
  0x57   :  { %v212_v33 = vld [vmem:[%s5647_s1 + $0x5f0] sm:$0xff]  ;;  %v387_v57 = vld [vmem:[%s5647_s1 + $0xb68] sm:$0xff] }
  0x58   :  { %2939 = vmatpush3.bf16.msra.mxu1 %v2938_v41  ;;  %v255_v41 = vld [vmem:[%s5647_s1 + $0x748] sm:$0xff] }
  0x59   :  { %2691 = vmatpush1.bf16.msra.mxu0 %v2690_v29  ;;  %2941 = vmatprep.subr.bf16.mxu1 %v2940_v46  ;;  %v2708_v29 = vpack.c.bf16 %v182_v17, %v179_v16  ;;  %v306_v46 = vld [vmem:[%s5647_s1 + $0x8e0] sm:$0xff]  ;;  %v2958_v50 = vpack.c.bf16 %v255_v41, %v252_v40  ;;  %v4144_v17 = vrot.slane %v3507_v55, %v451_v0  ;;  %v205_v55 = vld [vmem:[%s5647_s1 + $0x5b8] sm:$0xff]  ;;  %v211_v41 = vld [vmem:[%s5647_s1 + $0x5e8] sm:$0xff] }
  0x5a   :  { %2693 = vmatprep.subr.bf16.mxu0 %v2692_v35  ;;  %v188_v35 = vld [vmem:[%s5647_s1 + $0x530] sm:$0xff]  ;;  %v2960_v52 = vpack.c.bf16 %v309_v47, %v306_v46  ;;  %v2728_v40 = vpack.c.bf16 %v212_v33, %v209_v32  ;;  %v215_v46 = vld [vmem:[%s5647_s1 + $0x608] sm:$0xff]  ;;  %v218_v47 = vld [vmem:[%s5647_s1 + $0x620] sm:$0xff] }
  0x5b   :  { %v232_v33 = vld [vmem:[%s5647_s1 + $0x690] sm:$0xff] }
  0x5c   :  { %2943 = vmatpush3.bf16.msra.mxu1 %v2942_v54  ;;  %v261_v54 = vld [vmem:[%s5647_s1 + $0x778] sm:$0xff] }
  0x5d   :  { %2695 = vmatpush1.bf16.msra.mxu0 %v2694_v43  ;;  %2945 = vmatprep.subr.bf16.mxu1 %v2944_v58  ;;  %v2712_v43 = vpack.c.bf16 %v188_v35, %v185_v34  ;;  %v360_v58 = vld [vmem:[%s5647_s1 + $0xa90] sm:$0xff]  ;;  %v2962_v63 = vpack.c.bf16 %v261_v54, %v258_v53  ;;  %v2732_v53 = vpack.c.bf16 %v218_v47, %v215_v46  ;;  %v217_v54 = vld [vmem:[%s5647_s1 + $0x618] sm:$0xff]  ;;  %v354_v47 = vld [vmem:[%s5647_s1 + $0xa60] sm:$0xff] }
  0x5e   :  { %2697 = vmatprep.subr.bf16.mxu0 %v2696_v49  ;;  %v194_v49 = vld [vmem:[%s5647_s1 + $0x560] sm:$0xff] }
  0x60   :  { %2947 = vmatpush3.bf16.msra.mxu1 %v2946_v4  ;;  %v2964_v4 = vpack.c.bf16 %v363_v59, %v360_v58  ;;  %v221_v58 = vld [vmem:[%s5647_s1 + $0x638] sm:$0xff]  ;;  %v224_v59 = vld [vmem:[%s5647_s1 + $0x650] sm:$0xff] }
  0x61   :  { %2699 = vmatpush1.bf16.msra.mxu0 %v2698_v56  ;;  %2949 = vmatprep.subr.bf16.mxu1 %v2948_v7  ;;  %v2716_v56 = vpack.c.bf16 %v194_v49, %v191_v48 }
  0x62   :  { %2701 = vmatprep.subr.bf16.mxu0 %v2700_v61  ;;  %v200_v61 = vld [vmem:[%s5647_s1 + $0x590] sm:$0xff] }
  0x63   :  { %v2720_v7 = vpack.c.bf16 %v200_v61, %v197_v60 }
  0x64   :  { %2951 = vmatpush3.bf16.msra.mxu1 %v2950_v18  ;;  %v2722_v18 = vpack.c.bf16 %v199_v8, %v196_v2  ;;  %v336_v2 = vld [vmem:[%s5647_s1 + $0x9d0] sm:$0xff]  ;;  %v393_v8 = vld [vmem:[%s5647_s1 + $0xb98] sm:$0xff] }
  0x65   :  { %2703 = vmatpush1.bf16.msra.mxu0 %v2702_v5  ;;  %2953 = vmatprep.subr.bf16.mxu1 %v2952_v22  ;;  %v312_v5 = vld [vmem:[%s5647_s1 + $0x910] sm:$0xff]  ;;  %v318_v22 = vld [vmem:[%s5647_s1 + $0x940] sm:$0xff] }
  0x66   :  { %2705 = vmatprep.subr.bf16.mxu0 %v2704_v12  ;;  %v369_v12 = vld [vmem:[%s5647_s1 + $0xad8] sm:$0xff]  ;;  %v2966_v16 = vpack.c.bf16 %v315_v6, %v312_v5  ;;  %v2970_v34 = vpack.c.bf16 %v321_v23, %v318_v22  ;;  %v2736_v5 = vpack.c.bf16 %v224_v59, %v221_v58  ;;  %v223_v6 = vld [vmem:[%s5647_s1 + $0x648] sm:$0xff]  ;;  %v396_v23 = vld [vmem:[%s5647_s1 + $0xbb0] sm:$0xff] }
  0x67   :  { %v2968_v21 = vpack.c.bf16 %v369_v12, %v366_v10  ;;  %v227_v10 = vld [vmem:[%s5647_s1 + $0x668] sm:$0xff]  ;;  %v230_v12 = vld [vmem:[%s5647_s1 + $0x680] sm:$0xff]  ;;  %v229_v22 = vld [vmem:[%s5647_s1 + $0x678] sm:$0xff] }
  0x68   :  { %2955 = vmatpush3.bf16.msra.mxu1 %v2954_v36  ;;  %v208_v36 = vld [vmem:[%s5647_s1 + $0x5d0] sm:$0xff]  ;;  %v411_v58 = vld [vmem:[%s5647_s1 + $0xc28] sm:$0xff] }
  0x69   :  { %2707 = vmatpush1.bf16.msra.mxu0 %v2706_v19  ;;  %2957 = vmatprep.subr.bf16.mxu1 %v2956_v39  ;;  %v202_v19 = vld [vmem:[%s5647_s1 + $0x5a0] sm:$0xff]  ;;  %v327_v39 = vld [vmem:[%s5647_s1 + $0x988] sm:$0xff]  ;;  %v2730_v49 = vpack.c.bf16 %v211_v41, %v208_v36 }
  0x6a   :  { %2709 = vmatprep.subr.bf16.mxu0 %v2708_v29  ;;  %v372_v29 = vld [vmem:[%s5647_s1 + $0xaf0] sm:$0xff]  ;;  %v2726_v35 = vpack.c.bf16 %v205_v55, %v202_v19  ;;  %v2974_v48 = vpack.c.bf16 %v327_v39, %v324_v38  ;;  %v342_v19 = vld [vmem:[%s5647_s1 + $0xa00] sm:$0xff]  ;;  %v233_v55 = vld [vmem:[%s5647_s1 + $0x698] sm:$0xff] }
  0x6b   :  { %v402_v38 = vld [vmem:[%s5647_s1 + $0xbe0] sm:$0xff]  ;;  %v405_v39 = vld [vmem:[%s5647_s1 + $0xbf8] sm:$0xff] }
  0x6c   :  { %2959 = vmatpush3.bf16.msra.mxu1 %v2958_v50  ;;  %v214_v50 = vld [vmem:[%s5647_s1 + $0x600] sm:$0xff]  ;;  %v2992_v46 = vpack.c.bf16 %v405_v39, %v402_v38  ;;  %v268_v38 = vld [vmem:[%s5647_s1 + $0x7b0] sm:$0xff]  ;;  %v271_v39 = vld [vmem:[%s5647_s1 + $0x7c8] sm:$0xff] }
  0x6d   :  { %2711 = vmatpush1.bf16.msra.mxu0 %v2710_v37  ;;  %2961 = vmatprep.subr.bf16.mxu1 %v2960_v52  ;;  %v2972_v37 = vpack.c.bf16 %v375_v30, %v372_v29  ;;  %v333_v52 = vld [vmem:[%s5647_s1 + $0x9b8] sm:$0xff]  ;;  %v2734_v61 = vpack.c.bf16 %v217_v54, %v214_v50  ;;  %v236_v29 = vld [vmem:[%s5647_s1 + $0x6b0] sm:$0xff]  ;;  %v242_v41 = vld [vmem:[%s5647_s1 + $0x6e0] sm:$0xff] }
  0x6e   :  { %2713 = vmatprep.subr.bf16.mxu0 %v2712_v43  ;;  %v378_v43 = vld [vmem:[%s5647_s1 + $0xb20] sm:$0xff]  ;;  %v2978_v60 = vpack.c.bf16 %v333_v52, %v330_v42  ;;  %v2744_v36 = vpack.c.bf16 %v236_v29, %v233_v55  ;;  %v245_v42 = vld [vmem:[%s5647_s1 + $0x6f8] sm:$0xff]  ;;  %v248_v52 = vld [vmem:[%s5647_s1 + $0x710] sm:$0xff] }
  0x6f   :  { %v238_v50 = vld [vmem:[%s5647_s1 + $0x6c0] sm:$0xff]  ;;  %v2752_v59 = vpack.c.bf16 %v248_v52, %v245_v42  ;;  %v280_v42 = vld [vmem:[%s5647_s1 + $0x810] sm:$0xff]  ;;  %v283_v52 = vld [vmem:[%s5647_s1 + $0x828] sm:$0xff] }
  0x70   :  { %2963 = vmatpush3.bf16.msra.mxu1 %v2962_v63  ;;  %v220_v63 = vld [vmem:[%s5647_s1 + $0x630] sm:$0xff]  ;;  %v266_v55 = vld [vmem:[%s5647_s1 + $0x7a0] sm:$0xff] }
  0x71   :  { %2715 = vmatpush1.bf16.msra.mxu0 %v2714_v51  ;;  %2965 = vmatprep.subr.bf16.mxu1 %v2964_v4  ;;  %v2976_v51 = vpack.c.bf16 %v381_v45, %v378_v43  ;;  %v339_v4 = vld [vmem:[%s5647_s1 + $0x9e8] sm:$0xff]  ;;  %v2738_v14 = vpack.c.bf16 %v223_v6, %v220_v63 }
  0x72   :  { %2717 = vmatprep.subr.bf16.mxu0 %v2716_v56  ;;  %v384_v56 = vld [vmem:[%s5647_s1 + $0xb50] sm:$0xff]  ;;  %v2982_v13 = vpack.c.bf16 %v339_v4, %v336_v2  ;;  %v251_v63 = vld [vmem:[%s5647_s1 + $0x728] sm:$0xff]  ;;  %v3356_v2 = vld [vmem:[%s5648_s0] sm:$0xff] }
  0x73   :  { %1044 = vmatmul.mubr.f32.vlgmr.msra.gmra.mrb[6].mxu1 %v4139_v15 }
  0x74   :  { %2967 = vmatpush3.bf16.msra.mxu1 %v2966_v16  ;;  %1113 = vmatprep.mubr.f32.mxu1 %v4144_v17  ;;  %v226_v16 = vld [vmem:[%s5647_s1 + $0x660] sm:$0xff] }
  0x75   :  { %2719 = vmatpush1.bf16.msra.mxu0 %v2718_v1  ;;  %2969 = vmatprep.subr.bf16.mxu1 %v2968_v21  ;;  %v2980_v1 = vpack.c.bf16 %v387_v57, %v384_v56  ;;  %v345_v21 = vld [vmem:[%s5647_s1 + $0xa18] sm:$0xff]  ;;  %v2742_v32 = vpack.c.bf16 %v229_v22, %v226_v16  ;;  %v408_v57 = vld [vmem:[%s5647_s1 + $0xc10] sm:$0xff] }
  0x76   :  { %2721 = vmatprep.subr.bf16.mxu0 %v2720_v7  ;;  %v390_v7 = vld [vmem:[%s5647_s1 + $0xb80] sm:$0xff]  ;;  %v2986_v30 = vpack.c.bf16 %v345_v21, %v342_v19  ;;  %v257_v16 = vld [vmem:[%s5647_s1 + $0x758] sm:$0xff]  ;;  %v256_v22 = vld [vmem:[%s5647_s1 + $0x750] sm:$0xff] }
  0x78   :  { %2971 = vmatpush3.bf16.msra.mxu1 %v2970_v34 }
  0x79   :  { %2723 = vmatpush1.bf16.msra.mxu0 %v2722_v18  ;;  %2973 = vmatprep.subr.bf16.mxu1 %v2972_v37  ;;  %v2984_v18 = vpack.c.bf16 %v393_v8, %v390_v7  ;;  %v235_v37 = vld [vmem:[%s5647_s1 + $0x6a8] sm:$0xff]  ;;  %v3359_v7 = vmov 0.0|0.0   ;;  %v414_v8 = vld [vmem:[%s5647_s1 + $0xc40] sm:$0xff] }
  0x7a   :  { %2725 = vmatprep.subr.bf16.mxu0 %v2724_v25  ;;  %v399_v25 = vld [vmem:[%s5647_s1 + $0xbc8] sm:$0xff]  ;;  %v2746_v45 = vpack.c.bf16 %v235_v37, %v232_v33  ;;  %v265_v33 = vld [vmem:[%s5647_s1 + $0x798] sm:$0xff] }
  0x7b   :  { %v2988_v34 = vpack.c.bf16 %v399_v25, %v396_v23  ;;  %v259_v23 = vld [vmem:[%s5647_s1 + $0x768] sm:$0xff] }
  0x7c   :  { %2975 = vmatpush3.bf16.msra.mxu1 %v2974_v48  ;;  %v357_v48 = vld [vmem:[%s5647_s1 + $0xa78] sm:$0xff]  ;;  %v263_v25 = vld [vmem:[%s5647_s1 + $0x788] sm:$0xff]  ;;  %v2762_v29 = vpack.c.bf16 %v259_v23, %v256_v22 }
  0x7d   :  { %2727 = vmatpush1.bf16.msra.mxu0 %v2726_v35  ;;  %2977 = vmatprep.subr.bf16.mxu1 %v2976_v51  ;;  %v351_v35 = vld [vmem:[%s5647_s1 + $0xa48] sm:$0xff]  ;;  %v241_v51 = vld [vmem:[%s5647_s1 + $0x6d8] sm:$0xff]  ;;  %v2994_v54 = vpack.c.bf16 %v357_v48, %v354_v47 }
  0x7e   :  { %2729 = vmatprep.subr.bf16.mxu0 %v2728_v40  ;;  %v239_v40 = vld [vmem:[%s5647_s1 + $0x6c8] sm:$0xff]  ;;  %v2750_v56 = vpack.c.bf16 %v241_v51, %v238_v50  ;;  %v277_v47 = vld [vmem:[%s5647_s1 + $0x7f8] sm:$0xff] }
  0x7f   :  { %v281_v48 = vld [vmem:[%s5647_s1 + $0x818] sm:$0xff]  ;;  %v307_v22 = vld [vmem:[%s5647_s1 + $0x8e8] sm:$0xff] }
  0x80   :  { %2979 = vmatpush3.bf16.msra.mxu1 %v2978_v60  ;;  %v244_v60 = vld [vmem:[%s5647_s1 + $0x6f0] sm:$0xff]  ;;  %v311_v23 = vld [vmem:[%s5647_s1 + $0x908] sm:$0xff] }
  0x81   :  { %2731 = vmatpush1.bf16.msra.mxu0 %v2730_v49  ;;  %2981 = vmatprep.subr.bf16.mxu1 %v2980_v1  ;;  %v2748_v49 = vpack.c.bf16 %v242_v41, %v239_v40  ;;  %v254_v1 = vld [vmem:[%s5647_s1 + $0x740] sm:$0xff]  ;;  %v275_v40 = vld [vmem:[%s5647_s1 + $0x7e8] sm:$0xff] }
  0x82   :  { %2733 = vmatprep.subr.bf16.mxu0 %v2732_v53  ;;  %v447_v53 = vsub.s32 6, %v3451_v28  ;;  %v278_v41 = vld [vmem:[%s5647_s1 + $0x800] sm:$0xff] }
  0x84   :  { %620 = vmatmul.mubr.f32.vlgmr.msra.gmra.mrb[0].mxu0 %v3933_v24  ;;  %v2740_v24 = vpack.c.bf16 %v230_v12, %v227_v10  ;;  %2983 = vmatpush3.bf16.msra.mxu1 %v2982_v13  ;;  %v4336_v4 = vrot.slane %v3356_v2, %v447_v53  ;;  %v417_v10 = vld [vmem:[%s5647_s1 + $0xc58] sm:$0xff]  ;;  %v2756_v12 = vpack.c.bf16 %v254_v1, %v251_v63  ;;  %v250_v13 = vld [vmem:[%s5647_s1 + $0x720] sm:$0xff]  ;;  %v296_v63 = vld [vmem:[%s5647_s1 + $0x890] sm:$0xff] }
  0x85   :  { %2735 = vmatpush1.bf16.msra.mxu0 %v2734_v61  ;;  %690 = vmatprep.mubr.f32.mxu0 %v3938_v26  ;;  %v348_v26 = vld [vmem:[%s5647_s1 + $0xa30] sm:$0xff]  ;;  %v247_v61 = vld [vmem:[%s5647_s1 + $0x708] sm:$0xff]  ;;  %v3000_v19 = vpack.c.bf16 %v417_v10, %v414_v8  ;;  %v302_v8 = vld [vmem:[%s5647_s1 + $0x8c0] sm:$0xff] }
  0x86   :  { %2737 = vmatprep.subr.bf16.mxu0 %v2736_v5  ;;  %2985 = vmatprep.subr.bf16.mxu1 %v2984_v18  ;;  %v2990_v43 = vpack.c.bf16 %v351_v35, %v348_v26  ;;  %v2997_v5 = vpack.c.bf16 %v411_v58, %v408_v57  ;;  %v2754_v6 = vpack.c.bf16 %v247_v61, %v244_v60  ;;  %v260_v18 = vld [vmem:[%s5647_s1 + $0x770] sm:$0xff]  ;;  %v3357_v35 = vld [vmem:[%s5648_s0 + $0x8] ss:$0 sm:$0xff]  ;;  %v289_v60 = vld [vmem:[%s5647_s1 + $0x858] sm:$0xff] }
  0x87   :  { %v272_v26 = vld [vmem:[%s5647_s1 + $0x7d0] sm:$0xff]  ;;  %v2778_v57 = vpack.c.bf16 %v283_v52, %v280_v42  ;;  %v293_v61 = vld [vmem:[%s5647_s1 + $0x878] sm:$0xff] }
  0x88   :  { %2987 = vmatpush3.bf16.msra.mxu1 %v2986_v30  ;;  %v2764_v30 = vpack.c.bf16 %v266_v55, %v263_v25  ;;  %v2784_v2 = vpack.c.bf16 %v296_v63, %v293_v61  ;;  %v314_v25 = vld [vmem:[%s5647_s1 + $0x920] sm:$0xff]  ;;  %v340_v61 = vld [vmem:[%s5647_s1 + $0x9f0] sm:$0xff]  ;;  %v343_v63 = vld [vmem:[%s5647_s1 + $0xa08] sm:$0xff] }
  0x89   :  { %2739 = vmatpush1.bf16.msra.mxu0 %v2738_v14  ;;  %2989 = vmatprep.subr.bf16.mxu1 %v2988_v34  ;;  %v253_v14 = vld [vmem:[%s5647_s1 + $0x738] sm:$0xff] }
  0x8a   :  { %2741 = vmatprep.subr.bf16.mxu0 %v2740_v24  ;;  %v2758_v21 = vpack.c.bf16 %v253_v14, %v250_v13  ;;  %v2760_v24 = vpack.c.bf16 %v260_v18, %v257_v16  ;;  %v269_v34 = vld [vmem:[%s5647_s1 + $0x7b8] sm:$0xff]  ;;  %v298_v13 = vld [vmem:[%s5647_s1 + $0x8a0] sm:$0xff]  ;;  %v308_v18 = vld [vmem:[%s5647_s1 + $0x8f0] sm:$0xff] }
  0x8b   :  { %v2768_v37 = vpack.c.bf16 %v272_v26, %v269_v34  ;;  %v301_v14 = vld [vmem:[%s5647_s1 + $0x8b8] sm:$0xff]  ;;  %v320_v34 = vld [vmem:[%s5647_s1 + $0x950] sm:$0xff] }
  0x8c   :  { %2991 = vmatpush3.bf16.msra.mxu1 %v2990_v43  ;;  %v2770_v43 = vpack.c.bf16 %v271_v39, %v268_v38  ;;  %v305_v16 = vld [vmem:[%s5647_s1 + $0x8d8] sm:$0xff]  ;;  %v323_v38 = vld [vmem:[%s5647_s1 + $0x968] sm:$0xff]  ;;  %v326_v39 = vld [vmem:[%s5647_s1 + $0x980] sm:$0xff] }
  0x8d   :  { %2743 = vmatpush1.bf16.msra.mxu0 %v2742_v32  ;;  %2993 = vmatprep.subr.bf16.mxu1 %v2992_v46  ;;  %v262_v32 = vld [vmem:[%s5647_s1 + $0x780] sm:$0xff] }
  0x8e   :  { %2745 = vmatprep.subr.bf16.mxu0 %v2744_v36  ;;  %v2766_v36 = vpack.c.bf16 %v265_v33, %v262_v32  ;;  %v274_v46 = vld [vmem:[%s5647_s1 + $0x7e0] sm:$0xff]  ;;  %v313_v32 = vld [vmem:[%s5647_s1 + $0x918] sm:$0xff] }
  0x8f   :  { %v2774_v50 = vpack.c.bf16 %v277_v47, %v274_v46  ;;  %v317_v33 = vld [vmem:[%s5647_s1 + $0x938] sm:$0xff] }
  0x90   :  { %2995 = vmatpush3.bf16.msra.mxu1 %v2994_v54  ;;  %v287_v54 = vld [vmem:[%s5647_s1 + $0x848] sm:$0xff]  ;;  %v329_v46 = vld [vmem:[%s5647_s1 + $0x998] sm:$0xff] }
  0x91   :  { %2747 = vmatpush1.bf16.msra.mxu0 %v2746_v45  ;;  %2996 = vmatprep.subr.bf16.mxu1 %v3359_v7  ;;  %v2772_v45 = vpack.c.bf16 %v278_v41, %v275_v40  ;;  %v2804_v41 = vpack.c.bf16 %v326_v39, %v323_v38  ;;  %v370_v38 = vld [vmem:[%s5647_s1 + $0xae0] sm:$0xff]  ;;  %v373_v39 = vld [vmem:[%s5647_s1 + $0xaf8] sm:$0xff] }
  0x92   :  { %2749 = vmatprep.subr.bf16.mxu0 %v2748_v49  ;;  %v284_v49 = vld [vmem:[%s5647_s1 + $0x830] sm:$0xff] }
  0x93   :  { %1114 = vmatmul.mubr.f32.vlgmr.msra.gmra.mrb[8].mxu1 %v4336_v4  ;;  %v2776_v51 = vpack.c.bf16 %v284_v49, %v281_v48  ;;  %v328_v48 = vld [vmem:[%s5647_s1 + $0x990] sm:$0xff]  ;;  %v331_v49 = vld [vmem:[%s5647_s1 + $0x9a8] sm:$0xff] }
  0x94   :  { %2998 = vmatpush3.bf16.msra.mxu1 %v2997_v5  ;;  %2596 = vmatprep.mubr.msk.f32.mxu1 %vm3360_vm1, %v3358_v3  ;;  %v292_v5 = vld [vmem:[%s5647_s1 + $0x870] sm:$0xff]  ;;  %v2810_v42 = vpack.c.bf16 %v331_v49, %v328_v48  ;;  %v386_v48 = vld [vmem:[%s5647_s1 + $0xb60] sm:$0xff] }
  0x95   :  { %2751 = vmatpush1.bf16.msra.mxu0 %v2750_v56  ;;  %2999 = vmatprep.subr.bf16.mxu1 %v3359_v7  ;;  %v290_v56 = vld [vmem:[%s5647_s1 + $0x860] sm:$0xff]  ;;  %v299_v7 = vld [vmem:[%s5647_s1 + $0x8a8] sm:$0xff] }
  0x96   :  { %2753 = vmatprep.subr.bf16.mxu0 %v2752_v59  ;;  %v2780_v58 = vpack.c.bf16 %v290_v56, %v287_v54  ;;  %v286_v59 = vld [vmem:[%s5647_s1 + $0x840] sm:$0xff]  ;;  %v337_v56 = vld [vmem:[%s5647_s1 + $0x9d8] sm:$0xff] }
  0x97   :  { %v2782_v1 = vpack.c.bf16 %v289_v60, %v286_v59  ;;  %v334_v54 = vld [vmem:[%s5647_s1 + $0x9c0] sm:$0xff] }
  0x98   :  { %3001 = vmatpush3.bf16.msra.mxu1 %v3000_v19  ;;  %v2790_v19 = vpack.c.bf16 %v301_v14, %v298_v13  ;;  %v2814_v59 = vpack.c.bf16 %v337_v56, %v334_v54  ;;  %v389_v54 = vld [vmem:[%s5647_s1 + $0xb78] sm:$0xff]  ;;  %v392_v56 = vld [vmem:[%s5647_s1 + $0xb90] sm:$0xff] }
  0x99   :  { %2755 = vmatpush1.bf16.msra.mxu0 %v2754_v6  ;;  %v295_v6 = vld [vmem:[%s5647_s1 + $0x888] sm:$0xff] }
  0x9a   :  { %2757 = vmatprep.subr.bf16.mxu0 %v2756_v12  ;;  %v2786_v10 = vpack.c.bf16 %v295_v6, %v292_v5  ;;  %v2788_v12 = vpack.c.bf16 %v302_v8, %v299_v7  ;;  %v2818_v5 = vpack.c.bf16 %v343_v63, %v340_v61  ;;  %v346_v7 = vld [vmem:[%s5647_s1 + $0xa20] sm:$0xff]  ;;  %v349_v8 = vld [vmem:[%s5647_s1 + $0xa38] sm:$0xff]  ;;  %v395_v61 = vld [vmem:[%s5647_s1 + $0xba8] sm:$0xff] }
  0x9b   :  { %2597 = vmatmul.mubr.msk.f32.vlgmr.msra.gmra.mrb[10].mxu1 %vm481_vm0, %v3357_v35  ;;  %v2800_v35 = vpack.c.bf16 %v320_v34, %v317_v33  ;;  %v2822_v13 = vpack.c.bf16 %v349_v8, %v346_v7  ;;  %v364_v33 = vld [vmem:[%s5647_s1 + $0xab0] sm:$0xff]  ;;  %v367_v34 = vld [vmem:[%s5647_s1 + $0xac8] sm:$0xff]  ;;  %v398_v63 = vld [vmem:[%s5647_s1 + $0xbc0] sm:$0xff] }
  0x9c   :  { %v401_v7 = vld [vmem:[%s5647_s1 + $0xbd8] sm:$0xff]  ;;  %v1193_v8 = vld [vmem:[%s5649_s3 + $0x8] sm:$0xff] }
  0x9d   :  { %2759 = vmatpush1.bf16.msra.mxu0 %v2758_v21  ;;  %v2792_v21 = vpack.c.bf16 %v308_v18, %v305_v16  ;;  %v352_v16 = vld [vmem:[%s5647_s1 + $0xa50] sm:$0xff]  ;;  %v355_v18 = vld [vmem:[%s5647_s1 + $0xa68] sm:$0xff] }
  0x9e   :  { %2761 = vmatprep.subr.bf16.mxu0 %v2760_v24  ;;  %v304_v24 = vld [vmem:[%s5647_s1 + $0x8d0] sm:$0xff] }
  0x9f   :  { %v2794_v55 = vpack.c.bf16 %v307_v22, %v304_v24  ;;  %v2826_v24 = vpack.c.bf16 %v355_v18, %v352_v16  ;;  %v1201_v16 = vld [vmem:[%s5649_s3 + $0x48] sm:$0xff] }
  0xa1   :  { %2763 = vmatpush1.bf16.msra.mxu0 %v2762_v29  ;;  %v2796_v29 = vpack.c.bf16 %v314_v25, %v311_v23  ;;  %v358_v23 = vld [vmem:[%s5647_s1 + $0xa80] sm:$0xff]  ;;  %v361_v25 = vld [vmem:[%s5647_s1 + $0xa98] sm:$0xff] }
  0xa2   :  { %2765 = vmatprep.subr.bf16.mxu0 %v2764_v30  ;;  %v310_v30 = vld [vmem:[%s5647_s1 + $0x900] sm:$0xff] }
  0xa3   :  { %v2798_v26 = vpack.c.bf16 %v313_v32, %v310_v30  ;;  %v2830_v30 = vpack.c.bf16 %v361_v25, %v358_v23  ;;  %v1220_v23 = vld [vmem:[%s5649_s3 + $0xe0] sm:$0xff] }
  0xa5   :  { %2767 = vmatpush1.bf16.msra.mxu0 %v2766_v36  ;;  %v316_v36 = vld [vmem:[%s5647_s1 + $0x930] sm:$0xff] }
  0xa6   :  { %2769 = vmatprep.subr.bf16.mxu0 %v2768_v37  ;;  %v319_v37 = vld [vmem:[%s5647_s1 + $0x948] sm:$0xff] }
  0xa7   :  { %v2802_v40 = vpack.c.bf16 %v319_v37, %v316_v36  ;;  %v2834_v36 = vpack.c.bf16 %v367_v34, %v364_v33  ;;  %v1206_v33 = vld [vmem:[%s5649_s3 + $0x70] sm:$0xff] }
  0xa9   :  { %2771 = vmatpush1.bf16.msra.mxu0 %v2770_v43  ;;  %v322_v43 = vld [vmem:[%s5647_s1 + $0x960] sm:$0xff] }
  0xaa   :  { %2773 = vmatprep.subr.bf16.mxu0 %v2772_v45  ;;  %v325_v45 = vld [vmem:[%s5647_s1 + $0x978] sm:$0xff] }
  0xad   :  { %2775 = vmatpush1.bf16.msra.mxu0 %v2774_v50  ;;  %v335_v50 = vld [vmem:[%s5647_s1 + $0x9c8] sm:$0xff] }
  0xae   :  { %2777 = vmatprep.subr.bf16.mxu0 %v2776_v51  ;;  %v338_v51 = vld [vmem:[%s5647_s1 + $0x9e0] sm:$0xff] }
  0xaf   :  { %v2812_v52 = vpack.c.bf16 %v338_v51, %v335_v50 }
  0xb1   :  { %2779 = vmatpush1.bf16.msra.mxu0 %v2778_v57  ;;  %v341_v57 = vld [vmem:[%s5647_s1 + $0x9f8] sm:$0xff] }
  0xb2   :  { %2781 = vmatprep.subr.bf16.mxu0 %v2780_v58  ;;  %v344_v58 = vld [vmem:[%s5647_s1 + $0xa10] sm:$0xff] }
  0xb3   :  { %v2816_v60 = vpack.c.bf16 %v344_v58, %v341_v57  ;;  %v2848_v58 = vpack.c.bf16 %v392_v56, %v389_v54  ;;  %v1274_v56 = vld [vmem:[%s5649_s3 + $0x290] sm:$0xff] }
  0xb5   :  { %2783 = vmatpush1.bf16.msra.mxu0 %v2782_v1  ;;  %v347_v1 = vld [vmem:[%s5647_s1 + $0xa28] sm:$0xff] }
  0xb6   :  { %2785 = vmatprep.subr.bf16.mxu0 %v2784_v2  ;;  %v350_v2 = vld [vmem:[%s5647_s1 + $0xa40] sm:$0xff] }
  0xb7   :  { %v2820_v6 = vpack.c.bf16 %v350_v2, %v347_v1  ;;  %v394_v2 = vld [vmem:[%s5647_s1 + $0xba0] sm:$0xff] }
  0xb9   :  { %2787 = vmatpush1.bf16.msra.mxu0 %v2786_v10  ;;  %v353_v10 = vld [vmem:[%s5647_s1 + $0xa58] sm:$0xff] }
  0xba   :  { %2789 = vmatprep.subr.bf16.mxu0 %v2788_v12  ;;  %v356_v12 = vld [vmem:[%s5647_s1 + $0xa70] sm:$0xff] }
  0xbb   :  { %v2824_v14 = vpack.c.bf16 %v356_v12, %v353_v10  ;;  %v1202_v10 = vld [vmem:[%s5649_s3 + $0x50] sm:$0xff] }
  0xbc   :  { %v404_v12 = vld [vmem:[%s5647_s1 + $0xbf0] sm:$0xff] }
  0xbd   :  { %2791 = vmatpush1.bf16.msra.mxu0 %v2790_v19  ;;  %v359_v19 = vld [vmem:[%s5647_s1 + $0xa88] sm:$0xff]  ;;  %v2856_v25 = vpack.c.bf16 %v404_v12, %v401_v7  ;;  %v1292_v7 = vld [vmem:[%s5649_s3 + $0x320] sm:$0xff] }
  0xbe   :  { %2793 = vmatprep.subr.bf16.mxu0 %v2792_v21  ;;  %v362_v21 = vld [vmem:[%s5647_s1 + $0xaa0] sm:$0xff] }
  0xbf   :  { %v2828_v22 = vpack.c.bf16 %v362_v21, %v359_v19  ;;  %v1211_v19 = vld [vmem:[%s5649_s3 + $0x98] sm:$0xff]  ;;  %v1232_v12 = vld [vmem:[%s5649_s3 + $0x140] sm:$0xff] }
  0xc1   :  { %2795 = vmatpush1.bf16.msra.mxu0 %v2794_v55  ;;  %v365_v55 = vld [vmem:[%s5647_s1 + $0xab8] sm:$0xff] }
  0xc2   :  { %2797 = vmatprep.subr.bf16.mxu0 %v2796_v29  ;;  %v368_v29 = vld [vmem:[%s5647_s1 + $0xad0] sm:$0xff] }
  0xc3   :  { %v2832_v32 = vpack.c.bf16 %v368_v29, %v365_v55  ;;  %v1197_v55 = vld [vmem:[%s5649_s3 + $0x28] sm:$0xff]  ;;  %v3006_v29 = vpack.c.bf16 %v1220_v23, %v1211_v19  ;;  %v1282_v19 = vld [vmem:[%s5649_s3 + $0x2d0] sm:$0xff] }
  0xc4   :  { %691 = vmatmul.mubr.f32.vlgmr.msra.gmra.mrb[0].mxu0 %v4139_v15  ;;  %v332_v15 = vld [vmem:[%s5647_s1 + $0x9b0] sm:$0xff] }
  0xc5   :  { %2799 = vmatpush1.bf16.msra.mxu0 %v2798_v26  ;;  %761 = vmatprep.mubr.f32.mxu0 %v4144_v17  ;;  %v2806_v17 = vpack.c.bf16 %v325_v45, %v322_v43  ;;  %v2808_v47 = vpack.c.bf16 %v332_v15, %v329_v46  ;;  %v371_v26 = vld [vmem:[%s5647_s1 + $0xae8] sm:$0xff]  ;;  %v2838_v43 = vpack.c.bf16 %v373_v39, %v370_v38  ;;  %v376_v46 = vld [vmem:[%s5647_s1 + $0xb10] sm:$0xff]  ;;  %v1196_v39 = vld [vmem:[%s5649_s3 + $0x20] sm:$0xff] }
  0xc6   :  { %2801 = vmatprep.subr.bf16.mxu0 %v2800_v35  ;;  %v374_v35 = vld [vmem:[%s5647_s1 + $0xb00] sm:$0xff]  ;;  %v379_v15 = vld [vmem:[%s5647_s1 + $0xb28] sm:$0xff] }
  0xc7   :  { %v2836_v37 = vpack.c.bf16 %v374_v35, %v371_v26  ;;  %v2842_v50 = vpack.c.bf16 %v379_v15, %v376_v46  ;;  %v1229_v26 = vld [vmem:[%s5649_s3 + $0x128] sm:$0xff]  ;;  %v1238_v35 = vld [vmem:[%s5649_s3 + $0x170] sm:$0xff]  ;;  %v1247_v15 = vld [vmem:[%s5649_s3 + $0x1b8] sm:$0xff] }
  0xc9   :  { %2803 = vmatpush1.bf16.msra.mxu0 %v2802_v40  ;;  %v377_v40 = vld [vmem:[%s5647_s1 + $0xb18] sm:$0xff] }
  0xca   :  { %2805 = vmatprep.subr.bf16.mxu0 %v2804_v41  ;;  %v380_v41 = vld [vmem:[%s5647_s1 + $0xb30] sm:$0xff] }
  0xcb   :  { %v2840_v45 = vpack.c.bf16 %v380_v41, %v377_v40  ;;  %v1205_v40 = vld [vmem:[%s5649_s3 + $0x68] sm:$0xff] }
  0xcc   :  { %v1237_v41 = vld [vmem:[%s5649_s3 + $0x168] sm:$0xff]  ;;  %v3132_v54 = vpack.c.bf16 %v1205_v40, %v1196_v39  ;;  %v1319_v39 = vld [vmem:[%s5649_s3 + $0x3f8] sm:$0xff]  ;;  %v1328_v40 = vld [vmem:[%s5649_s3 + $0x440] sm:$0xff] }
  0xcd   :  { %2807 = vmatpush1.bf16.msra.mxu0 %v2806_v17 }
  0xce   :  { %2809 = vmatprep.subr.bf16.mxu0 %v2808_v47  ;;  %v383_v47 = vld [vmem:[%s5647_s1 + $0xb48] sm:$0xff] }
  0xcf   :  { %v2844_v51 = vpack.c.bf16 %v386_v48, %v383_v47  ;;  %v1256_v47 = vld [vmem:[%s5649_s3 + $0x200] sm:$0xff] }
  0xd0   :  { %v1224_v48 = vld [vmem:[%s5649_s3 + $0x100] sm:$0xff] }
  0xd1   :  { %2811 = vmatpush1.bf16.msra.mxu0 %v2810_v42  ;;  %v382_v42 = vld [vmem:[%s5647_s1 + $0xb40] sm:$0xff] }
  0xd2   :  { %2813 = vmatprep.subr.bf16.mxu0 %v2812_v52  ;;  %v385_v52 = vld [vmem:[%s5647_s1 + $0xb58] sm:$0xff] }
  0xd3   :  { %v2846_v57 = vpack.c.bf16 %v385_v52, %v382_v42  ;;  %v1255_v42 = vld [vmem:[%s5649_s3 + $0x1f8] sm:$0xff]  ;;  %v1265_v52 = vld [vmem:[%s5649_s3 + $0x248] sm:$0xff] }
  0xd5   :  { %2815 = vmatpush1.bf16.msra.mxu0 %v2814_v59  ;;  %v388_v59 = vld [vmem:[%s5647_s1 + $0xb70] sm:$0xff] }
  0xd6   :  { %2817 = vmatprep.subr.bf16.mxu0 %v2816_v60  ;;  %v391_v60 = vld [vmem:[%s5647_s1 + $0xb88] sm:$0xff] }
  0xd7   :  { %v2850_v1 = vpack.c.bf16 %v391_v60, %v388_v59  ;;  %v1223_v59 = vld [vmem:[%s5649_s3 + $0xf8] sm:$0xff]  ;;  %v1233_v60 = vld [vmem:[%s5649_s3 + $0x148] sm:$0xff] }
  0xd9   :  { %2819 = vmatpush1.bf16.msra.mxu0 %v2818_v5  ;;  %v397_v5 = vld [vmem:[%s5647_s1 + $0xbb8] sm:$0xff] }
  0xda   :  { %2821 = vmatprep.subr.bf16.mxu0 %v2820_v6  ;;  %v2852_v6 = vpack.c.bf16 %v398_v63, %v395_v61  ;;  %v2854_v21 = vpack.c.bf16 %v397_v5, %v394_v2  ;;  %v1242_v63 = vld [vmem:[%s5649_s3 + $0x190] sm:$0xff]  ;;  %v1264_v2 = vld [vmem:[%s5649_s3 + $0x240] sm:$0xff]  ;;  %v1273_v5 = vld [vmem:[%s5649_s3 + $0x288] sm:$0xff] }
  0xdd   :  { %2823 = vmatpush1.bf16.msra.mxu0 %v2822_v13  ;;  %v3002_v13 = vpack.c.bf16 %v1202_v10, %v1193_v8  ;;  %v3138_v10 = vpack.c.bf16 %v1242_v63, %v1233_v60  ;;  %v1305_v60 = vld [vmem:[%s5649_s3 + $0x388] sm:$0xff]  ;;  %v1314_v63 = vld [vmem:[%s5649_s3 + $0x3d0] sm:$0xff] }
  0xde   :  { %2825 = vmatprep.subr.bf16.mxu0 %v2824_v14  ;;  %v1192_v14 = vld [vmem:[%s5649_s3] sm:$0xff] }
  0xdf   :  { %v3004_v18 = vpack.c.bf16 %v1201_v16, %v1192_v14  ;;  %3003 = vmatprep.subr.bf16.mxu1 %v3002_v13  ;;  %v1251_v13 = vld [vmem:[%s5649_s3 + $0x1d8] sm:$0xff]  ;;  %v3020_v14 = vpack.c.bf16 %v1273_v5, %v1264_v2  ;;  %v1260_v16 = vld [vmem:[%s5649_s3 + $0x220] sm:$0xff]  ;;  %v1345_v5 = vld [vmem:[%s5649_s3 + $0x4c8] sm:$0xff] }
  0xe0   :  { %v1336_v2 = vld [vmem:[%s5649_s3 + $0x480] sm:$0xff] }
  0xe1   :  { %2827 = vmatpush1.bf16.msra.mxu0 %v2826_v24  ;;  %v400_v24 = vld [vmem:[%s5647_s1 + $0xbd0] sm:$0xff]  ;;  %3005 = vmatpush1.bf16.msra.mxu1 %v3004_v18 }
  0xe2   :  { %2829 = vmatprep.subr.bf16.mxu0 %v2828_v22  ;;  %v403_v22 = vld [vmem:[%s5647_s1 + $0xbe8] sm:$0xff]  ;;  %3007 = vmatprep.subr.bf16.mxu1 %v3006_v29  ;;  %v1250_v29 = vld [vmem:[%s5649_s3 + $0x1d0] sm:$0xff] }
  0xe3   :  { %v2858_v38 = vpack.c.bf16 %v403_v22, %v400_v24  ;;  %v1301_v24 = vld [vmem:[%s5649_s3 + $0x368] sm:$0xff]  ;;  %v1310_v22 = vld [vmem:[%s5649_s3 + $0x3b0] sm:$0xff] }
  0xe5   :  { %2831 = vmatpush1.bf16.msra.mxu0 %v2830_v30  ;;  %v1210_v30 = vld [vmem:[%s5649_s3 + $0x90] sm:$0xff] }
  0xe6   :  { %2833 = vmatprep.subr.bf16.mxu0 %v2832_v32  ;;  %v4611_v17 = vpop.f32.mrb[0].mxu1  ;;  %v1219_v32 = vld [vmem:[%s5649_s3 + $0xd8] sm:$0xff] }
  0xe7   :  { %v4619_v49 = vpop.f32.mrb[1].mxu1  ;;  %v3008_v34 = vpack.c.bf16 %v1219_v32, %v1210_v30  ;;  %v1259_v30 = vld [vmem:[%s5649_s3 + $0x218] sm:$0xff]  ;;  %v1269_v32 = vld [vmem:[%s5649_s3 + $0x268] sm:$0xff] }
  0xe9   :  { %2835 = vmatpush1.bf16.msra.mxu0 %v2834_v36  ;;  %v3010_v36 = vpack.c.bf16 %v1238_v35, %v1229_v26  ;;  %3009 = vmatpush1.bf16.msra.mxu1 %v3008_v34  ;;  %v1278_v26 = vld [vmem:[%s5649_s3 + $0x2b0] sm:$0xff]  ;;  %v3026_v35 = vpack.c.bf16 %v1310_v22, %v1301_v24  ;;  %v1373_v24 = vld [vmem:[%s5649_s3 + $0x5a8] sm:$0xff] }
  0xea   :  { %2837 = vmatprep.subr.bf16.mxu0 %v2836_v37  ;;  %v1228_v37 = vld [vmem:[%s5649_s3 + $0x120] sm:$0xff]  ;;  %v1382_v22 = vld [vmem:[%s5649_s3 + $0x5f0] sm:$0xff] }
  0xeb   :  { %v3012_v46 = vpack.c.bf16 %v1237_v41, %v1228_v37  ;;  %3011 = vmatprep.subr.bf16.mxu1 %v3010_v36  ;;  %v1300_v36 = vld [vmem:[%s5649_s3 + $0x360] sm:$0xff]  ;;  %v1309_v37 = vld [vmem:[%s5649_s3 + $0x3a8] sm:$0xff]  ;;  %v3144_v41 = vpack.c.bf16 %v1259_v30, %v1250_v29  ;;  %v1331_v29 = vld [vmem:[%s5649_s3 + $0x458] sm:$0xff] }
  0xec   :  { %v1341_v30 = vld [vmem:[%s5649_s3 + $0x4a8] sm:$0xff] }
  0xed   :  { %2839 = vmatpush1.bf16.msra.mxu0 %v2838_v43  ;;  %v3130_v43 = vpack.c.bf16 %v1206_v33, %v1197_v55  ;;  %3013 = vmatpush1.bf16.msra.mxu1 %v3012_v46  ;;  %v3142_v55 = vpack.c.bf16 %v1260_v16, %v1251_v13  ;;  %v1277_v46 = vld [vmem:[%s5649_s3 + $0x2a8] sm:$0xff]  ;;  %v1323_v13 = vld [vmem:[%s5649_s3 + $0x418] sm:$0xff]  ;;  %v1332_v16 = vld [vmem:[%s5649_s3 + $0x460] sm:$0xff] }
  0xee   :  { %2841 = vmatprep.subr.bf16.mxu0 %v2840_v45  ;;  %v1215_v45 = vld [vmem:[%s5649_s3 + $0xb8] sm:$0xff] }
  0xf1   :  { %2843 = vmatpush1.bf16.msra.mxu0 %v2842_v50  ;;  %v3014_v50 = vpack.c.bf16 %v1256_v47, %v1247_v15  ;;  %v1287_v15 = vld [vmem:[%s5649_s3 + $0x2f8] sm:$0xff]  ;;  %v3028_v47 = vpack.c.bf16 %v1309_v37, %v1300_v36  ;;  %v1400_v37 = vld [vmem:[%s5649_s3 + $0x680] sm:$0xff] }
  0xf2   :  { %2845 = vmatprep.subr.bf16.mxu0 %v2844_v51  ;;  %v1246_v51 = vld [vmem:[%s5649_s3 + $0x1b0] sm:$0xff]  ;;  %v1391_v36 = vld [vmem:[%s5649_s3 + $0x638] sm:$0xff] }
  0xf3   :  { %v3016_v61 = vpack.c.bf16 %v1255_v42, %v1246_v51  ;;  %3015 = vmatprep.subr.bf16.mxu1 %v3014_v50  ;;  %v3030_v50 = vpack.c.bf16 %v1328_v40, %v1319_v39  ;;  %v1318_v51 = vld [vmem:[%s5649_s3 + $0x3f0] sm:$0xff]  ;;  %v1327_v42 = vld [vmem:[%s5649_s3 + $0x438] sm:$0xff] }
  0xf5   :  { %2847 = vmatpush1.bf16.msra.mxu0 %v2846_v57  ;;  %v3134_v57 = vpack.c.bf16 %v1224_v48, %v1215_v45  ;;  %3017 = vmatpush1.bf16.msra.mxu1 %v3016_v61  ;;  %v1268_v45 = vld [vmem:[%s5649_s3 + $0x260] sm:$0xff]  ;;  %v3032_v61 = vpack.c.bf16 %v1327_v42, %v1318_v51  ;;  %v1409_v51 = vld [vmem:[%s5649_s3 + $0x6c8] sm:$0xff]  ;;  %v1418_v42 = vld [vmem:[%s5649_s3 + $0x710] sm:$0xff] }
  0xf6   :  { %2849 = vmatprep.subr.bf16.mxu0 %v2848_v58  ;;  %v1214_v58 = vld [vmem:[%s5649_s3 + $0xb0] sm:$0xff]  ;;  %v1296_v48 = vld [vmem:[%s5649_s3 + $0x340] sm:$0xff] }
  0xf7   :  { %v3136_v8 = vpack.c.bf16 %v1223_v59, %v1214_v58  ;;  %v1286_v58 = vld [vmem:[%s5649_s3 + $0x2f0] sm:$0xff]  ;;  %v1295_v59 = vld [vmem:[%s5649_s3 + $0x338] sm:$0xff] }
  0xf9   :  { %2851 = vmatpush1.bf16.msra.mxu0 %v2850_v1  ;;  %v3018_v1 = vpack.c.bf16 %v1274_v56, %v1265_v52  ;;  %v1337_v52 = vld [vmem:[%s5649_s3 + $0x488] sm:$0xff]  ;;  %v3148_v56 = vpack.c.bf16 %v1277_v46, %v1268_v45  ;;  %v1359_v45 = vld [vmem:[%s5649_s3 + $0x538] sm:$0xff] }
  0xfa   :  { %2853 = vmatprep.subr.bf16.mxu0 %v2852_v6  ;;  %v1283_v6 = vld [vmem:[%s5649_s3 + $0x2d8] sm:$0xff] }
  0xfb   :  { %3019 = vmatprep.subr.bf16.mxu1 %v3018_v1  ;;  %v3022_v18 = vpack.c.bf16 %v1292_v7, %v1283_v6  ;;  %v1355_v6 = vld [vmem:[%s5649_s3 + $0x518] sm:$0xff]  ;;  %v1364_v7 = vld [vmem:[%s5649_s3 + $0x560] sm:$0xff] }
  0xfc   :  { %3021 = vmatpush1.bf16.msra.mxu1 %v3020_v14  ;;  %v3036_v14 = vpack.c.bf16 %v1345_v5, %v1336_v2  ;;  %v1417_v2 = vld [vmem:[%s5649_s3 + $0x708] sm:$0xff]  ;;  %v1427_v5 = vld [vmem:[%s5649_s3 + $0x758] sm:$0xff] }
  0xfd   :  { %2855 = vmatpush1.bf16.msra.mxu0 %v2854_v21  ;;  %v1291_v21 = vld [vmem:[%s5649_s3 + $0x318] sm:$0xff]  ;;  %3023 = vmatprep.subr.bf16.mxu1 %v3022_v18  ;;  %v3038_v18 = vpack.c.bf16 %v1364_v7, %v1355_v6  ;;  %v1436_v6 = vld [vmem:[%s5649_s3 + $0x7a0] sm:$0xff] }
  0xfe   :  { %2857 = vmatprep.subr.bf16.mxu0 %v2856_v25  ;;  %v3024_v33 = vpack.c.bf16 %v1291_v21, %v1282_v19  ;;  %v1354_v19 = vld [vmem:[%s5649_s3 + $0x510] sm:$0xff]  ;;  %v1363_v21 = vld [vmem:[%s5649_s3 + $0x558] sm:$0xff] }
 0x100   :  { %3025 = vmatpush1.bf16.msra.mxu1 %v3024_v33  ;;  %v1350_v33 = vld [vmem:[%s5649_s3 + $0x4f0] sm:$0xff] }
 0x101   :  { %2859 = vmatpush1.bf16.msra.mxu0 %v2858_v38  ;;  %3027 = vmatprep.subr.bf16.mxu1 %v3026_v35  ;;  %v1381_v35 = vld [vmem:[%s5649_s3 + $0x5e8] sm:$0xff]  ;;  %v3162_v40 = vpack.c.bf16 %v1350_v33, %v1341_v30 }
 0x102   :  { %3131 = vmatprep.subr.bf16.mxu0 %v3130_v43  ;;  %v3146_v43 = vpack.c.bf16 %v1278_v26, %v1269_v32  ;;  %v3040_v32 = vpack.c.bf16 %v1363_v21, %v1354_v19  ;;  %v1372_v26 = vld [vmem:[%s5649_s3 + $0x5a0] sm:$0xff]  ;;  %v1426_v19 = vld [vmem:[%s5649_s3 + $0x750] sm:$0xff]  ;;  %v1435_v21 = vld [vmem:[%s5649_s3 + $0x798] sm:$0xff] }
 0x103   :  { %v3044_v46 = vpack.c.bf16 %v1381_v35, %v1372_v26  ;;  %v3056_v30 = vpack.c.bf16 %v1435_v21, %v1426_v19  ;;  %v1413_v33 = vld [vmem:[%s5649_s3 + $0x6e8] sm:$0xff]  ;;  %v1466_v19 = vld [vmem:[%s5649_s3 + $0x890] sm:$0xff]  ;;  %v1475_v21 = vld [vmem:[%s5649_s3 + $0x8d8] sm:$0xff] }
 0x104   :  { %762 = vmatmul.mubr.f32.vlgmr.msra.gmra.mrb[0].mxu0 %v4336_v4  ;;  %v1241_v4 = vld [vmem:[%s5649_s3 + $0x188] sm:$0xff]  ;;  %3029 = vmatpush1.bf16.msra.mxu1 %v3028_v47  ;;  %v3046_v47 = vpack.c.bf16 %v1400_v37, %v1391_v36  ;;  %v1412_v37 = vld [vmem:[%s5649_s3 + $0x6e0] sm:$0xff] }
 0x105   :  { %3133 = vmatpush1.bf16.msra.mxu0 %v3132_v54  ;;  %v3140_v23 = vpack.c.bf16 %v1241_v4, %v1232_v12  ;;  %v1346_v54 = vld [vmem:[%s5649_s3 + $0x4d0] sm:$0xff]  ;;  %3031 = vmatprep.subr.bf16.mxu1 %v3030_v50  ;;  %v1304_v12 = vld [vmem:[%s5649_s3 + $0x380] sm:$0xff]  ;;  %v1313_v4 = vld [vmem:[%s5649_s3 + $0x3c8] sm:$0xff] }
 0x106   :  { %3135 = vmatprep.subr.bf16.mxu0 %v3134_v57  ;;  %v2438_v25 = vpop.f32.mrb[2].mxu1  ;;  %v3150_v57 = vpack.c.bf16 %v1296_v48, %v1287_v15  ;;  %v3034_v1 = vpack.c.bf16 %v1346_v54, %v1337_v52  ;;  %v1368_v15 = vld [vmem:[%s5649_s3 + $0x580] sm:$0xff]  ;;  %v1390_v48 = vld [vmem:[%s5649_s3 + $0x630] sm:$0xff]  ;;  %v1399_v50 = vld [vmem:[%s5649_s3 + $0x678] sm:$0xff] }
 0x107   :  { %v2439_v34 = vpop.f32.mrb[3].mxu1  ;;  %v4933_v52 = vld [vmem:[%s5650_s2] sm:$0x7] }
 0x108   :  { %v4802_v38 = vadd.f32 %v2439_v34, %v2438_v25  ;;  %3033 = vmatpush1.bf16.msra.mxu1 %v3032_v61  ;;  %v3158_v25 = vpack.c.bf16 %v1332_v16, %v1323_v13  ;;  %v3042_v34 = vpack.c.bf16 %v1382_v22, %v1373_v24  ;;  %v1386_v61 = vld [vmem:[%s5649_s3 + $0x610] sm:$0xff]  ;;  %v1395_v13 = vld [vmem:[%s5649_s3 + $0x658] sm:$0xff]  ;;  %v1404_v16 = vld [vmem:[%s5649_s3 + $0x6a0] sm:$0xff] }
 0x109   :  { %3137 = vmatpush1.bf16.msra.mxu0 %v3136_v8  ;;  %v3152_v8 = vpack.c.bf16 %v1295_v59, %v1286_v58  ;;  %3035 = vmatprep.subr.bf16.mxu1 %v3034_v1  ;;  %v1367_v58 = vld [vmem:[%s5649_s3 + $0x578] sm:$0xff]  ;;  %v1377_v59 = vld [vmem:[%s5649_s3 + $0x5c8] sm:$0xff]  ;;  %v1408_v1 = vld [vmem:[%s5649_s3 + $0x6c0] sm:$0xff] }
 0x10a   :  { %3139 = vmatprep.subr.bf16.mxu0 %v3138_v10  ;;  %v3154_v10 = vpack.c.bf16 %v1314_v63, %v1305_v60  ;;  %v3048_v60 = vpack.c.bf16 %v1399_v50, %v1390_v48  ;;  %v3050_v63 = vpack.c.bf16 %v1418_v42, %v1409_v51 }
 0x10c   :  { %3037 = vmatpush1.bf16.msra.mxu1 %v3036_v14  ;;  %v3052_v14 = vpack.c.bf16 %v1417_v2, %v1408_v1  ;;  %v1448_v2 = vld [vmem:[%s5649_s3 + $0x800] sm:$0xff] }
 0x10d   :  { %3141 = vmatpush1.bf16.msra.mxu0 %v3140_v23  ;;  %v3156_v23 = vpack.c.bf16 %v1313_v4, %v1304_v12  ;;  %3039 = vmatprep.subr.bf16.mxu1 %v3038_v18  ;;  %v1376_v12 = vld [vmem:[%s5649_s3 + $0x5c0] sm:$0xff]  ;;  %v1385_v4 = vld [vmem:[%s5649_s3 + $0x608] sm:$0xff]  ;;  %v3054_v18 = vpack.c.bf16 %v1436_v6, %v1427_v5 }
 0x10e   :  { %3143 = vmatprep.subr.bf16.mxu0 %v3142_v55  ;;  %v1322_v55 = vld [vmem:[%s5649_s3 + $0x410] sm:$0xff]  ;;  %v3172_v24 = vpack.c.bf16 %v1385_v4, %v1376_v12  ;;  %v1457_v5 = vld [vmem:[%s5649_s3 + $0x848] sm:$0xff]  ;;  %v1476_v4 = vld [vmem:[%s5649_s3 + $0x8e0] sm:$0xff] }
 0x10f   :  { %v3160_v39 = vpack.c.bf16 %v1331_v29, %v1322_v55  ;;  %v1394_v55 = vld [vmem:[%s5649_s3 + $0x650] sm:$0xff]  ;;  %v1403_v29 = vld [vmem:[%s5649_s3 + $0x698] sm:$0xff]  ;;  %v3188_v6 = vpack.c.bf16 %v1457_v5, %v1448_v2  ;;  %v1221_v2 = vld [vmem:[%s5649_s3 + $0xe8] sm:$0xff] }
 0x110   :  { %3041 = vmatpush1.bf16.msra.mxu1 %v3040_v32  ;;  %v3176_v26 = vpack.c.bf16 %v1403_v29, %v1394_v55 }
 0x111   :  { %3145 = vmatpush1.bf16.msra.mxu0 %v3144_v41  ;;  %v1340_v41 = vld [vmem:[%s5649_s3 + $0x4a0] sm:$0xff]  ;;  %3043 = vmatprep.subr.bf16.mxu1 %v3042_v34 }
 0x112   :  { %3147 = vmatprep.subr.bf16.mxu0 %v3146_v43  ;;  %v1349_v43 = vld [vmem:[%s5649_s3 + $0x4e8] sm:$0xff] }
 0x113   :  { %v3164_v54 = vpack.c.bf16 %v1349_v43, %v1340_v41  ;;  %v1440_v41 = vld [vmem:[%s5649_s3 + $0x7c0] sm:$0xff] }
 0x114   :  { %3045 = vmatpush1.bf16.msra.mxu1 %v3044_v46  ;;  %v1430_v46 = vld [vmem:[%s5649_s3 + $0x770] sm:$0xff] }
 0x115   :  { %3149 = vmatpush1.bf16.msra.mxu0 %v3148_v56  ;;  %v3166_v56 = vpack.c.bf16 %v1368_v15, %v1359_v45  ;;  %3047 = vmatprep.subr.bf16.mxu1 %v3046_v47  ;;  %v1439_v15 = vld [vmem:[%s5649_s3 + $0x7b8] sm:$0xff] }
 0x116   :  { %3151 = vmatprep.subr.bf16.mxu0 %v3150_v57  ;;  %v1358_v57 = vld [vmem:[%s5649_s3 + $0x530] sm:$0xff]  ;;  %v3184_v47 = vpack.c.bf16 %v1439_v15, %v1430_v46  ;;  %v1353_v46 = vld [vmem:[%s5649_s3 + $0x508] sm:$0xff] }
 0x117   :  { %v3168_v7 = vpack.c.bf16 %v1367_v58, %v1358_v57  ;;  %v1449_v57 = vld [vmem:[%s5649_s3 + $0x808] sm:$0xff] }
 0x118   :  { %3049 = vmatpush1.bf16.msra.mxu1 %v3048_v60  ;;  %v1444_v60 = vld [vmem:[%s5649_s3 + $0x7e0] sm:$0xff] }
 0x119   :  { %3153 = vmatpush1.bf16.msra.mxu0 %v3152_v8  ;;  %v477_v8 = vrot.slane %v4933_v52, %v3904_v9  ;;  %3051 = vmatprep.subr.bf16.mxu1 %v3050_v63 }
 0x11a   :  { %3155 = vmatprep.subr.bf16.mxu0 %v3154_v10  ;;  %v3170_v10 = vpack.c.bf16 %v1386_v61, %v1377_v59  ;;  %v1458_v59 = vld [vmem:[%s5649_s3 + $0x850] sm:$0xff]  ;;  %v1453_v61 = vld [vmem:[%s5649_s3 + $0x828] sm:$0xff] }
 0x11b   :  { %v906_v22 = vadd.f32 %v4802_v38, %v477_v8  ;;  %v1422_v38 = vld [vmem:[%s5649_s3 + $0x730] sm:$0xff]  ;;  %v3186_v63 = vpack.c.bf16 %v1458_v59, %v1449_v57  ;;  %v3060_v1 = vpack.c.bf16 %v1453_v61, %v1444_v60  ;;  %v1472_v8 = vld [vmem:[%s5649_s3 + $0x8c0] sm:$0xff]  ;;  %v1213_v57 = vld [vmem:[%s5649_s3 + $0xa8] sm:$0xff] }
 0x11c   :  { %3053 = vmatpush1.bf16.msra.mxu1 %v3052_v14  ;;  %v3178_v36 = vpack.c.bf16 %v1422_v38, %v1413_v33  ;;  %v1471_v14 = vld [vmem:[%s5649_s3 + $0x8b8] sm:$0xff]  ;;  %v1362_v59 = vld [vmem:[%s5649_s3 + $0x550] sm:$0xff] }
 0x11d   :  { %3157 = vmatpush1.bf16.msra.mxu0 %v3156_v23  ;;  %3055 = vmatprep.subr.bf16.mxu1 %v3054_v18  ;;  %v1371_v60 = vld [vmem:[%s5649_s3 + $0x598] sm:$0xff] }
 0x11e   :  { %3159 = vmatprep.subr.bf16.mxu0 %v3158_v25  ;;  %v3174_v25 = vpack.c.bf16 %v1404_v16, %v1395_v13  ;;  %v1462_v13 = vld [vmem:[%s5649_s3 + $0x870] sm:$0xff] }
 0x11f   :  { %v3064_v18 = vpack.c.bf16 %v1471_v14, %v1462_v13  ;;  %v1380_v13 = vld [vmem:[%s5649_s3 + $0x5e0] sm:$0xff]  ;;  %v1389_v14 = vld [vmem:[%s5649_s3 + $0x628] sm:$0xff] }
 0x120   :  { %3057 = vmatpush1.bf16.msra.mxu1 %v3056_v30 }
 0x121   :  { %3161 = vmatpush1.bf16.msra.mxu0 %v3160_v39  ;;  %v1421_v39 = vld [vmem:[%s5649_s3 + $0x728] sm:$0xff] }
 0x122   :  { %3163 = vmatprep.subr.bf16.mxu0 %v3162_v40  ;;  %v1431_v40 = vld [vmem:[%s5649_s3 + $0x778] sm:$0xff]  ;;  %v3180_v43 = vpack.c.bf16 %v1421_v39, %v1412_v37 }
 0x123   :  { %v3182_v45 = vpack.c.bf16 %v1440_v41, %v1431_v40 }
 0x125   :  { %3165 = vmatpush1.bf16.msra.mxu0 %v3164_v54  ;;  %v1445_v54 = vld [vmem:[%s5649_s3 + $0x7e8] sm:$0xff] }
 0x126   :  { %3167 = vmatprep.subr.bf16.mxu0 %v3166_v56  ;;  %v2473_v23 = vpop.f32.mrb[4].mxu1  ;;  %v1454_v56 = vld [vmem:[%s5649_s3 + $0x830] sm:$0xff] }
 0x127   :  { %v2474_v32 = vpop.f32.mrb[5].mxu1  ;;  %v3058_v58 = vpack.c.bf16 %v1454_v56, %v1445_v54  ;;  %v1200_v54 = vld [vmem:[%s5649_s3 + $0x40] sm:$0xff]  ;;  %v1209_v56 = vld [vmem:[%s5649_s3 + $0x88] sm:$0xff] }
 0x128   :  { %v2475_v34 = vadd.f32 %v2474_v32, %v2473_v23  ;;  %v1485_v23 = vld [vmem:[%s5649_s3 + $0x928] sm:$0xff] }
 0x129   :  { %3169 = vmatpush1.bf16.msra.mxu0 %v3168_v7  ;;  %3059 = vmatprep.subr.bf16.mxu1 %v3058_v58  ;;  %v1463_v7 = vld [vmem:[%s5649_s3 + $0x878] sm:$0xff]  ;;  %v1222_v58 = vld [vmem:[%s5649_s3 + $0xf0] sm:$0xff] }
 0x12a   :  { %3171 = vmatprep.subr.bf16.mxu0 %v3170_v10  ;;  %v976_v35 = vadd.f32 %v2475_v34, %v906_v22  ;;  %3061 = vmatpush1.bf16.msra.mxu1 %v3060_v1  ;;  %v1467_v10 = vld [vmem:[%s5649_s3 + $0x898] sm:$0xff]  ;;  %v3062_v12 = vpack.c.bf16 %v1472_v8, %v1463_v7  ;;  %v1481_v22 = vld [vmem:[%s5649_s3 + $0x908] sm:$0xff]  ;;  %v469_v34 = vrot.slane %v4933_v52, %v3703_v31  ;;  %v1212_v1 = vld [vmem:[%s5649_s3 + $0xa0] sm:$0xff] }
 0x12b   :  { %v3190_v16 = vpack.c.bf16 %v1476_v4, %v1467_v10  ;;  %v1227_v7 = vld [vmem:[%s5649_s3 + $0x118] sm:$0xff]  ;;  %v3070_v10 = vpack.c.bf16 %v1222_v58, %v1213_v57  ;;  %v1240_v4 = vld [vmem:[%s5649_s3 + $0x180] sm:$0xff]  ;;  %v1434_v57 = vld [vmem:[%s5649_s3 + $0x790] sm:$0xff] }
 0x12c   :  { %3063 = vmatprep.subr.bf16.mxu1 %v3062_v12  ;;  %v1231_v8 = vld [vmem:[%s5649_s3 + $0x138] sm:$0xff]  ;;  %v3262_v12 = vpack.c.bf16 %v1371_v60, %v1362_v59 }
 0x12d   :  { %3173 = vmatpush1.bf16.msra.mxu0 %v3172_v24  ;;  %v3192_v24 = vpack.c.bf16 %v1475_v21, %v1466_v19  ;;  %v1230_v19 = vld [vmem:[%s5649_s3 + $0x130] sm:$0xff]  ;;  %v1239_v21 = vld [vmem:[%s5649_s3 + $0x178] sm:$0xff] }
 0x12e   :  { %3175 = vmatprep.subr.bf16.mxu0 %v3174_v25  ;;  %3065 = vmatpush1.bf16.msra.mxu1 %v3064_v18  ;;  %v1443_v58 = vld [vmem:[%s5649_s3 + $0x7d8] sm:$0xff] }
 0x12f   :  { %1613 = vmatprep.subr.mxu1 %v1481_v22  ;;  %v3266_v22 = vpack.c.bf16 %v1389_v14, %v1380_v13 }
 0x131   :  { %3177 = vmatpush1.bf16.msra.mxu0 %v3176_v26  ;;  %v473_v26 = vrot.slane %v4933_v52, %v3484_v44  ;;  %v1344_v52 = vld [vmem:[%s5649_s3 + $0x4c0] sm:$0xff] }
 0x132   :  { %3179 = vmatprep.subr.bf16.mxu0 %v3178_v36 }
 0x135   :  { %3181 = vmatpush1.bf16.msra.mxu0 %v3180_v43  ;;  %v1195_v43 = vld [vmem:[%s5649_s3 + $0x18] sm:$0xff] }
 0x136   :  { %3183 = vmatprep.subr.bf16.mxu0 %v3182_v45  ;;  %v1204_v45 = vld [vmem:[%s5649_s3 + $0x60] sm:$0xff] }
 0x139   :  { %3185 = vmatpush1.bf16.msra.mxu0 %v3184_v47  ;;  %v1484_v47 = vld [vmem:[%s5649_s3 + $0x920] sm:$0xff] }
 0x13a   :  { %3187 = vmatprep.subr.bf16.mxu0 %v3186_v63  ;;  %v3260_v63 = vpack.c.bf16 %v1209_v56, %v1200_v54  ;;  %v1285_v54 = vld [vmem:[%s5649_s3 + $0x2e8] sm:$0xff]  ;;  %v1294_v56 = vld [vmem:[%s5649_s3 + $0x330] sm:$0xff] }
 0x13d   :  { %3189 = vmatpush1.bf16.msra.mxu0 %v3188_v6  ;;  %v1218_v6 = vld [vmem:[%s5649_s3 + $0xd0] sm:$0xff] }
 0x13e   :  { %3191 = vmatprep.subr.bf16.mxu0 %v3190_v16  ;;  %v3072_v16 = vpack.c.bf16 %v1221_v2, %v1212_v1  ;;  %v3264_v18 = vpack.c.bf16 %v1227_v7, %v1218_v6  ;;  %v3086_v1 = vpack.c.bf16 %v1294_v56, %v1285_v54  ;;  %v3278_v2 = vpack.c.bf16 %v1443_v58, %v1434_v57  ;;  %v1290_v6 = vld [vmem:[%s5649_s3 + $0x310] sm:$0xff]  ;;  %v1299_v7 = vld [vmem:[%s5649_s3 + $0x358] sm:$0xff]  ;;  %v1384_v54 = vld [vmem:[%s5649_s3 + $0x600] sm:$0xff] }
 0x13f   :  { %v3280_v14 = vpack.c.bf16 %v1299_v7, %v1290_v6  ;;  %v1374_v58 = vld [vmem:[%s5649_s3 + $0x5b0] sm:$0xff]  ;;  %v1401_v6 = vld [vmem:[%s5649_s3 + $0x688] sm:$0xff]  ;;  %v1411_v7 = vld [vmem:[%s5649_s3 + $0x6d8] sm:$0xff] }
 0x141   :  { %3193 = vmatpush1.bf16.msra.mxu0 %v3192_v24  ;;  %v3074_v24 = vpack.c.bf16 %v1240_v4, %v1231_v8  ;;  %v1303_v8 = vld [vmem:[%s5649_s3 + $0x378] sm:$0xff]  ;;  %v1461_v4 = vld [vmem:[%s5649_s3 + $0x868] sm:$0xff] }
 0x142   :  { %1897 = vmatprep.subr.mxu0 %v1485_v23  ;;  %v1236_v23 = vld [vmem:[%s5649_s3 + $0x160] sm:$0xff] }
 0x146   :  { %v2508_v48 = vpop.f32.mrb[6].mxu1 }
 0x147   :  { %v2509_v50 = vpop.f32.mrb[7].mxu1 }
 0x148   :  { %v2510_v51 = vadd.f32 %v2509_v50, %v2508_v48  ;;  %v3066_v48 = vpack.c.bf16 %v1204_v45, %v1195_v43  ;;  %v3258_v50 = vpack.c.bf16 %v1353_v46, %v1344_v52  ;;  %v1416_v43 = vld [vmem:[%s5649_s3 + $0x700] sm:$0xff]  ;;  %v1425_v45 = vld [vmem:[%s5649_s3 + $0x748] sm:$0xff] }
 0x14a   :  { %v1046_v42 = vadd.f32 %v2510_v51, %v976_v35  ;;  %v1194_v51 = vld [vmem:[%s5649_s3 + $0x10] sm:$0xff] }
 0x166   :  { %v2543_v25 = vpop.f32.mrb[8].mxu1 }
 0x167   :  { %v2544_v55 = vpop.f32.mrb[9].mxu1 }
 0x168   :  { %v2545_v29 = vadd.f32 %v2544_v55, %v2543_v25  ;;  %v1245_v25 = vld [vmem:[%s5649_s3 + $0x1a8] sm:$0xff] }
 0x169   :  { %v1249_v55 = vld [vmem:[%s5649_s3 + $0x1c8] sm:$0xff] }
 0x16a   :  { %v1116_v30 = vadd.f32 %v2545_v29, %v1046_v42  ;;  %v1203_v42 = vld [vmem:[%s5649_s3 + $0x58] sm:$0xff]  ;;  %v1258_v29 = vld [vmem:[%s5649_s3 + $0x210] sm:$0xff] }
 0x16b   :  { %v3068_v61 = vpack.c.bf16 %v1203_v42, %v1194_v51  ;;  %v1272_v51 = vld [vmem:[%s5649_s3 + $0x280] sm:$0xff]  ;;  %v1281_v42 = vld [vmem:[%s5649_s3 + $0x2c8] sm:$0xff] }
 0x16c   :  { %v3276_v60 = vpack.c.bf16 %v1281_v42, %v1272_v51  ;;  %v1365_v51 = vld [vmem:[%s5649_s3 + $0x568] sm:$0xff]  ;;  %v1375_v42 = vld [vmem:[%s5649_s3 + $0x5b8] sm:$0xff] }
 0x16d   :  { %v3106_v57 = vpack.c.bf16 %v1384_v54, %v1375_v42  ;;  %v1235_v42 = vld [vmem:[%s5649_s3 + $0x158] sm:$0xff]  ;;  %v1244_v54 = vld [vmem:[%s5649_s3 + $0x1a0] sm:$0xff] }
 0x16e   :  { %v1185_v32 = vpop.f32.mrb[10].mxu1 }
 0x16f   :  { %v1186_v33 = vadd.f32 %v1185_v32, %v1116_v30  ;;  %v2598_v38 = vpop.f32.mrb[11].mxu1  ;;  %v1398_v30 = vld [vmem:[%s5649_s3 + $0x670] sm:$0xff]  ;;  %v1407_v32 = vld [vmem:[%s5649_s3 + $0x6b8] sm:$0xff] }
 0x170   :  { %v3268_v38 = vpack.c.bf16 %v1245_v25, %v1236_v23  ;;  %v1321_v23 = vld [vmem:[%s5649_s3 + $0x408] sm:$0xff]  ;;  %v1330_v25 = vld [vmem:[%s5649_s3 + $0x450] sm:$0xff] }
 0x171   :  { %v5128_v5 = vmax.f32 %v1186_v33, 0.0  ;;  %v3076_v33 = vpack.c.bf16 %v1239_v21, %v1230_v19 }
 0x1d7   :  { %v763_v35 = vpop.f32.mrb[0].mxu0 }
 0x1d8   :  { %v3290_v36 = vadd.f32 %v763_v35, %v469_v34  ;;  %v765_v37 = vpop.f32.mrb[1].mxu0  ;;  %v1248_v34 = vld [vmem:[%s5649_s3 + $0x1c0] sm:$0xff]  ;;  %v3078_v35 = vpack.c.bf16 %v1258_v29, %v1249_v55  ;;  %v1470_v55 = vld [vmem:[%s5649_s3 + $0x8b0] sm:$0xff]  ;;  %v1479_v29 = vld [vmem:[%s5649_s3 + $0x8f8] sm:$0xff] }
 0x1d9   :  { %v3292_v39 = vadd.f32 %v765_v37, %v473_v26  ;;  %v1257_v26 = vld [vmem:[%s5649_s3 + $0x208] sm:$0xff]  ;;  %v1254_v37 = vld [vmem:[%s5649_s3 + $0x1f0] sm:$0xff] }
 0x1da   :  { %v3291_v40 = vadd.f32 %v3290_v36, %v4611_v17  ;;  %v3270_v36 = vpack.c.bf16 %v1407_v32, %v1398_v30  ;;  %v3080_v52 = vpack.c.bf16 %v1257_v26, %v1248_v34  ;;  %v3286_v34 = vpack.c.bf16 %v1479_v29, %v1470_v55  ;;  %v1329_v26 = vld [vmem:[%s5649_s3 + $0x448] sm:$0xff]  ;;  %v1446_v29 = vld [vmem:[%s5649_s3 + $0x7f0] sm:$0xff] }
 0x1db   :  { %v3293_v41 = vadd.f32 %v3292_v39, %v4619_v49  ;;  %v1480_v49 = vld [vmem:[%s5649_s3 + $0x900] sm:$0xff]  ;;  %v1263_v39 = vld [vmem:[%s5649_s3 + $0x238] sm:$0xff] }
 0x1dc   :  { %v5084_v17 = vmax.f32 %v3291_v40, 0.0  ;;  %v1267_v40 = vld [vmem:[%s5649_s3 + $0x258] sm:$0xff]  ;;  %v3272_v46 = vpack.c.bf16 %v1263_v39, %v1254_v37  ;;  %v1348_v39 = vld [vmem:[%s5649_s3 + $0x4e0] sm:$0xff] }
 0x1dd   :  { %v5082_v15 = vmax.f32 %v3293_v41, 0.0  ;;  %v1276_v41 = vld [vmem:[%s5649_s3 + $0x2a0] sm:$0xff]  ;;  %v1339_v37 = vld [vmem:[%s5649_s3 + $0x498] sm:$0xff] }
 0x1df   :  { %1606 = vmatprep.mubr.f32.mxu1 %v5082_v15  ;;  %1890 = vmatprep.mubr.f32.mxu0 %v5082_v15 }
 0x1e0   :  { %1607 = vmatmul.mubr.f32.vlgmr.msra.gmra.mrb[12].mxu1 %v5084_v17  ;;  %1891 = vmatmul.mubr.f32.vlgmr.msra.gmra.mrb[2].mxu0 %v5084_v17 }
 0x1e1   :  { %1614 = vmatpush1.msra.mxu1 %v1480_v49  ;;  %1898 = vmatpush1.msra.mxu0 %v1484_v47  ;;  %v1266_v49 = vld [vmem:[%s5649_s3 + $0x250] sm:$0xff]  ;;  %v1275_v47 = vld [vmem:[%s5649_s3 + $0x298] sm:$0xff] }
 0x1e2   :  { %1677 = vmatprep.mubr.f32.mxu1 %v3358_v3  ;;  %3067 = vmatprep.subr.bf16.mxu1 %v3066_v48  ;;  %v3082_v48 = vpack.c.bf16 %v1276_v41, %v1267_v40  ;;  %v3084_v59 = vpack.c.bf16 %v1275_v47, %v1266_v49  ;;  %v1366_v49 = vld [vmem:[%s5649_s3 + $0x570] sm:$0xff] }
 0x1e3   :  { %1961 = vmatprep.mubr.f32.mxu0 %v3358_v3  ;;  %3259 = vmatprep.subr.bf16.mxu0 %v3258_v50  ;;  %v3274_v50 = vpack.c.bf16 %v1425_v45, %v1416_v43  ;;  %v3098_v43 = vpack.c.bf16 %v1348_v39, %v1339_v37  ;;  %v1338_v45 = vld [vmem:[%s5649_s3 + $0x490] sm:$0xff]  ;;  %v1483_v37 = vld [vmem:[%s5649_s3 + $0x918] sm:$0xff] }
 0x1e4   :  { %v1199_v39 = vld [vmem:[%s5649_s3 + $0x38] sm:$0xff] }
 0x1e8   :  { %2392 = vmatmul.mubr.msk.f32.vlgmr.msra.gmra.mrb[12].mxu1 %vm1538_vm2, %v5128_v5  ;;  %2394 = vmatmul.mubr.msk.f32.vlgmr.msra.gmra.mrb[2].mxu0 %vm1538_vm2, %v5128_v5 }
 0x1e9   :  { %3069 = vmatpush1.bf16.msra.mxu1 %v3068_v61  ;;  %3261 = vmatpush3.bf16.msra.mxu0 %v3260_v63  ;;  %v1284_v61 = vld [vmem:[%s5649_s3 + $0x2e0] sm:$0xff]  ;;  %v1293_v63 = vld [vmem:[%s5649_s3 + $0x328] sm:$0xff] }
 0x1ea   :  { %1748 = vmatprep.mubr.f32.mxu1 %v5082_v15  ;;  %2174 = vmatprep.mubr.f32.mxu0 %v5082_v15  ;;  %v3088_v13 = vpack.c.bf16 %v1293_v63, %v1284_v61  ;;  %v1402_v61 = vld [vmem:[%s5649_s3 + $0x690] sm:$0xff] }
 0x1eb   :  { %3071 = vmatprep.subr.bf16.mxu1 %v3070_v10  ;;  %3263 = vmatprep.subr.bf16.mxu0 %v3262_v12  ;;  %v1312_v10 = vld [vmem:[%s5649_s3 + $0x3c0] sm:$0xff] }
 0x1ec   :  { %v1452_v12 = vld [vmem:[%s5649_s3 + $0x820] sm:$0xff]  ;;  %v3090_v19 = vpack.c.bf16 %v1312_v10, %v1303_v8 }
 0x1ed   :  { %3073 = vmatpush1.bf16.msra.mxu1 %v3072_v16  ;;  %3265 = vmatpush3.bf16.msra.mxu0 %v3264_v18  ;;  %v1302_v16 = vld [vmem:[%s5649_s3 + $0x370] sm:$0xff]  ;;  %v1311_v18 = vld [vmem:[%s5649_s3 + $0x3b8] sm:$0xff]  ;;  %v3282_v21 = vpack.c.bf16 %v1461_v4, %v1452_v12  ;;  %v1420_v8 = vld [vmem:[%s5649_s3 + $0x720] sm:$0xff] }
 0x1ee   :  { %3075 = vmatprep.subr.bf16.mxu1 %v3074_v24  ;;  %3267 = vmatprep.subr.bf16.mxu0 %v3266_v22  ;;  %v1308_v24 = vld [vmem:[%s5649_s3 + $0x3a0] sm:$0xff]  ;;  %v1317_v22 = vld [vmem:[%s5649_s3 + $0x3e8] sm:$0xff]  ;;  %v3092_v30 = vpack.c.bf16 %v1311_v18, %v1302_v16  ;;  %v3114_v12 = vpack.c.bf16 %v1420_v8, %v1411_v7  ;;  %v1410_v4 = vld [vmem:[%s5649_s3 + $0x6d0] sm:$0xff] }
 0x1ef   :  { %v3284_v32 = vpack.c.bf16 %v1317_v22, %v1308_v24  ;;  %v1438_v16 = vld [vmem:[%s5649_s3 + $0x7b0] sm:$0xff]  ;;  %v1437_v24 = vld [vmem:[%s5649_s3 + $0x7a8] sm:$0xff]  ;;  %v1447_v22 = vld [vmem:[%s5649_s3 + $0x7f8] sm:$0xff] }
 0x1f0   :  { %v1280_v7 = vld [vmem:[%s5649_s3 + $0x2c0] sm:$0xff] }
 0x1f1   :  { %3077 = vmatpush1.bf16.msra.mxu1 %v3076_v33  ;;  %3269 = vmatpush3.bf16.msra.mxu0 %v3268_v38  ;;  %v1320_v33 = vld [vmem:[%s5649_s3 + $0x400] sm:$0xff]  ;;  %v3094_v38 = vpack.c.bf16 %v1330_v25, %v1321_v23 }
 0x1f2   :  { %3079 = vmatprep.subr.bf16.mxu1 %v3078_v35  ;;  %3271 = vmatprep.subr.bf16.mxu0 %v3270_v36  ;;  %v1326_v35 = vld [vmem:[%s5649_s3 + $0x430] sm:$0xff]  ;;  %v1335_v36 = vld [vmem:[%s5649_s3 + $0x478] sm:$0xff]  ;;  %v3096_v40 = vpack.c.bf16 %v1329_v26, %v1320_v33  ;;  %v1456_v23 = vld [vmem:[%s5649_s3 + $0x840] sm:$0xff] }
 0x1f3   :  { %v3288_v41 = vpack.c.bf16 %v1335_v36, %v1326_v35  ;;  %v3122_v55 = vpack.c.bf16 %v1456_v23, %v1447_v22  ;;  %v1474_v33 = vld [vmem:[%s5649_s3 + $0x8d0] sm:$0xff]  ;;  %v1464_v26 = vld [vmem:[%s5649_s3 + $0x880] sm:$0xff]  ;;  %v1473_v35 = vld [vmem:[%s5649_s3 + $0x8c8] sm:$0xff] }
 0x1f4   :  { %v3128_v36 = vpack.c.bf16 %v1473_v35, %v1464_v26  ;;  %v1316_v22 = vld [vmem:[%s5649_s3 + $0x3e0] sm:$0xff]  ;;  %v1333_v26 = vld [vmem:[%s5649_s3 + $0x468] sm:$0xff]  ;;  %v1343_v35 = vld [vmem:[%s5649_s3 + $0x4b8] sm:$0xff] }
 0x1f5   :  { %3081 = vmatpush1.bf16.msra.mxu1 %v3080_v52  ;;  %3273 = vmatpush3.bf16.msra.mxu0 %v3272_v46  ;;  %v1347_v52 = vld [vmem:[%s5649_s3 + $0x4d8] sm:$0xff]  ;;  %v1357_v46 = vld [vmem:[%s5649_s3 + $0x528] sm:$0xff] }
 0x1f6   :  { %3083 = vmatprep.subr.bf16.mxu1 %v3082_v48  ;;  %3275 = vmatprep.subr.bf16.mxu0 %v3274_v50  ;;  %v3100_v47 = vpack.c.bf16 %v1347_v52, %v1338_v45  ;;  %v3102_v48 = vpack.c.bf16 %v1366_v49, %v1357_v46  ;;  %v1356_v50 = vld [vmem:[%s5649_s3 + $0x520] sm:$0xff]  ;;  %v1198_v45 = vld [vmem:[%s5649_s3 + $0x30] sm:$0xff]  ;;  %v1207_v52 = vld [vmem:[%s5649_s3 + $0x78] sm:$0xff] }
 0x1f7   :  { %v3104_v56 = vpack.c.bf16 %v1365_v51, %v1356_v50  ;;  %v1217_v46 = vld [vmem:[%s5649_s3 + $0xc8] sm:$0xff]  ;;  %v1226_v49 = vld [vmem:[%s5649_s3 + $0x110] sm:$0xff]  ;;  %v1216_v50 = vld [vmem:[%s5649_s3 + $0xc0] sm:$0xff] }
 0x1f8   :  { %v1225_v51 = vld [vmem:[%s5649_s3 + $0x108] sm:$0xff] }
 0x1f9   :  { %3085 = vmatpush1.bf16.msra.mxu1 %v3084_v59  ;;  %3277 = vmatpush3.bf16.msra.mxu0 %v3276_v60  ;;  %v1383_v59 = vld [vmem:[%s5649_s3 + $0x5f8] sm:$0xff]  ;;  %v1393_v60 = vld [vmem:[%s5649_s3 + $0x648] sm:$0xff] }
 0x1fa   :  { %3087 = vmatprep.subr.bf16.mxu1 %v3086_v1  ;;  %3279 = vmatprep.subr.bf16.mxu0 %v3278_v2  ;;  %v3108_v63 = vpack.c.bf16 %v1383_v59, %v1374_v58  ;;  %v3110_v1 = vpack.c.bf16 %v1402_v61, %v1393_v60  ;;  %v1392_v2 = vld [vmem:[%s5649_s3 + $0x640] sm:$0xff]  ;;  %v1234_v58 = vld [vmem:[%s5649_s3 + $0x150] sm:$0xff]  ;;  %v1243_v59 = vld [vmem:[%s5649_s3 + $0x198] sm:$0xff] }
 0x1fb   :  { %v3112_v10 = vpack.c.bf16 %v1401_v6, %v1392_v2  ;;  %v1253_v60 = vld [vmem:[%s5649_s3 + $0x1e8] sm:$0xff]  ;;  %v1262_v61 = vld [vmem:[%s5649_s3 + $0x230] sm:$0xff]  ;;  %v1271_v6 = vld [vmem:[%s5649_s3 + $0x278] sm:$0xff] }
 0x1fc   :  { %v1261_v2 = vld [vmem:[%s5649_s3 + $0x228] sm:$0xff] }
 0x1fd   :  { %3089 = vmatpush1.bf16.msra.mxu1 %v3088_v13  ;;  %3281 = vmatpush3.bf16.msra.mxu0 %v3280_v14  ;;  %v1419_v13 = vld [vmem:[%s5649_s3 + $0x718] sm:$0xff]  ;;  %v1429_v14 = vld [vmem:[%s5649_s3 + $0x768] sm:$0xff] }
 0x1fe   :  { %3091 = vmatprep.subr.bf16.mxu1 %v3090_v19  ;;  %3283 = vmatprep.subr.bf16.mxu0 %v3282_v21  ;;  %v3116_v18 = vpack.c.bf16 %v1419_v13, %v1410_v4  ;;  %v3118_v19 = vpack.c.bf16 %v1438_v16, %v1429_v14  ;;  %v1428_v21 = vld [vmem:[%s5649_s3 + $0x760] sm:$0xff]  ;;  %v1279_v4 = vld [vmem:[%s5649_s3 + $0x2b8] sm:$0xff]  ;;  %v1289_v13 = vld [vmem:[%s5649_s3 + $0x308] sm:$0xff] }
 0x1ff   :  { %v3120_v25 = vpack.c.bf16 %v1437_v24, %v1428_v21  ;;  %v1298_v14 = vld [vmem:[%s5649_s3 + $0x350] sm:$0xff]  ;;  %v1297_v21 = vld [vmem:[%s5649_s3 + $0x348] sm:$0xff]  ;;  %v1307_v24 = vld [vmem:[%s5649_s3 + $0x398] sm:$0xff] }
 0x201   :  { %3093 = vmatpush1.bf16.msra.mxu1 %v3092_v30  ;;  %3285 = vmatpush3.bf16.msra.mxu0 %v3284_v32  ;;  %v1455_v30 = vld [vmem:[%s5649_s3 + $0x838] sm:$0xff]  ;;  %v1465_v32 = vld [vmem:[%s5649_s3 + $0x888] sm:$0xff] }
 0x202   :  { %3095 = vmatprep.subr.bf16.mxu1 %v3094_v38  ;;  %3287 = vmatprep.subr.bf16.mxu0 %v3286_v34  ;;  %v3124_v38 = vpack.c.bf16 %v1455_v30, %v1446_v29  ;;  %v3126_v34 = vpack.c.bf16 %v1474_v33, %v1465_v32  ;;  %v1315_v29 = vld [vmem:[%s5649_s3 + $0x3d8] sm:$0xff]  ;;  %v1325_v30 = vld [vmem:[%s5649_s3 + $0x428] sm:$0xff]  ;;  %v1334_v32 = vld [vmem:[%s5649_s3 + $0x470] sm:$0xff] }
 0x205   :  { %3097 = vmatpush1.bf16.msra.mxu1 %v3096_v40  ;;  %3289 = vmatpush3.bf16.msra.mxu0 %v3288_v41  ;;  %v1208_v40 = vld [vmem:[%s5649_s3 + $0x80] sm:$0xff]  ;;  %v1482_v41 = vld [vmem:[%s5649_s3 + $0x910] sm:$0xff] }
 0x206   :  { %3099 = vmatprep.subr.bf16.mxu1 %v3098_v43  ;;  %v3194_v43 = vpack.c.bf16 %v1208_v40, %v1199_v39  ;;  %v1342_v40 = vld [vmem:[%s5649_s3 + $0x4b0] sm:$0xff] }
 0x208   :  { %2175 = vmatmul.mubr.f32.vlgmr.msra.gmra.mrb[4].mxu0 %v5084_v17 }
 0x209   :  { %3101 = vmatpush1.bf16.msra.mxu1 %v3100_v47  ;;  %v3196_v47 = vpack.c.bf16 %v1207_v52, %v1198_v45  ;;  %v1370_v45 = vld [vmem:[%s5649_s3 + $0x590] sm:$0xff] }
 0x20a   :  { %3103 = vmatprep.subr.bf16.mxu1 %v3102_v48  ;;  %v3198_v48 = vpack.c.bf16 %v1226_v49, %v1217_v46  ;;  %v1360_v49 = vld [vmem:[%s5649_s3 + $0x540] sm:$0xff] }
 0x20d   :  { %3105 = vmatpush1.bf16.msra.mxu1 %v3104_v56  ;;  %v3200_v56 = vpack.c.bf16 %v1225_v51, %v1216_v50  ;;  %v1388_v50 = vld [vmem:[%s5649_s3 + $0x620] sm:$0xff] }
 0x20e   :  { %3107 = vmatprep.subr.bf16.mxu1 %v3106_v57  ;;  %v3202_v57 = vpack.c.bf16 %v1244_v54, %v1235_v42  ;;  %v1378_v54 = vld [vmem:[%s5649_s3 + $0x5d0] sm:$0xff] }
 0x211   :  { %3109 = vmatpush1.bf16.msra.mxu1 %v3108_v63  ;;  %v3206_v63 = vpack.c.bf16 %v1262_v61, %v1253_v60  ;;  %v1396_v61 = vld [vmem:[%s5649_s3 + $0x660] sm:$0xff] }
 0x212   :  { %3111 = vmatprep.subr.bf16.mxu1 %v3110_v1  ;;  %v1252_v1 = vld [vmem:[%s5649_s3 + $0x1e0] sm:$0xff] }
 0x213   :  { %v3208_v8 = vpack.c.bf16 %v1261_v2, %v1252_v1  ;;  %v1424_v1 = vld [vmem:[%s5649_s3 + $0x740] sm:$0xff] }
 0x215   :  { %3113 = vmatpush1.bf16.msra.mxu1 %v3112_v10  ;;  %v3210_v10 = vpack.c.bf16 %v1280_v7, %v1271_v6  ;;  %v1414_v7 = vld [vmem:[%s5649_s3 + $0x6f0] sm:$0xff] }
 0x216   :  { %3115 = vmatprep.subr.bf16.mxu1 %v3114_v12  ;;  %v1270_v12 = vld [vmem:[%s5649_s3 + $0x270] sm:$0xff] }
 0x217   :  { %v3212_v16 = vpack.c.bf16 %v1279_v4, %v1270_v12  ;;  %v1442_v12 = vld [vmem:[%s5649_s3 + $0x7d0] sm:$0xff] }
 0x219   :  { %3117 = vmatpush1.bf16.msra.mxu1 %v3116_v18  ;;  %v3214_v18 = vpack.c.bf16 %v1298_v14, %v1289_v13  ;;  %v1432_v14 = vld [vmem:[%s5649_s3 + $0x780] sm:$0xff] }
 0x21a   :  { %3119 = vmatprep.subr.bf16.mxu1 %v3118_v19  ;;  %v1288_v19 = vld [vmem:[%s5649_s3 + $0x300] sm:$0xff] }
 0x21b   :  { %v3216_v23 = vpack.c.bf16 %v1297_v21, %v1288_v19  ;;  %v1460_v19 = vld [vmem:[%s5649_s3 + $0x860] sm:$0xff] }
 0x21d   :  { %3121 = vmatpush1.bf16.msra.mxu1 %v3120_v25  ;;  %v3218_v25 = vpack.c.bf16 %v1316_v22, %v1307_v24  ;;  %v1450_v22 = vld [vmem:[%s5649_s3 + $0x810] sm:$0xff] }
 0x21e   :  { %3123 = vmatprep.subr.bf16.mxu1 %v3122_v55  ;;  %v1306_v55 = vld [vmem:[%s5649_s3 + $0x390] sm:$0xff] }
 0x21f   :  { %v3220_v33 = vpack.c.bf16 %v1315_v29, %v1306_v55  ;;  %v1478_v55 = vld [vmem:[%s5649_s3 + $0x8f0] sm:$0xff] }
 0x221   :  { %3125 = vmatpush1.bf16.msra.mxu1 %v3124_v38  ;;  %v3222_v38 = vpack.c.bf16 %v1334_v32, %v1325_v30  ;;  %v1468_v32 = vld [vmem:[%s5649_s3 + $0x8a0] sm:$0xff] }
 0x222   :  { %3127 = vmatprep.subr.bf16.mxu1 %v3126_v34  ;;  %v1324_v34 = vld [vmem:[%s5649_s3 + $0x420] sm:$0xff] }
 0x225   :  { %3129 = vmatpush1.bf16.msra.mxu1 %v3128_v36  ;;  %v1352_v36 = vld [vmem:[%s5649_s3 + $0x500] sm:$0xff] }
 0x226   :  { %1755 = vmatprep.subr.mxu1 %v1483_v37  ;;  %v3224_v37 = vpack.c.bf16 %v1333_v26, %v1324_v34  ;;  %v3226_v39 = vpack.c.bf16 %v1352_v36, %v1343_v35  ;;  %v1487_v34 = vld [vmem:[%s5649_s3 + $0x938] sm:$0xff]  ;;  %v1486_v26 = vld [vmem:[%s5649_s3 + $0x930] sm:$0xff]  ;;  %v1488_v35 = vld [vmem:[%s5649_s3 + $0x940] sm:$0xff] }
 0x228   :  { %1749 = vmatmul.mubr.f32.vlgmr.msra.gmra.mrb[14].mxu1 %v5084_v17 }
 0x229   :  { %1756 = vmatpush1.msra.mxu1 %v1482_v41  ;;  %1819 = vmatprep.mubr.f32.mxu1 %v3358_v3  ;;  %v1351_v41 = vld [vmem:[%s5649_s3 + $0x4f8] sm:$0xff] }
 0x22a   :  { %3195 = vmatprep.subr.bf16.mxu1 %v3194_v43  ;;  %v1361_v43 = vld [vmem:[%s5649_s3 + $0x548] sm:$0xff]  ;;  %v3228_v52 = vpack.c.bf16 %v1351_v41, %v1342_v40 }
 0x22b   :  { %v3230_v46 = vpack.c.bf16 %v1370_v45, %v1361_v43 }
 0x230   :  { %2393 = vmatmul.mubr.msk.f32.vlgmr.msra.gmra.mrb[14].mxu1 %vm1538_vm2, %v5128_v5 }
 0x231   :  { %3197 = vmatpush1.bf16.msra.mxu1 %v3196_v47  ;;  %2032 = vmatprep.mubr.f32.mxu1 %v5082_v15  ;;  %v3204_v15 = vpack.c.bf16 %v1243_v59, %v1234_v58  ;;  %v1369_v47 = vld [vmem:[%s5649_s3 + $0x588] sm:$0xff]  ;;  %v1406_v58 = vld [vmem:[%s5649_s3 + $0x6b0] sm:$0xff] }
 0x232   :  { %3199 = vmatprep.subr.bf16.mxu1 %v3198_v48  ;;  %v1379_v48 = vld [vmem:[%s5649_s3 + $0x5d8] sm:$0xff]  ;;  %v3232_v51 = vpack.c.bf16 %v1369_v47, %v1360_v49 }
 0x233   :  { %v3234_v42 = vpack.c.bf16 %v1388_v50, %v1379_v48 }
 0x235   :  { %3201 = vmatpush1.bf16.msra.mxu1 %v3200_v56  ;;  %v1387_v56 = vld [vmem:[%s5649_s3 + $0x618] sm:$0xff] }
 0x236   :  { %3203 = vmatprep.subr.bf16.mxu1 %v3202_v57  ;;  %v1397_v57 = vld [vmem:[%s5649_s3 + $0x668] sm:$0xff]  ;;  %v3236_v59 = vpack.c.bf16 %v1387_v56, %v1378_v54 }
 0x237   :  { %v3238_v60 = vpack.c.bf16 %v1406_v58, %v1397_v57 }
 0x239   :  { %3205 = vmatpush1.bf16.msra.mxu1 %v3204_v15  ;;  %v1405_v15 = vld [vmem:[%s5649_s3 + $0x6a8] sm:$0xff] }
 0x23a   :  { %3207 = vmatprep.subr.bf16.mxu1 %v3206_v63  ;;  %v1415_v63 = vld [vmem:[%s5649_s3 + $0x6f8] sm:$0xff]  ;;  %v3240_v2 = vpack.c.bf16 %v1405_v15, %v1396_v61 }
 0x23b   :  { %v3242_v6 = vpack.c.bf16 %v1424_v1, %v1415_v63 }
 0x23d   :  { %3209 = vmatpush1.bf16.msra.mxu1 %v3208_v8  ;;  %v1423_v8 = vld [vmem:[%s5649_s3 + $0x738] sm:$0xff] }
 0x23e   :  { %3211 = vmatprep.subr.bf16.mxu1 %v3210_v10  ;;  %v1433_v10 = vld [vmem:[%s5649_s3 + $0x788] sm:$0xff]  ;;  %v3244_v4 = vpack.c.bf16 %v1423_v8, %v1414_v7 }
 0x23f   :  { %v3246_v13 = vpack.c.bf16 %v1442_v12, %v1433_v10 }
 0x241   :  { %3213 = vmatpush1.bf16.msra.mxu1 %v3212_v16  ;;  %v1441_v16 = vld [vmem:[%s5649_s3 + $0x7c8] sm:$0xff] }
 0x242   :  { %3215 = vmatprep.subr.bf16.mxu1 %v3214_v18  ;;  %v1451_v18 = vld [vmem:[%s5649_s3 + $0x818] sm:$0xff]  ;;  %v3248_v21 = vpack.c.bf16 %v1441_v16, %v1432_v14 }
 0x243   :  { %v3250_v24 = vpack.c.bf16 %v1460_v19, %v1451_v18 }
 0x245   :  { %3217 = vmatpush1.bf16.msra.mxu1 %v3216_v23  ;;  %v1459_v23 = vld [vmem:[%s5649_s3 + $0x858] sm:$0xff] }
 0x246   :  { %3219 = vmatprep.subr.bf16.mxu1 %v3218_v25  ;;  %v1469_v25 = vld [vmem:[%s5649_s3 + $0x8a8] sm:$0xff]  ;;  %v3252_v29 = vpack.c.bf16 %v1459_v23, %v1450_v22  ;;  %v3361_v22 = vmov 1966171168  }
 0x247   :  { %v3254_v30 = vpack.c.bf16 %v1478_v55, %v1469_v25 }
 0x249   :  { %3221 = vmatpush1.bf16.msra.mxu1 %v3220_v33  ;;  %v1477_v33 = vld [vmem:[%s5649_s3 + $0x8e8] sm:$0xff] }
 0x24a   :  { %3223 = vmatprep.subr.bf16.mxu1 %v3222_v38  ;;  %v3256_v38 = vpack.c.bf16 %v1477_v33, %v1468_v32 }
 0x24d   :  { %3225 = vmatpush1.bf16.msra.mxu1 %v3224_v37 }
 0x24e   :  { %3227 = vmatprep.subr.bf16.mxu1 %v3226_v39 }
 0x251   :  { %3229 = vmatpush1.bf16.msra.mxu1 %v3228_v52 }
 0x252   :  { %3231 = vmatprep.subr.bf16.mxu1 %v3230_v46 }
 0x255   :  { %3233 = vmatpush1.bf16.msra.mxu1 %v3232_v51 }
 0x256   :  { %3235 = vmatprep.subr.bf16.mxu1 %v3234_v42 }
 0x259   :  { %3237 = vmatpush1.bf16.msra.mxu1 %v3236_v59 }
 0x25a   :  { %3239 = vmatprep.subr.bf16.mxu1 %v3238_v60 }
 0x25d   :  { %3241 = vmatpush1.bf16.msra.mxu1 %v3240_v2 }
 0x25e   :  { %3243 = vmatprep.subr.bf16.mxu1 %v3242_v6 }
 0x261   :  { %3245 = vmatpush1.bf16.msra.mxu1 %v3244_v4 }
 0x262   :  { %3247 = vmatprep.subr.bf16.mxu1 %v3246_v13 }
 0x265   :  { %3249 = vmatpush1.bf16.msra.mxu1 %v3248_v21 }
 0x266   :  { %3251 = vmatprep.subr.bf16.mxu1 %v3250_v24 }
 0x269   :  { %3253 = vmatpush1.bf16.msra.mxu1 %v3252_v29 }
 0x26a   :  { %3255 = vmatprep.subr.bf16.mxu1 %v3254_v30 }
 0x26d   :  { %3257 = vmatpush1.bf16.msra.mxu1 %v3256_v38 }
 0x26e   :  { %2039 = vmatprep.subr.mxu1 %v1487_v34 }
 0x270   :  { %2033 = vmatmul.mubr.f32.vlgmr.msra.gmra.mrb[16].mxu1 %v5084_v17  ;;  %v5607_v17 = vld [vmem:[%s5651_s4] sm:$0xff] }
 0x271   :  { %2040 = vmatpush1.msra.mxu1 %v1486_v26  ;;  %2103 = vmatprep.mubr.f32.mxu1 %v3358_v3  ;;  %v1496_v36 = vrot.slane %v5607_v17, %v3703_v31  ;;  %v1512_v37 = vrot.slane %v5607_v17, %v439_v62  ;;  %v1500_v39 = vrot.slane %v5607_v17, %v3484_v44 }
 0x272   :  { %2599 = vmatprep.subr.mxu1 %v3358_v3  ;;  %v1504_v7 = vrot.slane %v5607_v17, %v3904_v9  ;;  %v1508_v8 = vrot.slane %v5607_v17, %v435_v27  ;;  %v2318_v9 = vunpack.c.l.s4 %v3361_v22  ;;  %v1520_v38 = vrot.slane %v5607_v17, %v447_v53 }
 0x273   :  { %v1524_v34 = vrot.slane %v5607_v17, %v451_v0 }
 0x274   :  { %v2319_v23 = vunpack.c.0.s8 %v2318_v9 }
 0x276   :  { %v2322_v27 = vsub.s32 %v2319_v23, %v3451_v28 }
 0x278   :  { %2395 = vmatmul.mubr.msk.f32.vlgmr.msra.gmra.mrb[16].mxu1 %vm1538_vm2, %v5128_v5 }
 0x279   :  { %2600 = vmatpush3.msra.mxu1 %v1488_v35  ;;  %2601 = vmatprep.mubr.msk.f32.mxu1 %vm3360_vm1, %v3358_v3  ;;  %v1516_v3 = vrot.slane %v5607_v17, %v443_v11  ;;  %v2391_v35 = vld [vmem:[%s5651_s4 + $0x8] ss:$0 sm:$0xff] }
 0x27c   :  { %2602 = vmatmul.mubr.msk.f32.vlgmr.msra.gmra.mrb[18].mxu1 %vm1538_vm2, %v5128_v5 }
 0x2bb   :  { %v1679_v5 = vpop.f32.mrb[12].mxu1  ;;  %v1963_v40 = vpop.f32.mrb[2].mxu0 }
 0x2bc   :  { %v3294_v41 = vadd.f32 %v1679_v5, %v1496_v36  ;;  %v3298_v43 = vadd.f32 %v1963_v40, %v1512_v37  ;;  %v1681_v45 = vpop.f32.mrb[13].mxu1  ;;  %v1965_v52 = vpop.f32.mrb[3].mxu0 }
 0x2bd   :  { %v3295_v46 = vadd.f32 %v1681_v45, %v1500_v39  ;;  %v3299_v49 = vadd.f32 %v1965_v52, %v1516_v3 }
 0x2be   :  { %v2397_v31 = vmul.f32 -1.442695, %v3294_v41  ;;  %v2401_v47 = vmul.f32 -1.442695, %v3298_v43 }
 0x2bf   :  { %v2398_v48 = vmul.f32 -1.442695, %v3295_v46  ;;  %v2402_v50 = vmul.f32 -1.442695, %v3299_v49 }
 0x2c0   :  { %3320 = vpow2.f32 %v2397_v31 }
 0x2c1   :  { %3322 = vpow2.f32 %v2401_v47 }
 0x2c2   :  { %3324 = vpow2.f32 %v2398_v48 }
 0x2c3   :  { %3326 = vpow2.f32 %v2402_v50 }
 0x2ca   :  { %v3321_v44 = vpop.eup %3320 }
 0x2cb   :  { %v3323_v62 = vpop.eup %3322  ;;  %v2277_v51 = vadd.f32 1.0, %v3321_v44 }
 0x2cc   :  { %v3325_v11 = vpop.eup %3324  ;;  %v2281_v42 = vadd.f32 1.0, %v3323_v62 }
 0x2cd   :  { %v3327_v54 = vpop.eup %3326  ;;  %3328 = vrcp.f32 %v2277_v51  ;;  %v2278_v56 = vadd.f32 1.0, %v3325_v11 }
 0x2ce   :  { %3330 = vrcp.f32 %v2281_v42  ;;  %v2282_v57 = vadd.f32 1.0, %v3327_v54 }
 0x2cf   :  { %3332 = vrcp.f32 %v2278_v56 }
 0x2d0   :  { %3334 = vrcp.f32 %v2282_v57 }
 0x2d7   :  { %v3329_v58 = vpop.eup %3328 }
 0x2d8   :  { %v5619_v59 = vpop.eup %3330 }
 0x2d9   :  { %v3333_v60 = vpop.eup %3332 }
 0x2da   :  { %v5621_v61 = vpop.eup %3334  ;;  %v2313_v15 = vcombine.low %v3329_v58, %v3333_v60 }
 0x2db   :  { %v2315_v63 = vcombine.low %v5619_v59, %v5621_v61  ;;  %v2583_v1 = vpop.f32.mrb[4].mxu0 }
 0x2dc   :  { %v2584_v2 = vpop.f32.mrb[5].mxu0  ;;  %v2323_v30 = vrot.slane %v2313_v15, %v2322_v27 }
 0x2dd   :  { %v2585_v6 = vadd.f32 %v2584_v2, %v2583_v1  ;;  %v2337_v44 = vrot.slane %v2315_v63, %v2322_v27 }
 0x2df   :  { %v2177_v5 = vadd.f32 %v2585_v6, %v2391_v35 }
 0x303   :  { %v1821_v10 = vpop.f32.mrb[14].mxu1 }
 0x304   :  { %v3296_v12 = vadd.f32 %v1821_v10, %v1504_v7  ;;  %v1823_v4 = vpop.f32.mrb[15].mxu1 }
 0x305   :  { %v3297_v13 = vadd.f32 %v1823_v4, %v1508_v8 }
 0x306   :  { %v2399_v14 = vmul.f32 -1.442695, %v3296_v12 }
 0x307   :  { %v2400_v16 = vmul.f32 -1.442695, %v3297_v13 }
 0x308   :  { %3336 = vpow2.f32 %v2399_v14 }
 0x309   :  { %3338 = vpow2.f32 %v2400_v16 }
 0x312   :  { %v3337_v18 = vpop.eup %3336 }
 0x313   :  { %v3339_v19 = vpop.eup %3338  ;;  %v2279_v21 = vadd.f32 1.0, %v3337_v18 }
 0x314   :  { %v2280_v24 = vadd.f32 1.0, %v3339_v19 }
 0x315   :  { %3340 = vrcp.f32 %v2279_v21 }
 0x316   :  { %3342 = vrcp.f32 %v2280_v24 }
 0x31f   :  { %v3341_v25 = vpop.eup %3340 }
 0x320   :  { %v3343_v55 = vpop.eup %3342 }
 0x321   :  { %v2314_v29 = vcombine.low %v3341_v25, %v3343_v55 }
 0x323   :  { %v2330_v32 = vrot.slane %v2314_v29, %v2322_v27 }
 0x325   :  { %v2345_v33 = vcombine.low %v2323_v30, %v2330_v32 }
 0x327   :  { %v2353_v54 = vrot.slane %v2345_v33, %v2322_v27 }
 0x34b   :  { %v2105_v26 = vpop.f32.mrb[16].mxu1 }
 0x34c   :  { %v3300_v36 = vadd.f32 %v2105_v26, %v1520_v38  ;;  %v2107_v37 = vpop.f32.mrb[17].mxu1 }
 0x34d   :  { %v3301_v39 = vadd.f32 %v2107_v37, %v1524_v34 }
 0x34e   :  { %v2403_v3 = vmul.f32 -1.442695, %v3300_v36 }
 0x34f   :  { %v2404_v40 = vmul.f32 -1.442695, %v3301_v39  ;;  %v2246_v41 = vpop.f32.mrb[18].mxu1 }
 0x350   :  { %3344 = vpow2.f32 %v2403_v3  ;;  %v2247_v43 = vadd.f32 %v2246_v41, %v2177_v5  ;;  %v2603_v45 = vpop.f32.mrb[19].mxu1 }
 0x351   :  { %3346 = vpow2.f32 %v2404_v40 }
 0x352   :  { %v2405_v53 = vmul.f32 -1.442695, %v2247_v43 }
 0x354   :  { %3348 = vpow2.f32 %v2405_v53 }
 0x35a   :  { %v3345_v28 = vpop.eup %3344 }
 0x35b   :  { %v3347_v0 = vpop.eup %3346  ;;  %v2283_v17 = vadd.f32 1.0, %v3345_v28 }
 0x35c   :  { %v2284_v52 = vadd.f32 1.0, %v3347_v0 }
 0x35d   :  { %3350 = vrcp.f32 %v2283_v17 }
 0x35e   :  { %v3349_v46 = vpop.eup %3348  ;;  %3352 = vrcp.f32 %v2284_v52 }
 0x35f   :  { %v2285_v49 = vadd.f32 1.0, %v3349_v46 }
 0x361   :  { %3354 = vrcp.f32 %v2285_v49 }
 0x367   :  { %v3351_v31 = vpop.eup %3350 }
 0x368   :  { %v3353_v47 = vpop.eup %3352 }
 0x369   :  { %v2316_v48 = vcombine.low %v3351_v31, %v3353_v47 }
 0x36b   :  { %v3355_v50 = vpop.eup %3354  ;;  %v2344_v62 = vrot.slane %v2316_v48, %v2322_v27 }
 0x36c   :  { %v2368_v51 = vrot.slane %v3355_v50, %v2322_v27 }
 0x36d   :  { %v2346_v11 = vcombine.low %v2337_v44, %v2344_v62 }
 0x36e   :  { %v2375_v42 = vrot.slane %v2368_v51, %v2322_v27 }
 0x36f   :  { %v2360_v56 = vrot.slane %v2346_v11, %v2322_v27 }
 0x370   :  { %2383 = vst.msk [vmem:[%s5652_s5 + $0x8] sm:$0x1] %vm2381_vm3, %v2375_v42 }
 0x371   :  { %v2361_v57 = vcombine.low %v2353_v54, %v2360_v56 }
 0x373   :  { %2378 = vst [vmem:[%s5652_s5] sm:$0xff] %v2361_v57 }

// kernel: se_module_forward.3
= control target key start
LH: loop header
LB: loop body
LE: loop exit
PB: predicated region body
PF: predicated region fallthrough
CT: control target
= control target key end

     0   :  { %s9610_s12 = smov 0   ;;  %s15465_s0 = inlined_call_operand.vmem [shape: f32[1,1056], index: 0, kind: input, shape index: {}]   ;;  %s15466_s1 = inlined_call_operand.vmem [shape: f32[1056,1056], index: 1, kind: input, shape index: {}]   ;;  %s15467_s2 = inlined_call_operand.vmem [shape: f32[1056,784], index: 2, kind: input, shape index: {}]   ;;  %s15468_s3 = inlined_call_operand.vmem [shape: f32[1056,784], index: 3, kind: output, shape index: {}]  }
   0x1 LB: > { %s7231_s13 = sadd.s32 4294967295, %s9585_s12   ;;  %p7235_p0 = scmp.ge.s32.totalorder %s9585_s12, 1  ;;  %s9585_s12 = sphi %s9610_s12, %s13_s12  }
   0x2   : > { %p139_p1 = scmp.lt.s32.totalorder %s9585_s12, 5 }
   0x4   : > { %p140_p2 = pnand %p7235_p0, %p139_p1 }
   0x6   : > { %143 = sbr.rel (%p140_p2) target bundleno = 1610 (0x64a), region = 32 }
   0xd   : > { %v823_v0 = vld [vmem:[%s15467_s2 + $0x8] sm:$0xff]  ;;  %v830_v1 = vld [vmem:[%s15467_s2 + $0x40] sm:$0xff]  ;;  %v825_v2 = vld [vmem:[%s15467_s2 + $0x18] sm:$0xff]  ;;  %s9800_s7 = smul.u32 33, %s7231_s13  ;;  %vm1746_vm0 = vcmask 261120   ;;  %vm9589_vm1 = vmmov 0  }
   0xe   : > { %v7517_v3 = vpack.c.bf16 %v830_v1, %v823_v0  ;;  %v832_v4 = vld [vmem:[%s15467_s2 + $0x50] sm:$0xff]  ;;  %v822_v5 = vld [vmem:[%s15467_s2] sm:$0xff]  ;;  %v829_v6 = vld [vmem:[%s15467_s2 + $0x38] sm:$0xff]  ;;  %vm6947_vm2 = vcmask 130048  }
   0xf   : > { %v7781_v7 = vpack.c.bf16 %v832_v4, %v825_v2  ;;  %v7519_v8 = vpack.c.bf16 %v829_v6, %v822_v5  ;;  %v824_v9 = vld [vmem:[%s15467_s2 + $0x10] sm:$0xff]  ;;  %v831_v10 = vld [vmem:[%s15467_s2 + $0x48] sm:$0xff]  ;;  %v837_v11 = vld [vmem:[%s15467_s2 + $0x78] sm:$0xff]  ;;  %p166_p3 = scmp.lt.s32.totalorder %s9800_s7, 131 }
  0x10   : > { %7518 = vmatprep.subr.bf16.mxu0 %v7517_v3  ;;  %v7783_v12 = vpack.c.bf16 %v831_v10, %v824_v9  ;;  %v844_v13 = vld [vmem:[%s15467_s2 + $0xb0] sm:$0xff]  ;;  %v839_v14 = vld [vmem:[%s15467_s2 + $0x88] sm:$0xff]  ;;  %v846_v15 = vld [vmem:[%s15467_s2 + $0xc0] sm:$0xff] }
  0x11   : > { %7782 = vmatprep.subr.bf16.mxu1 %v7781_v7  ;;  %7520 = vmatpush1.bf16.msra.mxu0 %v7519_v8  ;;  %v7521_v16 = vpack.c.bf16 %v844_v13, %v837_v11  ;;  %v7785_v17 = vpack.c.bf16 %v846_v15, %v839_v14  ;;  %v836_v18 = vld [vmem:[%s15467_s2 + $0x70] sm:$0xff]  ;;  %v843_v19 = vld [vmem:[%s15467_s2 + $0xa8] sm:$0xff]  ;;  %v838_v20 = vld [vmem:[%s15467_s2 + $0x80] sm:$0xff]  ;;  %s16464_s7 = smov (!%p166_p3, %s9800_s7), 131 }
  0x12   : > { %7784 = vmatpush1.bf16.msra.mxu1 %v7783_v12  ;;  %v7523_v21 = vpack.c.bf16 %v843_v19, %v836_v18  ;;  %v845_v22 = vld [vmem:[%s15467_s2 + $0xb8] sm:$0xff]  ;;  %v851_v23 = vld [vmem:[%s15467_s2 + $0xe8] sm:$0xff]  ;;  %v858_v24 = vld [vmem:[%s15467_s2 + $0x120] sm:$0xff]  ;;  %s9563_s5 = smul.u32 72, %s16464_s7 }
  0x13   : > { %7522 = vmatprep.subr.bf16.mxu0 %v7521_v16  ;;  %7786 = vmatprep.subr.bf16.mxu1 %v7785_v17  ;;  %v7787_v25 = vpack.c.bf16 %v845_v22, %v838_v20  ;;  %v7525_v26 = vpack.c.bf16 %v858_v24, %v851_v23  ;;  %v853_v27 = vld [vmem:[%s15467_s2 + $0xf8] sm:$0xff]  ;;  %v860_v28 = vld [vmem:[%s15467_s2 + $0x130] sm:$0xff]  ;;  %v850_v29 = vld [vmem:[%s15467_s2 + $0xe0] sm:$0xff]  ;;  %s9564_s16 = smul.u32 56, %s16464_s7 }
  0x14   : > { %v7789_v30 = vpack.c.bf16 %v860_v28, %v853_v27  ;;  %v857_v31 = vld [vmem:[%s15467_s2 + $0x118] sm:$0xff]  ;;  %v852_v32 = vld [vmem:[%s15467_s2 + $0xf0] sm:$0xff]  ;;  %v859_v33 = vld [vmem:[%s15467_s2 + $0x128] sm:$0xff]  ;;  %s9913_s28 = scalar_lea.vmem %s15466_s1, %s9563_s5 }
  0x15   : > { %7524 = vmatpush1.bf16.msra.mxu0 %v7523_v21  ;;  %v7527_v34 = vpack.c.bf16 %v857_v31, %v850_v29  ;;  %v865_v35 = vld [vmem:[%s15467_s2 + $0x158] sm:$0xff]  ;;  %v872_v36 = vld [vmem:[%s15467_s2 + $0x190] sm:$0xff]  ;;  %v867_v37 = vld [vmem:[%s15467_s2 + $0x168] sm:$0xff]  ;;  %v7791_v38 = vpack.c.bf16 %v859_v33, %v852_v32  ;;  %s13878_s19 = scalar_lea.vmem %s15468_s3, %s9564_s16 }
  0x16   : > { %7788 = vmatpush1.bf16.msra.mxu1 %v7787_v25  ;;  %7526 = vmatprep.subr.bf16.mxu0 %v7525_v26  ;;  %v7529_v39 = vpack.c.bf16 %v872_v36, %v865_v35  ;;  %v874_v40 = vld [vmem:[%s15467_s2 + $0x1a0] sm:$0xff]  ;;  %v864_v41 = vld [vmem:[%s15467_s2 + $0x150] sm:$0xff]  ;;  %v871_v42 = vld [vmem:[%s15467_s2 + $0x188] sm:$0xff] }
  0x17   : > { %7790 = vmatprep.subr.bf16.mxu1 %v7789_v30  ;;  %v7793_v43 = vpack.c.bf16 %v874_v40, %v867_v37  ;;  %v866_v44 = vld [vmem:[%s15467_s2 + $0x160] sm:$0xff]  ;;  %v873_v45 = vld [vmem:[%s15467_s2 + $0x198] sm:$0xff]  ;;  %v879_v46 = vld [vmem:[%s15467_s2 + $0x1c8] sm:$0xff]  ;;  %v7531_v50 = vpack.c.bf16 %v871_v42, %v864_v41 }
  0x18   : > { %v886_v47 = vld [vmem:[%s15467_s2 + $0x200] sm:$0xff]  ;;  %v881_v48 = vld [vmem:[%s15467_s2 + $0x1d8] sm:$0xff]  ;;  %v888_v49 = vld [vmem:[%s15467_s2 + $0x210] sm:$0xff]  ;;  %v7795_v51 = vpack.c.bf16 %v873_v45, %v866_v44 }
  0x19   : > { %7528 = vmatpush1.bf16.msra.mxu0 %v7527_v34  ;;  %v7533_v52 = vpack.c.bf16 %v886_v47, %v879_v46  ;;  %v878_v53 = vld [vmem:[%s15467_s2 + $0x1c0] sm:$0xff]  ;;  %v885_v54 = vld [vmem:[%s15467_s2 + $0x1f8] sm:$0xff]  ;;  %v880_v55 = vld [vmem:[%s15467_s2 + $0x1d0] sm:$0xff]  ;;  %v7797_v56 = vpack.c.bf16 %v888_v49, %v881_v48  ;;  %v480_v47 = vlaneseq }
  0x1a   : > { %7792 = vmatpush1.bf16.msra.mxu1 %v7791_v38  ;;  %7530 = vmatprep.subr.bf16.mxu0 %v7529_v39  ;;  %v887_v57 = vld [vmem:[%s15467_s2 + $0x208] sm:$0xff]  ;;  %v893_v58 = vld [vmem:[%s15467_s2 + $0x238] sm:$0xff]  ;;  %v900_v59 = vld [vmem:[%s15467_s2 + $0x270] sm:$0xff]  ;;  %v7535_v62 = vpack.c.bf16 %v885_v54, %v878_v53 }
  0x1b   : > { %7794 = vmatprep.subr.bf16.mxu1 %v7793_v43  ;;  %v895_v60 = vld [vmem:[%s15467_s2 + $0x248] sm:$0xff]  ;;  %v902_v61 = vld [vmem:[%s15467_s2 + $0x280] sm:$0xff]  ;;  %v7799_v63 = vpack.c.bf16 %v887_v57, %v880_v55  ;;  %v7537_v0 = vpack.c.bf16 %v900_v59, %v893_v58  ;;  %v892_v1 = vld [vmem:[%s15467_s2 + $0x230] sm:$0xff] }
  0x1c   : > { %v899_v2 = vld [vmem:[%s15467_s2 + $0x268] sm:$0xff]  ;;  %v894_v3 = vld [vmem:[%s15467_s2 + $0x240] sm:$0xff]  ;;  %v7801_v4 = vpack.c.bf16 %v902_v61, %v895_v60  ;;  %v901_v5 = vld [vmem:[%s15467_s2 + $0x278] sm:$0xff]  ;;  %v9881_v60 = vshrl.u32 %v480_v47, 7 }
  0x1d   : > { %7532 = vmatpush1.bf16.msra.mxu0 %v7531_v50  ;;  %v907_v6 = vld [vmem:[%s15467_s2 + $0x2a8] sm:$0xff]  ;;  %v914_v7 = vld [vmem:[%s15467_s2 + $0x2e0] sm:$0xff]  ;;  %v909_v8 = vld [vmem:[%s15467_s2 + $0x2b8] sm:$0xff]  ;;  %v7539_v10 = vpack.c.bf16 %v899_v2, %v892_v1  ;;  %v7803_v11 = vpack.c.bf16 %v901_v5, %v894_v3 }
  0x1e   : > { %7796 = vmatpush1.bf16.msra.mxu1 %v7795_v51  ;;  %7534 = vmatprep.subr.bf16.mxu0 %v7533_v52  ;;  %v916_v9 = vld [vmem:[%s15467_s2 + $0x2f0] sm:$0xff]  ;;  %v7541_v12 = vpack.c.bf16 %v914_v7, %v907_v6  ;;  %v906_v13 = vld [vmem:[%s15467_s2 + $0x2a0] sm:$0xff]  ;;  %v913_v14 = vld [vmem:[%s15467_s2 + $0x2d8] sm:$0xff] }
  0x1f   : > { %7798 = vmatprep.subr.bf16.mxu1 %v7797_v56  ;;  %v908_v15 = vld [vmem:[%s15467_s2 + $0x2b0] sm:$0xff]  ;;  %v7805_v16 = vpack.c.bf16 %v916_v9, %v909_v8  ;;  %v915_v17 = vld [vmem:[%s15467_s2 + $0x2e8] sm:$0xff]  ;;  %v921_v18 = vld [vmem:[%s15467_s2 + $0x318] sm:$0xff]  ;;  %v7543_v22 = vpack.c.bf16 %v913_v14, %v906_v13 }
  0x20   : > { %v928_v19 = vld [vmem:[%s15467_s2 + $0x350] sm:$0xff]  ;;  %v923_v20 = vld [vmem:[%s15467_s2 + $0x328] sm:$0xff]  ;;  %v930_v21 = vld [vmem:[%s15467_s2 + $0x360] sm:$0xff]  ;;  %v7807_v23 = vpack.c.bf16 %v915_v17, %v908_v15 }
  0x21   : > { %7536 = vmatpush1.bf16.msra.mxu0 %v7535_v62  ;;  %v7545_v24 = vpack.c.bf16 %v928_v19, %v921_v18  ;;  %v920_v25 = vld [vmem:[%s15467_s2 + $0x310] sm:$0xff]  ;;  %v927_v26 = vld [vmem:[%s15467_s2 + $0x348] sm:$0xff]  ;;  %v922_v27 = vld [vmem:[%s15467_s2 + $0x320] sm:$0xff]  ;;  %v7809_v28 = vpack.c.bf16 %v930_v21, %v923_v20 }
  0x22   : > { %7800 = vmatpush1.bf16.msra.mxu1 %v7799_v63  ;;  %7538 = vmatprep.subr.bf16.mxu0 %v7537_v0  ;;  %v929_v29 = vld [vmem:[%s15467_s2 + $0x358] sm:$0xff]  ;;  %v935_v30 = vld [vmem:[%s15467_s2 + $0x388] sm:$0xff]  ;;  %v942_v31 = vld [vmem:[%s15467_s2 + $0x3c0] sm:$0xff]  ;;  %v7547_v34 = vpack.c.bf16 %v927_v26, %v920_v25 }
  0x23   : > { %7802 = vmatprep.subr.bf16.mxu1 %v7801_v4  ;;  %v937_v32 = vld [vmem:[%s15467_s2 + $0x398] sm:$0xff]  ;;  %v944_v33 = vld [vmem:[%s15467_s2 + $0x3d0] sm:$0xff]  ;;  %v7811_v35 = vpack.c.bf16 %v929_v29, %v922_v27  ;;  %v7549_v36 = vpack.c.bf16 %v942_v31, %v935_v30  ;;  %v934_v37 = vld [vmem:[%s15467_s2 + $0x380] sm:$0xff] }
  0x24   : > { %v941_v38 = vld [vmem:[%s15467_s2 + $0x3b8] sm:$0xff]  ;;  %v936_v39 = vld [vmem:[%s15467_s2 + $0x390] sm:$0xff]  ;;  %v7813_v40 = vpack.c.bf16 %v944_v33, %v937_v32  ;;  %v943_v41 = vld [vmem:[%s15467_s2 + $0x3c8] sm:$0xff] }
  0x25   : > { %7540 = vmatpush1.bf16.msra.mxu0 %v7539_v10  ;;  %v949_v42 = vld [vmem:[%s15467_s2 + $0x3f8] sm:$0xff]  ;;  %v956_v43 = vld [vmem:[%s15467_s2 + $0x430] sm:$0xff]  ;;  %v951_v44 = vld [vmem:[%s15467_s2 + $0x408] sm:$0xff]  ;;  %v7551_v46 = vpack.c.bf16 %v941_v38, %v934_v37  ;;  %v7815_v48 = vpack.c.bf16 %v943_v41, %v936_v39  ;;  %v486_v10 = vsub.s32 1, %v9881_v60 }
  0x26   : > { %7804 = vmatpush1.bf16.msra.mxu1 %v7803_v11  ;;  %7542 = vmatprep.subr.bf16.mxu0 %v7541_v12  ;;  %v958_v45 = vld [vmem:[%s15467_s2 + $0x440] sm:$0xff]  ;;  %v7553_v49 = vpack.c.bf16 %v956_v43, %v949_v42  ;;  %v948_v50 = vld [vmem:[%s15467_s2 + $0x3f0] sm:$0xff]  ;;  %v955_v51 = vld [vmem:[%s15467_s2 + $0x428] sm:$0xff] }
  0x27   : > { %7806 = vmatprep.subr.bf16.mxu1 %v7805_v16  ;;  %v950_v52 = vld [vmem:[%s15467_s2 + $0x400] sm:$0xff]  ;;  %v7817_v53 = vpack.c.bf16 %v958_v45, %v951_v44  ;;  %v957_v54 = vld [vmem:[%s15467_s2 + $0x438] sm:$0xff]  ;;  %v963_v55 = vld [vmem:[%s15467_s2 + $0x468] sm:$0xff]  ;;  %v7555_v59 = vpack.c.bf16 %v955_v51, %v948_v50 }
  0x28   : > { %v970_v56 = vld [vmem:[%s15467_s2 + $0x4a0] sm:$0xff]  ;;  %v965_v57 = vld [vmem:[%s15467_s2 + $0x478] sm:$0xff]  ;;  %v972_v58 = vld [vmem:[%s15467_s2 + $0x4b0] sm:$0xff]  ;;  %v7819_v61 = vpack.c.bf16 %v957_v54, %v950_v52 }
  0x29   : > { %7544 = vmatpush1.bf16.msra.mxu0 %v7543_v22  ;;  %v7557_v62 = vpack.c.bf16 %v970_v56, %v963_v55  ;;  %v962_v63 = vld [vmem:[%s15467_s2 + $0x460] sm:$0xff]  ;;  %v969_v0 = vld [vmem:[%s15467_s2 + $0x498] sm:$0xff]  ;;  %v964_v1 = vld [vmem:[%s15467_s2 + $0x470] sm:$0xff]  ;;  %v7821_v2 = vpack.c.bf16 %v972_v58, %v965_v57 }
  0x2a   : > { %7808 = vmatpush1.bf16.msra.mxu1 %v7807_v23  ;;  %7546 = vmatprep.subr.bf16.mxu0 %v7545_v24  ;;  %v971_v3 = vld [vmem:[%s15467_s2 + $0x4a8] sm:$0xff]  ;;  %v977_v4 = vld [vmem:[%s15467_s2 + $0x4d8] sm:$0xff]  ;;  %v984_v5 = vld [vmem:[%s15467_s2 + $0x510] sm:$0xff]  ;;  %v7559_v8 = vpack.c.bf16 %v969_v0, %v962_v63 }
  0x2b   : > { %7810 = vmatprep.subr.bf16.mxu1 %v7809_v28  ;;  %v979_v6 = vld [vmem:[%s15467_s2 + $0x4e8] sm:$0xff]  ;;  %v986_v7 = vld [vmem:[%s15467_s2 + $0x520] sm:$0xff]  ;;  %v976_v9 = vld [vmem:[%s15467_s2 + $0x4d0] sm:$0xff]  ;;  %v7823_v11 = vpack.c.bf16 %v971_v3, %v964_v1  ;;  %v7561_v12 = vpack.c.bf16 %v984_v5, %v977_v4 }
  0x2c   : > { %v983_v13 = vld [vmem:[%s15467_s2 + $0x508] sm:$0xff]  ;;  %v978_v14 = vld [vmem:[%s15467_s2 + $0x4e0] sm:$0xff]  ;;  %v985_v15 = vld [vmem:[%s15467_s2 + $0x518] sm:$0xff]  ;;  %v7825_v16 = vpack.c.bf16 %v986_v7, %v979_v6 }
  0x2d   : > { %7548 = vmatpush1.bf16.msra.mxu0 %v7547_v34  ;;  %v991_v17 = vld [vmem:[%s15467_s2 + $0x548] sm:$0xff]  ;;  %v998_v18 = vld [vmem:[%s15467_s2 + $0x580] sm:$0xff]  ;;  %v993_v19 = vld [vmem:[%s15467_s2 + $0x558] sm:$0xff]  ;;  %v7563_v23 = vpack.c.bf16 %v983_v13, %v976_v9  ;;  %v7827_v25 = vpack.c.bf16 %v985_v15, %v978_v14 }
  0x2e   : > { %7812 = vmatpush1.bf16.msra.mxu1 %v7811_v35  ;;  %7550 = vmatprep.subr.bf16.mxu0 %v7549_v36  ;;  %v1000_v20 = vld [vmem:[%s15467_s2 + $0x590] sm:$0xff]  ;;  %v180_v21 = vld [vmem:[%s9913_s28 + $0x8] sm:$0xff]  ;;  %v9941_v22 = vld [vmem:[%s15465_s0] sm:$0xff]  ;;  %v7565_v26 = vpack.c.bf16 %v998_v18, %v991_v17 }
  0x2f   : > { %7814 = vmatprep.subr.bf16.mxu1 %v7813_v40  ;;  %v9944_v24 = vrot.slane %v9941_v22, %v486_v10  ;;  %v990_v27 = vld [vmem:[%s15467_s2 + $0x540] sm:$0xff]  ;;  %v997_v28 = vld [vmem:[%s15467_s2 + $0x578] sm:$0xff]  ;;  %v992_v29 = vld [vmem:[%s15467_s2 + $0x550] sm:$0xff]  ;;  %v7829_v30 = vpack.c.bf16 %v1000_v20, %v993_v19 }
  0x30   : > { %v999_v31 = vld [vmem:[%s15467_s2 + $0x588] sm:$0xff]  ;;  %v1005_v32 = vld [vmem:[%s15467_s2 + $0x5b8] sm:$0xff]  ;;  %v1012_v33 = vld [vmem:[%s15467_s2 + $0x5f0] sm:$0xff]  ;;  %v7567_v37 = vpack.c.bf16 %v997_v28, %v990_v27 }
  0x31   : > { %7552 = vmatpush1.bf16.msra.mxu0 %v7551_v46  ;;  %v9965_v34 = vmul.f32 %v9944_v24, %v180_v21  ;;  %v1007_v35 = vld [vmem:[%s15467_s2 + $0x5c8] sm:$0xff]  ;;  %v1014_v36 = vld [vmem:[%s15467_s2 + $0x600] sm:$0xff]  ;;  %v7831_v38 = vpack.c.bf16 %v999_v31, %v992_v29  ;;  %v7569_v39 = vpack.c.bf16 %v1012_v33, %v1005_v32  ;;  %v1004_v40 = vld [vmem:[%s15467_s2 + $0x5b0] sm:$0xff] }
  0x32   : > { %7816 = vmatpush1.bf16.msra.mxu1 %v7815_v48  ;;  %7554 = vmatprep.subr.bf16.mxu0 %v7553_v49  ;;  %v1011_v41 = vld [vmem:[%s15467_s2 + $0x5e8] sm:$0xff]  ;;  %v1006_v42 = vld [vmem:[%s15467_s2 + $0x5c0] sm:$0xff]  ;;  %v7833_v43 = vpack.c.bf16 %v1014_v36, %v1007_v35  ;;  %v1013_v44 = vld [vmem:[%s15467_s2 + $0x5f8] sm:$0xff] }
  0x33   : > { %7818 = vmatprep.subr.bf16.mxu1 %v7817_v53  ;;  %1910 = vmatprep.mubr.f32.mxu0 %v9965_v34  ;;  %v1019_v45 = vld [vmem:[%s15467_s2 + $0x628] sm:$0xff]  ;;  %v1026_v46 = vld [vmem:[%s15467_s2 + $0x660] sm:$0xff]  ;;  %v1021_v47 = vld [vmem:[%s15467_s2 + $0x638] sm:$0xff]  ;;  %v7571_v49 = vpack.c.bf16 %v1011_v41, %v1004_v40  ;;  %v7835_v50 = vpack.c.bf16 %v1013_v44, %v1006_v42 }
  0x34   : > { %3225 = vmatprep.mubr.f32.mxu1 %v9965_v34  ;;  %v1028_v48 = vld [vmem:[%s15467_s2 + $0x670] sm:$0xff]  ;;  %v7573_v51 = vpack.c.bf16 %v1026_v46, %v1019_v45  ;;  %v1018_v52 = vld [vmem:[%s15467_s2 + $0x620] sm:$0xff]  ;;  %v1025_v53 = vld [vmem:[%s15467_s2 + $0x658] sm:$0xff] }
  0x35   : > { %7556 = vmatpush1.bf16.msra.mxu0 %v7555_v59  ;;  %v1020_v54 = vld [vmem:[%s15467_s2 + $0x630] sm:$0xff]  ;;  %v7837_v55 = vpack.c.bf16 %v1028_v48, %v1021_v47  ;;  %v1027_v56 = vld [vmem:[%s15467_s2 + $0x668] sm:$0xff]  ;;  %v1033_v57 = vld [vmem:[%s15467_s2 + $0x698] sm:$0xff]  ;;  %v7575_v63 = vpack.c.bf16 %v1025_v53, %v1018_v52 }
  0x36   : > { %7820 = vmatpush1.bf16.msra.mxu1 %v7819_v61  ;;  %7558 = vmatprep.subr.bf16.mxu0 %v7557_v62  ;;  %v1040_v58 = vld [vmem:[%s15467_s2 + $0x6d0] sm:$0xff]  ;;  %v1035_v59 = vld [vmem:[%s15467_s2 + $0x6a8] sm:$0xff]  ;;  %v1042_v61 = vld [vmem:[%s15467_s2 + $0x6e0] sm:$0xff]  ;;  %v482_v62 = vsub.s32 0, %v9881_v60  ;;  %v7839_v0 = vpack.c.bf16 %v1027_v56, %v1020_v54 }
  0x37   : > { %7822 = vmatprep.subr.bf16.mxu1 %v7821_v2  ;;  %v7577_v1 = vpack.c.bf16 %v1040_v58, %v1033_v57  ;;  %v1032_v2 = vld [vmem:[%s15467_s2 + $0x690] sm:$0xff]  ;;  %v1039_v3 = vld [vmem:[%s15467_s2 + $0x6c8] sm:$0xff]  ;;  %v1034_v4 = vld [vmem:[%s15467_s2 + $0x6a0] sm:$0xff]  ;;  %v7841_v5 = vpack.c.bf16 %v1042_v61, %v1035_v59 }
  0x38   : > { %v1041_v6 = vld [vmem:[%s15467_s2 + $0x6d8] sm:$0xff]  ;;  %v1047_v7 = vld [vmem:[%s15467_s2 + $0x708] sm:$0xff]  ;;  %v10043_v9 = vrot.slane %v9941_v22, %v482_v62  ;;  %v179_v13 = vld [vmem:[%s9913_s28] sm:$0xff] }
  0x39   : > { %7560 = vmatpush1.bf16.msra.mxu0 %v7559_v8  ;;  %v1054_v8 = vld [vmem:[%s15467_s2 + $0x740] sm:$0xff]  ;;  %v1049_v10 = vld [vmem:[%s15467_s2 + $0x718] sm:$0xff]  ;;  %v7843_v14 = vpack.c.bf16 %v1041_v6, %v1034_v4  ;;  %v1048_v19 = vld [vmem:[%s15467_s2 + $0x710] sm:$0xff] }
  0x3a   : > { %7824 = vmatpush1.bf16.msra.mxu1 %v7823_v11  ;;  %7562 = vmatprep.subr.bf16.mxu0 %v7561_v12  ;;  %v1056_v11 = vld [vmem:[%s15467_s2 + $0x750] sm:$0xff]  ;;  %v7579_v12 = vpack.c.bf16 %v1039_v3, %v1032_v2  ;;  %v7581_v15 = vpack.c.bf16 %v1054_v8, %v1047_v7  ;;  %v1053_v17 = vld [vmem:[%s15467_s2 + $0x738] sm:$0xff]  ;;  %v1055_v20 = vld [vmem:[%s15467_s2 + $0x748] sm:$0xff]  ;;  %v10066_v22 = vmul.f32 %v10043_v9, %v179_v13 }
  0x3b   : > { %7826 = vmatprep.subr.bf16.mxu1 %v7825_v16  ;;  %v1046_v16 = vld [vmem:[%s15467_s2 + $0x700] sm:$0xff]  ;;  %v7845_v18 = vpack.c.bf16 %v1056_v11, %v1049_v10  ;;  %v189_v21 = vld [vmem:[%s9913_s28 + $0x50] sm:$0xff]  ;;  %v188_v27 = vld [vmem:[%s9913_s28 + $0x48] sm:$0xff] }
  0x3c   : > { %v1063_v28 = vld [vmem:[%s15467_s2 + $0x788] sm:$0xff]  ;;  %v1070_v29 = vld [vmem:[%s15467_s2 + $0x7c0] sm:$0xff]  ;;  %v10082_v31 = vmul.f32 %v9944_v24, %v189_v21  ;;  %v198_v32 = vld [vmem:[%s9913_s28 + $0x98] sm:$0xff] }
  0x3d   : > { %7564 = vmatpush1.bf16.msra.mxu0 %v7563_v23  ;;  %v1061_v23 = vld [vmem:[%s15467_s2 + $0x778] sm:$0xff]  ;;  %v1060_v35 = vld [vmem:[%s15467_s2 + $0x770] sm:$0xff]  ;;  %v1067_v36 = vld [vmem:[%s15467_s2 + $0x7a8] sm:$0xff] }
  0x3e   : > { %7828 = vmatpush1.bf16.msra.mxu1 %v7827_v25  ;;  %7566 = vmatprep.subr.bf16.mxu0 %v7565_v26  ;;  %v1068_v25 = vld [vmem:[%s15467_s2 + $0x7b0] sm:$0xff]  ;;  %v7583_v26 = vpack.c.bf16 %v1053_v17, %v1046_v16  ;;  %v1069_v40 = vld [vmem:[%s15467_s2 + $0x7b8] sm:$0xff]  ;;  %v1075_v41 = vld [vmem:[%s15467_s2 + $0x7e8] sm:$0xff]  ;;  %v7587_v47 = vpack.c.bf16 %v1067_v36, %v1060_v35 }
  0x3f   : > { %7830 = vmatprep.subr.bf16.mxu1 %v7829_v30  ;;  %v7847_v30 = vpack.c.bf16 %v1055_v20, %v1048_v19  ;;  %v7585_v33 = vpack.c.bf16 %v1068_v25, %v1061_v23  ;;  %v1082_v42 = vld [vmem:[%s15467_s2 + $0x820] sm:$0xff]  ;;  %v197_v44 = vld [vmem:[%s9913_s28 + $0x90] sm:$0xff]  ;;  %v1077_v45 = vld [vmem:[%s15467_s2 + $0x7f8] sm:$0xff] }
  0x40   : > { %v1084_v46 = vld [vmem:[%s15467_s2 + $0x830] sm:$0xff]  ;;  %v207_v48 = vld [vmem:[%s9913_s28 + $0xe0] sm:$0xff]  ;;  %v1081_v52 = vld [vmem:[%s15467_s2 + $0x818] sm:$0xff]  ;;  %v10132_v54 = vmul.f32 %v10043_v9, %v197_v44 }
  0x41   : > { %7568 = vmatpush1.bf16.msra.mxu0 %v7567_v37  ;;  %v1062_v37 = vld [vmem:[%s15467_s2 + $0x780] sm:$0xff]  ;;  %v1076_v53 = vld [vmem:[%s15467_s2 + $0x7f0] sm:$0xff]  ;;  %v1083_v56 = vld [vmem:[%s15467_s2 + $0x828] sm:$0xff]  ;;  %v10146_v59 = vmul.f32 %v9944_v24, %v207_v48 }
  0x42   : > { %7832 = vmatpush1.bf16.msra.mxu1 %v7831_v38  ;;  %7570 = vmatprep.subr.bf16.mxu0 %v7569_v39  ;;  %v10096_v38 = vmul.f32 %v10043_v9, %v188_v27  ;;  %v7849_v39 = vpack.c.bf16 %v1070_v29, %v1063_v28  ;;  %v1089_v57 = vld [vmem:[%s15467_s2 + $0x858] sm:$0xff]  ;;  %v1096_v58 = vld [vmem:[%s15467_s2 + $0x890] sm:$0xff]  ;;  %v1091_v62 = vld [vmem:[%s15467_s2 + $0x868] sm:$0xff]  ;;  %v7855_v2 = vpack.c.bf16 %v1083_v56, %v1076_v53 }
  0x43   : > { %7834 = vmatprep.subr.bf16.mxu1 %v7833_v43  ;;  %v10109_v43 = vmul.f32 %v9944_v24, %v198_v32  ;;  %v206_v61 = vld [vmem:[%s9913_s28 + $0xd8] sm:$0xff]  ;;  %v7593_v3 = vpack.c.bf16 %v1096_v58, %v1089_v57  ;;  %v1088_v4 = vld [vmem:[%s15467_s2 + $0x850] sm:$0xff]  ;;  %v1090_v6 = vld [vmem:[%s15467_s2 + $0x860] sm:$0xff] }
  0x44   : > { %v10168_v7 = vmul.f32 %v10043_v9, %v206_v61  ;;  %v1097_v10 = vld [vmem:[%s15467_s2 + $0x898] sm:$0xff]  ;;  %v1103_v11 = vld [vmem:[%s15467_s2 + $0x8c8] sm:$0xff]  ;;  %v1112_v16 = vld [vmem:[%s15467_s2 + $0x910] sm:$0xff] }
  0x45   : > { %7572 = vmatpush1.bf16.msra.mxu0 %v7571_v49  ;;  %v7851_v49 = vpack.c.bf16 %v1069_v40, %v1062_v37  ;;  %v225_v17 = vld [vmem:[%s9913_s28 + $0x170] sm:$0xff]  ;;  %v7859_v19 = vpack.c.bf16 %v1097_v10, %v1090_v6  ;;  %v1102_v21 = vld [vmem:[%s15467_s2 + $0x8c0] sm:$0xff]  ;;  %v1109_v23 = vld [vmem:[%s15467_s2 + $0x8f8] sm:$0xff] }
  0x46   : > { %7836 = vmatpush1.bf16.msra.mxu1 %v7835_v50  ;;  %7574 = vmatprep.subr.bf16.mxu0 %v7573_v51  ;;  %v7589_v50 = vpack.c.bf16 %v1082_v42, %v1075_v41  ;;  %v1074_v51 = vld [vmem:[%s15467_s2 + $0x7e0] sm:$0xff]  ;;  %v1104_v25 = vld [vmem:[%s15467_s2 + $0x8d0] sm:$0xff]  ;;  %v1111_v28 = vld [vmem:[%s15467_s2 + $0x908] sm:$0xff]  ;;  %v10218_v32 = vmul.f32 %v9944_v24, %v225_v17 }
  0x47   : > { %7838 = vmatprep.subr.bf16.mxu1 %v7837_v55  ;;  %v7853_v55 = vpack.c.bf16 %v1084_v46, %v1077_v45  ;;  %v1117_v29 = vld [vmem:[%s15467_s2 + $0x938] sm:$0xff]  ;;  %v1119_v35 = vld [vmem:[%s15467_s2 + $0x948] sm:$0xff]  ;;  %v1126_v36 = vld [vmem:[%s15467_s2 + $0x980] sm:$0xff]  ;;  %v7863_v40 = vpack.c.bf16 %v1111_v28, %v1104_v25 }
  0x48   : > { %v234_v37 = vld [vmem:[%s9913_s28 + $0x1b8] sm:$0xff]  ;;  %v1116_v42 = vld [vmem:[%s15467_s2 + $0x930] sm:$0xff]  ;;  %v1123_v44 = vld [vmem:[%s15467_s2 + $0x968] sm:$0xff] }
  0x49   : > { %7576 = vmatpush1.bf16.msra.mxu0 %v7575_v63  ;;  %v1098_v63 = vld [vmem:[%s15467_s2 + $0x8a0] sm:$0xff]  ;;  %v1125_v48 = vld [vmem:[%s15467_s2 + $0x978] sm:$0xff]  ;;  %v7603_v57 = vpack.c.bf16 %v1123_v44, %v1116_v42  ;;  %v1147_v10 = vld [vmem:[%s15467_s2 + $0xa28] sm:$0xff] }
  0x4a   : > { %7840 = vmatpush1.bf16.msra.mxu1 %v7839_v0  ;;  %7578 = vmatprep.subr.bf16.mxu0 %v7577_v1  ;;  %v216_v0 = vld [vmem:[%s9913_s28 + $0x128] sm:$0xff]  ;;  %v7591_v1 = vpack.c.bf16 %v1081_v52, %v1074_v51  ;;  %v7857_v8 = vpack.c.bf16 %v1098_v63, %v1091_v62  ;;  %v1118_v45 = vld [vmem:[%s15467_s2 + $0x940] sm:$0xff]  ;;  %v10254_v51 = vmul.f32 %v9944_v24, %v234_v37  ;;  %v233_v52 = vld [vmem:[%s9913_s28 + $0x1b0] sm:$0xff] }
  0x4b   : > { %7842 = vmatprep.subr.bf16.mxu1 %v7841_v5  ;;  %v1095_v5 = vld [vmem:[%s15467_s2 + $0x888] sm:$0xff]  ;;  %v10182_v13 = vmul.f32 %v9944_v24, %v216_v0  ;;  %v1133_v53 = vld [vmem:[%s15467_s2 + $0x9b8] sm:$0xff]  ;;  %v243_v56 = vld [vmem:[%s9913_s28 + $0x200] sm:$0xff]  ;;  %v7867_v58 = vpack.c.bf16 %v1125_v48, %v1118_v45 }
  0x4c   : > { %v1130_v62 = vld [vmem:[%s15467_s2 + $0x9a0] sm:$0xff]  ;;  %v1137_v63 = vld [vmem:[%s15467_s2 + $0x9d8] sm:$0xff]  ;;  %v1132_v0 = vld [vmem:[%s15467_s2 + $0x9b0] sm:$0xff]  ;;  %v10290_v6 = vmul.f32 %v9944_v24, %v243_v56 }
  0x4d   : > { %7580 = vmatpush1.bf16.msra.mxu0 %v7579_v12  ;;  %v1110_v12 = vld [vmem:[%s15467_s2 + $0x900] sm:$0xff]  ;;  %v1144_v17 = vld [vmem:[%s15467_s2 + $0xa10] sm:$0xff]  ;;  %v1159_v25 = vld [vmem:[%s15467_s2 + $0xa88] sm:$0xff] }
  0x4e   : > { %7844 = vmatpush1.bf16.msra.mxu1 %v7843_v14  ;;  %7582 = vmatprep.subr.bf16.mxu0 %v7581_v15  ;;  %v215_v14 = vld [vmem:[%s9913_s28 + $0x120] sm:$0xff]  ;;  %v1105_v15 = vld [vmem:[%s15467_s2 + $0x8d8] sm:$0xff]  ;;  %v7597_v20 = vpack.c.bf16 %v1110_v12, %v1103_v11  ;;  %v252_v12 = vld [vmem:[%s9913_s28 + $0x248] sm:$0xff] }
  0x4f   : > { %7846 = vmatprep.subr.bf16.mxu1 %v7845_v18  ;;  %v7595_v18 = vpack.c.bf16 %v1095_v5, %v1088_v4  ;;  %v7861_v27 = vpack.c.bf16 %v1112_v16, %v1105_v15  ;;  %v1145_v4 = vld [vmem:[%s15467_s2 + $0xa18] sm:$0xff]  ;;  %v1152_v5 = vld [vmem:[%s15467_s2 + $0xa50] sm:$0xff]  ;;  %v1154_v11 = vld [vmem:[%s15467_s2 + $0xa60] sm:$0xff]  ;;  %v10326_v28 = vmul.f32 %v9944_v24, %v252_v12 }
  0x50   : > { %1911 = vmatmul.mubr.f32.vlgmr.msra.gmra.mrb[0].mxu0 %v10066_v22  ;;  %v7609_v16 = vpack.c.bf16 %v1152_v5, %v1145_v4  ;;  %v1160_v42 = vld [vmem:[%s15467_s2 + $0xa90] sm:$0xff]  ;;  %v1173_v48 = vld [vmem:[%s15467_s2 + $0xaf8] sm:$0xff]  ;;  %v1187_v5 = vld [vmem:[%s15467_s2 + $0xb68] sm:$0xff] }
  0x51   : > { %3226 = vmatmul.mubr.f32.vlgmr.msra.gmra.mrb[0].mxu1 %v10066_v22  ;;  %7584 = vmatpush1.bf16.msra.mxu0 %v7583_v26  ;;  %v10204_v26 = vmul.f32 %v10043_v9, %v215_v14  ;;  %v7607_v14 = vpack.c.bf16 %v1137_v63, %v1130_v62  ;;  %v270_v56 = vld [vmem:[%s9913_s28 + $0x2d8] sm:$0xff]  ;;  %v1172_v62 = vld [vmem:[%s15467_s2 + $0xaf0] sm:$0xff]  ;;  %v1179_v63 = vld [vmem:[%s15467_s2 + $0xb28] sm:$0xff] }
  0x52   : > { %7848 = vmatpush1.bf16.msra.mxu1 %v7847_v30  ;;  %1916 = vmatprep.mubr.f32.mxu0 %v10082_v31  ;;  %v1124_v30 = vld [vmem:[%s15467_s2 + $0x970] sm:$0xff]  ;;  %v1181_v4 = vld [vmem:[%s15467_s2 + $0xb38] sm:$0xff] }
  0x53   : > { %3231 = vmatprep.mubr.f32.mxu1 %v10082_v31  ;;  %7586 = vmatprep.subr.bf16.mxu0 %v7585_v33  ;;  %v224_v33 = vld [vmem:[%s9913_s28 + $0x168] sm:$0xff]  ;;  %v7601_v41 = vpack.c.bf16 %v1124_v30, %v1117_v29  ;;  %v251_v29 = vld [vmem:[%s9913_s28 + $0x240] sm:$0xff]  ;;  %v1161_v30 = vld [vmem:[%s15467_s2 + $0xa98] sm:$0xff] }
  0x54   : > { %1917 = vmatmul.mubr.f32.gmra.mrb[2].mxu0 %v10096_v38  ;;  %7850 = vmatprep.subr.bf16.mxu1 %v7849_v39  ;;  %v7599_v39 = vpack.c.bf16 %v1109_v23, %v1102_v21  ;;  %v10240_v46 = vmul.f32 %v10043_v9, %v224_v33  ;;  %v7873_v21 = vpack.c.bf16 %v1154_v11, %v1147_v10  ;;  %v1153_v23 = vld [vmem:[%s15467_s2 + $0xa58] sm:$0xff]  ;;  %v1168_v33 = vld [vmem:[%s15467_s2 + $0xad0] sm:$0xff] }
  0x55   : > { %3232 = vmatmul.mubr.f32.gmra.mrb[2].mxu1 %v10096_v38  ;;  %1922 = vmatprep.mubr.f32.mxu0 %v10109_v43  ;;  %v10348_v44 = vmul.f32 %v10043_v9, %v251_v29  ;;  %v7877_v45 = vpack.c.bf16 %v1168_v33, %v1161_v30  ;;  %v10398_v10 = vmul.f32 %v9944_v24, %v270_v56  ;;  %v269_v11 = vld [vmem:[%s9913_s28 + $0x2d0] sm:$0xff]  ;;  %v1189_v12 = vld [vmem:[%s15467_s2 + $0xb78] sm:$0xff]  ;;  %v1195_v29 = vld [vmem:[%s15467_s2 + $0xba8] sm:$0xff] }
  0x56   : > { %3237 = vmatprep.mubr.f32.mxu1 %v10109_v43  ;;  %7588 = vmatpush1.bf16.msra.mxu0 %v7587_v47  ;;  %v7865_v47 = vpack.c.bf16 %v1126_v36, %v1119_v35  ;;  %v261_v35 = vld [vmem:[%s9913_s28 + $0x290] sm:$0xff]  ;;  %v1201_v30 = vld [vmem:[%s15467_s2 + $0xbd8] sm:$0xff]  ;;  %v1215_v56 = vld [vmem:[%s15467_s2 + $0xc48] sm:$0xff] }
  0x57   : > { %7852 = vmatpush1.bf16.msra.mxu1 %v7851_v49  ;;  %7590 = vmatprep.subr.bf16.mxu0 %v7589_v50  ;;  %v1131_v49 = vld [vmem:[%s15467_s2 + $0x9a8] sm:$0xff]  ;;  %v1138_v50 = vld [vmem:[%s15467_s2 + $0x9e0] sm:$0xff]  ;;  %v1208_v33 = vld [vmem:[%s15467_s2 + $0xc10] sm:$0xff] }
  0x58   : > { %1923 = vmatmul.mubr.f32.gmra.mrb[4].mxu0 %v10132_v54  ;;  %7854 = vmatprep.subr.bf16.mxu1 %v7853_v55  ;;  %v1140_v55 = vld [vmem:[%s15467_s2 + $0x9f0] sm:$0xff]  ;;  %v7605_v61 = vpack.c.bf16 %v1138_v50, %v1131_v49  ;;  %v10362_v50 = vmul.f32 %v9944_v24, %v261_v35 }
  0x59   : > { %3238 = vmatmul.mubr.f32.gmra.mrb[4].mxu1 %v10132_v54  ;;  %1928 = vmatprep.mubr.f32.mxu0 %v10146_v59  ;;  %v1180_v49 = vld [vmem:[%s15467_s2 + $0xb30] sm:$0xff] }
  0x5a   : > { %3243 = vmatprep.mubr.f32.mxu1 %v10146_v59  ;;  %7592 = vmatpush1.bf16.msra.mxu0 %v7591_v1  ;;  %v10276_v1 = vmul.f32 %v10043_v9, %v233_v52  ;;  %v260_v52 = vld [vmem:[%s9913_s28 + $0x288] sm:$0xff] }
  0x5b   : > { %7856 = vmatpush1.bf16.msra.mxu1 %v7855_v2  ;;  %7594 = vmatprep.subr.bf16.mxu0 %v7593_v3  ;;  %v7869_v2 = vpack.c.bf16 %v1140_v55, %v1133_v53  ;;  %v1139_v3 = vld [vmem:[%s15467_s2 + $0x9e8] sm:$0xff]  ;;  %v1182_v55 = vld [vmem:[%s15467_s2 + $0xb40] sm:$0xff] }
  0x5c   : > { %1929 = vmatmul.mubr.f32.gmra.mrb[6].mxu0 %v10168_v7  ;;  %7858 = vmatprep.subr.bf16.mxu1 %v7857_v8  ;;  %v242_v8 = vld [vmem:[%s9913_s28 + $0x1f8] sm:$0xff]  ;;  %v7871_v15 = vpack.c.bf16 %v1139_v3, %v1132_v0  ;;  %v1175_v53 = vld [vmem:[%s15467_s2 + $0xb08] sm:$0xff]  ;;  %v1174_v0 = vld [vmem:[%s15467_s2 + $0xb00] sm:$0xff] }
  0x5d   : > { %3244 = vmatmul.mubr.f32.gmra.mrb[6].mxu1 %v10168_v7  ;;  %1934 = vmatprep.mubr.f32.mxu0 %v10182_v13  ;;  %v7881_v3 = vpack.c.bf16 %v1182_v55, %v1175_v53  ;;  %v1209_v55 = vld [vmem:[%s15467_s2 + $0xc18] sm:$0xff] }
  0x5e   : > { %3249 = vmatprep.mubr.f32.mxu1 %v10182_v13  ;;  %7596 = vmatpush1.bf16.msra.mxu0 %v7595_v18  ;;  %v1151_v18 = vld [vmem:[%s15467_s2 + $0xa48] sm:$0xff] }
  0x5f   : > { %7860 = vmatpush1.bf16.msra.mxu1 %v7859_v19  ;;  %7598 = vmatprep.subr.bf16.mxu0 %v7597_v20  ;;  %v1146_v19 = vld [vmem:[%s15467_s2 + $0xa20] sm:$0xff]  ;;  %v10312_v20 = vmul.f32 %v10043_v9, %v242_v8  ;;  %v7611_v36 = vpack.c.bf16 %v1151_v18, %v1144_v17  ;;  %v7883_v17 = vpack.c.bf16 %v1181_v4, %v1174_v0  ;;  %v297_v0 = vld [vmem:[%s9913_s28 + $0x3b0] sm:$0xff] }
  0x60   : > { %1935 = vmatmul.mubr.f32.gmra.mrb[8].mxu0 %v10204_v26  ;;  %7862 = vmatprep.subr.bf16.mxu1 %v7861_v27  ;;  %v1166_v27 = vld [vmem:[%s15467_s2 + $0xac0] sm:$0xff]  ;;  %v7875_v37 = vpack.c.bf16 %v1153_v23, %v1146_v19  ;;  %v1188_v23 = vld [vmem:[%s15467_s2 + $0xb70] sm:$0xff] }
  0x61   : > { %3250 = vmatmul.mubr.f32.gmra.mrb[8].mxu1 %v10204_v26  ;;  %1940 = vmatprep.mubr.f32.mxu0 %v10218_v32  ;;  %v1194_v8 = vld [vmem:[%s15467_s2 + $0xba0] sm:$0xff] }
  0x62   : > { %3255 = vmatprep.mubr.f32.mxu1 %v10218_v32  ;;  %7600 = vmatpush1.bf16.msra.mxu0 %v7599_v39  ;;  %v7613_v39 = vpack.c.bf16 %v1166_v27, %v1159_v25  ;;  %v7621_v18 = vpack.c.bf16 %v1194_v8, %v1187_v5  ;;  %v1186_v19 = vld [vmem:[%s15467_s2 + $0xb60] sm:$0xff]  ;;  %v10420_v25 = vmul.f32 %v10043_v9, %v269_v11  ;;  %v1221_v11 = vld [vmem:[%s15467_s2 + $0xc78] sm:$0xff] }
  0x63   : > { %7864 = vmatpush1.bf16.msra.mxu1 %v7863_v40  ;;  %7602 = vmatprep.subr.bf16.mxu0 %v7601_v41  ;;  %v1158_v40 = vld [vmem:[%s15467_s2 + $0xa80] sm:$0xff]  ;;  %v1165_v41 = vld [vmem:[%s15467_s2 + $0xab8] sm:$0xff] }
  0x64   : > { %1941 = vmatmul.mubr.f32.gmra.mrb[10].mxu0 %v10240_v46  ;;  %7866 = vmatprep.subr.bf16.mxu1 %v7865_v47  ;;  %v1167_v47 = vld [vmem:[%s15467_s2 + $0xac8] sm:$0xff]  ;;  %v1214_v8 = vld [vmem:[%s15467_s2 + $0xc40] sm:$0xff] }
  0x65   : > { %3256 = vmatmul.mubr.f32.gmra.mrb[10].mxu1 %v10240_v46  ;;  %1946 = vmatprep.mubr.f32.mxu0 %v10254_v51 }
  0x66   : > { %3261 = vmatprep.mubr.f32.mxu1 %v10254_v51  ;;  %7604 = vmatpush1.bf16.msra.mxu0 %v7603_v57  ;;  %v7615_v57 = vpack.c.bf16 %v1165_v41, %v1158_v40  ;;  %v288_v40 = vld [vmem:[%s9913_s28 + $0x368] sm:$0xff] }
  0x67   : > { %7868 = vmatpush1.bf16.msra.mxu1 %v7867_v58  ;;  %7606 = vmatprep.subr.bf16.mxu0 %v7605_v61  ;;  %v7879_v58 = vpack.c.bf16 %v1167_v47, %v1160_v42  ;;  %v7617_v61 = vpack.c.bf16 %v1180_v49, %v1173_v48  ;;  %v7887_v42 = vpack.c.bf16 %v1195_v29, %v1188_v23  ;;  %v1200_v47 = vld [vmem:[%s15467_s2 + $0xbd0] sm:$0xff]  ;;  %v1207_v48 = vld [vmem:[%s15467_s2 + $0xc08] sm:$0xff]  ;;  %v1202_v49 = vld [vmem:[%s15467_s2 + $0xbe0] sm:$0xff] }
  0x68   : > { %1947 = vmatmul.mubr.f32.gmra.mrb[12].mxu0 %v10276_v1  ;;  %7870 = vmatprep.subr.bf16.mxu1 %v7869_v2  ;;  %v10384_v2 = vmul.f32 %v10043_v9, %v260_v52  ;;  %v7891_v4 = vpack.c.bf16 %v1209_v55, %v1202_v49  ;;  %v1231_v23 = vld [vmem:[%s15467_s2 + $0xcc8] sm:$0xff]  ;;  %v306_v29 = vld [vmem:[%s9913_s28 + $0x3f8] sm:$0xff] }
  0x69   : > { %3262 = vmatmul.mubr.f32.gmra.mrb[12].mxu1 %v10276_v1  ;;  %1952 = vmatprep.mubr.f32.mxu0 %v10290_v6  ;;  %v10542_v49 = vmul.f32 %v9944_v24, %v306_v29  ;;  %v1245_v55 = vld [vmem:[%s15467_s2 + $0xd38] sm:$0xff] }
  0x6a   : > { %3267 = vmatprep.mubr.f32.mxu1 %v10290_v6  ;;  %7608 = vmatpush1.bf16.msra.mxu0 %v7607_v14  ;;  %v1196_v14 = vld [vmem:[%s15467_s2 + $0xbb0] sm:$0xff] }
  0x6b   : > { %7872 = vmatpush1.bf16.msra.mxu1 %v7871_v15  ;;  %7610 = vmatprep.subr.bf16.mxu0 %v7609_v16  ;;  %v279_v15 = vld [vmem:[%s9913_s28 + $0x320] sm:$0xff]  ;;  %v7619_v16 = vpack.c.bf16 %v1179_v63, %v1172_v62  ;;  %v7885_v27 = vpack.c.bf16 %v1196_v14, %v1189_v12  ;;  %v1217_v62 = vld [vmem:[%s15467_s2 + $0xc58] sm:$0xff]  ;;  %v1224_v63 = vld [vmem:[%s15467_s2 + $0xc90] sm:$0xff] }
  0x6c   : > { %1953 = vmatmul.mubr.f32.gmra.mrb[14].mxu0 %v10312_v20  ;;  %7874 = vmatprep.subr.bf16.mxu1 %v7873_v21  ;;  %v1193_v21 = vld [vmem:[%s15467_s2 + $0xb98] sm:$0xff]  ;;  %v10434_v35 = vmul.f32 %v9944_v24, %v279_v15  ;;  %v1216_v12 = vld [vmem:[%s15467_s2 + $0xc50] sm:$0xff]  ;;  %v7893_v15 = vpack.c.bf16 %v1224_v63, %v1217_v62 }
  0x6d   : > { %3268 = vmatmul.mubr.f32.gmra.mrb[14].mxu1 %v10312_v20  ;;  %1958 = vmatprep.mubr.f32.mxu0 %v10326_v28  ;;  %v7623_v41 = vpack.c.bf16 %v1193_v21, %v1186_v19  ;;  %v10506_v19 = vmul.f32 %v9944_v24, %v297_v0  ;;  %v296_v21 = vld [vmem:[%s9913_s28 + $0x3a8] sm:$0xff]  ;;  %v1242_v0 = vld [vmem:[%s15467_s2 + $0xd20] sm:$0xff] }
  0x6e   : > { %3273 = vmatprep.mubr.f32.mxu1 %v10326_v28  ;;  %7612 = vmatpush1.bf16.msra.mxu0 %v7611_v36  ;;  %v278_v36 = vld [vmem:[%s9913_s28 + $0x318] sm:$0xff] }
  0x6f   : > { %7876 = vmatpush1.bf16.msra.mxu1 %v7875_v37  ;;  %7614 = vmatprep.subr.bf16.mxu0 %v7613_v39  ;;  %v1203_v37 = vld [vmem:[%s15467_s2 + $0xbe8] sm:$0xff]  ;;  %v1210_v39 = vld [vmem:[%s15467_s2 + $0xc20] sm:$0xff]  ;;  %v10456_v52 = vmul.f32 %v10043_v9, %v278_v36 }
  0x70   : > { %1959 = vmatmul.mubr.f32.gmra.mrb[16].mxu0 %v10348_v44  ;;  %7878 = vmatprep.subr.bf16.mxu1 %v7877_v45  ;;  %v7625_v45 = vpack.c.bf16 %v1208_v33, %v1201_v30  ;;  %v7889_v53 = vpack.c.bf16 %v1210_v39, %v1203_v37  ;;  %v7631_v30 = vpack.c.bf16 %v1221_v11, %v1214_v8  ;;  %v1228_v37 = vld [vmem:[%s15467_s2 + $0xcb0] sm:$0xff]  ;;  %v1235_v39 = vld [vmem:[%s15467_s2 + $0xce8] sm:$0xff] }
  0x71   : > { %3274 = vmatmul.mubr.f32.gmra.mrb[16].mxu1 %v10348_v44  ;;  %1964 = vmatprep.mubr.f32.mxu0 %v10362_v50  ;;  %v1251_v11 = vld [vmem:[%s15467_s2 + $0xd68] sm:$0xff] }
  0x72   : > { %3279 = vmatprep.mubr.f32.mxu1 %v10362_v50  ;;  %7616 = vmatpush1.bf16.msra.mxu0 %v7615_v57  ;;  %v1222_v57 = vld [vmem:[%s15467_s2 + $0xc80] sm:$0xff] }
  0x73   : > { %7880 = vmatpush1.bf16.msra.mxu1 %v7879_v58  ;;  %7618 = vmatprep.subr.bf16.mxu0 %v7617_v61  ;;  %v10470_v58 = vmul.f32 %v9944_v24, %v288_v40  ;;  %v287_v61 = vld [vmem:[%s9913_s28 + $0x360] sm:$0xff]  ;;  %v7629_v5 = vpack.c.bf16 %v1222_v57, %v1215_v56  ;;  %v1252_v56 = vld [vmem:[%s15467_s2 + $0xd70] sm:$0xff] }
  0x74   : > { %1965 = vmatmul.mubr.f32.gmra.mrb[18].mxu0 %v10384_v2  ;;  %7882 = vmatprep.subr.bf16.mxu1 %v7881_v3  ;;  %v7627_v3 = vpack.c.bf16 %v1207_v48, %v1200_v47  ;;  %v10492_v14 = vmul.f32 %v10043_v9, %v287_v61  ;;  %v1230_v40 = vld [vmem:[%s15467_s2 + $0xcc0] sm:$0xff]  ;;  %v1243_v47 = vld [vmem:[%s15467_s2 + $0xd28] sm:$0xff]  ;;  %v7635_v61 = vpack.c.bf16 %v1235_v39, %v1228_v37 }
  0x75   : > { %3280 = vmatmul.mubr.f32.gmra.mrb[18].mxu1 %v10384_v2  ;;  %1970 = vmatprep.mubr.f32.mxu0 %v10398_v10  ;;  %v1250_v48 = vld [vmem:[%s15467_s2 + $0xd60] sm:$0xff]  ;;  %v7901_v8 = vpack.c.bf16 %v1252_v56, %v1245_v55  ;;  %v1273_v55 = vld [vmem:[%s15467_s2 + $0xe18] sm:$0xff]  ;;  %v1280_v56 = vld [vmem:[%s15467_s2 + $0xe50] sm:$0xff] }
  0x76   : > { %3285 = vmatprep.mubr.f32.mxu1 %v10398_v10  ;;  %7620 = vmatpush1.bf16.msra.mxu0 %v7619_v16  ;;  %v1223_v16 = vld [vmem:[%s15467_s2 + $0xc88] sm:$0xff]  ;;  %v315_v57 = vld [vmem:[%s9913_s28 + $0x440] sm:$0xff]  ;;  %v7637_v63 = vpack.c.bf16 %v1250_v48, %v1243_v47 }
  0x77   : > { %7884 = vmatpush1.bf16.msra.mxu1 %v7883_v17  ;;  %7622 = vmatprep.subr.bf16.mxu0 %v7621_v18  ;;  %v1229_v17 = vld [vmem:[%s15467_s2 + $0xcb8] sm:$0xff]  ;;  %v1236_v18 = vld [vmem:[%s15467_s2 + $0xcf0] sm:$0xff]  ;;  %v7895_v33 = vpack.c.bf16 %v1223_v16, %v1216_v12  ;;  %v10578_v16 = vmul.f32 %v9944_v24, %v315_v57  ;;  %v1258_v37 = vld [vmem:[%s15467_s2 + $0xda0] sm:$0xff] }
  0x78   : > { %1971 = vmatmul.mubr.f32.gmra.mrb[20].mxu0 %v10420_v25  ;;  %7886 = vmatprep.subr.bf16.mxu1 %v7885_v27  ;;  %v1238_v27 = vld [vmem:[%s15467_s2 + $0xd00] sm:$0xff]  ;;  %v7633_v36 = vpack.c.bf16 %v1236_v18, %v1229_v17  ;;  %v1257_v12 = vld [vmem:[%s15467_s2 + $0xd98] sm:$0xff]  ;;  %v1259_v18 = vld [vmem:[%s15467_s2 + $0xda8] sm:$0xff] }
  0x79   : > { %3286 = vmatmul.mubr.f32.gmra.mrb[20].mxu1 %v10420_v25  ;;  %1976 = vmatprep.mubr.f32.mxu0 %v10434_v35  ;;  %v314_v17 = vld [vmem:[%s9913_s28 + $0x438] sm:$0xff]  ;;  %v1278_v47 = vld [vmem:[%s15467_s2 + $0xe40] sm:$0xff]  ;;  %v333_v57 = vld [vmem:[%s9913_s28 + $0x4d0] sm:$0xff] }
  0x7a   : > { %3291 = vmatprep.mubr.f32.mxu1 %v10434_v35  ;;  %7624 = vmatpush1.bf16.msra.mxu0 %v7623_v41  ;;  %v10528_v41 = vmul.f32 %v10043_v9, %v296_v21  ;;  %v1266_v21 = vld [vmem:[%s15467_s2 + $0xde0] sm:$0xff]  ;;  %v10600_v39 = vmul.f32 %v10043_v9, %v314_v17  ;;  %v341_v17 = vld [vmem:[%s9913_s28 + $0x510] sm:$0xff] }
  0x7b   : > { %7888 = vmatpush1.bf16.msra.mxu1 %v7887_v42  ;;  %7626 = vmatprep.subr.bf16.mxu0 %v7625_v45  ;;  %v7897_v42 = vpack.c.bf16 %v1238_v27, %v1231_v23  ;;  %v1237_v45 = vld [vmem:[%s15467_s2 + $0xcf8] sm:$0xff]  ;;  %v324_v23 = vld [vmem:[%s9913_s28 + $0x488] sm:$0xff] }
  0x7c   : > { %1977 = vmatmul.mubr.f32.gmra.mrb[22].mxu0 %v10456_v52  ;;  %7890 = vmatprep.subr.bf16.mxu1 %v7889_v53  ;;  %v305_v53 = vld [vmem:[%s9913_s28 + $0x3f0] sm:$0xff]  ;;  %v7899_v62 = vpack.c.bf16 %v1237_v45, %v1230_v40  ;;  %v7905_v40 = vpack.c.bf16 %v1266_v21, %v1259_v18  ;;  %v1271_v45 = vld [vmem:[%s15467_s2 + $0xe08] sm:$0xff]  ;;  %v10614_v48 = vmul.f32 %v9944_v24, %v324_v23  ;;  %v351_v18 = vld [vmem:[%s9913_s28 + $0x560] sm:$0xff] }
  0x7d   : > { %3292 = vmatmul.mubr.f32.gmra.mrb[22].mxu1 %v10456_v52  ;;  %1982 = vmatprep.mubr.f32.mxu0 %v10470_v58  ;;  %v10651_v21 = vmul.f32 %v10043_v9, %v341_v17  ;;  %v10656_v23 = vmul.f32 %v9944_v24, %v351_v18  ;;  %v395_v17 = vld [vmem:[%s9913_s28 + $0x6c0] sm:$0xff]  ;;  %v405_v18 = vld [vmem:[%s9913_s28 + $0x710] sm:$0xff] }
  0x7e   : > { %3297 = vmatprep.mubr.f32.mxu1 %v10470_v58  ;;  %7628 = vmatpush1.bf16.msra.mxu0 %v7627_v3  ;;  %v1249_v3 = vld [vmem:[%s15467_s2 + $0xd58] sm:$0xff] }
  0x7f   : > { %7892 = vmatpush1.bf16.msra.mxu1 %v7891_v4  ;;  %7630 = vmatprep.subr.bf16.mxu0 %v7629_v5  ;;  %v1244_v4 = vld [vmem:[%s15467_s2 + $0xd30] sm:$0xff]  ;;  %v10564_v5 = vmul.f32 %v10043_v9, %v305_v53  ;;  %v7639_v27 = vpack.c.bf16 %v1249_v3, %v1242_v0  ;;  %v323_v53 = vld [vmem:[%s9913_s28 + $0x480] sm:$0xff]  ;;  %v7909_v3 = vpack.c.bf16 %v1280_v56, %v1273_v55 }
  0x80   : > { %1983 = vmatmul.mubr.f32.gmra.mrb[24].mxu0 %v10492_v14  ;;  %7894 = vmatprep.subr.bf16.mxu1 %v7893_v15  ;;  %v1264_v15 = vld [vmem:[%s15467_s2 + $0xdd0] sm:$0xff]  ;;  %v7903_v29 = vpack.c.bf16 %v1251_v11, %v1244_v4  ;;  %v10627_v0 = vmul.f32 %v10043_v9, %v323_v53  ;;  %v10632_v4 = vmul.f32 %v9944_v24, %v333_v57  ;;  %v342_v11 = vld [vmem:[%s9913_s28 + $0x518] sm:$0xff]  ;;  %v387_v57 = vld [vmem:[%s9913_s28 + $0x680] sm:$0xff] }
  0x81   : > { %3298 = vmatmul.mubr.f32.gmra.mrb[24].mxu1 %v10492_v14  ;;  %1988 = vmatprep.mubr.f32.mxu0 %v10506_v19  ;;  %v377_v56 = vld [vmem:[%s9913_s28 + $0x630] sm:$0xff] }
  0x82   : > { %3303 = vmatprep.mubr.f32.mxu1 %v10506_v19  ;;  %7632 = vmatpush1.bf16.msra.mxu0 %v7631_v30  ;;  %v7641_v30 = vpack.c.bf16 %v1264_v15, %v1257_v12  ;;  %v10644_v15 = vmul.f32 %v9944_v24, %v342_v11 }
  0x83   : > { %7896 = vmatpush1.bf16.msra.mxu1 %v7895_v33  ;;  %7634 = vmatprep.subr.bf16.mxu0 %v7633_v36  ;;  %v1256_v33 = vld [vmem:[%s15467_s2 + $0xd90] sm:$0xff]  ;;  %v1263_v36 = vld [vmem:[%s15467_s2 + $0xdc8] sm:$0xff] }
  0x84   : > { %1989 = vmatmul.mubr.f32.gmra.mrb[26].mxu0 %v10528_v41  ;;  %7898 = vmatprep.subr.bf16.mxu1 %v7897_v42  ;;  %v1265_v42 = vld [vmem:[%s15467_s2 + $0xdd8] sm:$0xff] }
  0x85   : > { %3304 = vmatmul.mubr.f32.gmra.mrb[26].mxu1 %v10528_v41  ;;  %1994 = vmatprep.mubr.f32.mxu0 %v10542_v49 }
  0x86   : > { %3309 = vmatprep.mubr.f32.mxu1 %v10542_v49  ;;  %7636 = vmatpush1.bf16.msra.mxu0 %v7635_v61  ;;  %v7643_v61 = vpack.c.bf16 %v1263_v36, %v1256_v33  ;;  %v359_v36 = vld [vmem:[%s9913_s28 + $0x5a0] sm:$0xff] }
  0x87   : > { %7900 = vmatpush1.bf16.msra.mxu1 %v7899_v62  ;;  %7638 = vmatprep.subr.bf16.mxu0 %v7637_v63  ;;  %v7907_v62 = vpack.c.bf16 %v1265_v42, %v1258_v37  ;;  %v7645_v63 = vpack.c.bf16 %v1278_v47, %v1271_v45  ;;  %v369_v37 = vld [vmem:[%s9913_s28 + $0x5f0] sm:$0xff]  ;;  %v368_v45 = vld [vmem:[%s9913_s28 + $0x5e8] sm:$0xff]  ;;  %v378_v47 = vld [vmem:[%s9913_s28 + $0x638] sm:$0xff] }
  0x88   : > { %1995 = vmatmul.mubr.f32.gmra.mrb[28].mxu0 %v10564_v5  ;;  %7902 = vmatprep.subr.bf16.mxu1 %v7901_v8  ;;  %v332_v8 = vld [vmem:[%s9913_s28 + $0x4c8] sm:$0xff]  ;;  %v10680_v42 = vmul.f32 %v9944_v24, %v369_v37  ;;  %v10687_v53 = vmul.f32 %v10043_v9, %v368_v45  ;;  %v10692_v55 = vmul.f32 %v9944_v24, %v378_v47  ;;  %v414_v37 = vld [vmem:[%s9913_s28 + $0x758] sm:$0xff] }
  0x89   : > { %3310 = vmatmul.mubr.f32.gmra.mrb[28].mxu1 %v10564_v5  ;;  %2000 = vmatprep.mubr.f32.mxu0 %v10578_v16  ;;  %v10639_v12 = vmul.f32 %v10043_v9, %v332_v8  ;;  %v10740_v47 = vmul.f32 %v9944_v24, %v414_v37 }
  0x8a   : > { %3315 = vmatprep.mubr.f32.mxu1 %v10578_v16  ;;  %7640 = vmatpush1.bf16.msra.mxu0 %v7639_v27  ;;  %v350_v27 = vld [vmem:[%s9913_s28 + $0x558] sm:$0xff]  ;;  %15970 = vst [vmem:[#allocation5_spill] sm:$0xff] %v10680_v42  ;;  %15971 = vst [vmem:[#allocation6_spill] sm:$0xff] %v10687_v53 }
  0x8b   : > { %7904 = vmatpush1.bf16.msra.mxu1 %v7903_v29  ;;  %7642 = vmatprep.subr.bf16.mxu0 %v7641_v30  ;;  %v360_v29 = vld [vmem:[%s9913_s28 + $0x5a8] sm:$0xff]  ;;  %v10663_v30 = vmul.f32 %v10043_v9, %v350_v27  ;;  %15972 = vst [vmem:[#allocation7_spill] sm:$0xff] %v10692_v55  ;;  %v10723_v27 = vmul.f32 %v10043_v9, %v395_v17  ;;  %15980 = vst [vmem:[#allocation15_spill] sm:$0xff] %v10740_v47  ;;  %v422_v17 = vld [vmem:[%s9913_s28 + $0x798] sm:$0xff] }
  0x8c   : > { %2001 = vmatmul.mubr.f32.gmra.mrb[30].mxu0 %v10600_v39  ;;  %7906 = vmatprep.subr.bf16.mxu1 %v7905_v40  ;;  %v10668_v33 = vmul.f32 %v9944_v24, %v360_v29  ;;  %v10675_v40 = vmul.f32 %v10043_v9, %v359_v36  ;;  %v10728_v29 = vmul.f32 %v9944_v24, %v405_v18  ;;  %v404_v36 = vld [vmem:[%s9913_s28 + $0x708] sm:$0xff] }
  0x8d   : > { %3316 = vmatmul.mubr.f32.gmra.mrb[30].mxu1 %v10600_v39  ;;  %2006 = vmatprep.mubr.f32.mxu0 %v10614_v48  ;;  %15967 = vst [vmem:[#allocation2_spill] sm:$0xff] %v10663_v30  ;;  %15977 = vst [vmem:[#allocation12_spill] sm:$0xff] %v10723_v27  ;;  %v10735_v45 = vmul.f32 %v10043_v9, %v404_v36  ;;  %v432_v18 = vld [vmem:[%s9913_s28 + $0x7e8] sm:$0xff]  ;;  %v10759_v36 = vmul.f32 %v10043_v9, %v422_v17 }
  0x8e   : > { %3321 = vmatprep.mubr.f32.mxu1 %v10614_v48  ;;  %7644 = vmatpush1.bf16.msra.mxu0 %v7643_v61  ;;  %15968 = vst [vmem:[#allocation3_spill] sm:$0xff] %v10668_v33  ;;  %15969 = vst [vmem:[#allocation4_spill] sm:$0xff] %v10675_v40  ;;  %v10699_v61 = vmul.f32 %v10043_v9, %v377_v56  ;;  %v413_v56 = vld [vmem:[%s9913_s28 + $0x750] sm:$0xff]  ;;  %v10764_v37 = vmul.f32 %v9944_v24, %v432_v18  ;;  %v440_v18 = vld [vmem:[%s9913_s28 + $0x828] sm:$0xff] }
  0x8f   : > { %7908 = vmatpush1.bf16.msra.mxu1 %v7907_v62  ;;  %7646 = vmatprep.subr.bf16.mxu0 %v7645_v63  ;;  %v10704_v62 = vmul.f32 %v9944_v24, %v387_v57  ;;  %v386_v63 = vld [vmem:[%s9913_s28 + $0x678] sm:$0xff]  ;;  %15978 = vst [vmem:[#allocation13_spill] sm:$0xff] %v10728_v29  ;;  %15979 = vst [vmem:[#allocation14_spill] sm:$0xff] %v10735_v45  ;;  %v423_v57 = vld [vmem:[%s9913_s28 + $0x7a0] sm:$0xff] }
  0x90   : > { %2007 = vmatmul.mubr.f32.gmra.mrb[32].mxu0 %v10627_v0  ;;  %7910 = vmatprep.subr.bf16.mxu1 %v7909_v3  ;;  %15973 = vst [vmem:[#allocation8_spill] sm:$0xff] %v10699_v61  ;;  %v396_v3 = vld [vmem:[%s9913_s28 + $0x6c8] sm:$0xff]  ;;  %v10711_v8 = vmul.f32 %v10043_v9, %v386_v63  ;;  %v10747_v63 = vmul.f32 %v10043_v9, %v413_v56  ;;  %15983 = vst [vmem:[#allocation18_spill] sm:$0xff] %v10759_v36  ;;  %v431_v56 = vld [vmem:[%s9913_s28 + $0x7e0] sm:$0xff] }
  0x91   : > { %3322 = vmatmul.mubr.f32.gmra.mrb[32].mxu1 %v10627_v0  ;;  %2012 = vmatprep.mubr.f32.mxu0 %v10632_v4  ;;  %15974 = vst [vmem:[#allocation9_spill] sm:$0xff] %v10704_v62  ;;  %v10716_v11 = vmul.f32 %v9944_v24, %v396_v3  ;;  %v10752_v3 = vmul.f32 %v9944_v24, %v423_v57  ;;  %15984 = vst [vmem:[#allocation19_spill] sm:$0xff] %v10764_v37  ;;  %v441_v57 = vld [vmem:[%s9913_s28 + $0x830] sm:$0xff] }
  0x92   : > { %3327 = vmatprep.mubr.f32.mxu1 %v10632_v4  ;;  %15975 = vst [vmem:[#allocation10_spill] sm:$0xff] %v10711_v8  ;;  %15981 = vst [vmem:[#allocation16_spill] sm:$0xff] %v10747_v63  ;;  %v10776_v17 = vmul.f32 %v9944_v24, %v441_v57  ;;  %v449_v57 = vld [vmem:[%s9913_s28 + $0x870] sm:$0xff] }
  0x93   : > { %15976 = vst [vmem:[#allocation11_spill] sm:$0xff] %v10716_v11  ;;  %15982 = vst [vmem:[#allocation17_spill] sm:$0xff] %v10752_v3 }
  0x94   : > { %2013 = vmatmul.mubr.f32.gmra.mrb[34].mxu0 %v10639_v12  ;;  %15986 = vst [vmem:[#allocation21_spill] sm:$0xff] %v10776_v17 }
  0x95   : > { %3328 = vmatmul.mubr.f32.gmra.mrb[34].mxu1 %v10639_v12  ;;  %2018 = vmatprep.mubr.f32.mxu0 %v10644_v15 }
  0x96   : > { %3333 = vmatprep.mubr.f32.mxu1 %v10644_v15 }
  0x98   : > { %2019 = vmatmul.mubr.f32.gmra.mrb[36].mxu0 %v10651_v21 }
  0x99   : > { %3334 = vmatmul.mubr.f32.gmra.mrb[36].mxu1 %v10651_v21  ;;  %2024 = vmatprep.mubr.f32.mxu0 %v10656_v23 }
  0x9a   : > { %3339 = vmatprep.mubr.f32.mxu1 %v10656_v23 }
  0x9c   : > { %2025 = vmatmul.mubr.f32.gmra.mrb[38].mxu0 %v10663_v30 }
  0x9d   : > { %3340 = vmatmul.mubr.f32.gmra.mrb[38].mxu1 %v10663_v30  ;;  %2030 = vmatprep.mubr.f32.mxu0 %v10668_v33  ;;  %v1319_v30 = vld [vmem:[%s15467_s2 + $0xf88] sm:$0xff] }
  0x9e   : > { %3345 = vmatprep.mubr.f32.mxu1 %v10668_v33  ;;  %v1305_v33 = vld [vmem:[%s15467_s2 + $0xf18] sm:$0xff] }
  0xa0   : > { %2031 = vmatmul.mubr.f32.gmra.mrb[40].mxu0 %v10675_v40 }
  0xa1   : > { %3346 = vmatmul.mubr.f32.gmra.mrb[40].mxu1 %v10675_v40  ;;  %2036 = vmatprep.mubr.f32.mxu0 %v10680_v42  ;;  %v209_v40 = vld [vmem:[%s9913_s28 + $0xf0] sm:$0xff] }
  0xa2   : > { %3351 = vmatprep.mubr.f32.mxu1 %v10680_v42 }
  0xa4   : > { %2037 = vmatmul.mubr.f32.gmra.mrb[42].mxu0 %v10687_v53 }
  0xa5   : > { %3352 = vmatmul.mubr.f32.gmra.mrb[42].mxu1 %v10687_v53  ;;  %2042 = vmatprep.mubr.f32.mxu0 %v10692_v55  ;;  %v1286_v53 = vld [vmem:[%s15467_s2 + $0xe80] sm:$0xff] }
  0xa6   : > { %3357 = vmatprep.mubr.f32.mxu1 %v10692_v55 }
  0xa8   : > { %2043 = vmatmul.mubr.f32.gmra.mrb[44].mxu0 %v10699_v61 }
  0xa9   : > { %3358 = vmatmul.mubr.f32.gmra.mrb[44].mxu1 %v10699_v61  ;;  %2048 = vmatprep.mubr.f32.mxu0 %v10704_v62 }
  0xaa   : > { %3363 = vmatprep.mubr.f32.mxu1 %v10704_v62 }
  0xac   : > { %2049 = vmatmul.mubr.f32.gmra.mrb[46].mxu0 %v10711_v8 }
  0xad   : > { %3364 = vmatmul.mubr.f32.gmra.mrb[46].mxu1 %v10711_v8  ;;  %2054 = vmatprep.mubr.f32.mxu0 %v10716_v11  ;;  %v1287_v8 = vld [vmem:[%s15467_s2 + $0xe88] sm:$0xff] }
  0xae   : > { %3369 = vmatprep.mubr.f32.mxu1 %v10716_v11  ;;  %v190_v11 = vld [vmem:[%s9913_s28 + $0x58] sm:$0xff] }
  0xb0   : > { %2055 = vmatmul.mubr.f32.gmra.mrb[48].mxu0 %v10723_v27 }
  0xb1   : > { %3370 = vmatmul.mubr.f32.gmra.mrb[48].mxu1 %v10723_v27  ;;  %2060 = vmatprep.mubr.f32.mxu0 %v10728_v29 }
  0xb2   : > { %3375 = vmatprep.mubr.f32.mxu1 %v10728_v29 }
  0xb4   : > { %2061 = vmatmul.mubr.f32.gmra.mrb[50].mxu0 %v10735_v45 }
  0xb5   : > { %3376 = vmatmul.mubr.f32.gmra.mrb[50].mxu1 %v10735_v45  ;;  %2066 = vmatprep.mubr.f32.mxu0 %v10740_v47 }
  0xb6   : > { %3381 = vmatprep.mubr.f32.mxu1 %v10740_v47  ;;  %v10771_v47 = vmul.f32 %v10043_v9, %v431_v56 }
  0xb8   : > { %2067 = vmatmul.mubr.f32.gmra.mrb[52].mxu0 %v10747_v63  ;;  %15985 = vst [vmem:[#allocation20_spill] sm:$0xff] %v10771_v47 }
  0xb9   : > { %3382 = vmatmul.mubr.f32.gmra.mrb[52].mxu1 %v10747_v63  ;;  %2072 = vmatprep.mubr.f32.mxu0 %v10752_v3  ;;  %v450_v63 = vld [vmem:[%s9913_s28 + $0x878] sm:$0xff] }
  0xba   : > { %3387 = vmatprep.mubr.f32.mxu1 %v10752_v3  ;;  %v10783_v3 = vmul.f32 %v10043_v9, %v440_v18  ;;  %v10788_v56 = vmul.f32 %v9944_v24, %v450_v63  ;;  %v458_v63 = vld [vmem:[%s9913_s28 + $0x8b8] sm:$0xff] }
  0xbb   : > { %v10808_v45 = vmul.f32 %v10043_v9, %v458_v63  ;;  %v182_v63 = vld [vmem:[%s9913_s28 + $0x18] sm:$0xff] }
  0xbc   : > { %2073 = vmatmul.mubr.f32.gmra.mrb[54].mxu0 %v10759_v36  ;;  %15987 = vst [vmem:[#allocation22_spill] sm:$0xff] %v10783_v3  ;;  %15988 = vst [vmem:[#allocation23_spill] sm:$0xff] %v10788_v56 }
  0xbd   : > { %3388 = vmatmul.mubr.f32.gmra.mrb[54].mxu1 %v10759_v36  ;;  %2078 = vmatprep.mubr.f32.mxu0 %v10764_v37  ;;  %v459_v36 = vld [vmem:[%s9913_s28 + $0x8c0] sm:$0xff]  ;;  %15991 = vst [vmem:[#allocation26_spill] sm:$0xff] %v10808_v45 }
  0xbe   : > { %3393 = vmatprep.mubr.f32.mxu1 %v10764_v37  ;;  %v10795_v37 = vmul.f32 %v10043_v9, %v449_v57  ;;  %v10800_v18 = vmul.f32 %v9944_v24, %v459_v36  ;;  %v490_v57 = vsub.s32 2, %v9881_v60 }
  0xc0   : > { %2079 = vmatmul.mubr.f32.gmra.mrb[56].mxu0 %v10771_v47  ;;  %15989 = vst [vmem:[#allocation24_spill] sm:$0xff] %v10795_v37  ;;  %15990 = vst [vmem:[#allocation25_spill] sm:$0xff] %v10800_v18 }
  0xc1   : > { %3394 = vmatmul.mubr.f32.gmra.mrb[56].mxu1 %v10771_v47  ;;  %2084 = vmatprep.mubr.f32.mxu0 %v10776_v17  ;;  %v494_v47 = vsub.s32 3, %v9881_v60 }
  0xc2   : > { %3399 = vmatprep.mubr.f32.mxu1 %v10776_v17  ;;  %v468_v17 = vld [vmem:[%s9913_s28 + $0x908] sm:$0xff] }
  0xc3   : > { %v10814_v36 = vmul.f32 %v9944_v24, %v468_v17  ;;  %v1270_v17 = vld [vmem:[%s15467_s2 + $0xe00] sm:$0xff] }
  0xc4   : > { %2085 = vmatmul.mubr.f32.gmra.mrb[58].mxu0 %v10783_v3 }
  0xc5   : > { %3400 = vmatmul.mubr.f32.gmra.mrb[58].mxu1 %v10783_v3  ;;  %2090 = vmatprep.mubr.f32.mxu0 %v10788_v56  ;;  %15992 = vst [vmem:[#allocation27_spill] sm:$0xff] %v10814_v36  ;;  %v467_v3 = vld [vmem:[%s9913_s28 + $0x900] sm:$0xff] }
  0xc6   : > { %3405 = vmatprep.mubr.f32.mxu1 %v10788_v56  ;;  %v9576_v56 = vld [vmem:[%s15465_s0] sm:$0xff] }
  0xc7   : > { %v10820_v29 = vrot.slane %v9576_v56, %v494_v47  ;;  %v10828_v27 = vrot.slane %v9576_v56, %v490_v57  ;;  %v181_v47 = vld [vmem:[%s9913_s28 + $0x10] sm:$0xff]  ;;  %v1279_v56 = vld [vmem:[%s15467_s2 + $0xe48] sm:$0xff]  ;;  %v191_v57 = vld [vmem:[%s9913_s28 + $0x60] sm:$0xff] }
  0xc8   : > { %2091 = vmatmul.mubr.f32.gmra.mrb[60].mxu0 %v10795_v37 }
  0xc9   : > { %3406 = vmatmul.mubr.f32.gmra.mrb[60].mxu1 %v10795_v37  ;;  %2096 = vmatprep.mubr.f32.mxu0 %v10800_v18  ;;  %v10826_v37 = vmul.f32 %v10043_v9, %v467_v3  ;;  %v10833_v24 = vmul.f32 %v10820_v29, %v182_v63  ;;  %v1277_v9 = vld [vmem:[%s15467_s2 + $0xe38] sm:$0xff]  ;;  %v1272_v3 = vld [vmem:[%s15467_s2 + $0xe10] sm:$0xff]  ;;  %v10852_v63 = vmul.f32 %v10828_v27, %v181_v47  ;;  %v1294_v47 = vld [vmem:[%s15467_s2 + $0xec0] sm:$0xff] }
  0xca   : > { %3411 = vmatprep.mubr.f32.mxu1 %v10800_v18  ;;  %v7647_v18 = vpack.c.bf16 %v1277_v9, %v1270_v17  ;;  %v7911_v62 = vpack.c.bf16 %v1279_v56, %v1272_v3  ;;  %v10871_v61 = vmul.f32 %v10820_v29, %v191_v57  ;;  %v1284_v17 = vld [vmem:[%s15467_s2 + $0xe70] sm:$0xff]  ;;  %v1291_v9 = vld [vmem:[%s15467_s2 + $0xea8] sm:$0xff]  ;;  %v10885_v3 = vmul.f32 %v10828_v27, %v190_v11  ;;  %v1306_v57 = vld [vmem:[%s15467_s2 + $0xf20] sm:$0xff] }
  0xcb   : > { %15993 = vst [vmem:[#allocation28_spill] sm:$0xff] %v10826_v37  ;;  %15994 = vst [vmem:[#allocation29_spill] sm:$0xff] %v10833_v24  ;;  %v7913_v56 = vpack.c.bf16 %v1294_v47, %v1287_v8  ;;  %v199_v11 = vld [vmem:[%s9913_s28 + $0xa0] sm:$0xff]  ;;  %v1301_v8 = vld [vmem:[%s15467_s2 + $0xef8] sm:$0xff]  ;;  %v7651_v42 = vpack.c.bf16 %v1291_v9, %v1284_v17 }
  0xcc   : > { %2097 = vmatmul.mubr.f32.gmra.mrb[62].mxu0 %v10808_v45  ;;  %15995 = vst [vmem:[#allocation30_spill] sm:$0xff] %v10852_v63  ;;  %15996 = vst [vmem:[#allocation31_spill] sm:$0xff] %v10871_v61  ;;  %v1308_v47 = vld [vmem:[%s15467_s2 + $0xf30] sm:$0xff]  ;;  %v1307_v17 = vld [vmem:[%s15467_s2 + $0xf28] sm:$0xff] }
  0xcd   : > { %3412 = vmatmul.mubr.f32.gmra.mrb[62].mxu1 %v10808_v45  ;;  %2102 = vmatprep.mubr.f32.mxu0 %v10814_v36  ;;  %v1292_v45 = vld [vmem:[%s15467_s2 + $0xeb0] sm:$0xff]  ;;  %15997 = vst [vmem:[#allocation32_spill] sm:$0xff] %v10885_v3  ;;  %v1313_v9 = vld [vmem:[%s15467_s2 + $0xf58] sm:$0xff] }
  0xce   : > { %3417 = vmatprep.mubr.f32.mxu1 %v10814_v36  ;;  %v1285_v36 = vld [vmem:[%s15467_s2 + $0xe78] sm:$0xff] }
  0xcf   : > { %v7649_v55 = vpack.c.bf16 %v1292_v45, %v1285_v36  ;;  %v1293_v45 = vld [vmem:[%s15467_s2 + $0xeb8] sm:$0xff]  ;;  %v1299_v36 = vld [vmem:[%s15467_s2 + $0xee8] sm:$0xff] }
  0xd0   : > { %2103 = vmatmul.mubr.f32.gmra.mrb[64].mxu0 %v10826_v37 }
  0xd1   : > { %3418 = vmatmul.mubr.f32.gmra.mrb[64].mxu1 %v10826_v37  ;;  %2173 = vmatprep.mubr.f32.mxu0 %v10833_v24  ;;  %v200_v37 = vld [vmem:[%s9913_s28 + $0xa8] sm:$0xff] }
  0xd2   : > { %3488 = vmatprep.mubr.f32.mxu1 %v10833_v24  ;;  %v10898_v24 = vmul.f32 %v10820_v29, %v200_v37  ;;  %v7915_v37 = vpack.c.bf16 %v1293_v45, %v1286_v53  ;;  %v7917_v53 = vpack.c.bf16 %v1308_v47, %v1301_v8  ;;  %v1320_v45 = vld [vmem:[%s15467_s2 + $0xf90] sm:$0xff]  ;;  %v218_v8 = vld [vmem:[%s9913_s28 + $0x138] sm:$0xff] }
  0xd4   : > { %2174 = vmatmul.mubr.f32.vlgmr.msra.gmra.mrb[0].mxu0 %v10852_v63  ;;  %15998 = vst [vmem:[#allocation33_spill] sm:$0xff] %v10898_v24 }
  0xd5   : > { %3489 = vmatmul.mubr.f32.vlgmr.msra.gmra.mrb[0].mxu1 %v10852_v63  ;;  %7648 = vmatpush1.bf16.msra.mxu0 %v7647_v18  ;;  %v7653_v18 = vpack.c.bf16 %v1306_v57, %v1299_v36  ;;  %v1298_v63 = vld [vmem:[%s15467_s2 + $0xee0] sm:$0xff]  ;;  %v10935_v36 = vmul.f32 %v10820_v29, %v209_v40  ;;  %v1315_v57 = vld [vmem:[%s15467_s2 + $0xf68] sm:$0xff]  ;;  %v7657_v40 = vpack.c.bf16 %v1320_v45, %v1313_v9  ;;  %v1336_v9 = vld [vmem:[%s15467_s2 + $0x1010] sm:$0xff] }
  0xd6   : > { %7912 = vmatpush1.bf16.msra.mxu1 %v7911_v62  ;;  %2179 = vmatprep.mubr.f32.mxu0 %v10871_v61  ;;  %v1300_v62 = vld [vmem:[%s15467_s2 + $0xef0] sm:$0xff]  ;;  %v7655_v47 = vpack.c.bf16 %v1305_v33, %v1298_v63  ;;  %v1321_v63 = vld [vmem:[%s15467_s2 + $0xf98] sm:$0xff]  ;;  %v227_v45 = vld [vmem:[%s9913_s28 + $0x180] sm:$0xff] }
  0xd7   : > { %3494 = vmatprep.mubr.f32.mxu1 %v10871_v61  ;;  %7650 = vmatprep.subr.bf16.mxu0 %v7649_v55  ;;  %v10921_v55 = vmul.f32 %v10828_v27, %v199_v11  ;;  %16000 = vst [vmem:[#allocation35_spill] sm:$0xff] %v10935_v36  ;;  %v1322_v11 = vld [vmem:[%s15467_s2 + $0xfa0] sm:$0xff]  ;;  %v1312_v61 = vld [vmem:[%s15467_s2 + $0xf50] sm:$0xff] }
  0xd8   : > { %2180 = vmatmul.mubr.f32.gmra.mrb[2].mxu0 %v10885_v3  ;;  %7914 = vmatprep.subr.bf16.mxu1 %v7913_v56  ;;  %v208_v56 = vld [vmem:[%s9913_s28 + $0xe8] sm:$0xff] }
  0xd9   : > { %15999 = vst [vmem:[#allocation34_spill] sm:$0xff] %v10921_v55  ;;  %3495 = vmatmul.mubr.f32.gmra.mrb[2].mxu1 %v10885_v3  ;;  %2185 = vmatprep.mubr.f32.mxu0 %v10898_v24  ;;  %v7919_v3 = vpack.c.bf16 %v1307_v17, %v1300_v62  ;;  %v10957_v33 = vmul.f32 %v10828_v27, %v208_v56  ;;  %v1329_v17 = vld [vmem:[%s15467_s2 + $0xfd8] sm:$0xff] }
  0xda   : > { %3500 = vmatprep.mubr.f32.mxu1 %v10898_v24  ;;  %7652 = vmatpush1.bf16.msra.mxu0 %v7651_v42  ;;  %v1314_v24 = vld [vmem:[%s15467_s2 + $0xf60] sm:$0xff]  ;;  %v7921_v42 = vpack.c.bf16 %v1322_v11, %v1315_v57  ;;  %v10971_v62 = vmul.f32 %v10820_v29, %v218_v8  ;;  %v7659_v56 = vpack.c.bf16 %v1319_v30, %v1312_v61 }
  0xdb   : > { %7916 = vmatpush1.bf16.msra.mxu1 %v7915_v37  ;;  %7654 = vmatprep.subr.bf16.mxu0 %v7653_v18  ;;  %16001 = vst [vmem:[#allocation36_spill] sm:$0xff] %v10957_v33  ;;  %v1327_v37 = vld [vmem:[%s15467_s2 + $0xfc8] sm:$0xff]  ;;  %v1334_v18 = vld [vmem:[%s15467_s2 + $0x1000] sm:$0xff]  ;;  %v7923_v57 = vpack.c.bf16 %v1321_v63, %v1314_v24  ;;  %v7925_v61 = vpack.c.bf16 %v1336_v9, %v1329_v17 }
  0xdc   : > { %2186 = vmatmul.mubr.f32.gmra.mrb[4].mxu0 %v10921_v55  ;;  %7918 = vmatprep.subr.bf16.mxu1 %v7917_v53  ;;  %16002 = vst [vmem:[#allocation37_spill] sm:$0xff] %v10971_v62  ;;  %v217_v53 = vld [vmem:[%s9913_s28 + $0x130] sm:$0xff]  ;;  %v7661_v11 = vpack.c.bf16 %v1334_v18, %v1327_v37  ;;  %v1326_v8 = vld [vmem:[%s15467_s2 + $0xfc0] sm:$0xff]  ;;  %v1335_v24 = vld [vmem:[%s15467_s2 + $0x1008] sm:$0xff]  ;;  %v11007_v63 = vmul.f32 %v10820_v29, %v227_v45 }
  0xdd   : > { %3501 = vmatmul.mubr.f32.gmra.mrb[4].mxu1 %v10921_v55  ;;  %2191 = vmatprep.mubr.f32.mxu0 %v10935_v36  ;;  %v1333_v55 = vld [vmem:[%s15467_s2 + $0xff8] sm:$0xff]  ;;  %v10993_v30 = vmul.f32 %v10828_v27, %v217_v53  ;;  %v1343_v37 = vld [vmem:[%s15467_s2 + $0x1048] sm:$0xff]  ;;  %v1350_v18 = vld [vmem:[%s15467_s2 + $0x1080] sm:$0xff] }
  0xde   : > { %3506 = vmatprep.mubr.f32.mxu1 %v10935_v36  ;;  %7656 = vmatpush1.bf16.msra.mxu0 %v7655_v47  ;;  %v1328_v47 = vld [vmem:[%s15467_s2 + $0xfd0] sm:$0xff]  ;;  %16004 = vst [vmem:[#allocation39_spill] sm:$0xff] %v11007_v63  ;;  %v236_v53 = vld [vmem:[%s9913_s28 + $0x1c8] sm:$0xff]  ;;  %v7663_v17 = vpack.c.bf16 %v1333_v55, %v1326_v8  ;;  %v1362_v8 = vld [vmem:[%s15467_s2 + $0x10e0] sm:$0xff] }
  0xdf   : > { %7920 = vmatpush1.bf16.msra.mxu1 %v7919_v3  ;;  %7658 = vmatprep.subr.bf16.mxu0 %v7657_v40  ;;  %16003 = vst [vmem:[#allocation38_spill] sm:$0xff] %v10993_v30  ;;  %v1341_v3 = vld [vmem:[%s15467_s2 + $0x1038] sm:$0xff]  ;;  %v1348_v40 = vld [vmem:[%s15467_s2 + $0x1070] sm:$0xff]  ;;  %v7927_v9 = vpack.c.bf16 %v1335_v24, %v1328_v47  ;;  %v1347_v36 = vld [vmem:[%s15467_s2 + $0x1068] sm:$0xff]  ;;  %v11043_v47 = vmul.f32 %v10820_v29, %v236_v53 }
  0xe0   : > { %2192 = vmatmul.mubr.f32.gmra.mrb[6].mxu0 %v10957_v33  ;;  %7922 = vmatprep.subr.bf16.mxu1 %v7921_v42  ;;  %v226_v42 = vld [vmem:[%s9913_s28 + $0x178] sm:$0xff]  ;;  %v7665_v45 = vpack.c.bf16 %v1348_v40, %v1341_v3  ;;  %v1364_v3 = vld [vmem:[%s15467_s2 + $0x10f0] sm:$0xff]  ;;  %v1354_v53 = vld [vmem:[%s15467_s2 + $0x10a0] sm:$0xff] }
  0xe1   : > { %3507 = vmatmul.mubr.f32.gmra.mrb[6].mxu1 %v10957_v33  ;;  %2197 = vmatprep.mubr.f32.mxu0 %v10971_v62  ;;  %v1340_v33 = vld [vmem:[%s15467_s2 + $0x1030] sm:$0xff]  ;;  %v11029_v55 = vmul.f32 %v10828_v27, %v226_v42  ;;  %16006 = vst [vmem:[#allocation41_spill] sm:$0xff] %v11043_v47  ;;  %v1357_v24 = vld [vmem:[%s15467_s2 + $0x10b8] sm:$0xff] }
  0xe2   : > { %3512 = vmatprep.mubr.f32.mxu1 %v10971_v62  ;;  %7660 = vmatpush1.bf16.msra.mxu0 %v7659_v56  ;;  %v1342_v62 = vld [vmem:[%s15467_s2 + $0x1040] sm:$0xff]  ;;  %v7929_v56 = vpack.c.bf16 %v1350_v18, %v1343_v37  ;;  %v245_v40 = vld [vmem:[%s9913_s28 + $0x210] sm:$0xff]  ;;  %v7667_v42 = vpack.c.bf16 %v1347_v36, %v1340_v33  ;;  %v7933_v33 = vpack.c.bf16 %v1364_v3, %v1357_v24 }
  0xe3   : > { %7924 = vmatpush1.bf16.msra.mxu1 %v7923_v57  ;;  %7662 = vmatprep.subr.bf16.mxu0 %v7661_v11  ;;  %16005 = vst [vmem:[#allocation40_spill] sm:$0xff] %v11029_v55  ;;  %v1349_v57 = vld [vmem:[%s15467_s2 + $0x1078] sm:$0xff]  ;;  %v1355_v11 = vld [vmem:[%s15467_s2 + $0x10a8] sm:$0xff] }
  0xe4   : > { %2198 = vmatmul.mubr.f32.gmra.mrb[8].mxu0 %v10993_v30  ;;  %7926 = vmatprep.subr.bf16.mxu1 %v7925_v61  ;;  %v235_v61 = vld [vmem:[%s9913_s28 + $0x1c0] sm:$0xff]  ;;  %v7931_v37 = vpack.c.bf16 %v1349_v57, %v1342_v62  ;;  %v7669_v18 = vpack.c.bf16 %v1362_v8, %v1355_v11  ;;  %v1363_v62 = vld [vmem:[%s15467_s2 + $0x10e8] sm:$0xff]  ;;  %v254_v8 = vld [vmem:[%s9913_s28 + $0x258] sm:$0xff] }
  0xe5   : > { %3513 = vmatmul.mubr.f32.gmra.mrb[8].mxu1 %v10993_v30  ;;  %2203 = vmatprep.mubr.f32.mxu0 %v11007_v63  ;;  %v1361_v30 = vld [vmem:[%s15467_s2 + $0x10d8] sm:$0xff]  ;;  %v11065_v36 = vmul.f32 %v10828_v27, %v235_v61  ;;  %v1371_v57 = vld [vmem:[%s15467_s2 + $0x1128] sm:$0xff]  ;;  %v1378_v11 = vld [vmem:[%s15467_s2 + $0x1160] sm:$0xff] }
  0xe6   : > { %3518 = vmatprep.mubr.f32.mxu1 %v11007_v63  ;;  %7664 = vmatpush1.bf16.msra.mxu0 %v7663_v17  ;;  %v1356_v63 = vld [vmem:[%s15467_s2 + $0x10b0] sm:$0xff]  ;;  %v1369_v17 = vld [vmem:[%s15467_s2 + $0x1118] sm:$0xff]  ;;  %v7671_v61 = vpack.c.bf16 %v1361_v30, %v1354_v53  ;;  %v11115_v53 = vmul.f32 %v10820_v29, %v254_v8  ;;  %v1382_v8 = vld [vmem:[%s15467_s2 + $0x1180] sm:$0xff] }
  0xe7   : > { %7928 = vmatpush1.bf16.msra.mxu1 %v7927_v9  ;;  %7666 = vmatprep.subr.bf16.mxu0 %v7665_v45  ;;  %16007 = vst [vmem:[#allocation42_spill] sm:$0xff] %v11065_v36  ;;  %v1376_v9 = vld [vmem:[%s15467_s2 + $0x1150] sm:$0xff]  ;;  %v11079_v45 = vmul.f32 %v10820_v29, %v245_v40  ;;  %v7935_v24 = vpack.c.bf16 %v1363_v62, %v1356_v63  ;;  %v1385_v62 = vld [vmem:[%s15467_s2 + $0x1198] sm:$0xff] }
  0xe8   : > { %2204 = vmatmul.mubr.f32.gmra.mrb[10].mxu0 %v11029_v55  ;;  %7930 = vmatprep.subr.bf16.mxu1 %v7929_v56  ;;  %v244_v56 = vld [vmem:[%s9913_s28 + $0x208] sm:$0xff]  ;;  %v7673_v3 = vpack.c.bf16 %v1376_v9, %v1369_v17  ;;  %v1368_v40 = vld [vmem:[%s15467_s2 + $0x1110] sm:$0xff]  ;;  %v7937_v63 = vpack.c.bf16 %v1378_v11, %v1371_v57  ;;  %16010 = vst [vmem:[#allocation45_spill] sm:$0xff] %v11115_v53  ;;  %v263_v9 = vld [vmem:[%s9913_s28 + $0x2a0] sm:$0xff] }
  0xe9   : > { %3519 = vmatmul.mubr.f32.gmra.mrb[10].mxu1 %v11029_v55  ;;  %2209 = vmatprep.mubr.f32.mxu0 %v11043_v47  ;;  %16008 = vst [vmem:[#allocation43_spill] sm:$0xff] %v11079_v45  ;;  %v1375_v55 = vld [vmem:[%s15467_s2 + $0x1148] sm:$0xff]  ;;  %v11101_v30 = vmul.f32 %v10828_v27, %v244_v56  ;;  %v1392_v17 = vld [vmem:[%s15467_s2 + $0x11d0] sm:$0xff] }
  0xea   : > { %3524 = vmatprep.mubr.f32.mxu1 %v11043_v47  ;;  %7668 = vmatpush1.bf16.msra.mxu0 %v7667_v42  ;;  %v1370_v47 = vld [vmem:[%s15467_s2 + $0x1120] sm:$0xff]  ;;  %v1377_v42 = vld [vmem:[%s15467_s2 + $0x1158] sm:$0xff]  ;;  %v7675_v56 = vpack.c.bf16 %v1375_v55, %v1368_v40  ;;  %v11151_v40 = vmul.f32 %v10820_v29, %v263_v9  ;;  %v1396_v9 = vld [vmem:[%s15467_s2 + $0x11f0] sm:$0xff] }
  0xeb   : > { %7932 = vmatpush1.bf16.msra.mxu1 %v7931_v37  ;;  %7670 = vmatprep.subr.bf16.mxu0 %v7669_v18  ;;  %16009 = vst [vmem:[#allocation44_spill] sm:$0xff] %v11101_v30  ;;  %v1383_v37 = vld [vmem:[%s15467_s2 + $0x1188] sm:$0xff]  ;;  %v1390_v18 = vld [vmem:[%s15467_s2 + $0x11c0] sm:$0xff]  ;;  %v7939_v57 = vpack.c.bf16 %v1377_v42, %v1370_v47  ;;  %v7941_v47 = vpack.c.bf16 %v1392_v17, %v1385_v62 }
  0xec   : > { %2210 = vmatmul.mubr.f32.gmra.mrb[12].mxu0 %v11065_v36  ;;  %7934 = vmatprep.subr.bf16.mxu1 %v7933_v33  ;;  %v253_v33 = vld [vmem:[%s9913_s28 + $0x250] sm:$0xff]  ;;  %v7677_v11 = vpack.c.bf16 %v1390_v18, %v1383_v37  ;;  %16012 = vst [vmem:[#allocation47_spill] sm:$0xff] %v11151_v40  ;;  %v1399_v42 = vld [vmem:[%s15467_s2 + $0x1208] sm:$0xff]  ;;  %v1406_v37 = vld [vmem:[%s15467_s2 + $0x1240] sm:$0xff] }
  0xed   : > { %3525 = vmatmul.mubr.f32.gmra.mrb[12].mxu1 %v11065_v36  ;;  %2215 = vmatprep.mubr.f32.mxu0 %v11079_v45  ;;  %v1389_v36 = vld [vmem:[%s15467_s2 + $0x11b8] sm:$0xff]  ;;  %v11137_v55 = vmul.f32 %v10828_v27, %v253_v33  ;;  %v272_v18 = vld [vmem:[%s9913_s28 + $0x2e8] sm:$0xff] }
  0xee   : > { %3530 = vmatprep.mubr.f32.mxu1 %v11079_v45  ;;  %7672 = vmatpush1.bf16.msra.mxu0 %v7671_v61  ;;  %v1384_v45 = vld [vmem:[%s15467_s2 + $0x1190] sm:$0xff]  ;;  %v1391_v61 = vld [vmem:[%s15467_s2 + $0x11c8] sm:$0xff]  ;;  %v7679_v33 = vpack.c.bf16 %v1389_v36, %v1382_v8  ;;  %v11187_v8 = vmul.f32 %v10820_v29, %v272_v18  ;;  %v1410_v18 = vld [vmem:[%s15467_s2 + $0x1260] sm:$0xff] }
  0xef   : > { %7936 = vmatpush1.bf16.msra.mxu1 %v7935_v24  ;;  %7674 = vmatprep.subr.bf16.mxu0 %v7673_v3  ;;  %16011 = vst [vmem:[#allocation46_spill] sm:$0xff] %v11137_v55  ;;  %v1397_v24 = vld [vmem:[%s15467_s2 + $0x11f8] sm:$0xff]  ;;  %v1404_v3 = vld [vmem:[%s15467_s2 + $0x1230] sm:$0xff]  ;;  %v7943_v62 = vpack.c.bf16 %v1391_v61, %v1384_v45  ;;  %v7945_v45 = vpack.c.bf16 %v1406_v37, %v1399_v42 }
  0xf0   : > { %2216 = vmatmul.mubr.f32.gmra.mrb[14].mxu0 %v11101_v30  ;;  %7938 = vmatprep.subr.bf16.mxu1 %v7937_v63  ;;  %v262_v63 = vld [vmem:[%s9913_s28 + $0x298] sm:$0xff]  ;;  %v7681_v17 = vpack.c.bf16 %v1404_v3, %v1397_v24  ;;  %16014 = vst [vmem:[#allocation49_spill] sm:$0xff] %v11187_v8  ;;  %v1420_v24 = vld [vmem:[%s15467_s2 + $0x12b0] sm:$0xff] }
  0xf1   : > { %3531 = vmatmul.mubr.f32.gmra.mrb[14].mxu1 %v11101_v30  ;;  %2221 = vmatprep.mubr.f32.mxu0 %v11115_v53  ;;  %v1403_v30 = vld [vmem:[%s15467_s2 + $0x1228] sm:$0xff]  ;;  %v11173_v36 = vmul.f32 %v10828_v27, %v262_v63  ;;  %v1413_v61 = vld [vmem:[%s15467_s2 + $0x1278] sm:$0xff]  ;;  %v281_v3 = vld [vmem:[%s9913_s28 + $0x330] sm:$0xff] }
  0xf2   : > { %3536 = vmatprep.mubr.f32.mxu1 %v11115_v53  ;;  %7676 = vmatpush1.bf16.msra.mxu0 %v7675_v56  ;;  %v1398_v53 = vld [vmem:[%s15467_s2 + $0x1200] sm:$0xff]  ;;  %v1405_v56 = vld [vmem:[%s15467_s2 + $0x1238] sm:$0xff]  ;;  %v7683_v63 = vpack.c.bf16 %v1403_v30, %v1396_v9  ;;  %v11223_v9 = vmul.f32 %v10820_v29, %v281_v3  ;;  %v1424_v3 = vld [vmem:[%s15467_s2 + $0x12d0] sm:$0xff] }
  0xf3   : > { %7940 = vmatpush1.bf16.msra.mxu1 %v7939_v57  ;;  %7678 = vmatprep.subr.bf16.mxu0 %v7677_v11  ;;  %16013 = vst [vmem:[#allocation48_spill] sm:$0xff] %v11173_v36  ;;  %v1411_v57 = vld [vmem:[%s15467_s2 + $0x1268] sm:$0xff]  ;;  %v1418_v11 = vld [vmem:[%s15467_s2 + $0x12a0] sm:$0xff]  ;;  %v7947_v42 = vpack.c.bf16 %v1405_v56, %v1398_v53  ;;  %v7949_v53 = vpack.c.bf16 %v1420_v24, %v1413_v61 }
  0xf4   : > { %2222 = vmatmul.mubr.f32.gmra.mrb[16].mxu0 %v11137_v55  ;;  %7942 = vmatprep.subr.bf16.mxu1 %v7941_v47  ;;  %v271_v47 = vld [vmem:[%s9913_s28 + $0x2e0] sm:$0xff]  ;;  %v7685_v37 = vpack.c.bf16 %v1418_v11, %v1411_v57  ;;  %16016 = vst [vmem:[#allocation51_spill] sm:$0xff] %v11223_v9  ;;  %v1427_v56 = vld [vmem:[%s15467_s2 + $0x12e8] sm:$0xff]  ;;  %v290_v11 = vld [vmem:[%s9913_s28 + $0x378] sm:$0xff] }
  0xf5   : > { %3537 = vmatmul.mubr.f32.gmra.mrb[16].mxu1 %v11137_v55  ;;  %2227 = vmatprep.mubr.f32.mxu0 %v11151_v40  ;;  %v1417_v55 = vld [vmem:[%s15467_s2 + $0x1298] sm:$0xff]  ;;  %v11209_v30 = vmul.f32 %v10828_v27, %v271_v47  ;;  %v1434_v57 = vld [vmem:[%s15467_s2 + $0x1320] sm:$0xff] }
  0xf6   : > { %3542 = vmatprep.mubr.f32.mxu1 %v11151_v40  ;;  %7680 = vmatpush1.bf16.msra.mxu0 %v7679_v33  ;;  %v1412_v40 = vld [vmem:[%s15467_s2 + $0x1270] sm:$0xff]  ;;  %v1419_v33 = vld [vmem:[%s15467_s2 + $0x12a8] sm:$0xff]  ;;  %v7687_v47 = vpack.c.bf16 %v1417_v55, %v1410_v18  ;;  %v11259_v18 = vmul.f32 %v10820_v29, %v290_v11  ;;  %v1438_v11 = vld [vmem:[%s15467_s2 + $0x1340] sm:$0xff] }
  0xf7   : > { %7944 = vmatpush1.bf16.msra.mxu1 %v7943_v62  ;;  %7682 = vmatprep.subr.bf16.mxu0 %v7681_v17  ;;  %16015 = vst [vmem:[#allocation50_spill] sm:$0xff] %v11209_v30  ;;  %v1425_v62 = vld [vmem:[%s15467_s2 + $0x12d8] sm:$0xff]  ;;  %v1432_v17 = vld [vmem:[%s15467_s2 + $0x1310] sm:$0xff]  ;;  %v7951_v61 = vpack.c.bf16 %v1419_v33, %v1412_v40  ;;  %v7953_v40 = vpack.c.bf16 %v1434_v57, %v1427_v56 }
  0xf8   : > { %2228 = vmatmul.mubr.f32.gmra.mrb[18].mxu0 %v11173_v36  ;;  %7946 = vmatprep.subr.bf16.mxu1 %v7945_v45  ;;  %v280_v45 = vld [vmem:[%s9913_s28 + $0x328] sm:$0xff]  ;;  %v7689_v24 = vpack.c.bf16 %v1432_v17, %v1425_v62  ;;  %16018 = vst [vmem:[#allocation53_spill] sm:$0xff] %v11259_v18  ;;  %v1441_v33 = vld [vmem:[%s15467_s2 + $0x1358] sm:$0xff]  ;;  %v1448_v62 = vld [vmem:[%s15467_s2 + $0x1390] sm:$0xff] }
  0xf9   : > { %3543 = vmatmul.mubr.f32.gmra.mrb[18].mxu1 %v11173_v36  ;;  %2233 = vmatprep.mubr.f32.mxu0 %v11187_v8  ;;  %v1431_v36 = vld [vmem:[%s15467_s2 + $0x1308] sm:$0xff]  ;;  %v11245_v55 = vmul.f32 %v10828_v27, %v280_v45  ;;  %v299_v17 = vld [vmem:[%s9913_s28 + $0x3c0] sm:$0xff] }
  0xfa   : > { %3548 = vmatprep.mubr.f32.mxu1 %v11187_v8  ;;  %7684 = vmatpush1.bf16.msra.mxu0 %v7683_v63  ;;  %v1426_v8 = vld [vmem:[%s15467_s2 + $0x12e0] sm:$0xff]  ;;  %v1433_v63 = vld [vmem:[%s15467_s2 + $0x1318] sm:$0xff]  ;;  %v7691_v45 = vpack.c.bf16 %v1431_v36, %v1424_v3  ;;  %v11295_v3 = vmul.f32 %v10820_v29, %v299_v17  ;;  %v1452_v17 = vld [vmem:[%s15467_s2 + $0x13b0] sm:$0xff] }
  0xfb   : > { %7948 = vmatpush1.bf16.msra.mxu1 %v7947_v42  ;;  %7686 = vmatprep.subr.bf16.mxu0 %v7685_v37  ;;  %16017 = vst [vmem:[#allocation52_spill] sm:$0xff] %v11245_v55  ;;  %v1439_v42 = vld [vmem:[%s15467_s2 + $0x1348] sm:$0xff]  ;;  %v1446_v37 = vld [vmem:[%s15467_s2 + $0x1380] sm:$0xff]  ;;  %v7955_v56 = vpack.c.bf16 %v1433_v63, %v1426_v8  ;;  %v7957_v8 = vpack.c.bf16 %v1448_v62, %v1441_v33 }
  0xfc   : > { %2234 = vmatmul.mubr.f32.gmra.mrb[20].mxu0 %v11209_v30  ;;  %7950 = vmatprep.subr.bf16.mxu1 %v7949_v53  ;;  %v289_v53 = vld [vmem:[%s9913_s28 + $0x370] sm:$0xff]  ;;  %v7693_v57 = vpack.c.bf16 %v1446_v37, %v1439_v42  ;;  %16020 = vst [vmem:[#allocation55_spill] sm:$0xff] %v11295_v3  ;;  %v1455_v63 = vld [vmem:[%s15467_s2 + $0x13c8] sm:$0xff]  ;;  %v1462_v42 = vld [vmem:[%s15467_s2 + $0x1400] sm:$0xff] }
  0xfd   : > { %3549 = vmatmul.mubr.f32.gmra.mrb[20].mxu1 %v11209_v30  ;;  %2239 = vmatprep.mubr.f32.mxu0 %v11223_v9  ;;  %v1445_v30 = vld [vmem:[%s15467_s2 + $0x1378] sm:$0xff]  ;;  %v11281_v36 = vmul.f32 %v10828_v27, %v289_v53  ;;  %v308_v37 = vld [vmem:[%s9913_s28 + $0x408] sm:$0xff] }
  0xfe   : > { %3554 = vmatprep.mubr.f32.mxu1 %v11223_v9  ;;  %7688 = vmatpush1.bf16.msra.mxu0 %v7687_v47  ;;  %v1440_v9 = vld [vmem:[%s15467_s2 + $0x1350] sm:$0xff]  ;;  %v1447_v47 = vld [vmem:[%s15467_s2 + $0x1388] sm:$0xff]  ;;  %v7695_v53 = vpack.c.bf16 %v1445_v30, %v1438_v11  ;;  %v11331_v11 = vmul.f32 %v10820_v29, %v308_v37  ;;  %v1466_v37 = vld [vmem:[%s15467_s2 + $0x1420] sm:$0xff] }
  0xff   : > { %7952 = vmatpush1.bf16.msra.mxu1 %v7951_v61  ;;  %7690 = vmatprep.subr.bf16.mxu0 %v7689_v24  ;;  %16019 = vst [vmem:[#allocation54_spill] sm:$0xff] %v11281_v36  ;;  %v1453_v61 = vld [vmem:[%s15467_s2 + $0x13b8] sm:$0xff]  ;;  %v1460_v24 = vld [vmem:[%s15467_s2 + $0x13f0] sm:$0xff]  ;;  %v7959_v33 = vpack.c.bf16 %v1447_v47, %v1440_v9  ;;  %v7961_v9 = vpack.c.bf16 %v1462_v42, %v1455_v63 }
 0x100   : > { %2240 = vmatmul.mubr.f32.gmra.mrb[22].mxu0 %v11245_v55  ;;  %7954 = vmatprep.subr.bf16.mxu1 %v7953_v40  ;;  %v298_v40 = vld [vmem:[%s9913_s28 + $0x3b8] sm:$0xff]  ;;  %v7697_v62 = vpack.c.bf16 %v1460_v24, %v1453_v61  ;;  %16022 = vst [vmem:[#allocation57_spill] sm:$0xff] %v11331_v11  ;;  %v1476_v61 = vld [vmem:[%s15467_s2 + $0x1470] sm:$0xff] }
 0x101   : > { %3555 = vmatmul.mubr.f32.gmra.mrb[22].mxu1 %v11245_v55  ;;  %2245 = vmatprep.mubr.f32.mxu0 %v11259_v18  ;;  %v1459_v55 = vld [vmem:[%s15467_s2 + $0x13e8] sm:$0xff]  ;;  %v11317_v30 = vmul.f32 %v10828_v27, %v298_v40  ;;  %v1469_v47 = vld [vmem:[%s15467_s2 + $0x1438] sm:$0xff]  ;;  %v317_v24 = vld [vmem:[%s9913_s28 + $0x450] sm:$0xff] }
 0x102   : > { %3560 = vmatprep.mubr.f32.mxu1 %v11259_v18  ;;  %7692 = vmatpush1.bf16.msra.mxu0 %v7691_v45  ;;  %v1454_v18 = vld [vmem:[%s15467_s2 + $0x13c0] sm:$0xff]  ;;  %v1461_v45 = vld [vmem:[%s15467_s2 + $0x13f8] sm:$0xff]  ;;  %v7699_v40 = vpack.c.bf16 %v1459_v55, %v1452_v17  ;;  %v11367_v17 = vmul.f32 %v10820_v29, %v317_v24  ;;  %v1480_v24 = vld [vmem:[%s15467_s2 + $0x1490] sm:$0xff] }
 0x103   : > { %7956 = vmatpush1.bf16.msra.mxu1 %v7955_v56  ;;  %7694 = vmatprep.subr.bf16.mxu0 %v7693_v57  ;;  %16021 = vst [vmem:[#allocation56_spill] sm:$0xff] %v11317_v30  ;;  %v1467_v56 = vld [vmem:[%s15467_s2 + $0x1428] sm:$0xff]  ;;  %v1474_v57 = vld [vmem:[%s15467_s2 + $0x1460] sm:$0xff]  ;;  %v7963_v63 = vpack.c.bf16 %v1461_v45, %v1454_v18  ;;  %v7965_v18 = vpack.c.bf16 %v1476_v61, %v1469_v47 }
 0x104   : > { %2246 = vmatmul.mubr.f32.gmra.mrb[24].mxu0 %v11281_v36  ;;  %7958 = vmatprep.subr.bf16.mxu1 %v7957_v8  ;;  %v307_v8 = vld [vmem:[%s9913_s28 + $0x400] sm:$0xff]  ;;  %v7701_v42 = vpack.c.bf16 %v1474_v57, %v1467_v56  ;;  %16024 = vst [vmem:[#allocation59_spill] sm:$0xff] %v11367_v17  ;;  %v1483_v45 = vld [vmem:[%s15467_s2 + $0x14a8] sm:$0xff]  ;;  %v326_v57 = vld [vmem:[%s9913_s28 + $0x498] sm:$0xff] }
 0x105   : > { %3561 = vmatmul.mubr.f32.gmra.mrb[24].mxu1 %v11281_v36  ;;  %2251 = vmatprep.mubr.f32.mxu0 %v11295_v3  ;;  %v1473_v36 = vld [vmem:[%s15467_s2 + $0x1458] sm:$0xff]  ;;  %v11353_v55 = vmul.f32 %v10828_v27, %v307_v8  ;;  %v1490_v56 = vld [vmem:[%s15467_s2 + $0x14e0] sm:$0xff] }
 0x106   : > { %3566 = vmatprep.mubr.f32.mxu1 %v11295_v3  ;;  %7696 = vmatpush1.bf16.msra.mxu0 %v7695_v53  ;;  %v1468_v3 = vld [vmem:[%s15467_s2 + $0x1430] sm:$0xff]  ;;  %v1475_v53 = vld [vmem:[%s15467_s2 + $0x1468] sm:$0xff]  ;;  %v7703_v8 = vpack.c.bf16 %v1473_v36, %v1466_v37  ;;  %v11403_v37 = vmul.f32 %v10820_v29, %v326_v57 }
 0x107   : > { %7960 = vmatpush1.bf16.msra.mxu1 %v7959_v33  ;;  %7698 = vmatprep.subr.bf16.mxu0 %v7697_v62  ;;  %16023 = vst [vmem:[#allocation58_spill] sm:$0xff] %v11353_v55  ;;  %v1481_v33 = vld [vmem:[%s15467_s2 + $0x1498] sm:$0xff]  ;;  %v1488_v62 = vld [vmem:[%s15467_s2 + $0x14d0] sm:$0xff]  ;;  %v7967_v47 = vpack.c.bf16 %v1475_v53, %v1468_v3  ;;  %v7969_v3 = vpack.c.bf16 %v1490_v56, %v1483_v45 }
 0x108   : > { %2252 = vmatmul.mubr.f32.gmra.mrb[26].mxu0 %v11317_v30  ;;  %7962 = vmatprep.subr.bf16.mxu1 %v7961_v9  ;;  %v316_v9 = vld [vmem:[%s9913_s28 + $0x448] sm:$0xff]  ;;  %v7705_v61 = vpack.c.bf16 %v1488_v62, %v1481_v33  ;;  %16026 = vst [vmem:[#allocation61_spill] sm:$0xff] %v11403_v37  ;;  %v1497_v53 = vld [vmem:[%s15467_s2 + $0x1518] sm:$0xff]  ;;  %v1504_v33 = vld [vmem:[%s15467_s2 + $0x1550] sm:$0xff] }
 0x109   : > { %3567 = vmatmul.mubr.f32.gmra.mrb[26].mxu1 %v11317_v30  ;;  %2257 = vmatprep.mubr.f32.mxu0 %v11331_v11  ;;  %v1487_v30 = vld [vmem:[%s15467_s2 + $0x14c8] sm:$0xff]  ;;  %v11389_v36 = vmul.f32 %v10828_v27, %v316_v9  ;;  %v335_v62 = vld [vmem:[%s9913_s28 + $0x4e0] sm:$0xff] }
 0x10a   : > { %3572 = vmatprep.mubr.f32.mxu1 %v11331_v11  ;;  %7700 = vmatpush1.bf16.msra.mxu0 %v7699_v40  ;;  %v1482_v11 = vld [vmem:[%s15467_s2 + $0x14a0] sm:$0xff]  ;;  %v1489_v40 = vld [vmem:[%s15467_s2 + $0x14d8] sm:$0xff]  ;;  %v7707_v9 = vpack.c.bf16 %v1487_v30, %v1480_v24 }
 0x10b   : > { %7964 = vmatpush1.bf16.msra.mxu1 %v7963_v63  ;;  %7702 = vmatprep.subr.bf16.mxu0 %v7701_v42  ;;  %16025 = vst [vmem:[#allocation60_spill] sm:$0xff] %v11389_v36  ;;  %v1495_v63 = vld [vmem:[%s15467_s2 + $0x1508] sm:$0xff]  ;;  %v1502_v42 = vld [vmem:[%s15467_s2 + $0x1540] sm:$0xff]  ;;  %v7971_v45 = vpack.c.bf16 %v1489_v40, %v1482_v11  ;;  %v334_v30 = vld [vmem:[%s9913_s28 + $0x4d8] sm:$0xff] }
 0x10c   : > { %2258 = vmatmul.mubr.f32.gmra.mrb[28].mxu0 %v11353_v55  ;;  %7966 = vmatprep.subr.bf16.mxu1 %v7965_v18  ;;  %v325_v18 = vld [vmem:[%s9913_s28 + $0x490] sm:$0xff]  ;;  %v7709_v56 = vpack.c.bf16 %v1502_v42, %v1495_v63  ;;  %v344_v11 = vld [vmem:[%s9913_s28 + $0x528] sm:$0xff]  ;;  %v343_v24 = vld [vmem:[%s9913_s28 + $0x520] sm:$0xff] }
 0x10d   : > { %3573 = vmatmul.mubr.f32.gmra.mrb[28].mxu1 %v11353_v55  ;;  %2263 = vmatprep.mubr.f32.mxu0 %v11367_v17  ;;  %v11416_v57 = vmul.f32 %v10828_v27, %v325_v18  ;;  %v7973_v55 = vpack.c.bf16 %v1504_v33, %v1497_v53  ;;  %v11440_v40 = vmul.f32 %v10828_v27, %v343_v24  ;;  %v352_v63 = vld [vmem:[%s9913_s28 + $0x568] sm:$0xff]  ;;  %v362_v42 = vld [vmem:[%s9913_s28 + $0x5b8] sm:$0xff]  ;;  %v361_v33 = vld [vmem:[%s9913_s28 + $0x5b0] sm:$0xff] }
 0x10e   : > { %3578 = vmatprep.mubr.f32.mxu1 %v11367_v17  ;;  %7704 = vmatpush1.bf16.msra.mxu0 %v7703_v8  ;;  %v11421_v8 = vmul.f32 %v10820_v29, %v335_v62  ;;  %v11452_v18 = vmul.f32 %v10828_v27, %v352_v63  ;;  %v11457_v53 = vmul.f32 %v10820_v29, %v362_v42  ;;  %v371_v62 = vld [vmem:[%s9913_s28 + $0x600] sm:$0xff]  ;;  %v389_v63 = vld [vmem:[%s9913_s28 + $0x690] sm:$0xff]  ;;  %v1543_v17 = vld [vmem:[%s15467_s2 + $0x1688] sm:$0xff] }
 0x10f   : > { %7968 = vmatpush1.bf16.msra.mxu1 %v7967_v47  ;;  %7706 = vmatprep.subr.bf16.mxu0 %v7705_v61  ;;  %16027 = vst [vmem:[#allocation62_spill] sm:$0xff] %v11416_v57  ;;  %v11428_v47 = vmul.f32 %v10828_v27, %v334_v30  ;;  %v11433_v61 = vmul.f32 %v10820_v29, %v344_v11  ;;  %16031 = vst [vmem:[#allocation66_spill] sm:$0xff] %v11440_v40  ;;  %v380_v30 = vld [vmem:[%s9913_s28 + $0x648] sm:$0xff] }
 0x110   : > { %2264 = vmatmul.mubr.f32.gmra.mrb[30].mxu0 %v11389_v36  ;;  %7970 = vmatprep.subr.bf16.mxu1 %v7969_v3  ;;  %16028 = vst [vmem:[#allocation63_spill] sm:$0xff] %v11421_v8  ;;  %v353_v3 = vld [vmem:[%s9913_s28 + $0x570] sm:$0xff]  ;;  %16033 = vst [vmem:[#allocation68_spill] sm:$0xff] %v11452_v18  ;;  %v11481_v24 = vmul.f32 %v10820_v29, %v380_v30 }
 0x111   : > { %3579 = vmatmul.mubr.f32.gmra.mrb[30].mxu1 %v11389_v36  ;;  %2269 = vmatprep.mubr.f32.mxu0 %v11403_v37  ;;  %16029 = vst [vmem:[#allocation64_spill] sm:$0xff] %v11428_v47  ;;  %16030 = vst [vmem:[#allocation65_spill] sm:$0xff] %v11433_v61  ;;  %v1529_v36 = vld [vmem:[%s15467_s2 + $0x1618] sm:$0xff] }
 0x112   : > { %3584 = vmatprep.mubr.f32.mxu1 %v11403_v37  ;;  %7708 = vmatpush1.bf16.msra.mxu0 %v7707_v9  ;;  %16034 = vst [vmem:[#allocation69_spill] sm:$0xff] %v11457_v53  ;;  %v11464_v9 = vmul.f32 %v10828_v27, %v361_v33  ;;  %16038 = vst [vmem:[#allocation73_spill] sm:$0xff] %v11481_v24  ;;  %v11493_v33 = vmul.f32 %v10820_v29, %v389_v63  ;;  %v397_v63 = vld [vmem:[%s9913_s28 + $0x6d0] sm:$0xff]  ;;  %v211_v37 = vld [vmem:[%s9913_s28 + $0x100] sm:$0xff] }
 0x113   : > { %7972 = vmatpush1.bf16.msra.mxu1 %v7971_v45  ;;  %7710 = vmatprep.subr.bf16.mxu0 %v7709_v56  ;;  %v11469_v45 = vmul.f32 %v10820_v29, %v371_v62  ;;  %v370_v56 = vld [vmem:[%s9913_s28 + $0x5f8] sm:$0xff]  ;;  %v388_v62 = vld [vmem:[%s9913_s28 + $0x688] sm:$0xff] }
 0x114   : > { %2270 = vmatmul.mubr.f32.gmra.mrb[32].mxu0 %v11416_v57  ;;  %7974 = vmatprep.subr.bf16.mxu1 %v7973_v55  ;;  %v11445_v55 = vmul.f32 %v10820_v29, %v353_v3  ;;  %16035 = vst [vmem:[#allocation70_spill] sm:$0xff] %v11464_v9  ;;  %v11476_v11 = vmul.f32 %v10828_v27, %v370_v56  ;;  %v379_v3 = vld [vmem:[%s9913_s28 + $0x640] sm:$0xff]  ;;  %16040 = vst [vmem:[#allocation75_spill] sm:$0xff] %v11493_v33  ;;  %v398_v56 = vld [vmem:[%s9913_s28 + $0x6d8] sm:$0xff] }
 0x115   : > { %3585 = vmatmul.mubr.f32.gmra.mrb[32].mxu1 %v11416_v57  ;;  %2275 = vmatprep.mubr.f32.mxu0 %v11421_v8  ;;  %16036 = vst [vmem:[#allocation71_spill] sm:$0xff] %v11469_v45  ;;  %v11488_v42 = vmul.f32 %v10828_v27, %v379_v3  ;;  %v11500_v30 = vmul.f32 %v10828_v27, %v388_v62 }
 0x116   : > { %3590 = vmatprep.mubr.f32.mxu1 %v11421_v8  ;;  %16032 = vst [vmem:[#allocation67_spill] sm:$0xff] %v11445_v55  ;;  %16037 = vst [vmem:[#allocation72_spill] sm:$0xff] %v11476_v11  ;;  %v11505_v3 = vmul.f32 %v10820_v29, %v398_v56  ;;  %v406_v56 = vld [vmem:[%s9913_s28 + $0x718] sm:$0xff]  ;;  %v1510_v8 = vld [vmem:[%s15467_s2 + $0x1580] sm:$0xff] }
 0x117   : > { %16039 = vst [vmem:[#allocation74_spill] sm:$0xff] %v11488_v42  ;;  %16041 = vst [vmem:[#allocation76_spill] sm:$0xff] %v11500_v30 }
 0x118   : > { %2276 = vmatmul.mubr.f32.gmra.mrb[34].mxu0 %v11428_v47  ;;  %16042 = vst [vmem:[#allocation77_spill] sm:$0xff] %v11505_v3 }
 0x119   : > { %3591 = vmatmul.mubr.f32.gmra.mrb[34].mxu1 %v11428_v47  ;;  %2281 = vmatprep.mubr.f32.mxu0 %v11433_v61 }
 0x11a   : > { %3596 = vmatprep.mubr.f32.mxu1 %v11433_v61 }
 0x11c   : > { %2282 = vmatmul.mubr.f32.gmra.mrb[36].mxu0 %v11440_v40 }
 0x11d   : > { %3597 = vmatmul.mubr.f32.gmra.mrb[36].mxu1 %v11440_v40  ;;  %2287 = vmatprep.mubr.f32.mxu0 %v11445_v55 }
 0x11e   : > { %3602 = vmatprep.mubr.f32.mxu1 %v11445_v55  ;;  %v1511_v55 = vld [vmem:[%s15467_s2 + $0x1588] sm:$0xff] }
 0x120   : > { %2288 = vmatmul.mubr.f32.gmra.mrb[38].mxu0 %v11452_v18 }
 0x121   : > { %3603 = vmatmul.mubr.f32.gmra.mrb[38].mxu1 %v11452_v18  ;;  %2293 = vmatprep.mubr.f32.mxu0 %v11457_v53  ;;  %v192_v18 = vld [vmem:[%s9913_s28 + $0x68] sm:$0xff] }
 0x122   : > { %3608 = vmatprep.mubr.f32.mxu1 %v11457_v53 }
 0x124   : > { %2294 = vmatmul.mubr.f32.gmra.mrb[40].mxu0 %v11464_v9 }
 0x125   : > { %3609 = vmatmul.mubr.f32.gmra.mrb[40].mxu1 %v11464_v9  ;;  %2299 = vmatprep.mubr.f32.mxu0 %v11469_v45 }
 0x126   : > { %3614 = vmatprep.mubr.f32.mxu1 %v11469_v45 }
 0x128   : > { %2300 = vmatmul.mubr.f32.gmra.mrb[42].mxu0 %v11476_v11 }
 0x129   : > { %3615 = vmatmul.mubr.f32.gmra.mrb[42].mxu1 %v11476_v11  ;;  %2305 = vmatprep.mubr.f32.mxu0 %v11481_v24  ;;  %v407_v11 = vld [vmem:[%s9913_s28 + $0x720] sm:$0xff] }
 0x12a   : > { %3620 = vmatprep.mubr.f32.mxu1 %v11481_v24  ;;  %v11512_v24 = vmul.f32 %v10828_v27, %v397_v63  ;;  %v11517_v62 = vmul.f32 %v10820_v29, %v407_v11  ;;  %v415_v11 = vld [vmem:[%s9913_s28 + $0x760] sm:$0xff] }
 0x12c   : > { %2306 = vmatmul.mubr.f32.gmra.mrb[44].mxu0 %v11488_v42  ;;  %16043 = vst [vmem:[#allocation78_spill] sm:$0xff] %v11512_v24  ;;  %16044 = vst [vmem:[#allocation79_spill] sm:$0xff] %v11517_v62 }
 0x12d   : > { %3621 = vmatmul.mubr.f32.gmra.mrb[44].mxu1 %v11488_v42  ;;  %2311 = vmatprep.mubr.f32.mxu0 %v11493_v33  ;;  %v416_v42 = vld [vmem:[%s9913_s28 + $0x768] sm:$0xff] }
 0x12e   : > { %3626 = vmatprep.mubr.f32.mxu1 %v11493_v33  ;;  %v11524_v33 = vmul.f32 %v10828_v27, %v406_v56  ;;  %v11529_v63 = vmul.f32 %v10820_v29, %v416_v42  ;;  %v424_v42 = vld [vmem:[%s9913_s28 + $0x7a8] sm:$0xff] }
 0x130   : > { %2312 = vmatmul.mubr.f32.gmra.mrb[46].mxu0 %v11500_v30  ;;  %16045 = vst [vmem:[#allocation80_spill] sm:$0xff] %v11524_v33  ;;  %16046 = vst [vmem:[#allocation81_spill] sm:$0xff] %v11529_v63 }
 0x131   : > { %3627 = vmatmul.mubr.f32.gmra.mrb[46].mxu1 %v11500_v30  ;;  %2317 = vmatprep.mubr.f32.mxu0 %v11505_v3  ;;  %v425_v30 = vld [vmem:[%s9913_s28 + $0x7b0] sm:$0xff] }
 0x132   : > { %3632 = vmatprep.mubr.f32.mxu1 %v11505_v3  ;;  %v11536_v3 = vmul.f32 %v10828_v27, %v415_v11  ;;  %v11541_v56 = vmul.f32 %v10820_v29, %v425_v30  ;;  %v433_v30 = vld [vmem:[%s9913_s28 + $0x7f0] sm:$0xff] }
 0x134   : > { %2318 = vmatmul.mubr.f32.gmra.mrb[48].mxu0 %v11512_v24  ;;  %16047 = vst [vmem:[#allocation82_spill] sm:$0xff] %v11536_v3  ;;  %16048 = vst [vmem:[#allocation83_spill] sm:$0xff] %v11541_v56 }
 0x135   : > { %3633 = vmatmul.mubr.f32.gmra.mrb[48].mxu1 %v11512_v24  ;;  %2323 = vmatprep.mubr.f32.mxu0 %v11517_v62  ;;  %v434_v24 = vld [vmem:[%s9913_s28 + $0x7f8] sm:$0xff] }
 0x136   : > { %3638 = vmatprep.mubr.f32.mxu1 %v11517_v62  ;;  %v11548_v62 = vmul.f32 %v10828_v27, %v424_v42  ;;  %v11553_v11 = vmul.f32 %v10820_v29, %v434_v24  ;;  %v442_v24 = vld [vmem:[%s9913_s28 + $0x838] sm:$0xff] }
 0x138   : > { %2324 = vmatmul.mubr.f32.gmra.mrb[50].mxu0 %v11524_v33  ;;  %16049 = vst [vmem:[#allocation84_spill] sm:$0xff] %v11548_v62  ;;  %16050 = vst [vmem:[#allocation85_spill] sm:$0xff] %v11553_v11 }
 0x139   : > { %3639 = vmatmul.mubr.f32.gmra.mrb[50].mxu1 %v11524_v33  ;;  %2329 = vmatprep.mubr.f32.mxu0 %v11529_v63  ;;  %v443_v33 = vld [vmem:[%s9913_s28 + $0x840] sm:$0xff] }
 0x13a   : > { %3644 = vmatprep.mubr.f32.mxu1 %v11529_v63  ;;  %v11560_v63 = vmul.f32 %v10828_v27, %v433_v30  ;;  %v11565_v42 = vmul.f32 %v10820_v29, %v443_v33  ;;  %v451_v33 = vld [vmem:[%s9913_s28 + $0x880] sm:$0xff] }
 0x13c   : > { %2330 = vmatmul.mubr.f32.gmra.mrb[52].mxu0 %v11536_v3  ;;  %16051 = vst [vmem:[#allocation86_spill] sm:$0xff] %v11560_v63  ;;  %16052 = vst [vmem:[#allocation87_spill] sm:$0xff] %v11565_v42 }
 0x13d   : > { %3645 = vmatmul.mubr.f32.gmra.mrb[52].mxu1 %v11536_v3  ;;  %2335 = vmatprep.mubr.f32.mxu0 %v11541_v56  ;;  %v452_v3 = vld [vmem:[%s9913_s28 + $0x888] sm:$0xff] }
 0x13e   : > { %3650 = vmatprep.mubr.f32.mxu1 %v11541_v56  ;;  %v11572_v56 = vmul.f32 %v10828_v27, %v442_v24  ;;  %v11577_v30 = vmul.f32 %v10820_v29, %v452_v3  ;;  %v460_v3 = vld [vmem:[%s9913_s28 + $0x8c8] sm:$0xff] }
 0x13f   : > { %v11597_v45 = vmul.f32 %v10828_v27, %v460_v3  ;;  %v184_v3 = vld [vmem:[%s9913_s28 + $0x28] sm:$0xff] }
 0x140   : > { %2336 = vmatmul.mubr.f32.gmra.mrb[54].mxu0 %v11548_v62  ;;  %16053 = vst [vmem:[#allocation88_spill] sm:$0xff] %v11572_v56  ;;  %16054 = vst [vmem:[#allocation89_spill] sm:$0xff] %v11577_v30 }
 0x141   : > { %3651 = vmatmul.mubr.f32.gmra.mrb[54].mxu1 %v11548_v62  ;;  %2341 = vmatprep.mubr.f32.mxu0 %v11553_v11  ;;  %v461_v62 = vld [vmem:[%s9913_s28 + $0x8d0] sm:$0xff]  ;;  %16057 = vst [vmem:[#allocation92_spill] sm:$0xff] %v11597_v45 }
 0x142   : > { %3656 = vmatprep.mubr.f32.mxu1 %v11553_v11  ;;  %v11584_v11 = vmul.f32 %v10828_v27, %v451_v33  ;;  %v11589_v24 = vmul.f32 %v10820_v29, %v461_v62  ;;  %v498_v33 = vsub.s32 4, %v9881_v60 }
 0x144   : > { %2342 = vmatmul.mubr.f32.gmra.mrb[56].mxu0 %v11560_v63  ;;  %16055 = vst [vmem:[#allocation90_spill] sm:$0xff] %v11584_v11  ;;  %16056 = vst [vmem:[#allocation91_spill] sm:$0xff] %v11589_v24 }
 0x145   : > { %3657 = vmatmul.mubr.f32.gmra.mrb[56].mxu1 %v11560_v63  ;;  %2347 = vmatprep.mubr.f32.mxu0 %v11565_v42  ;;  %v502_v63 = vsub.s32 5, %v9881_v60 }
 0x146   : > { %3662 = vmatprep.mubr.f32.mxu1 %v11565_v42  ;;  %v470_v42 = vld [vmem:[%s9913_s28 + $0x918] sm:$0xff] }
 0x147   : > { %v11603_v62 = vmul.f32 %v10820_v29, %v470_v42  ;;  %v1494_v42 = vld [vmem:[%s15467_s2 + $0x1500] sm:$0xff] }
 0x148   : > { %2348 = vmatmul.mubr.f32.gmra.mrb[58].mxu0 %v11572_v56 }
 0x149   : > { %3663 = vmatmul.mubr.f32.gmra.mrb[58].mxu1 %v11572_v56  ;;  %2353 = vmatprep.mubr.f32.mxu0 %v11577_v30  ;;  %16058 = vst [vmem:[#allocation93_spill] sm:$0xff] %v11603_v62  ;;  %v469_v56 = vld [vmem:[%s9913_s28 + $0x910] sm:$0xff] }
 0x14a   : > { %3668 = vmatprep.mubr.f32.mxu1 %v11577_v30  ;;  %v9577_v30 = vld [vmem:[%s15465_s0] sm:$0xff] }
 0x14b   : > { %v11609_v9 = vrot.slane %v9577_v30, %v502_v63  ;;  %v11617_v53 = vrot.slane %v9577_v30, %v498_v33  ;;  %v183_v63 = vld [vmem:[%s9913_s28 + $0x20] sm:$0xff]  ;;  %v1503_v30 = vld [vmem:[%s15467_s2 + $0x1548] sm:$0xff]  ;;  %v193_v33 = vld [vmem:[%s9913_s28 + $0x70] sm:$0xff] }
 0x14c   : > { %2354 = vmatmul.mubr.f32.gmra.mrb[60].mxu0 %v11584_v11 }
 0x14d   : > { %3669 = vmatmul.mubr.f32.gmra.mrb[60].mxu1 %v11584_v11  ;;  %2359 = vmatprep.mubr.f32.mxu0 %v11589_v24  ;;  %v11615_v11 = vmul.f32 %v10828_v27, %v469_v56  ;;  %v11622_v29 = vmul.f32 %v11609_v9, %v184_v3  ;;  %v1501_v27 = vld [vmem:[%s15467_s2 + $0x1538] sm:$0xff]  ;;  %v1496_v56 = vld [vmem:[%s15467_s2 + $0x1510] sm:$0xff]  ;;  %v11641_v3 = vmul.f32 %v11617_v53, %v183_v63  ;;  %v1518_v63 = vld [vmem:[%s15467_s2 + $0x15c0] sm:$0xff] }
 0x14e   : > { %3674 = vmatprep.mubr.f32.mxu1 %v11589_v24  ;;  %v7711_v24 = vpack.c.bf16 %v1501_v27, %v1494_v42  ;;  %v7975_v40 = vpack.c.bf16 %v1503_v30, %v1496_v56  ;;  %v11660_v61 = vmul.f32 %v11609_v9, %v193_v33  ;;  %v1508_v42 = vld [vmem:[%s15467_s2 + $0x1570] sm:$0xff]  ;;  %v1515_v27 = vld [vmem:[%s15467_s2 + $0x15a8] sm:$0xff]  ;;  %v11674_v56 = vmul.f32 %v11617_v53, %v192_v18  ;;  %v1530_v33 = vld [vmem:[%s15467_s2 + $0x1620] sm:$0xff] }
 0x14f   : > { %16059 = vst [vmem:[#allocation94_spill] sm:$0xff] %v11615_v11  ;;  %16060 = vst [vmem:[#allocation95_spill] sm:$0xff] %v11622_v29  ;;  %v7977_v30 = vpack.c.bf16 %v1518_v63, %v1511_v55  ;;  %v201_v18 = vld [vmem:[%s9913_s28 + $0xb0] sm:$0xff]  ;;  %v1525_v55 = vld [vmem:[%s15467_s2 + $0x15f8] sm:$0xff]  ;;  %v7715_v57 = vpack.c.bf16 %v1515_v27, %v1508_v42 }
 0x150   : > { %2360 = vmatmul.mubr.f32.gmra.mrb[62].mxu0 %v11597_v45  ;;  %16061 = vst [vmem:[#allocation96_spill] sm:$0xff] %v11641_v3  ;;  %16062 = vst [vmem:[#allocation97_spill] sm:$0xff] %v11660_v61  ;;  %v1532_v63 = vld [vmem:[%s15467_s2 + $0x1630] sm:$0xff]  ;;  %v1531_v42 = vld [vmem:[%s15467_s2 + $0x1628] sm:$0xff] }
 0x151   : > { %3675 = vmatmul.mubr.f32.gmra.mrb[62].mxu1 %v11597_v45  ;;  %2365 = vmatprep.mubr.f32.mxu0 %v11603_v62  ;;  %v1516_v45 = vld [vmem:[%s15467_s2 + $0x15b0] sm:$0xff]  ;;  %16063 = vst [vmem:[#allocation98_spill] sm:$0xff] %v11674_v56  ;;  %v1537_v27 = vld [vmem:[%s15467_s2 + $0x1658] sm:$0xff] }
 0x152   : > { %3680 = vmatprep.mubr.f32.mxu1 %v11603_v62  ;;  %v1509_v62 = vld [vmem:[%s15467_s2 + $0x1578] sm:$0xff] }
 0x153   : > { %v7713_v47 = vpack.c.bf16 %v1516_v45, %v1509_v62  ;;  %v1517_v45 = vld [vmem:[%s15467_s2 + $0x15b8] sm:$0xff]  ;;  %v1523_v62 = vld [vmem:[%s15467_s2 + $0x15e8] sm:$0xff] }
 0x154   : > { %2366 = vmatmul.mubr.f32.gmra.mrb[64].mxu0 %v11615_v11 }
 0x155   : > { %3681 = vmatmul.mubr.f32.gmra.mrb[64].mxu1 %v11615_v11  ;;  %2436 = vmatprep.mubr.f32.mxu0 %v11622_v29  ;;  %v202_v11 = vld [vmem:[%s9913_s28 + $0xb8] sm:$0xff] }
 0x156   : > { %3751 = vmatprep.mubr.f32.mxu1 %v11622_v29  ;;  %v11687_v29 = vmul.f32 %v11609_v9, %v202_v11  ;;  %v7979_v11 = vpack.c.bf16 %v1517_v45, %v1510_v8  ;;  %v7981_v8 = vpack.c.bf16 %v1532_v63, %v1525_v55  ;;  %v1544_v45 = vld [vmem:[%s15467_s2 + $0x1690] sm:$0xff]  ;;  %v220_v55 = vld [vmem:[%s9913_s28 + $0x148] sm:$0xff] }
 0x158   : > { %2437 = vmatmul.mubr.f32.vlgmr.msra.gmra.mrb[0].mxu0 %v11641_v3  ;;  %16064 = vst [vmem:[#allocation99_spill] sm:$0xff] %v11687_v29 }
 0x159   : > { %3752 = vmatmul.mubr.f32.vlgmr.msra.gmra.mrb[0].mxu1 %v11641_v3  ;;  %7712 = vmatpush1.bf16.msra.mxu0 %v7711_v24  ;;  %v7717_v24 = vpack.c.bf16 %v1530_v33, %v1523_v62  ;;  %v1522_v3 = vld [vmem:[%s15467_s2 + $0x15e0] sm:$0xff]  ;;  %v11724_v62 = vmul.f32 %v11609_v9, %v211_v37  ;;  %v1539_v33 = vld [vmem:[%s15467_s2 + $0x1668] sm:$0xff]  ;;  %v7721_v37 = vpack.c.bf16 %v1544_v45, %v1537_v27  ;;  %v1560_v27 = vld [vmem:[%s15467_s2 + $0x1710] sm:$0xff] }
 0x15a   : > { %7976 = vmatpush1.bf16.msra.mxu1 %v7975_v40  ;;  %2442 = vmatprep.mubr.f32.mxu0 %v11660_v61  ;;  %v1524_v40 = vld [vmem:[%s15467_s2 + $0x15f0] sm:$0xff]  ;;  %v7719_v63 = vpack.c.bf16 %v1529_v36, %v1522_v3  ;;  %v1545_v3 = vld [vmem:[%s15467_s2 + $0x1698] sm:$0xff] }
 0x15b   : > { %3757 = vmatprep.mubr.f32.mxu1 %v11660_v61  ;;  %7714 = vmatprep.subr.bf16.mxu0 %v7713_v47  ;;  %v11710_v47 = vmul.f32 %v11617_v53, %v201_v18  ;;  %16066 = vst [vmem:[#allocation101_spill] sm:$0xff] %v11724_v62  ;;  %v1546_v18 = vld [vmem:[%s15467_s2 + $0x16a0] sm:$0xff]  ;;  %v1536_v61 = vld [vmem:[%s15467_s2 + $0x1650] sm:$0xff] }
 0x15c   : > { %2443 = vmatmul.mubr.f32.gmra.mrb[2].mxu0 %v11674_v56  ;;  %7978 = vmatprep.subr.bf16.mxu1 %v7977_v30  ;;  %v210_v30 = vld [vmem:[%s9913_s28 + $0xf8] sm:$0xff]  ;;  %v229_v45 = vld [vmem:[%s9913_s28 + $0x190] sm:$0xff] }
 0x15d   : > { %16065 = vst [vmem:[#allocation100_spill] sm:$0xff] %v11710_v47  ;;  %3758 = vmatmul.mubr.f32.gmra.mrb[2].mxu1 %v11674_v56  ;;  %2448 = vmatprep.mubr.f32.mxu0 %v11687_v29  ;;  %v7983_v56 = vpack.c.bf16 %v1531_v42, %v1524_v40  ;;  %v11746_v36 = vmul.f32 %v11617_v53, %v210_v30  ;;  %v1553_v42 = vld [vmem:[%s15467_s2 + $0x16d8] sm:$0xff] }
 0x15e   : > { %3763 = vmatprep.mubr.f32.mxu1 %v11687_v29  ;;  %7716 = vmatpush1.bf16.msra.mxu0 %v7715_v57  ;;  %v1538_v29 = vld [vmem:[%s15467_s2 + $0x1660] sm:$0xff]  ;;  %v7985_v57 = vpack.c.bf16 %v1546_v18, %v1539_v33  ;;  %v11760_v40 = vmul.f32 %v11609_v9, %v220_v55  ;;  %v7723_v30 = vpack.c.bf16 %v1543_v17, %v1536_v61 }
 0x15f   : > { %7980 = vmatpush1.bf16.msra.mxu1 %v7979_v11  ;;  %7718 = vmatprep.subr.bf16.mxu0 %v7717_v24  ;;  %16067 = vst [vmem:[#allocation102_spill] sm:$0xff] %v11746_v36  ;;  %v1551_v11 = vld [vmem:[%s15467_s2 + $0x16c8] sm:$0xff]  ;;  %v1558_v24 = vld [vmem:[%s15467_s2 + $0x1700] sm:$0xff]  ;;  %v7987_v33 = vpack.c.bf16 %v1545_v3, %v1538_v29  ;;  %v7989_v61 = vpack.c.bf16 %v1560_v27, %v1553_v42 }
 0x160   : > { %2449 = vmatmul.mubr.f32.gmra.mrb[4].mxu0 %v11710_v47  ;;  %7982 = vmatprep.subr.bf16.mxu1 %v7981_v8  ;;  %16068 = vst [vmem:[#allocation103_spill] sm:$0xff] %v11760_v40  ;;  %v219_v8 = vld [vmem:[%s9913_s28 + $0x140] sm:$0xff]  ;;  %v7725_v18 = vpack.c.bf16 %v1558_v24, %v1551_v11  ;;  %v1559_v29 = vld [vmem:[%s15467_s2 + $0x1708] sm:$0xff]  ;;  %v11796_v3 = vmul.f32 %v11609_v9, %v229_v45 }
 0x161   : > { %3764 = vmatmul.mubr.f32.gmra.mrb[4].mxu1 %v11710_v47  ;;  %2454 = vmatprep.mubr.f32.mxu0 %v11724_v62  ;;  %v1550_v55 = vld [vmem:[%s15467_s2 + $0x16c0] sm:$0xff]  ;;  %v1557_v47 = vld [vmem:[%s15467_s2 + $0x16f8] sm:$0xff]  ;;  %v11782_v17 = vmul.f32 %v11617_v53, %v219_v8  ;;  %v1567_v11 = vld [vmem:[%s15467_s2 + $0x1748] sm:$0xff] }
 0x162   : > { %3769 = vmatprep.mubr.f32.mxu1 %v11724_v62  ;;  %7720 = vmatpush1.bf16.msra.mxu0 %v7719_v63  ;;  %v1552_v63 = vld [vmem:[%s15467_s2 + $0x16d0] sm:$0xff]  ;;  %16070 = vst [vmem:[#allocation105_spill] sm:$0xff] %v11796_v3  ;;  %v1574_v24 = vld [vmem:[%s15467_s2 + $0x1780] sm:$0xff]  ;;  %v238_v8 = vld [vmem:[%s9913_s28 + $0x1d8] sm:$0xff]  ;;  %v7727_v42 = vpack.c.bf16 %v1557_v47, %v1550_v55 }
 0x163   : > { %7984 = vmatpush1.bf16.msra.mxu1 %v7983_v56  ;;  %7722 = vmatprep.subr.bf16.mxu0 %v7721_v37  ;;  %16069 = vst [vmem:[#allocation104_spill] sm:$0xff] %v11782_v17  ;;  %v1565_v56 = vld [vmem:[%s15467_s2 + $0x1738] sm:$0xff]  ;;  %v1572_v37 = vld [vmem:[%s15467_s2 + $0x1770] sm:$0xff]  ;;  %v7991_v27 = vpack.c.bf16 %v1559_v29, %v1552_v63  ;;  %v1571_v62 = vld [vmem:[%s15467_s2 + $0x1768] sm:$0xff]  ;;  %v11832_v63 = vmul.f32 %v11609_v9, %v238_v8 }
 0x164   : > { %2455 = vmatmul.mubr.f32.gmra.mrb[6].mxu0 %v11746_v36  ;;  %7986 = vmatprep.subr.bf16.mxu1 %v7985_v57  ;;  %v228_v57 = vld [vmem:[%s9913_s28 + $0x188] sm:$0xff]  ;;  %v7729_v45 = vpack.c.bf16 %v1572_v37, %v1565_v56  ;;  %v1586_v55 = vld [vmem:[%s15467_s2 + $0x17e0] sm:$0xff]  ;;  %v1581_v29 = vld [vmem:[%s15467_s2 + $0x17b8] sm:$0xff] }
 0x165   : > { %3770 = vmatmul.mubr.f32.gmra.mrb[6].mxu1 %v11746_v36  ;;  %2460 = vmatprep.mubr.f32.mxu0 %v11760_v40  ;;  %v1564_v36 = vld [vmem:[%s15467_s2 + $0x1730] sm:$0xff]  ;;  %v11818_v47 = vmul.f32 %v11617_v53, %v228_v57  ;;  %16072 = vst [vmem:[#allocation107_spill] sm:$0xff] %v11832_v63  ;;  %v247_v37 = vld [vmem:[%s9913_s28 + $0x220] sm:$0xff] }
 0x166   : > { %3775 = vmatprep.mubr.f32.mxu1 %v11760_v40  ;;  %7724 = vmatpush1.bf16.msra.mxu0 %v7723_v30  ;;  %v1566_v40 = vld [vmem:[%s15467_s2 + $0x1740] sm:$0xff]  ;;  %v7993_v30 = vpack.c.bf16 %v1574_v24, %v1567_v11  ;;  %v1588_v56 = vld [vmem:[%s15467_s2 + $0x17f0] sm:$0xff]  ;;  %v7731_v57 = vpack.c.bf16 %v1571_v62, %v1564_v36 }
 0x167   : > { %7988 = vmatpush1.bf16.msra.mxu1 %v7987_v33  ;;  %7726 = vmatprep.subr.bf16.mxu0 %v7725_v18  ;;  %16071 = vst [vmem:[#allocation106_spill] sm:$0xff] %v11818_v47  ;;  %v1573_v33 = vld [vmem:[%s15467_s2 + $0x1778] sm:$0xff]  ;;  %v1579_v18 = vld [vmem:[%s15467_s2 + $0x17a8] sm:$0xff]  ;;  %v1578_v8 = vld [vmem:[%s15467_s2 + $0x17a0] sm:$0xff]  ;;  %v7997_v36 = vpack.c.bf16 %v1588_v56, %v1581_v29 }
 0x168   : > { %2461 = vmatmul.mubr.f32.gmra.mrb[8].mxu0 %v11782_v17  ;;  %7990 = vmatprep.subr.bf16.mxu1 %v7989_v61  ;;  %v237_v61 = vld [vmem:[%s9913_s28 + $0x1d0] sm:$0xff]  ;;  %v7995_v11 = vpack.c.bf16 %v1573_v33, %v1566_v40  ;;  %v7733_v24 = vpack.c.bf16 %v1586_v55, %v1579_v18  ;;  %v1587_v40 = vld [vmem:[%s15467_s2 + $0x17e8] sm:$0xff]  ;;  %v1602_v18 = vld [vmem:[%s15467_s2 + $0x1860] sm:$0xff] }
 0x169   : > { %3776 = vmatmul.mubr.f32.gmra.mrb[8].mxu1 %v11782_v17  ;;  %2466 = vmatprep.mubr.f32.mxu0 %v11796_v3  ;;  %v1585_v17 = vld [vmem:[%s15467_s2 + $0x17d8] sm:$0xff]  ;;  %v11854_v62 = vmul.f32 %v11617_v53, %v237_v61  ;;  %v1595_v33 = vld [vmem:[%s15467_s2 + $0x1828] sm:$0xff] }
 0x16a   : > { %3781 = vmatprep.mubr.f32.mxu1 %v11796_v3  ;;  %7728 = vmatpush1.bf16.msra.mxu0 %v7727_v42  ;;  %v1580_v3 = vld [vmem:[%s15467_s2 + $0x17b0] sm:$0xff]  ;;  %v1593_v42 = vld [vmem:[%s15467_s2 + $0x1818] sm:$0xff]  ;;  %v256_v55 = vld [vmem:[%s9913_s28 + $0x268] sm:$0xff]  ;;  %v7735_v61 = vpack.c.bf16 %v1585_v17, %v1578_v8 }
 0x16b   : > { %7992 = vmatpush1.bf16.msra.mxu1 %v7991_v27  ;;  %7730 = vmatprep.subr.bf16.mxu0 %v7729_v45  ;;  %16073 = vst [vmem:[#allocation108_spill] sm:$0xff] %v11854_v62  ;;  %v1600_v27 = vld [vmem:[%s15467_s2 + $0x1850] sm:$0xff]  ;;  %v11868_v45 = vmul.f32 %v11609_v9, %v247_v37  ;;  %v7999_v29 = vpack.c.bf16 %v1587_v40, %v1580_v3  ;;  %v1609_v40 = vld [vmem:[%s15467_s2 + $0x1898] sm:$0xff] }
 0x16c   : > { %2467 = vmatmul.mubr.f32.gmra.mrb[10].mxu0 %v11818_v47  ;;  %7994 = vmatprep.subr.bf16.mxu1 %v7993_v30  ;;  %v246_v30 = vld [vmem:[%s9913_s28 + $0x218] sm:$0xff]  ;;  %v7737_v56 = vpack.c.bf16 %v1600_v27, %v1593_v42  ;;  %v1592_v37 = vld [vmem:[%s15467_s2 + $0x1810] sm:$0xff]  ;;  %v8001_v3 = vpack.c.bf16 %v1602_v18, %v1595_v33  ;;  %v11904_v8 = vmul.f32 %v11609_v9, %v256_v55  ;;  %v1606_v55 = vld [vmem:[%s15467_s2 + $0x1880] sm:$0xff] }
 0x16d   : > { %3782 = vmatmul.mubr.f32.gmra.mrb[10].mxu1 %v11818_v47  ;;  %2472 = vmatprep.mubr.f32.mxu0 %v11832_v63  ;;  %16074 = vst [vmem:[#allocation109_spill] sm:$0xff] %v11868_v45  ;;  %v1599_v47 = vld [vmem:[%s15467_s2 + $0x1848] sm:$0xff]  ;;  %v11890_v17 = vmul.f32 %v11617_v53, %v246_v30  ;;  %v1616_v42 = vld [vmem:[%s15467_s2 + $0x18d0] sm:$0xff] }
 0x16e   : > { %3787 = vmatprep.mubr.f32.mxu1 %v11832_v63  ;;  %7732 = vmatpush1.bf16.msra.mxu0 %v7731_v57  ;;  %v1594_v63 = vld [vmem:[%s15467_s2 + $0x1820] sm:$0xff]  ;;  %v1601_v57 = vld [vmem:[%s15467_s2 + $0x1858] sm:$0xff]  ;;  %16076 = vst [vmem:[#allocation111_spill] sm:$0xff] %v11904_v8  ;;  %v265_v27 = vld [vmem:[%s9913_s28 + $0x2b0] sm:$0xff]  ;;  %v7739_v30 = vpack.c.bf16 %v1599_v47, %v1592_v37 }
 0x16f   : > { %7996 = vmatpush1.bf16.msra.mxu1 %v7995_v11  ;;  %7734 = vmatprep.subr.bf16.mxu0 %v7733_v24  ;;  %16075 = vst [vmem:[#allocation110_spill] sm:$0xff] %v11890_v17  ;;  %v1607_v11 = vld [vmem:[%s15467_s2 + $0x1888] sm:$0xff]  ;;  %v1614_v24 = vld [vmem:[%s15467_s2 + $0x18c0] sm:$0xff]  ;;  %v8003_v33 = vpack.c.bf16 %v1601_v57, %v1594_v63  ;;  %v8005_v63 = vpack.c.bf16 %v1616_v42, %v1609_v40 }
 0x170   : > { %2473 = vmatmul.mubr.f32.gmra.mrb[12].mxu0 %v11854_v62  ;;  %7998 = vmatprep.subr.bf16.mxu1 %v7997_v36  ;;  %v255_v36 = vld [vmem:[%s9913_s28 + $0x260] sm:$0xff]  ;;  %v7741_v18 = vpack.c.bf16 %v1614_v24, %v1607_v11  ;;  %v11940_v37 = vmul.f32 %v11609_v9, %v265_v27  ;;  %v1623_v57 = vld [vmem:[%s15467_s2 + $0x1908] sm:$0xff]  ;;  %v274_v24 = vld [vmem:[%s9913_s28 + $0x2f8] sm:$0xff] }
 0x171   : > { %3788 = vmatmul.mubr.f32.gmra.mrb[12].mxu1 %v11854_v62  ;;  %2478 = vmatprep.mubr.f32.mxu0 %v11868_v45  ;;  %v1613_v62 = vld [vmem:[%s15467_s2 + $0x18b8] sm:$0xff]  ;;  %v11926_v47 = vmul.f32 %v11617_v53, %v255_v36  ;;  %v1630_v11 = vld [vmem:[%s15467_s2 + $0x1940] sm:$0xff]  ;;  %v1620_v27 = vld [vmem:[%s15467_s2 + $0x18f0] sm:$0xff] }
 0x172   : > { %3793 = vmatprep.mubr.f32.mxu1 %v11868_v45  ;;  %7736 = vmatpush1.bf16.msra.mxu0 %v7735_v61  ;;  %v1608_v45 = vld [vmem:[%s15467_s2 + $0x1890] sm:$0xff]  ;;  %v1615_v61 = vld [vmem:[%s15467_s2 + $0x18c8] sm:$0xff]  ;;  %16078 = vst [vmem:[#allocation113_spill] sm:$0xff] %v11940_v37  ;;  %v7743_v36 = vpack.c.bf16 %v1613_v62, %v1606_v55  ;;  %v11976_v55 = vmul.f32 %v11609_v9, %v274_v24  ;;  %v1634_v24 = vld [vmem:[%s15467_s2 + $0x1960] sm:$0xff] }
 0x173   : > { %8000 = vmatpush1.bf16.msra.mxu1 %v7999_v29  ;;  %7738 = vmatprep.subr.bf16.mxu0 %v7737_v56  ;;  %16077 = vst [vmem:[#allocation112_spill] sm:$0xff] %v11926_v47  ;;  %v1621_v29 = vld [vmem:[%s15467_s2 + $0x18f8] sm:$0xff]  ;;  %v1628_v56 = vld [vmem:[%s15467_s2 + $0x1930] sm:$0xff]  ;;  %v8007_v40 = vpack.c.bf16 %v1615_v61, %v1608_v45  ;;  %v8009_v45 = vpack.c.bf16 %v1630_v11, %v1623_v57 }
 0x174   : > { %2479 = vmatmul.mubr.f32.gmra.mrb[14].mxu0 %v11890_v17  ;;  %8002 = vmatprep.subr.bf16.mxu1 %v8001_v3  ;;  %v264_v3 = vld [vmem:[%s9913_s28 + $0x2a8] sm:$0xff]  ;;  %v7745_v42 = vpack.c.bf16 %v1628_v56, %v1621_v29  ;;  %16080 = vst [vmem:[#allocation115_spill] sm:$0xff] %v11976_v55  ;;  %v1637_v61 = vld [vmem:[%s15467_s2 + $0x1978] sm:$0xff]  ;;  %v1644_v29 = vld [vmem:[%s15467_s2 + $0x19b0] sm:$0xff] }
 0x175   : > { %3794 = vmatmul.mubr.f32.gmra.mrb[14].mxu1 %v11890_v17  ;;  %2484 = vmatprep.mubr.f32.mxu0 %v11904_v8  ;;  %v1627_v17 = vld [vmem:[%s15467_s2 + $0x1928] sm:$0xff]  ;;  %v11962_v62 = vmul.f32 %v11617_v53, %v264_v3  ;;  %v283_v56 = vld [vmem:[%s9913_s28 + $0x340] sm:$0xff] }
 0x176   : > { %3799 = vmatprep.mubr.f32.mxu1 %v11904_v8  ;;  %7740 = vmatpush1.bf16.msra.mxu0 %v7739_v30  ;;  %v1622_v8 = vld [vmem:[%s15467_s2 + $0x1900] sm:$0xff]  ;;  %v1629_v30 = vld [vmem:[%s15467_s2 + $0x1938] sm:$0xff]  ;;  %v7747_v3 = vpack.c.bf16 %v1627_v17, %v1620_v27  ;;  %v12012_v27 = vmul.f32 %v11609_v9, %v283_v56  ;;  %v1648_v56 = vld [vmem:[%s15467_s2 + $0x19d0] sm:$0xff] }
 0x177   : > { %8004 = vmatpush1.bf16.msra.mxu1 %v8003_v33  ;;  %7742 = vmatprep.subr.bf16.mxu0 %v7741_v18  ;;  %16079 = vst [vmem:[#allocation114_spill] sm:$0xff] %v11962_v62  ;;  %v1635_v33 = vld [vmem:[%s15467_s2 + $0x1968] sm:$0xff]  ;;  %v1642_v18 = vld [vmem:[%s15467_s2 + $0x19a0] sm:$0xff]  ;;  %v8011_v57 = vpack.c.bf16 %v1629_v30, %v1622_v8  ;;  %v8013_v8 = vpack.c.bf16 %v1644_v29, %v1637_v61 }
 0x178   : > { %2485 = vmatmul.mubr.f32.gmra.mrb[16].mxu0 %v11926_v47  ;;  %8006 = vmatprep.subr.bf16.mxu1 %v8005_v63  ;;  %v273_v63 = vld [vmem:[%s9913_s28 + $0x2f0] sm:$0xff]  ;;  %v7749_v11 = vpack.c.bf16 %v1642_v18, %v1635_v33  ;;  %16082 = vst [vmem:[#allocation117_spill] sm:$0xff] %v12012_v27  ;;  %v1651_v30 = vld [vmem:[%s15467_s2 + $0x19e8] sm:$0xff]  ;;  %v1658_v33 = vld [vmem:[%s15467_s2 + $0x1a20] sm:$0xff] }
 0x179   : > { %3800 = vmatmul.mubr.f32.gmra.mrb[16].mxu1 %v11926_v47  ;;  %2490 = vmatprep.mubr.f32.mxu0 %v11940_v37  ;;  %v1641_v47 = vld [vmem:[%s15467_s2 + $0x1998] sm:$0xff]  ;;  %v11998_v17 = vmul.f32 %v11617_v53, %v273_v63  ;;  %v292_v18 = vld [vmem:[%s9913_s28 + $0x388] sm:$0xff] }
 0x17a   : > { %3805 = vmatprep.mubr.f32.mxu1 %v11940_v37  ;;  %7744 = vmatpush1.bf16.msra.mxu0 %v7743_v36  ;;  %v1636_v37 = vld [vmem:[%s15467_s2 + $0x1970] sm:$0xff]  ;;  %v1643_v36 = vld [vmem:[%s15467_s2 + $0x19a8] sm:$0xff]  ;;  %v7751_v63 = vpack.c.bf16 %v1641_v47, %v1634_v24  ;;  %v12048_v24 = vmul.f32 %v11609_v9, %v292_v18  ;;  %v1662_v18 = vld [vmem:[%s15467_s2 + $0x1a40] sm:$0xff] }
 0x17b   : > { %8008 = vmatpush1.bf16.msra.mxu1 %v8007_v40  ;;  %7746 = vmatprep.subr.bf16.mxu0 %v7745_v42  ;;  %16081 = vst [vmem:[#allocation116_spill] sm:$0xff] %v11998_v17  ;;  %v1649_v40 = vld [vmem:[%s15467_s2 + $0x19d8] sm:$0xff]  ;;  %v1656_v42 = vld [vmem:[%s15467_s2 + $0x1a10] sm:$0xff]  ;;  %v8015_v61 = vpack.c.bf16 %v1643_v36, %v1636_v37  ;;  %v8017_v37 = vpack.c.bf16 %v1658_v33, %v1651_v30 }
 0x17c   : > { %2491 = vmatmul.mubr.f32.gmra.mrb[18].mxu0 %v11962_v62  ;;  %8010 = vmatprep.subr.bf16.mxu1 %v8009_v45  ;;  %v282_v45 = vld [vmem:[%s9913_s28 + $0x338] sm:$0xff]  ;;  %v7753_v29 = vpack.c.bf16 %v1656_v42, %v1649_v40  ;;  %16084 = vst [vmem:[#allocation119_spill] sm:$0xff] %v12048_v24  ;;  %v1672_v40 = vld [vmem:[%s15467_s2 + $0x1a90] sm:$0xff] }
 0x17d   : > { %3806 = vmatmul.mubr.f32.gmra.mrb[18].mxu1 %v11962_v62  ;;  %2496 = vmatprep.mubr.f32.mxu0 %v11976_v55  ;;  %v1655_v62 = vld [vmem:[%s15467_s2 + $0x1a08] sm:$0xff]  ;;  %v12034_v47 = vmul.f32 %v11617_v53, %v282_v45  ;;  %v1665_v36 = vld [vmem:[%s15467_s2 + $0x1a58] sm:$0xff]  ;;  %v301_v42 = vld [vmem:[%s9913_s28 + $0x3d0] sm:$0xff] }
 0x17e   : > { %3811 = vmatprep.mubr.f32.mxu1 %v11976_v55  ;;  %7748 = vmatpush1.bf16.msra.mxu0 %v7747_v3  ;;  %v1650_v55 = vld [vmem:[%s15467_s2 + $0x19e0] sm:$0xff]  ;;  %v1657_v3 = vld [vmem:[%s15467_s2 + $0x1a18] sm:$0xff]  ;;  %v7755_v45 = vpack.c.bf16 %v1655_v62, %v1648_v56  ;;  %v12084_v56 = vmul.f32 %v11609_v9, %v301_v42  ;;  %v1676_v42 = vld [vmem:[%s15467_s2 + $0x1ab0] sm:$0xff] }
 0x17f   : > { %8012 = vmatpush1.bf16.msra.mxu1 %v8011_v57  ;;  %7750 = vmatprep.subr.bf16.mxu0 %v7749_v11  ;;  %16083 = vst [vmem:[#allocation118_spill] sm:$0xff] %v12034_v47  ;;  %v1663_v57 = vld [vmem:[%s15467_s2 + $0x1a48] sm:$0xff]  ;;  %v1670_v11 = vld [vmem:[%s15467_s2 + $0x1a80] sm:$0xff]  ;;  %v8019_v30 = vpack.c.bf16 %v1657_v3, %v1650_v55  ;;  %v8021_v55 = vpack.c.bf16 %v1672_v40, %v1665_v36 }
 0x180   : > { %2497 = vmatmul.mubr.f32.gmra.mrb[20].mxu0 %v11998_v17  ;;  %8014 = vmatprep.subr.bf16.mxu1 %v8013_v8  ;;  %v291_v8 = vld [vmem:[%s9913_s28 + $0x380] sm:$0xff]  ;;  %v7757_v33 = vpack.c.bf16 %v1670_v11, %v1663_v57  ;;  %16086 = vst [vmem:[#allocation121_spill] sm:$0xff] %v12084_v56  ;;  %v1679_v3 = vld [vmem:[%s15467_s2 + $0x1ac8] sm:$0xff]  ;;  %v310_v11 = vld [vmem:[%s9913_s28 + $0x418] sm:$0xff] }
 0x181   : > { %3812 = vmatmul.mubr.f32.gmra.mrb[20].mxu1 %v11998_v17  ;;  %2502 = vmatprep.mubr.f32.mxu0 %v12012_v27  ;;  %v1669_v17 = vld [vmem:[%s15467_s2 + $0x1a78] sm:$0xff]  ;;  %v12070_v62 = vmul.f32 %v11617_v53, %v291_v8  ;;  %v1686_v57 = vld [vmem:[%s15467_s2 + $0x1b00] sm:$0xff] }
 0x182   : > { %3817 = vmatprep.mubr.f32.mxu1 %v12012_v27  ;;  %7752 = vmatpush1.bf16.msra.mxu0 %v7751_v63  ;;  %v1664_v27 = vld [vmem:[%s15467_s2 + $0x1a50] sm:$0xff]  ;;  %v1671_v63 = vld [vmem:[%s15467_s2 + $0x1a88] sm:$0xff]  ;;  %v7759_v8 = vpack.c.bf16 %v1669_v17, %v1662_v18  ;;  %v12120_v18 = vmul.f32 %v11609_v9, %v310_v11  ;;  %v1690_v11 = vld [vmem:[%s15467_s2 + $0x1b20] sm:$0xff] }
 0x183   : > { %8016 = vmatpush1.bf16.msra.mxu1 %v8015_v61  ;;  %7754 = vmatprep.subr.bf16.mxu0 %v7753_v29  ;;  %16085 = vst [vmem:[#allocation120_spill] sm:$0xff] %v12070_v62  ;;  %v1677_v61 = vld [vmem:[%s15467_s2 + $0x1ab8] sm:$0xff]  ;;  %v1684_v29 = vld [vmem:[%s15467_s2 + $0x1af0] sm:$0xff]  ;;  %v8023_v36 = vpack.c.bf16 %v1671_v63, %v1664_v27  ;;  %v8025_v27 = vpack.c.bf16 %v1686_v57, %v1679_v3 }
 0x184   : > { %2503 = vmatmul.mubr.f32.gmra.mrb[22].mxu0 %v12034_v47  ;;  %8018 = vmatprep.subr.bf16.mxu1 %v8017_v37  ;;  %v300_v37 = vld [vmem:[%s9913_s28 + $0x3c8] sm:$0xff]  ;;  %v7761_v40 = vpack.c.bf16 %v1684_v29, %v1677_v61  ;;  %16088 = vst [vmem:[#allocation123_spill] sm:$0xff] %v12120_v18  ;;  %v1693_v63 = vld [vmem:[%s15467_s2 + $0x1b38] sm:$0xff]  ;;  %v1700_v61 = vld [vmem:[%s15467_s2 + $0x1b70] sm:$0xff] }
 0x185   : > { %3818 = vmatmul.mubr.f32.gmra.mrb[22].mxu1 %v12034_v47  ;;  %2508 = vmatprep.mubr.f32.mxu0 %v12048_v24  ;;  %v1683_v47 = vld [vmem:[%s15467_s2 + $0x1ae8] sm:$0xff]  ;;  %v12106_v17 = vmul.f32 %v11617_v53, %v300_v37  ;;  %v319_v29 = vld [vmem:[%s9913_s28 + $0x460] sm:$0xff] }
 0x186   : > { %3823 = vmatprep.mubr.f32.mxu1 %v12048_v24  ;;  %7756 = vmatpush1.bf16.msra.mxu0 %v7755_v45  ;;  %v1678_v24 = vld [vmem:[%s15467_s2 + $0x1ac0] sm:$0xff]  ;;  %v1685_v45 = vld [vmem:[%s15467_s2 + $0x1af8] sm:$0xff]  ;;  %v7763_v37 = vpack.c.bf16 %v1683_v47, %v1676_v42  ;;  %v12156_v42 = vmul.f32 %v11609_v9, %v319_v29  ;;  %v1704_v29 = vld [vmem:[%s15467_s2 + $0x1b90] sm:$0xff] }
 0x187   : > { %8020 = vmatpush1.bf16.msra.mxu1 %v8019_v30  ;;  %7758 = vmatprep.subr.bf16.mxu0 %v7757_v33  ;;  %16087 = vst [vmem:[#allocation122_spill] sm:$0xff] %v12106_v17  ;;  %v1691_v30 = vld [vmem:[%s15467_s2 + $0x1b28] sm:$0xff]  ;;  %v1698_v33 = vld [vmem:[%s15467_s2 + $0x1b60] sm:$0xff]  ;;  %v8027_v3 = vpack.c.bf16 %v1685_v45, %v1678_v24  ;;  %v8029_v24 = vpack.c.bf16 %v1700_v61, %v1693_v63 }
 0x188   : > { %2509 = vmatmul.mubr.f32.gmra.mrb[24].mxu0 %v12070_v62  ;;  %8022 = vmatprep.subr.bf16.mxu1 %v8021_v55  ;;  %v309_v55 = vld [vmem:[%s9913_s28 + $0x410] sm:$0xff]  ;;  %v7765_v57 = vpack.c.bf16 %v1698_v33, %v1691_v30  ;;  %v1707_v45 = vld [vmem:[%s15467_s2 + $0x1ba8] sm:$0xff]  ;;  %v1714_v30 = vld [vmem:[%s15467_s2 + $0x1be0] sm:$0xff] }
 0x189   : > { %3824 = vmatmul.mubr.f32.gmra.mrb[24].mxu1 %v12070_v62  ;;  %2514 = vmatprep.mubr.f32.mxu0 %v12084_v56  ;;  %v1697_v62 = vld [vmem:[%s15467_s2 + $0x1b58] sm:$0xff]  ;;  %v12142_v47 = vmul.f32 %v11617_v53, %v309_v55  ;;  %v328_v33 = vld [vmem:[%s9913_s28 + $0x4a8] sm:$0xff] }
 0x18a   : > { %3829 = vmatprep.mubr.f32.mxu1 %v12084_v56  ;;  %7760 = vmatpush1.bf16.msra.mxu0 %v7759_v8  ;;  %v1692_v56 = vld [vmem:[%s15467_s2 + $0x1b30] sm:$0xff]  ;;  %v1699_v8 = vld [vmem:[%s15467_s2 + $0x1b68] sm:$0xff]  ;;  %v7767_v55 = vpack.c.bf16 %v1697_v62, %v1690_v11  ;;  %v12192_v11 = vmul.f32 %v11609_v9, %v328_v33 }
 0x18b   : > { %8024 = vmatpush1.bf16.msra.mxu1 %v8023_v36  ;;  %7762 = vmatprep.subr.bf16.mxu0 %v7761_v40  ;;  %16089 = vst [vmem:[#allocation124_spill] sm:$0xff] %v12142_v47  ;;  %v1705_v36 = vld [vmem:[%s15467_s2 + $0x1b98] sm:$0xff]  ;;  %v1712_v40 = vld [vmem:[%s15467_s2 + $0x1bd0] sm:$0xff]  ;;  %v8031_v63 = vpack.c.bf16 %v1699_v8, %v1692_v56  ;;  %v8033_v56 = vpack.c.bf16 %v1714_v30, %v1707_v45 }
 0x18c   : > { %2515 = vmatmul.mubr.f32.gmra.mrb[26].mxu0 %v12106_v17  ;;  %8026 = vmatprep.subr.bf16.mxu1 %v8025_v27  ;;  %v318_v27 = vld [vmem:[%s9913_s28 + $0x458] sm:$0xff]  ;;  %v7769_v61 = vpack.c.bf16 %v1712_v40, %v1705_v36  ;;  %v1728_v36 = vld [vmem:[%s15467_s2 + $0x1c50] sm:$0xff] }
 0x18d   : > { %3830 = vmatmul.mubr.f32.gmra.mrb[26].mxu1 %v12106_v17  ;;  %2520 = vmatprep.mubr.f32.mxu0 %v12120_v18  ;;  %v1711_v17 = vld [vmem:[%s15467_s2 + $0x1bc8] sm:$0xff]  ;;  %v12178_v62 = vmul.f32 %v11617_v53, %v318_v27  ;;  %v1721_v8 = vld [vmem:[%s15467_s2 + $0x1c18] sm:$0xff]  ;;  %v337_v40 = vld [vmem:[%s9913_s28 + $0x4f0] sm:$0xff] }
 0x18e   : > { %3835 = vmatprep.mubr.f32.mxu1 %v12120_v18  ;;  %7764 = vmatpush1.bf16.msra.mxu0 %v7763_v37  ;;  %v1706_v18 = vld [vmem:[%s15467_s2 + $0x1ba0] sm:$0xff]  ;;  %v1713_v37 = vld [vmem:[%s15467_s2 + $0x1bd8] sm:$0xff]  ;;  %v7771_v27 = vpack.c.bf16 %v1711_v17, %v1704_v29  ;;  %v336_v17 = vld [vmem:[%s9913_s28 + $0x4e8] sm:$0xff] }
 0x18f   : > { %8028 = vmatpush1.bf16.msra.mxu1 %v8027_v3  ;;  %7766 = vmatprep.subr.bf16.mxu0 %v7765_v57  ;;  %v1719_v3 = vld [vmem:[%s15467_s2 + $0x1c08] sm:$0xff]  ;;  %v1726_v57 = vld [vmem:[%s15467_s2 + $0x1c40] sm:$0xff]  ;;  %v8035_v45 = vpack.c.bf16 %v1713_v37, %v1706_v18  ;;  %v346_v18 = vld [vmem:[%s9913_s28 + $0x538] sm:$0xff] }
 0x190   : > { %2521 = vmatmul.mubr.f32.gmra.mrb[28].mxu0 %v12142_v47  ;;  %8030 = vmatprep.subr.bf16.mxu1 %v8029_v24  ;;  %v327_v24 = vld [vmem:[%s9913_s28 + $0x4a0] sm:$0xff]  ;;  %v7773_v30 = vpack.c.bf16 %v1726_v57, %v1719_v3  ;;  %v345_v29 = vld [vmem:[%s9913_s28 + $0x530] sm:$0xff]  ;;  %v354_v3 = vld [vmem:[%s9913_s28 + $0x578] sm:$0xff] }
 0x191   : > { %3836 = vmatmul.mubr.f32.gmra.mrb[28].mxu1 %v12142_v47  ;;  %2526 = vmatprep.mubr.f32.mxu0 %v12156_v42  ;;  %v12205_v33 = vmul.f32 %v11617_v53, %v327_v24  ;;  %v8037_v47 = vpack.c.bf16 %v1728_v36, %v1721_v8  ;;  %v12229_v37 = vmul.f32 %v11617_v53, %v345_v29  ;;  %v364_v57 = vld [vmem:[%s9913_s28 + $0x5c8] sm:$0xff]  ;;  %v363_v36 = vld [vmem:[%s9913_s28 + $0x5c0] sm:$0xff] }
 0x192   : > { %3841 = vmatprep.mubr.f32.mxu1 %v12156_v42  ;;  %7768 = vmatpush1.bf16.msra.mxu0 %v7767_v55  ;;  %v12210_v55 = vmul.f32 %v11609_v9, %v337_v40  ;;  %v12241_v24 = vmul.f32 %v11617_v53, %v354_v3  ;;  %v12246_v8 = vmul.f32 %v11609_v9, %v364_v57  ;;  %v373_v40 = vld [vmem:[%s9913_s28 + $0x610] sm:$0xff]  ;;  %v391_v3 = vld [vmem:[%s9913_s28 + $0x6a0] sm:$0xff] }
 0x193   : > { %8032 = vmatpush1.bf16.msra.mxu1 %v8031_v63  ;;  %7770 = vmatprep.subr.bf16.mxu0 %v7769_v61  ;;  %v12217_v63 = vmul.f32 %v11617_v53, %v336_v17  ;;  %v12222_v61 = vmul.f32 %v11609_v9, %v346_v18  ;;  %16092 = vst [vmem:[#allocation127_spill] sm:$0xff] %v12229_v37  ;;  %v382_v17 = vld [vmem:[%s9913_s28 + $0x658] sm:$0xff] }
 0x194   : > { %2527 = vmatmul.mubr.f32.gmra.mrb[30].mxu0 %v12178_v62  ;;  %8034 = vmatprep.subr.bf16.mxu1 %v8033_v56  ;;  %v355_v56 = vld [vmem:[%s9913_s28 + $0x580] sm:$0xff]  ;;  %16094 = vst [vmem:[#allocation129_spill] sm:$0xff] %v12241_v24  ;;  %16095 = vst [vmem:[#allocation130_spill] sm:$0xff] %v12246_v8  ;;  %v12270_v29 = vmul.f32 %v11609_v9, %v382_v17 }
 0x195   : > { %3842 = vmatmul.mubr.f32.gmra.mrb[30].mxu1 %v12178_v62  ;;  %2532 = vmatprep.mubr.f32.mxu0 %v12192_v11  ;;  %16090 = vst [vmem:[#allocation125_spill] sm:$0xff] %v12217_v63  ;;  %16091 = vst [vmem:[#allocation126_spill] sm:$0xff] %v12222_v61 }
 0x196   : > { %3847 = vmatprep.mubr.f32.mxu1 %v12192_v11  ;;  %7772 = vmatpush1.bf16.msra.mxu0 %v7771_v27  ;;  %v12253_v27 = vmul.f32 %v11617_v53, %v363_v36  ;;  %16099 = vst [vmem:[#allocation134_spill] sm:$0xff] %v12270_v29  ;;  %v12282_v36 = vmul.f32 %v11609_v9, %v391_v3  ;;  %v399_v3 = vld [vmem:[%s9913_s28 + $0x6e0] sm:$0xff] }
 0x197   : > { %8036 = vmatpush1.bf16.msra.mxu1 %v8035_v45  ;;  %7774 = vmatprep.subr.bf16.mxu0 %v7773_v30  ;;  %v12258_v45 = vmul.f32 %v11609_v9, %v373_v40  ;;  %v372_v30 = vld [vmem:[%s9913_s28 + $0x608] sm:$0xff]  ;;  %v390_v40 = vld [vmem:[%s9913_s28 + $0x698] sm:$0xff] }
 0x198   : > { %2533 = vmatmul.mubr.f32.gmra.mrb[32].mxu0 %v12205_v33  ;;  %8038 = vmatprep.subr.bf16.mxu1 %v8037_v47  ;;  %v12234_v47 = vmul.f32 %v11609_v9, %v355_v56  ;;  %16096 = vst [vmem:[#allocation131_spill] sm:$0xff] %v12253_v27  ;;  %v12265_v18 = vmul.f32 %v11617_v53, %v372_v30  ;;  %v381_v56 = vld [vmem:[%s9913_s28 + $0x650] sm:$0xff]  ;;  %16101 = vst [vmem:[#allocation136_spill] sm:$0xff] %v12282_v36  ;;  %v400_v30 = vld [vmem:[%s9913_s28 + $0x6e8] sm:$0xff] }
 0x199   : > { %3848 = vmatmul.mubr.f32.gmra.mrb[32].mxu1 %v12205_v33  ;;  %2538 = vmatprep.mubr.f32.mxu0 %v12210_v55  ;;  %16097 = vst [vmem:[#allocation132_spill] sm:$0xff] %v12258_v45  ;;  %v12277_v57 = vmul.f32 %v11617_v53, %v381_v56  ;;  %v12289_v17 = vmul.f32 %v11617_v53, %v390_v40 }
 0x19a   : > { %3853 = vmatprep.mubr.f32.mxu1 %v12210_v55  ;;  %16093 = vst [vmem:[#allocation128_spill] sm:$0xff] %v12234_v47  ;;  %16098 = vst [vmem:[#allocation133_spill] sm:$0xff] %v12265_v18  ;;  %v12294_v56 = vmul.f32 %v11609_v9, %v400_v30  ;;  %v408_v30 = vld [vmem:[%s9913_s28 + $0x728] sm:$0xff] }
 0x19b   : > { %16100 = vst [vmem:[#allocation135_spill] sm:$0xff] %v12277_v57  ;;  %16102 = vst [vmem:[#allocation137_spill] sm:$0xff] %v12289_v17 }
 0x19c   : > { %2539 = vmatmul.mubr.f32.gmra.mrb[34].mxu0 %v12217_v63  ;;  %16103 = vst [vmem:[#allocation138_spill] sm:$0xff] %v12294_v56 }
 0x19d   : > { %3854 = vmatmul.mubr.f32.gmra.mrb[34].mxu1 %v12217_v63  ;;  %2544 = vmatprep.mubr.f32.mxu0 %v12222_v61 }
 0x19e   : > { %3859 = vmatprep.mubr.f32.mxu1 %v12222_v61 }
 0x1a0   : > { %2545 = vmatmul.mubr.f32.gmra.mrb[36].mxu0 %v12229_v37 }
 0x1a1   : > { %3860 = vmatmul.mubr.f32.gmra.mrb[36].mxu1 %v12229_v37  ;;  %2550 = vmatprep.mubr.f32.mxu0 %v12234_v47 }
 0x1a2   : > { %3865 = vmatprep.mubr.f32.mxu1 %v12234_v47 }
 0x1a4   : > { %2551 = vmatmul.mubr.f32.gmra.mrb[38].mxu0 %v12241_v24 }
 0x1a5   : > { %3866 = vmatmul.mubr.f32.gmra.mrb[38].mxu1 %v12241_v24  ;;  %2556 = vmatprep.mubr.f32.mxu0 %v12246_v8  ;;  %v1735_v24 = vld [vmem:[%s15467_s2 + $0x1c88] sm:$0xff] }
 0x1a6   : > { %3871 = vmatprep.mubr.f32.mxu1 %v12246_v8  ;;  %v194_v8 = vld [vmem:[%s9913_s28 + $0x78] sm:$0xff] }
 0x1a8   : > { %2557 = vmatmul.mubr.f32.gmra.mrb[40].mxu0 %v12253_v27 }
 0x1a9   : > { %3872 = vmatmul.mubr.f32.gmra.mrb[40].mxu1 %v12253_v27  ;;  %2562 = vmatprep.mubr.f32.mxu0 %v12258_v45 }
 0x1aa   : > { %3877 = vmatprep.mubr.f32.mxu1 %v12258_v45 }
 0x1ac   : > { %2563 = vmatmul.mubr.f32.gmra.mrb[42].mxu0 %v12265_v18 }
 0x1ad   : > { %3878 = vmatmul.mubr.f32.gmra.mrb[42].mxu1 %v12265_v18  ;;  %2568 = vmatprep.mubr.f32.mxu0 %v12270_v29  ;;  %v409_v18 = vld [vmem:[%s9913_s28 + $0x730] sm:$0xff] }
 0x1ae   : > { %3883 = vmatprep.mubr.f32.mxu1 %v12270_v29  ;;  %v12301_v29 = vmul.f32 %v11617_v53, %v399_v3  ;;  %v12306_v40 = vmul.f32 %v11609_v9, %v409_v18  ;;  %v417_v18 = vld [vmem:[%s9913_s28 + $0x770] sm:$0xff] }
 0x1b0   : > { %2569 = vmatmul.mubr.f32.gmra.mrb[44].mxu0 %v12277_v57  ;;  %16104 = vst [vmem:[#allocation139_spill] sm:$0xff] %v12301_v29  ;;  %16105 = vst [vmem:[#allocation140_spill] sm:$0xff] %v12306_v40 }
 0x1b1   : > { %3884 = vmatmul.mubr.f32.gmra.mrb[44].mxu1 %v12277_v57  ;;  %2574 = vmatprep.mubr.f32.mxu0 %v12282_v36  ;;  %v418_v57 = vld [vmem:[%s9913_s28 + $0x778] sm:$0xff] }
 0x1b2   : > { %3889 = vmatprep.mubr.f32.mxu1 %v12282_v36  ;;  %v12313_v36 = vmul.f32 %v11617_v53, %v408_v30  ;;  %v12318_v3 = vmul.f32 %v11609_v9, %v418_v57  ;;  %v426_v57 = vld [vmem:[%s9913_s28 + $0x7b8] sm:$0xff] }
 0x1b4   : > { %2575 = vmatmul.mubr.f32.gmra.mrb[46].mxu0 %v12289_v17  ;;  %16106 = vst [vmem:[#allocation141_spill] sm:$0xff] %v12313_v36  ;;  %16107 = vst [vmem:[#allocation142_spill] sm:$0xff] %v12318_v3 }
 0x1b5   : > { %3890 = vmatmul.mubr.f32.gmra.mrb[46].mxu1 %v12289_v17  ;;  %2580 = vmatprep.mubr.f32.mxu0 %v12294_v56  ;;  %v427_v17 = vld [vmem:[%s9913_s28 + $0x7c0] sm:$0xff] }
 0x1b6   : > { %3895 = vmatprep.mubr.f32.mxu1 %v12294_v56  ;;  %v12325_v56 = vmul.f32 %v11617_v53, %v417_v18  ;;  %v12330_v30 = vmul.f32 %v11609_v9, %v427_v17  ;;  %v435_v17 = vld [vmem:[%s9913_s28 + $0x800] sm:$0xff] }
 0x1b8   : > { %2581 = vmatmul.mubr.f32.gmra.mrb[48].mxu0 %v12301_v29  ;;  %16108 = vst [vmem:[#allocation143_spill] sm:$0xff] %v12325_v56  ;;  %16109 = vst [vmem:[#allocation144_spill] sm:$0xff] %v12330_v30 }
 0x1b9   : > { %3896 = vmatmul.mubr.f32.gmra.mrb[48].mxu1 %v12301_v29  ;;  %2586 = vmatprep.mubr.f32.mxu0 %v12306_v40  ;;  %v436_v29 = vld [vmem:[%s9913_s28 + $0x808] sm:$0xff] }
 0x1ba   : > { %3901 = vmatprep.mubr.f32.mxu1 %v12306_v40  ;;  %v12337_v40 = vmul.f32 %v11617_v53, %v426_v57  ;;  %v12342_v18 = vmul.f32 %v11609_v9, %v436_v29  ;;  %v444_v29 = vld [vmem:[%s9913_s28 + $0x848] sm:$0xff] }
 0x1bc   : > { %2587 = vmatmul.mubr.f32.gmra.mrb[50].mxu0 %v12313_v36  ;;  %16110 = vst [vmem:[#allocation145_spill] sm:$0xff] %v12337_v40  ;;  %16111 = vst [vmem:[#allocation146_spill] sm:$0xff] %v12342_v18 }
 0x1bd   : > { %3902 = vmatmul.mubr.f32.gmra.mrb[50].mxu1 %v12313_v36  ;;  %2592 = vmatprep.mubr.f32.mxu0 %v12318_v3  ;;  %v445_v36 = vld [vmem:[%s9913_s28 + $0x850] sm:$0xff] }
 0x1be   : > { %3907 = vmatprep.mubr.f32.mxu1 %v12318_v3  ;;  %v12349_v3 = vmul.f32 %v11617_v53, %v435_v17  ;;  %v12354_v57 = vmul.f32 %v11609_v9, %v445_v36  ;;  %v453_v36 = vld [vmem:[%s9913_s28 + $0x890] sm:$0xff] }
 0x1c0   : > { %2593 = vmatmul.mubr.f32.gmra.mrb[52].mxu0 %v12325_v56  ;;  %16112 = vst [vmem:[#allocation147_spill] sm:$0xff] %v12349_v3  ;;  %16113 = vst [vmem:[#allocation148_spill] sm:$0xff] %v12354_v57 }
 0x1c1   : > { %3908 = vmatmul.mubr.f32.gmra.mrb[52].mxu1 %v12325_v56  ;;  %2598 = vmatprep.mubr.f32.mxu0 %v12330_v30  ;;  %v454_v56 = vld [vmem:[%s9913_s28 + $0x898] sm:$0xff] }
 0x1c2   : > { %3913 = vmatprep.mubr.f32.mxu1 %v12330_v30  ;;  %v12361_v30 = vmul.f32 %v11617_v53, %v444_v29  ;;  %v12366_v17 = vmul.f32 %v11609_v9, %v454_v56  ;;  %v462_v56 = vld [vmem:[%s9913_s28 + $0x8d8] sm:$0xff] }
 0x1c3   : > { %v12386_v45 = vmul.f32 %v11617_v53, %v462_v56  ;;  %v186_v56 = vld [vmem:[%s9913_s28 + $0x38] sm:$0xff] }
 0x1c4   : > { %2599 = vmatmul.mubr.f32.gmra.mrb[54].mxu0 %v12337_v40  ;;  %16114 = vst [vmem:[#allocation149_spill] sm:$0xff] %v12361_v30  ;;  %16115 = vst [vmem:[#allocation150_spill] sm:$0xff] %v12366_v17 }
 0x1c5   : > { %3914 = vmatmul.mubr.f32.gmra.mrb[54].mxu1 %v12337_v40  ;;  %2604 = vmatprep.mubr.f32.mxu0 %v12342_v18  ;;  %v463_v40 = vld [vmem:[%s9913_s28 + $0x8e0] sm:$0xff]  ;;  %16118 = vst [vmem:[#allocation153_spill] sm:$0xff] %v12386_v45 }
 0x1c6   : > { %3919 = vmatprep.mubr.f32.mxu1 %v12342_v18  ;;  %v12373_v18 = vmul.f32 %v11617_v53, %v453_v36  ;;  %v12378_v29 = vmul.f32 %v11609_v9, %v463_v40  ;;  %v506_v36 = vsub.s32 6, %v9881_v60 }
 0x1c8   : > { %2605 = vmatmul.mubr.f32.gmra.mrb[56].mxu0 %v12349_v3  ;;  %16116 = vst [vmem:[#allocation151_spill] sm:$0xff] %v12373_v18  ;;  %16117 = vst [vmem:[#allocation152_spill] sm:$0xff] %v12378_v29 }
 0x1c9   : > { %3920 = vmatmul.mubr.f32.gmra.mrb[56].mxu1 %v12349_v3  ;;  %2610 = vmatprep.mubr.f32.mxu0 %v12354_v57  ;;  %v510_v3 = vsub.s32 7, %v9881_v60 }
 0x1ca   : > { %3925 = vmatprep.mubr.f32.mxu1 %v12354_v57  ;;  %v472_v57 = vld [vmem:[%s9913_s28 + $0x928] sm:$0xff] }
 0x1cb   : > { %v12392_v40 = vmul.f32 %v11609_v9, %v472_v57  ;;  %v1718_v57 = vld [vmem:[%s15467_s2 + $0x1c00] sm:$0xff] }
 0x1cc   : > { %2611 = vmatmul.mubr.f32.gmra.mrb[58].mxu0 %v12361_v30 }
 0x1cd   : > { %3926 = vmatmul.mubr.f32.gmra.mrb[58].mxu1 %v12361_v30  ;;  %2616 = vmatprep.mubr.f32.mxu0 %v12366_v17  ;;  %16119 = vst [vmem:[#allocation154_spill] sm:$0xff] %v12392_v40  ;;  %v471_v30 = vld [vmem:[%s9913_s28 + $0x920] sm:$0xff] }
 0x1ce   : > { %3931 = vmatprep.mubr.f32.mxu1 %v12366_v17  ;;  %v9578_v17 = vld [vmem:[%s15465_s0] sm:$0xff]  ;;  %v12404_v60 = vmul.f32 %v11617_v53, %v471_v30  ;;  %v1725_v53 = vld [vmem:[%s15467_s2 + $0x1c38] sm:$0xff]  ;;  %v1720_v30 = vld [vmem:[%s15467_s2 + $0x1c10] sm:$0xff] }
 0x1cf   : > { %v12398_v27 = vrot.slane %v9578_v17, %v510_v3  ;;  %v185_v3 = vld [vmem:[%s9913_s28 + $0x30] sm:$0xff] }
 0x1d0   : > { %2617 = vmatmul.mubr.f32.gmra.mrb[60].mxu0 %v12373_v18  ;;  %16120 = vst [vmem:[#allocation155_spill] sm:$0xff] %v12404_v60 }
 0x1d1   : > { %3932 = vmatmul.mubr.f32.gmra.mrb[60].mxu1 %v12373_v18  ;;  %2622 = vmatprep.mubr.f32.mxu0 %v12378_v29  ;;  %v12406_v18 = vrot.slane %v9578_v17, %v506_v36  ;;  %v12411_v9 = vmul.f32 %v12398_v27, %v186_v56  ;;  %v1727_v17 = vld [vmem:[%s15467_s2 + $0x1c48] sm:$0xff]  ;;  %v195_v36 = vld [vmem:[%s9913_s28 + $0x80] sm:$0xff] }
 0x1d2   : > { %3937 = vmatprep.mubr.f32.mxu1 %v12378_v29  ;;  %v7775_v29 = vpack.c.bf16 %v1725_v53, %v1718_v57  ;;  %v8039_v47 = vpack.c.bf16 %v1727_v17, %v1720_v30  ;;  %v12449_v37 = vmul.f32 %v12398_v27, %v195_v36  ;;  %v1732_v57 = vld [vmem:[%s15467_s2 + $0x1c70] sm:$0xff]  ;;  %v1739_v53 = vld [vmem:[%s15467_s2 + $0x1ca8] sm:$0xff]  ;;  %v1734_v17 = vld [vmem:[%s15467_s2 + $0x1c80] sm:$0xff] }
 0x1d3   : > { %16121 = vst [vmem:[#allocation156_spill] sm:$0xff] %v12411_v9  ;;  %v12430_v56 = vmul.f32 %v12406_v18, %v185_v3  ;;  %v1742_v3 = vld [vmem:[%s15467_s2 + $0x1cc0] sm:$0xff]  ;;  %v12460_v63 = vmul.f32 %v12406_v18, %v194_v8  ;;  %v7779_v8 = vpack.c.bf16 %v1739_v53, %v1732_v57  ;;  %v222_v57 = vld [vmem:[%s9913_s28 + $0x158] sm:$0xff] }
 0x1d4   : > { %2623 = vmatmul.mubr.f32.gmra.mrb[62].mxu0 %v12386_v45  ;;  %16123 = vst [vmem:[#allocation158_spill] sm:$0xff] %v12449_v37  ;;  %v8041_v30 = vpack.c.bf16 %v1742_v3, %v1735_v24  ;;  %v203_v36 = vld [vmem:[%s9913_s28 + $0xc0] sm:$0xff]  ;;  %v213_v24 = vld [vmem:[%s9913_s28 + $0x110] sm:$0xff] }
 0x1d5   : > { %3938 = vmatmul.mubr.f32.gmra.mrb[62].mxu1 %v12386_v45  ;;  %2628 = vmatprep.mubr.f32.mxu0 %v12392_v40  ;;  %16122 = vst [vmem:[#allocation157_spill] sm:$0xff] %v12430_v56  ;;  %v1740_v45 = vld [vmem:[%s15467_s2 + $0x1cb0] sm:$0xff]  ;;  %16124 = vst [vmem:[#allocation159_spill] sm:$0xff] %v12460_v63 }
 0x1d6   : > { %3943 = vmatprep.mubr.f32.mxu1 %v12392_v40  ;;  %v1733_v40 = vld [vmem:[%s15467_s2 + $0x1c78] sm:$0xff] }
 0x1d7   : > { %v7777_v61 = vpack.c.bf16 %v1740_v45, %v1733_v40  ;;  %v1741_v45 = vld [vmem:[%s15467_s2 + $0x1cb8] sm:$0xff] }
 0x1d8   : > { %2629 = vmatmul.mubr.f32.gmra.mrb[64].mxu0 %v12404_v60  ;;  %v8043_v3 = vpack.c.bf16 %v1741_v45, %v1734_v17  ;;  %v12501_v17 = vmul.f32 %v12398_v27, %v222_v57  ;;  %v221_v45 = vld [vmem:[%s9913_s28 + $0x150] sm:$0xff] }
 0x1d9   : > { %3944 = vmatmul.mubr.f32.gmra.mrb[64].mxu1 %v12404_v60  ;;  %2699 = vmatprep.mubr.f32.mxu0 %v12411_v9  ;;  %v204_v60 = vld [vmem:[%s9913_s28 + $0xc8] sm:$0xff] }
 0x1da   : > { %4014 = vmatprep.mubr.f32.mxu1 %v12411_v9  ;;  %v12470_v40 = vmul.f32 %v12398_v27, %v204_v60  ;;  %v834_v60 = vld [vmem:[%s15467_s2 + $0x60] sm:$0xff]  ;;  %16129 = vst [vmem:[#allocation164_spill] sm:$0xff] %v12501_v17 }
 0x1db   : > { %v870_v9 = vld [vmem:[%s15467_s2 + $0x180] sm:$0xff] }
 0x1dc   : > { %2700 = vmatmul.mubr.f32.vlgmr.msra.gmra.mrb[0].mxu0 %v12430_v56  ;;  %16125 = vst [vmem:[#allocation160_spill] sm:$0xff] %v12470_v40 }
 0x1dd   : > { %4015 = vmatmul.mubr.f32.vlgmr.msra.gmra.mrb[0].mxu1 %v12430_v56  ;;  %7776 = vmatpush1.bf16.msra.mxu0 %v7775_v29  ;;  %v12478_v56 = vmul.f32 %v12406_v18, %v203_v36  ;;  %v212_v29 = vld [vmem:[%s9913_s28 + $0x108] sm:$0xff]  ;;  %v231_v36 = vld [vmem:[%s9913_s28 + $0x1a0] sm:$0xff] }
 0x1de   : > { %8040 = vmatpush1.bf16.msra.mxu1 %v8039_v47  ;;  %2705 = vmatprep.mubr.f32.mxu0 %v12449_v37  ;;  %v12483_v47 = vmul.f32 %v12398_v27, %v213_v24  ;;  %v15779_v24 = vmov 0.0|0.0  }
 0x1df   : > { %4020 = vmatprep.mubr.f32.mxu1 %v12449_v37  ;;  %7778 = vmatprep.subr.bf16.mxu0 %v7777_v61  ;;  %16126 = vst [vmem:[#allocation161_spill] sm:$0xff] %v12478_v56  ;;  %v827_v61 = vld [vmem:[%s15467_s2 + $0x28] sm:$0xff]  ;;  %v868_v37 = vld [vmem:[%s15467_s2 + $0x170] sm:$0xff] }
 0x1e0   : > { %2706 = vmatmul.mubr.f32.gmra.mrb[2].mxu0 %v12460_v63  ;;  %8042 = vmatprep.subr.bf16.mxu1 %v8041_v30  ;;  %16127 = vst [vmem:[#allocation162_spill] sm:$0xff] %v12483_v47  ;;  %v8045_v53 = vpack.c.bf16 %v834_v60, %v827_v61  ;;  %v12496_v30 = vmul.f32 %v12406_v18, %v212_v29  ;;  %v230_v29 = vld [vmem:[%s9913_s28 + $0x198] sm:$0xff]  ;;  %v240_v61 = vld [vmem:[%s9913_s28 + $0x1e8] sm:$0xff] }
 0x1e1   : > { %4021 = vmatmul.mubr.f32.gmra.mrb[2].mxu1 %v12460_v63  ;;  %2711 = vmatprep.mubr.f32.mxu0 %v12470_v40  ;;  %v12521_v60 = vmul.f32 %v12406_v18, %v230_v29  ;;  %v12526_v57 = vmul.f32 %v12398_v27, %v240_v61  ;;  %v248_v61 = vld [vmem:[%s9913_s28 + $0x228] sm:$0xff]  ;;  %v854_v63 = vld [vmem:[%s15467_s2 + $0x100] sm:$0xff] }
 0x1e2   : > { %4026 = vmatprep.mubr.f32.mxu1 %v12470_v40  ;;  %7780 = vmatpush1.bf16.msra.mxu0 %v7779_v8  ;;  %16128 = vst [vmem:[#allocation163_spill] sm:$0xff] %v12496_v30  ;;  %v12509_v8 = vmul.f32 %v12406_v18, %v221_v45  ;;  %v249_v45 = vld [vmem:[%s9913_s28 + $0x230] sm:$0xff] }
 0x1e3   : > { %8044 = vmatpush1.bf16.msra.mxu1 %v8043_v3  ;;  %8046 = vmatprep.subr.bf16.mxu0 %v8045_v53  ;;  %v12514_v3 = vmul.f32 %v12398_v27, %v231_v36  ;;  %16132 = vst [vmem:[#allocation167_spill] sm:$0xff] %v12521_v60  ;;  %16133 = vst [vmem:[#allocation168_spill] sm:$0xff] %v12526_v57  ;;  %v239_v53 = vld [vmem:[%s9913_s28 + $0x1e0] sm:$0xff]  ;;  %v12538_v29 = vmul.f32 %v12398_v27, %v249_v45  ;;  %v257_v45 = vld [vmem:[%s9913_s28 + $0x270] sm:$0xff] }
 0x1e4   : > { %2712 = vmatmul.mubr.f32.gmra.mrb[4].mxu0 %v12478_v56  ;;  %8309 = vmatprep.subr.bf16.mxu1 %v15779_v24  ;;  %16130 = vst [vmem:[#allocation165_spill] sm:$0xff] %v12509_v8  ;;  %v12533_v36 = vmul.f32 %v12406_v18, %v239_v53  ;;  %v258_v24 = vld [vmem:[%s9913_s28 + $0x278] sm:$0xff] }
 0x1e5   : > { %4027 = vmatmul.mubr.f32.gmra.mrb[4].mxu1 %v12478_v56  ;;  %2717 = vmatprep.mubr.f32.mxu0 %v12483_v47  ;;  %16131 = vst [vmem:[#allocation166_spill] sm:$0xff] %v12514_v3  ;;  %16135 = vst [vmem:[#allocation170_spill] sm:$0xff] %v12538_v29  ;;  %v12550_v53 = vmul.f32 %v12398_v27, %v258_v24  ;;  %v266_v24 = vld [vmem:[%s9913_s28 + $0x2b8] sm:$0xff]  ;;  %v847_v56 = vld [vmem:[%s15467_s2 + $0xc8] sm:$0xff] }
 0x1e6   : > { %4032 = vmatprep.mubr.f32.mxu1 %v12483_v47  ;;  %16134 = vst [vmem:[#allocation169_spill] sm:$0xff] %v12533_v36  ;;  %v840_v47 = vld [vmem:[%s15467_s2 + $0x90] sm:$0xff] }
 0x1e7   : > { %16137 = vst [vmem:[#allocation172_spill] sm:$0xff] %v12550_v53 }
 0x1e8   : > { %2718 = vmatmul.mubr.f32.gmra.mrb[6].mxu0 %v12496_v30 }
 0x1e9   : > { %4033 = vmatmul.mubr.f32.gmra.mrb[6].mxu1 %v12496_v30  ;;  %2723 = vmatprep.mubr.f32.mxu0 %v12501_v17 }
 0x1ea   : > { %4038 = vmatprep.mubr.f32.mxu1 %v12501_v17  ;;  %v196_v17 = vld [vmem:[%s9913_s28 + $0x88] sm:$0xff] }
 0x1ec   : > { %2724 = vmatmul.mubr.f32.gmra.mrb[8].mxu0 %v12509_v8 }
 0x1ed   : > { %4039 = vmatmul.mubr.f32.gmra.mrb[8].mxu1 %v12509_v8  ;;  %2729 = vmatprep.mubr.f32.mxu0 %v12514_v3 }
 0x1ee   : > { %4044 = vmatprep.mubr.f32.mxu1 %v12514_v3  ;;  %v12545_v3 = vmul.f32 %v12406_v18, %v248_v61 }
 0x1f0   : > { %2730 = vmatmul.mubr.f32.gmra.mrb[10].mxu0 %v12521_v60  ;;  %16136 = vst [vmem:[#allocation171_spill] sm:$0xff] %v12545_v3 }
 0x1f1   : > { %4045 = vmatmul.mubr.f32.gmra.mrb[10].mxu1 %v12521_v60  ;;  %2735 = vmatprep.mubr.f32.mxu0 %v12526_v57  ;;  %v267_v60 = vld [vmem:[%s9913_s28 + $0x2c0] sm:$0xff] }
 0x1f2   : > { %4050 = vmatprep.mubr.f32.mxu1 %v12526_v57  ;;  %v12557_v57 = vmul.f32 %v12406_v18, %v257_v45  ;;  %v12562_v61 = vmul.f32 %v12398_v27, %v267_v60  ;;  %v275_v60 = vld [vmem:[%s9913_s28 + $0x300] sm:$0xff] }
 0x1f4   : > { %2736 = vmatmul.mubr.f32.gmra.mrb[12].mxu0 %v12533_v36  ;;  %16138 = vst [vmem:[#allocation173_spill] sm:$0xff] %v12557_v57  ;;  %16139 = vst [vmem:[#allocation174_spill] sm:$0xff] %v12562_v61 }
 0x1f5   : > { %4051 = vmatmul.mubr.f32.gmra.mrb[12].mxu1 %v12533_v36  ;;  %2741 = vmatprep.mubr.f32.mxu0 %v12538_v29  ;;  %v276_v36 = vld [vmem:[%s9913_s28 + $0x308] sm:$0xff] }
 0x1f6   : > { %4056 = vmatprep.mubr.f32.mxu1 %v12538_v29  ;;  %v12569_v29 = vmul.f32 %v12406_v18, %v266_v24  ;;  %v12574_v45 = vmul.f32 %v12398_v27, %v276_v36  ;;  %v284_v36 = vld [vmem:[%s9913_s28 + $0x348] sm:$0xff] }
 0x1f8   : > { %2742 = vmatmul.mubr.f32.gmra.mrb[14].mxu0 %v12545_v3  ;;  %16140 = vst [vmem:[#allocation175_spill] sm:$0xff] %v12569_v29  ;;  %16141 = vst [vmem:[#allocation176_spill] sm:$0xff] %v12574_v45 }
 0x1f9   : > { %4057 = vmatmul.mubr.f32.gmra.mrb[14].mxu1 %v12545_v3  ;;  %2747 = vmatprep.mubr.f32.mxu0 %v12550_v53  ;;  %v285_v3 = vld [vmem:[%s9913_s28 + $0x350] sm:$0xff] }
 0x1fa   : > { %4062 = vmatprep.mubr.f32.mxu1 %v12550_v53  ;;  %v12581_v53 = vmul.f32 %v12406_v18, %v275_v60  ;;  %v12586_v24 = vmul.f32 %v12398_v27, %v285_v3  ;;  %v293_v3 = vld [vmem:[%s9913_s28 + $0x390] sm:$0xff] }
 0x1fc   : > { %2748 = vmatmul.mubr.f32.gmra.mrb[16].mxu0 %v12557_v57  ;;  %16142 = vst [vmem:[#allocation177_spill] sm:$0xff] %v12581_v53  ;;  %16143 = vst [vmem:[#allocation178_spill] sm:$0xff] %v12586_v24 }
 0x1fd   : > { %4063 = vmatmul.mubr.f32.gmra.mrb[16].mxu1 %v12557_v57  ;;  %2753 = vmatprep.mubr.f32.mxu0 %v12562_v61  ;;  %v294_v57 = vld [vmem:[%s9913_s28 + $0x398] sm:$0xff] }
 0x1fe   : > { %4068 = vmatprep.mubr.f32.mxu1 %v12562_v61  ;;  %v12593_v61 = vmul.f32 %v12406_v18, %v284_v36  ;;  %v12598_v60 = vmul.f32 %v12398_v27, %v294_v57  ;;  %v302_v57 = vld [vmem:[%s9913_s28 + $0x3d8] sm:$0xff] }
 0x200   : > { %2754 = vmatmul.mubr.f32.gmra.mrb[18].mxu0 %v12569_v29  ;;  %16144 = vst [vmem:[#allocation179_spill] sm:$0xff] %v12593_v61  ;;  %16145 = vst [vmem:[#allocation180_spill] sm:$0xff] %v12598_v60 }
 0x201   : > { %4069 = vmatmul.mubr.f32.gmra.mrb[18].mxu1 %v12569_v29  ;;  %2759 = vmatprep.mubr.f32.mxu0 %v12574_v45  ;;  %v303_v29 = vld [vmem:[%s9913_s28 + $0x3e0] sm:$0xff] }
 0x202   : > { %4074 = vmatprep.mubr.f32.mxu1 %v12574_v45  ;;  %v12605_v45 = vmul.f32 %v12406_v18, %v293_v3  ;;  %v12610_v36 = vmul.f32 %v12398_v27, %v303_v29  ;;  %v311_v29 = vld [vmem:[%s9913_s28 + $0x420] sm:$0xff] }
 0x204   : > { %2760 = vmatmul.mubr.f32.gmra.mrb[20].mxu0 %v12581_v53  ;;  %16146 = vst [vmem:[#allocation181_spill] sm:$0xff] %v12605_v45  ;;  %16147 = vst [vmem:[#allocation182_spill] sm:$0xff] %v12610_v36 }
 0x205   : > { %4075 = vmatmul.mubr.f32.gmra.mrb[20].mxu1 %v12581_v53  ;;  %2765 = vmatprep.mubr.f32.mxu0 %v12586_v24  ;;  %v312_v53 = vld [vmem:[%s9913_s28 + $0x428] sm:$0xff] }
 0x206   : > { %4080 = vmatprep.mubr.f32.mxu1 %v12586_v24  ;;  %v12617_v24 = vmul.f32 %v12406_v18, %v302_v57  ;;  %v12622_v3 = vmul.f32 %v12398_v27, %v312_v53  ;;  %v320_v53 = vld [vmem:[%s9913_s28 + $0x468] sm:$0xff] }
 0x208   : > { %2766 = vmatmul.mubr.f32.gmra.mrb[22].mxu0 %v12593_v61  ;;  %16148 = vst [vmem:[#allocation183_spill] sm:$0xff] %v12617_v24  ;;  %16149 = vst [vmem:[#allocation184_spill] sm:$0xff] %v12622_v3 }
 0x209   : > { %4081 = vmatmul.mubr.f32.gmra.mrb[22].mxu1 %v12593_v61  ;;  %2771 = vmatprep.mubr.f32.mxu0 %v12598_v60  ;;  %v321_v61 = vld [vmem:[%s9913_s28 + $0x470] sm:$0xff] }
 0x20a   : > { %4086 = vmatprep.mubr.f32.mxu1 %v12598_v60  ;;  %v12629_v60 = vmul.f32 %v12406_v18, %v311_v29  ;;  %v12634_v57 = vmul.f32 %v12398_v27, %v321_v61  ;;  %v329_v61 = vld [vmem:[%s9913_s28 + $0x4b0] sm:$0xff] }
 0x20c   : > { %2772 = vmatmul.mubr.f32.gmra.mrb[24].mxu0 %v12605_v45  ;;  %16150 = vst [vmem:[#allocation185_spill] sm:$0xff] %v12629_v60  ;;  %16151 = vst [vmem:[#allocation186_spill] sm:$0xff] %v12634_v57 }
 0x20d   : > { %4087 = vmatmul.mubr.f32.gmra.mrb[24].mxu1 %v12605_v45  ;;  %2777 = vmatprep.mubr.f32.mxu0 %v12610_v36  ;;  %v330_v45 = vld [vmem:[%s9913_s28 + $0x4b8] sm:$0xff] }
 0x20e   : > { %4092 = vmatprep.mubr.f32.mxu1 %v12610_v36  ;;  %v12641_v36 = vmul.f32 %v12406_v18, %v320_v53  ;;  %v12646_v29 = vmul.f32 %v12398_v27, %v330_v45  ;;  %v338_v45 = vld [vmem:[%s9913_s28 + $0x4f8] sm:$0xff] }
 0x210   : > { %2778 = vmatmul.mubr.f32.gmra.mrb[26].mxu0 %v12617_v24  ;;  %16152 = vst [vmem:[#allocation187_spill] sm:$0xff] %v12641_v36  ;;  %16153 = vst [vmem:[#allocation188_spill] sm:$0xff] %v12646_v29 }
 0x211   : > { %4093 = vmatmul.mubr.f32.gmra.mrb[26].mxu1 %v12617_v24  ;;  %2783 = vmatprep.mubr.f32.mxu0 %v12622_v3  ;;  %v339_v24 = vld [vmem:[%s9913_s28 + $0x500] sm:$0xff] }
 0x212   : > { %4098 = vmatprep.mubr.f32.mxu1 %v12622_v3  ;;  %v12653_v3 = vmul.f32 %v12406_v18, %v329_v61  ;;  %v12658_v53 = vmul.f32 %v12398_v27, %v339_v24  ;;  %v347_v24 = vld [vmem:[%s9913_s28 + $0x540] sm:$0xff] }
 0x214   : > { %2784 = vmatmul.mubr.f32.gmra.mrb[28].mxu0 %v12629_v60  ;;  %16154 = vst [vmem:[#allocation189_spill] sm:$0xff] %v12653_v3  ;;  %16155 = vst [vmem:[#allocation190_spill] sm:$0xff] %v12658_v53 }
 0x215   : > { %4099 = vmatmul.mubr.f32.gmra.mrb[28].mxu1 %v12629_v60  ;;  %2789 = vmatprep.mubr.f32.mxu0 %v12634_v57  ;;  %v348_v60 = vld [vmem:[%s9913_s28 + $0x548] sm:$0xff] }
 0x216   : > { %4104 = vmatprep.mubr.f32.mxu1 %v12634_v57  ;;  %v12665_v57 = vmul.f32 %v12406_v18, %v338_v45  ;;  %v12670_v61 = vmul.f32 %v12398_v27, %v348_v60  ;;  %v356_v60 = vld [vmem:[%s9913_s28 + $0x588] sm:$0xff] }
 0x218   : > { %2790 = vmatmul.mubr.f32.gmra.mrb[30].mxu0 %v12641_v36  ;;  %16156 = vst [vmem:[#allocation191_spill] sm:$0xff] %v12665_v57  ;;  %16157 = vst [vmem:[#allocation192_spill] sm:$0xff] %v12670_v61 }
 0x219   : > { %4105 = vmatmul.mubr.f32.gmra.mrb[30].mxu1 %v12641_v36  ;;  %2795 = vmatprep.mubr.f32.mxu0 %v12646_v29  ;;  %v357_v36 = vld [vmem:[%s9913_s28 + $0x590] sm:$0xff] }
 0x21a   : > { %4110 = vmatprep.mubr.f32.mxu1 %v12646_v29  ;;  %v12677_v29 = vmul.f32 %v12406_v18, %v347_v24  ;;  %v12682_v45 = vmul.f32 %v12398_v27, %v357_v36  ;;  %v365_v36 = vld [vmem:[%s9913_s28 + $0x5d0] sm:$0xff] }
 0x21c   : > { %2796 = vmatmul.mubr.f32.gmra.mrb[32].mxu0 %v12653_v3  ;;  %16158 = vst [vmem:[#allocation193_spill] sm:$0xff] %v12677_v29  ;;  %16159 = vst [vmem:[#allocation194_spill] sm:$0xff] %v12682_v45 }
 0x21d   : > { %4111 = vmatmul.mubr.f32.gmra.mrb[32].mxu1 %v12653_v3  ;;  %2801 = vmatprep.mubr.f32.mxu0 %v12658_v53  ;;  %v366_v3 = vld [vmem:[%s9913_s28 + $0x5d8] sm:$0xff] }
 0x21e   : > { %4116 = vmatprep.mubr.f32.mxu1 %v12658_v53  ;;  %v12689_v53 = vmul.f32 %v12406_v18, %v356_v60  ;;  %v12694_v24 = vmul.f32 %v12398_v27, %v366_v3  ;;  %v374_v3 = vld [vmem:[%s9913_s28 + $0x618] sm:$0xff] }
 0x220   : > { %2802 = vmatmul.mubr.f32.gmra.mrb[34].mxu0 %v12665_v57  ;;  %16160 = vst [vmem:[#allocation195_spill] sm:$0xff] %v12689_v53  ;;  %16161 = vst [vmem:[#allocation196_spill] sm:$0xff] %v12694_v24 }
 0x221   : > { %4117 = vmatmul.mubr.f32.gmra.mrb[34].mxu1 %v12665_v57  ;;  %2807 = vmatprep.mubr.f32.mxu0 %v12670_v61  ;;  %v375_v57 = vld [vmem:[%s9913_s28 + $0x620] sm:$0xff] }
 0x222   : > { %4122 = vmatprep.mubr.f32.mxu1 %v12670_v61  ;;  %v12701_v61 = vmul.f32 %v12406_v18, %v365_v36  ;;  %v12706_v60 = vmul.f32 %v12398_v27, %v375_v57  ;;  %v383_v57 = vld [vmem:[%s9913_s28 + $0x660] sm:$0xff] }
 0x224   : > { %2808 = vmatmul.mubr.f32.gmra.mrb[36].mxu0 %v12677_v29  ;;  %16162 = vst [vmem:[#allocation197_spill] sm:$0xff] %v12701_v61  ;;  %16163 = vst [vmem:[#allocation198_spill] sm:$0xff] %v12706_v60 }
 0x225   : > { %4123 = vmatmul.mubr.f32.gmra.mrb[36].mxu1 %v12677_v29  ;;  %2813 = vmatprep.mubr.f32.mxu0 %v12682_v45  ;;  %v384_v29 = vld [vmem:[%s9913_s28 + $0x668] sm:$0xff] }
 0x226   : > { %4128 = vmatprep.mubr.f32.mxu1 %v12682_v45  ;;  %v12713_v45 = vmul.f32 %v12406_v18, %v374_v3  ;;  %v12718_v36 = vmul.f32 %v12398_v27, %v384_v29  ;;  %v392_v29 = vld [vmem:[%s9913_s28 + $0x6a8] sm:$0xff] }
 0x228   : > { %2814 = vmatmul.mubr.f32.gmra.mrb[38].mxu0 %v12689_v53  ;;  %16164 = vst [vmem:[#allocation199_spill] sm:$0xff] %v12713_v45  ;;  %16165 = vst [vmem:[#allocation200_spill] sm:$0xff] %v12718_v36 }
 0x229   : > { %4129 = vmatmul.mubr.f32.gmra.mrb[38].mxu1 %v12689_v53  ;;  %2819 = vmatprep.mubr.f32.mxu0 %v12694_v24  ;;  %v393_v53 = vld [vmem:[%s9913_s28 + $0x6b0] sm:$0xff] }
 0x22a   : > { %4134 = vmatprep.mubr.f32.mxu1 %v12694_v24  ;;  %v12725_v24 = vmul.f32 %v12406_v18, %v383_v57  ;;  %v12730_v3 = vmul.f32 %v12398_v27, %v393_v53  ;;  %v401_v53 = vld [vmem:[%s9913_s28 + $0x6f0] sm:$0xff] }
 0x22c   : > { %2820 = vmatmul.mubr.f32.gmra.mrb[40].mxu0 %v12701_v61  ;;  %16166 = vst [vmem:[#allocation201_spill] sm:$0xff] %v12725_v24  ;;  %16167 = vst [vmem:[#allocation202_spill] sm:$0xff] %v12730_v3 }
 0x22d   : > { %4135 = vmatmul.mubr.f32.gmra.mrb[40].mxu1 %v12701_v61  ;;  %2825 = vmatprep.mubr.f32.mxu0 %v12706_v60  ;;  %v402_v61 = vld [vmem:[%s9913_s28 + $0x6f8] sm:$0xff] }
 0x22e   : > { %4140 = vmatprep.mubr.f32.mxu1 %v12706_v60  ;;  %v12737_v60 = vmul.f32 %v12406_v18, %v392_v29  ;;  %v12742_v57 = vmul.f32 %v12398_v27, %v402_v61  ;;  %v410_v61 = vld [vmem:[%s9913_s28 + $0x738] sm:$0xff] }
 0x230   : > { %2826 = vmatmul.mubr.f32.gmra.mrb[42].mxu0 %v12713_v45  ;;  %16168 = vst [vmem:[#allocation203_spill] sm:$0xff] %v12737_v60  ;;  %16169 = vst [vmem:[#allocation204_spill] sm:$0xff] %v12742_v57 }
 0x231   : > { %4141 = vmatmul.mubr.f32.gmra.mrb[42].mxu1 %v12713_v45  ;;  %2831 = vmatprep.mubr.f32.mxu0 %v12718_v36  ;;  %v411_v45 = vld [vmem:[%s9913_s28 + $0x740] sm:$0xff] }
 0x232   : > { %4146 = vmatprep.mubr.f32.mxu1 %v12718_v36  ;;  %v12749_v36 = vmul.f32 %v12406_v18, %v401_v53  ;;  %v12754_v29 = vmul.f32 %v12398_v27, %v411_v45  ;;  %v419_v45 = vld [vmem:[%s9913_s28 + $0x780] sm:$0xff] }
 0x234   : > { %2832 = vmatmul.mubr.f32.gmra.mrb[44].mxu0 %v12725_v24  ;;  %16170 = vst [vmem:[#allocation205_spill] sm:$0xff] %v12749_v36  ;;  %16171 = vst [vmem:[#allocation206_spill] sm:$0xff] %v12754_v29 }
 0x235   : > { %4147 = vmatmul.mubr.f32.gmra.mrb[44].mxu1 %v12725_v24  ;;  %2837 = vmatprep.mubr.f32.mxu0 %v12730_v3  ;;  %v420_v24 = vld [vmem:[%s9913_s28 + $0x788] sm:$0xff] }
 0x236   : > { %4152 = vmatprep.mubr.f32.mxu1 %v12730_v3  ;;  %v12761_v3 = vmul.f32 %v12406_v18, %v410_v61  ;;  %v12766_v53 = vmul.f32 %v12398_v27, %v420_v24  ;;  %v428_v24 = vld [vmem:[%s9913_s28 + $0x7c8] sm:$0xff] }
 0x238   : > { %2838 = vmatmul.mubr.f32.gmra.mrb[46].mxu0 %v12737_v60  ;;  %16172 = vst [vmem:[#allocation207_spill] sm:$0xff] %v12761_v3  ;;  %16173 = vst [vmem:[#allocation208_spill] sm:$0xff] %v12766_v53 }
 0x239   : > { %4153 = vmatmul.mubr.f32.gmra.mrb[46].mxu1 %v12737_v60  ;;  %2843 = vmatprep.mubr.f32.mxu0 %v12742_v57  ;;  %v429_v60 = vld [vmem:[%s9913_s28 + $0x7d0] sm:$0xff] }
 0x23a   : > { %4158 = vmatprep.mubr.f32.mxu1 %v12742_v57  ;;  %v12773_v57 = vmul.f32 %v12406_v18, %v419_v45  ;;  %v12778_v61 = vmul.f32 %v12398_v27, %v429_v60  ;;  %v437_v60 = vld [vmem:[%s9913_s28 + $0x810] sm:$0xff] }
 0x23c   : > { %2844 = vmatmul.mubr.f32.gmra.mrb[48].mxu0 %v12749_v36  ;;  %16174 = vst [vmem:[#allocation209_spill] sm:$0xff] %v12773_v57  ;;  %16175 = vst [vmem:[#allocation210_spill] sm:$0xff] %v12778_v61 }
 0x23d   : > { %4159 = vmatmul.mubr.f32.gmra.mrb[48].mxu1 %v12749_v36  ;;  %2849 = vmatprep.mubr.f32.mxu0 %v12754_v29  ;;  %v438_v36 = vld [vmem:[%s9913_s28 + $0x818] sm:$0xff] }
 0x23e   : > { %4164 = vmatprep.mubr.f32.mxu1 %v12754_v29  ;;  %v12785_v29 = vmul.f32 %v12406_v18, %v428_v24  ;;  %v12790_v45 = vmul.f32 %v12398_v27, %v438_v36  ;;  %v446_v36 = vld [vmem:[%s9913_s28 + $0x858] sm:$0xff] }
 0x240   : > { %2850 = vmatmul.mubr.f32.gmra.mrb[50].mxu0 %v12761_v3  ;;  %16176 = vst [vmem:[#allocation211_spill] sm:$0xff] %v12785_v29  ;;  %16177 = vst [vmem:[#allocation212_spill] sm:$0xff] %v12790_v45 }
 0x241   : > { %4165 = vmatmul.mubr.f32.gmra.mrb[50].mxu1 %v12761_v3  ;;  %2855 = vmatprep.mubr.f32.mxu0 %v12766_v53  ;;  %v447_v3 = vld [vmem:[%s9913_s28 + $0x860] sm:$0xff] }
 0x242   : > { %4170 = vmatprep.mubr.f32.mxu1 %v12766_v53  ;;  %v12797_v53 = vmul.f32 %v12406_v18, %v437_v60  ;;  %v12802_v24 = vmul.f32 %v12398_v27, %v447_v3  ;;  %v455_v3 = vld [vmem:[%s9913_s28 + $0x8a0] sm:$0xff] }
 0x244   : > { %2856 = vmatmul.mubr.f32.gmra.mrb[52].mxu0 %v12773_v57  ;;  %16178 = vst [vmem:[#allocation213_spill] sm:$0xff] %v12797_v53  ;;  %16179 = vst [vmem:[#allocation214_spill] sm:$0xff] %v12802_v24 }
 0x245   : > { %4171 = vmatmul.mubr.f32.gmra.mrb[52].mxu1 %v12773_v57  ;;  %2861 = vmatprep.mubr.f32.mxu0 %v12778_v61  ;;  %v456_v57 = vld [vmem:[%s9913_s28 + $0x8a8] sm:$0xff] }
 0x246   : > { %4176 = vmatprep.mubr.f32.mxu1 %v12778_v61  ;;  %v12809_v61 = vmul.f32 %v12406_v18, %v446_v36  ;;  %v12814_v60 = vmul.f32 %v12398_v27, %v456_v57  ;;  %v464_v57 = vld [vmem:[%s9913_s28 + $0x8e8] sm:$0xff] }
 0x248   : > { %2862 = vmatmul.mubr.f32.gmra.mrb[54].mxu0 %v12785_v29  ;;  %16180 = vst [vmem:[#allocation215_spill] sm:$0xff] %v12809_v61  ;;  %16181 = vst [vmem:[#allocation216_spill] sm:$0xff] %v12814_v60 }
 0x249   : > { %4177 = vmatmul.mubr.f32.gmra.mrb[54].mxu1 %v12785_v29  ;;  %2867 = vmatprep.mubr.f32.mxu0 %v12790_v45  ;;  %v465_v29 = vld [vmem:[%s9913_s28 + $0x8f0] sm:$0xff] }
 0x24a   : > { %4182 = vmatprep.mubr.f32.mxu1 %v12790_v45  ;;  %v12821_v45 = vmul.f32 %v12406_v18, %v455_v3  ;;  %v12826_v36 = vmul.f32 %v12398_v27, %v465_v29 }
 0x24c   : > { %2868 = vmatmul.mubr.f32.gmra.mrb[56].mxu0 %v12797_v53  ;;  %16182 = vst [vmem:[#allocation217_spill] sm:$0xff] %v12821_v45  ;;  %16183 = vst [vmem:[#allocation218_spill] sm:$0xff] %v12826_v36 }
 0x24d   : > { %4183 = vmatmul.mubr.f32.gmra.mrb[56].mxu1 %v12797_v53  ;;  %2873 = vmatprep.mubr.f32.mxu0 %v12802_v24  ;;  %v474_v53 = vld [vmem:[%s9913_s28 + $0x938] sm:$0xff] }
 0x24e   : > { %4188 = vmatprep.mubr.f32.mxu1 %v12802_v24  ;;  %v12833_v24 = vmul.f32 %v12406_v18, %v464_v57  ;;  %v12838_v3 = vmul.f32 %v12398_v27, %v474_v53  ;;  %v187_v57 = vld [vmem:[%s9913_s28 + $0x40] sm:$0xff]  ;;  %v828_v53 = vld [vmem:[%s15467_s2 + $0x30] sm:$0xff] }
 0x24f   : > { %v826_v27 = vld [vmem:[%s15467_s2 + $0x20] sm:$0xff] }
 0x250   : > { %2874 = vmatmul.mubr.f32.gmra.mrb[58].mxu0 %v12809_v61  ;;  %16184 = vst [vmem:[#allocation219_spill] sm:$0xff] %v12833_v24  ;;  %16185 = vst [vmem:[#allocation220_spill] sm:$0xff] %v12838_v3 }
 0x251   : > { %4189 = vmatmul.mubr.f32.gmra.mrb[58].mxu1 %v12809_v61  ;;  %2879 = vmatprep.mubr.f32.mxu0 %v12814_v60  ;;  %v473_v61 = vld [vmem:[%s9913_s28 + $0x930] sm:$0xff] }
 0x252   : > { %4194 = vmatprep.mubr.f32.mxu1 %v12814_v60  ;;  %v12844_v29 = vmul.f32 %v12406_v18, %v473_v61  ;;  %v833_v18 = vld [vmem:[%s15467_s2 + $0x58] sm:$0xff]  ;;  %v835_v61 = vld [vmem:[%s15467_s2 + $0x68] sm:$0xff]  ;;  %v15949_v60 = vmov 0.0  }
 0x253   : > { %v8047_v8 = vpack.c.bf16 %v833_v18, %v826_v27  ;;  %v862_v18 = vld [vmem:[%s15467_s2 + $0x140] sm:$0xff] }
 0x254   : > { %2880 = vmatmul.mubr.f32.gmra.mrb[60].mxu0 %v12821_v45  ;;  %16186 = vst [vmem:[#allocation221_spill] sm:$0xff] %v12844_v29 }
 0x255   : > { %4195 = vmatmul.mubr.f32.gmra.mrb[60].mxu1 %v12821_v45  ;;  %2885 = vmatprep.mubr.f32.mxu0 %v12826_v36  ;;  %v12852_v45 = vld [vmem:[%s15465_s0 + $0x8] ss:$0 sm:$0xff] }
 0x256   : > { %4200 = vmatprep.mubr.f32.mxu1 %v12826_v36  ;;  %v848_v36 = vld [vmem:[%s15467_s2 + $0xd0] sm:$0xff]  ;;  %v12893_v27 = vmul.f32 %v12852_v45, %v196_v17  ;;  %v8051_v17 = vpack.c.bf16 %v847_v56, %v840_v47  ;;  %v16190_v47 = vmov 0.0|0.0  }
 0x258   : > { %2886 = vmatmul.mubr.f32.gmra.mrb[62].mxu0 %v12833_v24  ;;  %16188 = vst [vmem:[#allocation223_spill] sm:$0xff] %v12893_v27 }
 0x259   : > { %4201 = vmatmul.mubr.f32.gmra.mrb[62].mxu1 %v12833_v24  ;;  %2891 = vmatprep.mubr.f32.mxu0 %v12838_v3  ;;  %v841_v24 = vld [vmem:[%s15467_s2 + $0x98] sm:$0xff] }
 0x25a   : > { %4206 = vmatprep.mubr.f32.mxu1 %v12838_v3  ;;  %v12869_v3 = vmul.f32 %v12852_v45, %v187_v57  ;;  %v8310_v57 = vpack.c.bf16 %v835_v61, %v828_v53  ;;  %v8049_v30 = vpack.c.bf16 %v848_v36, %v841_v24  ;;  %v849_v24 = vld [vmem:[%s15467_s2 + $0xd8] sm:$0xff]  ;;  %v855_v36 = vld [vmem:[%s15467_s2 + $0x108] sm:$0xff]  ;;  %v205_v53 = vld [vmem:[%s9913_s28 + $0xd0] sm:$0xff] }
 0x25b   : > { %v8053_v40 = vpack.c.bf16 %v862_v18, %v855_v36  ;;  %v12921_v56 = vmul.f32 %v12852_v45, %v205_v53 }
 0x25c   : > { %2892 = vmatmul.mubr.f32.gmra.mrb[64].mxu0 %v12844_v29  ;;  %16187 = vst [vmem:[#allocation222_spill] sm:$0xff] %v12869_v3 }
 0x25d   : > { %4207 = vmatmul.mubr.f32.gmra.mrb[64].mxu1 %v12844_v29  ;;  %2962 = vmatprep.mubr.f32.mxu0 %v15949_v60  ;;  %v842_v29 = vld [vmem:[%s15467_s2 + $0xa0] sm:$0xff]  ;;  %16189 = vst [vmem:[#allocation224_spill] sm:$0xff] %v12921_v56 }
 0x25e   : > { %4277 = vmatprep.mubr.f32.mxu1 %v15949_v60  ;;  %v8313_v61 = vpack.c.bf16 %v849_v24, %v842_v29  ;;  %v869_v29 = vld [vmem:[%s15467_s2 + $0x178] sm:$0xff] }
 0x25f   : > { %v214_v24 = vld [vmem:[%s9913_s28 + $0x118] sm:$0xff] }
 0x260   : > { %7239 = vmatmul.mubr.msk.f32.vlgmr.msra.gmra.mrb[0].mxu0 %vm1746_vm0, %v12869_v3 }
 0x261   : > { %7272 = vmatmul.mubr.msk.f32.vlgmr.msra.gmra.mrb[0].mxu1 %vm1746_vm0, %v12869_v3  ;;  %8048 = vmatpush1.bf16.msra.mxu0 %v8047_v8  ;;  %v861_v3 = vld [vmem:[%s15467_s2 + $0x138] sm:$0xff]  ;;  %v856_v8 = vld [vmem:[%s15467_s2 + $0x110] sm:$0xff] }
 0x262   : > { %8311 = vmatpush1.bf16.msra.mxu1 %v8310_v57  ;;  %2968 = vmatprep.mubr.f32.mxu0 %v15949_v60  ;;  %v876_v57 = vld [vmem:[%s15467_s2 + $0x1b0] sm:$0xff]  ;;  %v8055_v36 = vpack.c.bf16 %v861_v3, %v854_v63  ;;  %v12950_v63 = vmul.f32 %v12852_v45, %v214_v24  ;;  %v883_v3 = vld [vmem:[%s15467_s2 + $0x1e8] sm:$0xff]  ;;  %v889_v24 = vld [vmem:[%s15467_s2 + $0x218] sm:$0xff] }
 0x263   : > { %4283 = vmatprep.mubr.f32.mxu1 %v15949_v60  ;;  %8050 = vmatprep.subr.bf16.mxu0 %v8049_v30  ;;  %v863_v30 = vld [vmem:[%s15467_s2 + $0x148] sm:$0xff]  ;;  %v8057_v53 = vpack.c.bf16 %v876_v57, %v869_v29  ;;  %v882_v57 = vld [vmem:[%s15467_s2 + $0x1e0] sm:$0xff] }
 0x264   : > { %7240 = vmatmul.mubr.msk.f32.gmra.mrb[2].mxu0 %vm1746_vm0, %v12893_v27  ;;  %8312 = vmatprep.subr.bf16.mxu1 %v16190_v47  ;;  %v8316_v18 = vpack.c.bf16 %v863_v30, %v856_v8  ;;  %16191 = vst [vmem:[#allocation225_spill] sm:$0xff] %v12950_v63 }
 0x265   : > { %7273 = vmatmul.mubr.msk.f32.gmra.mrb[2].mxu1 %vm1746_vm0, %v12893_v27  ;;  %2974 = vmatprep.mubr.f32.mxu0 %v15949_v60  ;;  %v875_v27 = vld [vmem:[%s15467_s2 + $0x1a8] sm:$0xff] }
 0x266   : > { %4289 = vmatprep.mubr.f32.mxu1 %v15949_v60  ;;  %8052 = vmatpush1.bf16.msra.mxu0 %v8051_v17  ;;  %v890_v17 = vld [vmem:[%s15467_s2 + $0x220] sm:$0xff]  ;;  %v8059_v8 = vpack.c.bf16 %v875_v27, %v868_v37  ;;  %v897_v27 = vld [vmem:[%s15467_s2 + $0x258] sm:$0xff] }
 0x267   : > { %8314 = vmatpush1.bf16.msra.mxu1 %v8313_v61  ;;  %8054 = vmatprep.subr.bf16.mxu0 %v8053_v40  ;;  %v877_v40 = vld [vmem:[%s15467_s2 + $0x1b8] sm:$0xff]  ;;  %v223_v61 = vld [vmem:[%s9913_s28 + $0x160] sm:$0xff]  ;;  %v8061_v29 = vpack.c.bf16 %v890_v17, %v883_v3  ;;  %v896_v17 = vld [vmem:[%s15467_s2 + $0x250] sm:$0xff] }
 0x268   : > { %7241 = vmatmul.mubr.msk.f32.gmra.mrb[4].mxu0 %vm1746_vm0, %v12921_v56  ;;  %8315 = vmatprep.subr.bf16.mxu1 %v16190_v47  ;;  %v8319_v30 = vpack.c.bf16 %v877_v40, %v870_v9  ;;  %v12979_v37 = vmul.f32 %v12852_v45, %v223_v61  ;;  %v891_v9 = vld [vmem:[%s15467_s2 + $0x228] sm:$0xff] }
 0x269   : > { %7274 = vmatmul.mubr.msk.f32.gmra.mrb[4].mxu1 %vm1746_vm0, %v12921_v56  ;;  %2980 = vmatprep.mubr.f32.mxu0 %v15949_v60  ;;  %v884_v56 = vld [vmem:[%s15467_s2 + $0x1f0] sm:$0xff]  ;;  %v903_v61 = vld [vmem:[%s15467_s2 + $0x288] sm:$0xff] }
 0x26a   : > { %4295 = vmatprep.mubr.f32.mxu1 %v15949_v60  ;;  %8056 = vmatpush1.bf16.msra.mxu0 %v8055_v36  ;;  %16192 = vst [vmem:[#allocation226_spill] sm:$0xff] %v12979_v37  ;;  %v904_v36 = vld [vmem:[%s15467_s2 + $0x290] sm:$0xff]  ;;  %v8322_v40 = vpack.c.bf16 %v891_v9, %v884_v56  ;;  %v905_v56 = vld [vmem:[%s15467_s2 + $0x298] sm:$0xff] }
 0x26b   : > { %8317 = vmatpush1.bf16.msra.mxu1 %v8316_v18  ;;  %8058 = vmatprep.subr.bf16.mxu0 %v8057_v53  ;;  %v232_v18 = vld [vmem:[%s9913_s28 + $0x1a8] sm:$0xff]  ;;  %v8063_v53 = vpack.c.bf16 %v889_v24, %v882_v57  ;;  %v8065_v3 = vpack.c.bf16 %v904_v36, %v897_v27  ;;  %v241_v57 = vld [vmem:[%s9913_s28 + $0x1f0] sm:$0xff]  ;;  %v8067_v24 = vpack.c.bf16 %v903_v61, %v896_v17  ;;  %v910_v36 = vld [vmem:[%s15467_s2 + $0x2c0] sm:$0xff] }
 0x26c   : > { %7242 = vmatmul.mubr.msk.f32.gmra.mrb[6].mxu0 %vm1746_vm0, %v12950_v63  ;;  %8318 = vmatprep.subr.bf16.mxu1 %v16190_v47  ;;  %v250_v17 = vld [vmem:[%s9913_s28 + $0x238] sm:$0xff] }
 0x26d   : > { %7275 = vmatmul.mubr.msk.f32.gmra.mrb[6].mxu1 %vm1746_vm0, %v12950_v63  ;;  %2986 = vmatprep.mubr.f32.mxu0 %v15949_v60  ;;  %v898_v63 = vld [vmem:[%s15467_s2 + $0x260] sm:$0xff] }
 0x26e   : > { %4301 = vmatprep.mubr.f32.mxu1 %v15949_v60  ;;  %8060 = vmatpush1.bf16.msra.mxu0 %v8059_v8  ;;  %v13008_v8 = vmul.f32 %v12852_v45, %v232_v18  ;;  %v8325_v9 = vpack.c.bf16 %v905_v56, %v898_v63  ;;  %v917_v18 = vld [vmem:[%s15467_s2 + $0x2f8] sm:$0xff]  ;;  %v919_v63 = vld [vmem:[%s15467_s2 + $0x308] sm:$0xff] }
 0x26f   : > { %8320 = vmatpush1.bf16.msra.mxu1 %v8319_v30  ;;  %8062 = vmatprep.subr.bf16.mxu0 %v8061_v29  ;;  %v911_v30 = vld [vmem:[%s15467_s2 + $0x2c8] sm:$0xff]  ;;  %v918_v29 = vld [vmem:[%s15467_s2 + $0x300] sm:$0xff]  ;;  %v8071_v61 = vpack.c.bf16 %v917_v18, %v910_v36 }
 0x270   : > { %7243 = vmatmul.mubr.msk.f32.gmra.mrb[8].mxu0 %vm1746_vm0, %v12979_v37  ;;  %16193 = vst [vmem:[#allocation227_spill] sm:$0xff] %v13008_v8  ;;  %8321 = vmatprep.subr.bf16.mxu1 %v16190_v47  ;;  %v8069_v27 = vpack.c.bf16 %v918_v29, %v911_v30  ;;  %v924_v29 = vld [vmem:[%s15467_s2 + $0x330] sm:$0xff]  ;;  %v259_v36 = vld [vmem:[%s9913_s28 + $0x280] sm:$0xff] }
 0x271   : > { %7276 = vmatmul.mubr.msk.f32.gmra.mrb[8].mxu1 %vm1746_vm0, %v12979_v37  ;;  %2992 = vmatprep.mubr.f32.mxu0 %v15949_v60  ;;  %v912_v37 = vld [vmem:[%s15467_s2 + $0x2d0] sm:$0xff] }
 0x272   : > { %4307 = vmatprep.mubr.f32.mxu1 %v15949_v60  ;;  %8064 = vmatpush1.bf16.msra.mxu0 %v8063_v53  ;;  %v13037_v53 = vmul.f32 %v12852_v45, %v241_v57  ;;  %v8328_v56 = vpack.c.bf16 %v919_v63, %v912_v37  ;;  %v931_v57 = vld [vmem:[%s15467_s2 + $0x368] sm:$0xff]  ;;  %v933_v37 = vld [vmem:[%s15467_s2 + $0x378] sm:$0xff] }
 0x273   : > { %8323 = vmatpush1.bf16.msra.mxu1 %v8322_v40  ;;  %8066 = vmatprep.subr.bf16.mxu0 %v8065_v3  ;;  %v925_v40 = vld [vmem:[%s15467_s2 + $0x338] sm:$0xff]  ;;  %v932_v3 = vld [vmem:[%s15467_s2 + $0x370] sm:$0xff]  ;;  %v8075_v18 = vpack.c.bf16 %v931_v57, %v924_v29  ;;  %v268_v29 = vld [vmem:[%s9913_s28 + $0x2c8] sm:$0xff] }
 0x274   : > { %7244 = vmatmul.mubr.msk.f32.gmra.mrb[10].mxu0 %vm1746_vm0, %v13008_v8  ;;  %16194 = vst [vmem:[#allocation228_spill] sm:$0xff] %v13037_v53  ;;  %8324 = vmatprep.subr.bf16.mxu1 %v16190_v47  ;;  %v8073_v30 = vpack.c.bf16 %v932_v3, %v925_v40  ;;  %v938_v3 = vld [vmem:[%s15467_s2 + $0x3a0] sm:$0xff] }
 0x275   : > { %7277 = vmatmul.mubr.msk.f32.gmra.mrb[10].mxu1 %vm1746_vm0, %v13008_v8  ;;  %2998 = vmatprep.mubr.f32.mxu0 %v15949_v60  ;;  %v926_v8 = vld [vmem:[%s15467_s2 + $0x340] sm:$0xff] }
 0x276   : > { %4313 = vmatprep.mubr.f32.mxu1 %v15949_v60  ;;  %8068 = vmatpush1.bf16.msra.mxu0 %v8067_v24  ;;  %v13066_v24 = vmul.f32 %v12852_v45, %v250_v17  ;;  %v8331_v63 = vpack.c.bf16 %v933_v37, %v926_v8  ;;  %v945_v17 = vld [vmem:[%s15467_s2 + $0x3d8] sm:$0xff]  ;;  %v947_v8 = vld [vmem:[%s15467_s2 + $0x3e8] sm:$0xff] }
 0x277   : > { %8326 = vmatpush1.bf16.msra.mxu1 %v8325_v9  ;;  %8070 = vmatprep.subr.bf16.mxu0 %v8069_v27  ;;  %v939_v9 = vld [vmem:[%s15467_s2 + $0x3a8] sm:$0xff]  ;;  %v946_v27 = vld [vmem:[%s15467_s2 + $0x3e0] sm:$0xff]  ;;  %v8079_v57 = vpack.c.bf16 %v945_v17, %v938_v3  ;;  %v277_v3 = vld [vmem:[%s9913_s28 + $0x310] sm:$0xff] }
 0x278   : > { %7245 = vmatmul.mubr.msk.f32.gmra.mrb[12].mxu0 %vm1746_vm0, %v13037_v53  ;;  %16195 = vst [vmem:[#allocation229_spill] sm:$0xff] %v13066_v24  ;;  %8327 = vmatprep.subr.bf16.mxu1 %v16190_v47  ;;  %v8077_v40 = vpack.c.bf16 %v946_v27, %v939_v9  ;;  %v952_v27 = vld [vmem:[%s15467_s2 + $0x410] sm:$0xff] }
 0x279   : > { %7278 = vmatmul.mubr.msk.f32.gmra.mrb[12].mxu1 %vm1746_vm0, %v13037_v53  ;;  %3004 = vmatprep.mubr.f32.mxu0 %v15949_v60  ;;  %v940_v53 = vld [vmem:[%s15467_s2 + $0x3b0] sm:$0xff] }
 0x27a   : > { %4319 = vmatprep.mubr.f32.mxu1 %v15949_v60  ;;  %8072 = vmatpush1.bf16.msra.mxu0 %v8071_v61  ;;  %v13095_v61 = vmul.f32 %v12852_v45, %v259_v36  ;;  %v8334_v37 = vpack.c.bf16 %v947_v8, %v940_v53  ;;  %v959_v36 = vld [vmem:[%s15467_s2 + $0x448] sm:$0xff]  ;;  %v961_v53 = vld [vmem:[%s15467_s2 + $0x458] sm:$0xff] }
 0x27b   : > { %8329 = vmatpush1.bf16.msra.mxu1 %v8328_v56  ;;  %8074 = vmatprep.subr.bf16.mxu0 %v8073_v30  ;;  %v953_v56 = vld [vmem:[%s15467_s2 + $0x418] sm:$0xff]  ;;  %v960_v30 = vld [vmem:[%s15467_s2 + $0x450] sm:$0xff]  ;;  %v8083_v17 = vpack.c.bf16 %v959_v36, %v952_v27 }
 0x27c   : > { %7246 = vmatmul.mubr.msk.f32.gmra.mrb[14].mxu0 %vm1746_vm0, %v13066_v24  ;;  %16196 = vst [vmem:[#allocation230_spill] sm:$0xff] %v13095_v61  ;;  %8330 = vmatprep.subr.bf16.mxu1 %v16190_v47  ;;  %v8081_v9 = vpack.c.bf16 %v960_v30, %v953_v56  ;;  %v966_v30 = vld [vmem:[%s15467_s2 + $0x480] sm:$0xff]  ;;  %v286_v27 = vld [vmem:[%s9913_s28 + $0x358] sm:$0xff] }
 0x27d   : > { %7279 = vmatmul.mubr.msk.f32.gmra.mrb[14].mxu1 %vm1746_vm0, %v13066_v24  ;;  %3010 = vmatprep.mubr.f32.mxu0 %v15949_v60  ;;  %v954_v24 = vld [vmem:[%s15467_s2 + $0x420] sm:$0xff] }
 0x27e   : > { %4325 = vmatprep.mubr.f32.mxu1 %v15949_v60  ;;  %8076 = vmatpush1.bf16.msra.mxu0 %v8075_v18  ;;  %v13124_v18 = vmul.f32 %v12852_v45, %v268_v29  ;;  %v8337_v8 = vpack.c.bf16 %v961_v53, %v954_v24  ;;  %v973_v29 = vld [vmem:[%s15467_s2 + $0x4b8] sm:$0xff]  ;;  %v975_v24 = vld [vmem:[%s15467_s2 + $0x4c8] sm:$0xff] }
 0x27f   : > { %8332 = vmatpush1.bf16.msra.mxu1 %v8331_v63  ;;  %8078 = vmatprep.subr.bf16.mxu0 %v8077_v40  ;;  %v967_v63 = vld [vmem:[%s15467_s2 + $0x488] sm:$0xff]  ;;  %v974_v40 = vld [vmem:[%s15467_s2 + $0x4c0] sm:$0xff]  ;;  %v8087_v36 = vpack.c.bf16 %v973_v29, %v966_v30 }
 0x280   : > { %7247 = vmatmul.mubr.msk.f32.gmra.mrb[16].mxu0 %vm1746_vm0, %v13095_v61  ;;  %16197 = vst [vmem:[#allocation231_spill] sm:$0xff] %v13124_v18  ;;  %8333 = vmatprep.subr.bf16.mxu1 %v16190_v47  ;;  %v8085_v56 = vpack.c.bf16 %v974_v40, %v967_v63  ;;  %v980_v40 = vld [vmem:[%s15467_s2 + $0x4f0] sm:$0xff]  ;;  %v295_v30 = vld [vmem:[%s9913_s28 + $0x3a0] sm:$0xff] }
 0x281   : > { %7280 = vmatmul.mubr.msk.f32.gmra.mrb[16].mxu1 %vm1746_vm0, %v13095_v61  ;;  %3016 = vmatprep.mubr.f32.mxu0 %v15949_v60  ;;  %v968_v61 = vld [vmem:[%s15467_s2 + $0x490] sm:$0xff] }
 0x282   : > { %4331 = vmatprep.mubr.f32.mxu1 %v15949_v60  ;;  %8080 = vmatpush1.bf16.msra.mxu0 %v8079_v57  ;;  %v13153_v57 = vmul.f32 %v12852_v45, %v277_v3  ;;  %v8340_v53 = vpack.c.bf16 %v975_v24, %v968_v61  ;;  %v987_v3 = vld [vmem:[%s15467_s2 + $0x528] sm:$0xff]  ;;  %v989_v61 = vld [vmem:[%s15467_s2 + $0x538] sm:$0xff] }
 0x283   : > { %8335 = vmatpush1.bf16.msra.mxu1 %v8334_v37  ;;  %8082 = vmatprep.subr.bf16.mxu0 %v8081_v9  ;;  %v981_v37 = vld [vmem:[%s15467_s2 + $0x4f8] sm:$0xff]  ;;  %v988_v9 = vld [vmem:[%s15467_s2 + $0x530] sm:$0xff]  ;;  %v8091_v29 = vpack.c.bf16 %v987_v3, %v980_v40  ;;  %v304_v40 = vld [vmem:[%s9913_s28 + $0x3e8] sm:$0xff] }
 0x284   : > { %7248 = vmatmul.mubr.msk.f32.gmra.mrb[18].mxu0 %vm1746_vm0, %v13124_v18  ;;  %16198 = vst [vmem:[#allocation232_spill] sm:$0xff] %v13153_v57  ;;  %8336 = vmatprep.subr.bf16.mxu1 %v16190_v47  ;;  %v8089_v63 = vpack.c.bf16 %v988_v9, %v981_v37  ;;  %v994_v9 = vld [vmem:[%s15467_s2 + $0x560] sm:$0xff] }
 0x285   : > { %7281 = vmatmul.mubr.msk.f32.gmra.mrb[18].mxu1 %vm1746_vm0, %v13124_v18  ;;  %3022 = vmatprep.mubr.f32.mxu0 %v15949_v60  ;;  %v982_v18 = vld [vmem:[%s15467_s2 + $0x500] sm:$0xff] }
 0x286   : > { %4337 = vmatprep.mubr.f32.mxu1 %v15949_v60  ;;  %8084 = vmatpush1.bf16.msra.mxu0 %v8083_v17  ;;  %v13182_v17 = vmul.f32 %v12852_v45, %v286_v27  ;;  %v8343_v24 = vpack.c.bf16 %v989_v61, %v982_v18  ;;  %v1001_v27 = vld [vmem:[%s15467_s2 + $0x598] sm:$0xff]  ;;  %v1003_v18 = vld [vmem:[%s15467_s2 + $0x5a8] sm:$0xff] }
 0x287   : > { %8338 = vmatpush1.bf16.msra.mxu1 %v8337_v8  ;;  %8086 = vmatprep.subr.bf16.mxu0 %v8085_v56  ;;  %v995_v8 = vld [vmem:[%s15467_s2 + $0x568] sm:$0xff]  ;;  %v1002_v56 = vld [vmem:[%s15467_s2 + $0x5a0] sm:$0xff]  ;;  %v8095_v3 = vpack.c.bf16 %v1001_v27, %v994_v9  ;;  %v313_v9 = vld [vmem:[%s9913_s28 + $0x430] sm:$0xff] }
 0x288   : > { %7249 = vmatmul.mubr.msk.f32.gmra.mrb[20].mxu0 %vm1746_vm0, %v13153_v57  ;;  %16199 = vst [vmem:[#allocation233_spill] sm:$0xff] %v13182_v17  ;;  %8339 = vmatprep.subr.bf16.mxu1 %v16190_v47  ;;  %v8093_v37 = vpack.c.bf16 %v1002_v56, %v995_v8  ;;  %v1008_v56 = vld [vmem:[%s15467_s2 + $0x5d0] sm:$0xff] }
 0x289   : > { %7282 = vmatmul.mubr.msk.f32.gmra.mrb[20].mxu1 %vm1746_vm0, %v13153_v57  ;;  %3028 = vmatprep.mubr.f32.mxu0 %v15949_v60  ;;  %v996_v57 = vld [vmem:[%s15467_s2 + $0x570] sm:$0xff] }
 0x28a   : > { %4343 = vmatprep.mubr.f32.mxu1 %v15949_v60  ;;  %8088 = vmatpush1.bf16.msra.mxu0 %v8087_v36  ;;  %v13211_v36 = vmul.f32 %v12852_v45, %v295_v30  ;;  %v8346_v61 = vpack.c.bf16 %v1003_v18, %v996_v57  ;;  %v1015_v30 = vld [vmem:[%s15467_s2 + $0x608] sm:$0xff]  ;;  %v1017_v57 = vld [vmem:[%s15467_s2 + $0x618] sm:$0xff] }
 0x28b   : > { %8341 = vmatpush1.bf16.msra.mxu1 %v8340_v53  ;;  %8090 = vmatprep.subr.bf16.mxu0 %v8089_v63  ;;  %v1009_v53 = vld [vmem:[%s15467_s2 + $0x5d8] sm:$0xff]  ;;  %v1016_v63 = vld [vmem:[%s15467_s2 + $0x610] sm:$0xff]  ;;  %v8099_v27 = vpack.c.bf16 %v1015_v30, %v1008_v56 }
 0x28c   : > { %7250 = vmatmul.mubr.msk.f32.gmra.mrb[22].mxu0 %vm1746_vm0, %v13182_v17  ;;  %16200 = vst [vmem:[#allocation234_spill] sm:$0xff] %v13211_v36  ;;  %8342 = vmatprep.subr.bf16.mxu1 %v16190_v47  ;;  %v8097_v8 = vpack.c.bf16 %v1016_v63, %v1009_v53  ;;  %v1022_v63 = vld [vmem:[%s15467_s2 + $0x640] sm:$0xff]  ;;  %v322_v56 = vld [vmem:[%s9913_s28 + $0x478] sm:$0xff] }
 0x28d   : > { %7283 = vmatmul.mubr.msk.f32.gmra.mrb[22].mxu1 %vm1746_vm0, %v13182_v17  ;;  %3034 = vmatprep.mubr.f32.mxu0 %v15949_v60  ;;  %v1010_v17 = vld [vmem:[%s15467_s2 + $0x5e0] sm:$0xff] }
 0x28e   : > { %4349 = vmatprep.mubr.f32.mxu1 %v15949_v60  ;;  %8092 = vmatpush1.bf16.msra.mxu0 %v8091_v29  ;;  %v13240_v29 = vmul.f32 %v12852_v45, %v304_v40  ;;  %v8349_v18 = vpack.c.bf16 %v1017_v57, %v1010_v17  ;;  %v1029_v40 = vld [vmem:[%s15467_s2 + $0x678] sm:$0xff]  ;;  %v1031_v17 = vld [vmem:[%s15467_s2 + $0x688] sm:$0xff] }
 0x28f   : > { %8344 = vmatpush1.bf16.msra.mxu1 %v8343_v24  ;;  %8094 = vmatprep.subr.bf16.mxu0 %v8093_v37  ;;  %v1023_v24 = vld [vmem:[%s15467_s2 + $0x648] sm:$0xff]  ;;  %v1030_v37 = vld [vmem:[%s15467_s2 + $0x680] sm:$0xff]  ;;  %v8103_v30 = vpack.c.bf16 %v1029_v40, %v1022_v63 }
 0x290   : > { %7251 = vmatmul.mubr.msk.f32.gmra.mrb[24].mxu0 %vm1746_vm0, %v13211_v36  ;;  %16201 = vst [vmem:[#allocation235_spill] sm:$0xff] %v13240_v29  ;;  %8345 = vmatprep.subr.bf16.mxu1 %v16190_v47  ;;  %v8101_v53 = vpack.c.bf16 %v1030_v37, %v1023_v24  ;;  %v1036_v37 = vld [vmem:[%s15467_s2 + $0x6b0] sm:$0xff]  ;;  %v331_v63 = vld [vmem:[%s9913_s28 + $0x4c0] sm:$0xff] }
 0x291   : > { %7284 = vmatmul.mubr.msk.f32.gmra.mrb[24].mxu1 %vm1746_vm0, %v13211_v36  ;;  %3040 = vmatprep.mubr.f32.mxu0 %v15949_v60  ;;  %v1024_v36 = vld [vmem:[%s15467_s2 + $0x650] sm:$0xff] }
 0x292   : > { %4355 = vmatprep.mubr.f32.mxu1 %v15949_v60  ;;  %8096 = vmatpush1.bf16.msra.mxu0 %v8095_v3  ;;  %v13269_v3 = vmul.f32 %v12852_v45, %v313_v9  ;;  %v8352_v57 = vpack.c.bf16 %v1031_v17, %v1024_v36  ;;  %v1043_v9 = vld [vmem:[%s15467_s2 + $0x6e8] sm:$0xff]  ;;  %v1045_v36 = vld [vmem:[%s15467_s2 + $0x6f8] sm:$0xff] }
 0x293   : > { %8347 = vmatpush1.bf16.msra.mxu1 %v8346_v61  ;;  %8098 = vmatprep.subr.bf16.mxu0 %v8097_v8  ;;  %v1037_v61 = vld [vmem:[%s15467_s2 + $0x6b8] sm:$0xff]  ;;  %v1044_v8 = vld [vmem:[%s15467_s2 + $0x6f0] sm:$0xff]  ;;  %v8107_v40 = vpack.c.bf16 %v1043_v9, %v1036_v37  ;;  %v367_v9 = vld [vmem:[%s9913_s28 + $0x5e0] sm:$0xff] }
 0x294   : > { %7252 = vmatmul.mubr.msk.f32.gmra.mrb[26].mxu0 %vm1746_vm0, %v13240_v29  ;;  %8348 = vmatprep.subr.bf16.mxu1 %v16190_v47  ;;  %v8105_v24 = vpack.c.bf16 %v1044_v8, %v1037_v61  ;;  %v13318_v8 = vmul.f32 %v12852_v45, %v331_v63  ;;  %v385_v63 = vld [vmem:[%s9913_s28 + $0x670] sm:$0xff] }
 0x295   : > { %7285 = vmatmul.mubr.msk.f32.gmra.mrb[26].mxu1 %vm1746_vm0, %v13240_v29  ;;  %3046 = vmatprep.mubr.f32.mxu0 %v15949_v60  ;;  %v1038_v29 = vld [vmem:[%s15467_s2 + $0x6c0] sm:$0xff] }
 0x296   : > { %4361 = vmatprep.mubr.f32.mxu1 %v15949_v60  ;;  %8100 = vmatpush1.bf16.msra.mxu0 %v8099_v27  ;;  %v13298_v27 = vmul.f32 %v12852_v45, %v322_v56  ;;  %v8355_v17 = vpack.c.bf16 %v1045_v36, %v1038_v29  ;;  %v340_v56 = vld [vmem:[%s9913_s28 + $0x508] sm:$0xff]  ;;  %v13360_v36 = vmul.f32 %v12852_v45, %v367_v9 }
 0x297   : > { %8350 = vmatpush1.bf16.msra.mxu1 %v8349_v18  ;;  %8102 = vmatprep.subr.bf16.mxu0 %v8101_v53  ;;  %v1051_v18 = vld [vmem:[%s15467_s2 + $0x728] sm:$0xff]  ;;  %v1058_v53 = vld [vmem:[%s15467_s2 + $0x760] sm:$0xff]  ;;  %v13329_v29 = vmul.f32 %v12852_v45, %v340_v56 }
 0x298   : > { %7253 = vmatmul.mubr.msk.f32.gmra.mrb[28].mxu0 %vm1746_vm0, %v13269_v3  ;;  %8351 = vmatprep.subr.bf16.mxu1 %v16190_v47  ;;  %v8109_v61 = vpack.c.bf16 %v1058_v53, %v1051_v18  ;;  %16202 = vst [vmem:[#allocation236_spill] sm:$0xff] %v13360_v36  ;;  %v376_v18 = vld [vmem:[%s9913_s28 + $0x628] sm:$0xff]  ;;  %v403_v56 = vld [vmem:[%s9913_s28 + $0x700] sm:$0xff] }
 0x299   : > { %7286 = vmatmul.mubr.msk.f32.gmra.mrb[28].mxu1 %vm1746_vm0, %v13269_v3  ;;  %3052 = vmatprep.mubr.f32.mxu0 %v15949_v60  ;;  %v13370_v53 = vmul.f32 %v12852_v45, %v376_v18  ;;  %v421_v18 = vld [vmem:[%s9913_s28 + $0x790] sm:$0xff] }
 0x29a   : > { %4367 = vmatprep.mubr.f32.mxu1 %v15949_v60  ;;  %8104 = vmatpush1.bf16.msra.mxu0 %v8103_v30  ;;  %v349_v30 = vld [vmem:[%s9913_s28 + $0x550] sm:$0xff] }
 0x29b   : > { %8353 = vmatpush1.bf16.msra.mxu1 %v8352_v57  ;;  %8106 = vmatprep.subr.bf16.mxu0 %v8105_v24  ;;  %v13340_v57 = vmul.f32 %v12852_v45, %v349_v30  ;;  %v358_v24 = vld [vmem:[%s9913_s28 + $0x598] sm:$0xff]  ;;  %16203 = vst [vmem:[#allocation237_spill] sm:$0xff] %v13370_v53  ;;  %v13400_v30 = vmul.f32 %v12852_v45, %v403_v56 }
 0x29c   : > { %7254 = vmatmul.mubr.msk.f32.gmra.mrb[30].mxu0 %vm1746_vm0, %v13298_v27  ;;  %8354 = vmatprep.subr.bf16.mxu1 %v16190_v47  ;;  %v13350_v37 = vmul.f32 %v12852_v45, %v358_v24  ;;  %v412_v24 = vld [vmem:[%s9913_s28 + $0x748] sm:$0xff] }
 0x29d   : > { %7287 = vmatmul.mubr.msk.f32.gmra.mrb[30].mxu1 %vm1746_vm0, %v13298_v27  ;;  %3058 = vmatprep.mubr.f32.mxu0 %v15949_v60  ;;  %16206 = vst [vmem:[#allocation240_spill] sm:$0xff] %v13400_v30  ;;  %v13410_v9 = vmul.f32 %v12852_v45, %v412_v24  ;;  %v439_v24 = vld [vmem:[%s9913_s28 + $0x820] sm:$0xff] }
 0x29e   : > { %4373 = vmatprep.mubr.f32.mxu1 %v15949_v60  ;;  %8108 = vmatpush1.bf16.msra.mxu0 %v8107_v40  ;;  %v13380_v40 = vmul.f32 %v12852_v45, %v385_v63  ;;  %v13420_v63 = vmul.f32 %v12852_v45, %v421_v18  ;;  %v13440_v18 = vmul.f32 %v12852_v45, %v439_v24  ;;  %v457_v24 = vld [vmem:[%s9913_s28 + $0x8b0] sm:$0xff] }
 0x29f   : > { %8356 = vmatpush1.bf16.msra.mxu1 %v8355_v17  ;;  %8110 = vmatprep.subr.bf16.mxu0 %v8109_v61  ;;  %v394_v17 = vld [vmem:[%s9913_s28 + $0x6b8] sm:$0xff]  ;;  %16207 = vst [vmem:[#allocation241_spill] sm:$0xff] %v13410_v9 }
 0x2a0   : > { %7255 = vmatmul.mubr.msk.f32.gmra.mrb[32].mxu0 %vm1746_vm0, %v13318_v8  ;;  %8357 = vmatprep.subr.bf16.mxu1 %v16190_v47  ;;  %16204 = vst [vmem:[#allocation238_spill] sm:$0xff] %v13380_v40  ;;  %v13390_v61 = vmul.f32 %v12852_v45, %v394_v17  ;;  %16208 = vst [vmem:[#allocation242_spill] sm:$0xff] %v13420_v63  ;;  %v430_v17 = vld [vmem:[%s9913_s28 + $0x7d8] sm:$0xff] }
 0x2a1   : > { %7288 = vmatmul.mubr.msk.f32.gmra.mrb[32].mxu1 %vm1746_vm0, %v13318_v8  ;;  %3064 = vmatprep.mubr.f32.mxu0 %v15949_v60  ;;  %v13430_v56 = vmul.f32 %v12852_v45, %v430_v17  ;;  %16210 = vst [vmem:[#allocation244_spill] sm:$0xff] %v13440_v18  ;;  %v448_v17 = vld [vmem:[%s9913_s28 + $0x868] sm:$0xff] }
 0x2a2   : > { %4379 = vmatprep.mubr.f32.mxu1 %v15949_v60  ;;  %16205 = vst [vmem:[#allocation239_spill] sm:$0xff] %v13390_v61 }
 0x2a3   : > { %16209 = vst [vmem:[#allocation243_spill] sm:$0xff] %v13430_v56 }
 0x2a4   : > { %7256 = vmatmul.mubr.msk.f32.gmra.mrb[34].mxu0 %vm1746_vm0, %v13329_v29 }
 0x2a5   : > { %7289 = vmatmul.mubr.msk.f32.gmra.mrb[34].mxu1 %vm1746_vm0, %v13329_v29  ;;  %3070 = vmatprep.mubr.f32.mxu0 %v15949_v60 }
 0x2a6   : > { %4385 = vmatprep.mubr.f32.mxu1 %v15949_v60 }
 0x2a8   : > { %7257 = vmatmul.mubr.msk.f32.gmra.mrb[36].mxu0 %vm1746_vm0, %v13340_v57 }
 0x2a9   : > { %7290 = vmatmul.mubr.msk.f32.gmra.mrb[36].mxu1 %vm1746_vm0, %v13340_v57  ;;  %3076 = vmatprep.mubr.f32.mxu0 %v15949_v60 }
 0x2aa   : > { %4391 = vmatprep.mubr.f32.mxu1 %v15949_v60 }
 0x2ac   : > { %7258 = vmatmul.mubr.msk.f32.gmra.mrb[38].mxu0 %vm1746_vm0, %v13350_v37 }
 0x2ad   : > { %7291 = vmatmul.mubr.msk.f32.gmra.mrb[38].mxu1 %vm1746_vm0, %v13350_v37  ;;  %3082 = vmatprep.mubr.f32.mxu0 %v15949_v60 }
 0x2ae   : > { %4397 = vmatprep.mubr.f32.mxu1 %v15949_v60 }
 0x2b0   : > { %7259 = vmatmul.mubr.msk.f32.gmra.mrb[40].mxu0 %vm1746_vm0, %v13360_v36 }
 0x2b1   : > { %7292 = vmatmul.mubr.msk.f32.gmra.mrb[40].mxu1 %vm1746_vm0, %v13360_v36  ;;  %3088 = vmatprep.mubr.f32.mxu0 %v15949_v60  ;;  %v1066_v36 = vld [vmem:[%s15467_s2 + $0x7a0] sm:$0xff] }
 0x2b2   : > { %4403 = vmatprep.mubr.f32.mxu1 %v15949_v60 }
 0x2b4   : > { %7260 = vmatmul.mubr.msk.f32.gmra.mrb[42].mxu0 %vm1746_vm0, %v13370_v53 }
 0x2b5   : > { %7293 = vmatmul.mubr.msk.f32.gmra.mrb[42].mxu1 %vm1746_vm0, %v13370_v53  ;;  %3094 = vmatprep.mubr.f32.mxu0 %v15949_v60  ;;  %v1071_v53 = vld [vmem:[%s15467_s2 + $0x7c8] sm:$0xff] }
 0x2b6   : > { %4409 = vmatprep.mubr.f32.mxu1 %v15949_v60 }
 0x2b8   : > { %7261 = vmatmul.mubr.msk.f32.gmra.mrb[44].mxu0 %vm1746_vm0, %v13380_v40 }
 0x2b9   : > { %7294 = vmatmul.mubr.msk.f32.gmra.mrb[44].mxu1 %vm1746_vm0, %v13380_v40  ;;  %3100 = vmatprep.mubr.f32.mxu0 %v15949_v60  ;;  %v1064_v40 = vld [vmem:[%s15467_s2 + $0x790] sm:$0xff] }
 0x2ba   : > { %4415 = vmatprep.mubr.f32.mxu1 %v15949_v60 }
 0x2bc   : > { %7262 = vmatmul.mubr.msk.f32.gmra.mrb[46].mxu0 %vm1746_vm0, %v13390_v61 }
 0x2bd   : > { %7295 = vmatmul.mubr.msk.f32.gmra.mrb[46].mxu1 %vm1746_vm0, %v13390_v61  ;;  %3106 = vmatprep.mubr.f32.mxu0 %v15949_v60 }
 0x2be   : > { %4421 = vmatprep.mubr.f32.mxu1 %v15949_v60 }
 0x2c0   : > { %7263 = vmatmul.mubr.msk.f32.gmra.mrb[48].mxu0 %vm1746_vm0, %v13400_v30 }
 0x2c1   : > { %7296 = vmatmul.mubr.msk.f32.gmra.mrb[48].mxu1 %vm1746_vm0, %v13400_v30  ;;  %3112 = vmatprep.mubr.f32.mxu0 %v15949_v60 }
 0x2c2   : > { %4427 = vmatprep.mubr.f32.mxu1 %v15949_v60 }
 0x2c4   : > { %7264 = vmatmul.mubr.msk.f32.gmra.mrb[50].mxu0 %vm1746_vm0, %v13410_v9 }
 0x2c5   : > { %7297 = vmatmul.mubr.msk.f32.gmra.mrb[50].mxu1 %vm1746_vm0, %v13410_v9  ;;  %3118 = vmatprep.mubr.f32.mxu0 %v15949_v60 }
 0x2c6   : > { %4433 = vmatprep.mubr.f32.mxu1 %v15949_v60 }
 0x2c8   : > { %7265 = vmatmul.mubr.msk.f32.gmra.mrb[52].mxu0 %vm1746_vm0, %v13420_v63 }
 0x2c9   : > { %7298 = vmatmul.mubr.msk.f32.gmra.mrb[52].mxu1 %vm1746_vm0, %v13420_v63  ;;  %3124 = vmatprep.mubr.f32.mxu0 %v15949_v60  ;;  %v13450_v63 = vmul.f32 %v12852_v45, %v448_v17  ;;  %v466_v17 = vld [vmem:[%s9913_s28 + $0x8f8] sm:$0xff] }
 0x2ca   : > { %4439 = vmatprep.mubr.f32.mxu1 %v15949_v60 }
 0x2cb   : > { %16211 = vst [vmem:[#allocation245_spill] sm:$0xff] %v13450_v63 }
 0x2cc   : > { %7266 = vmatmul.mubr.msk.f32.gmra.mrb[54].mxu0 %vm1746_vm0, %v13430_v56 }
 0x2cd   : > { %7299 = vmatmul.mubr.msk.f32.gmra.mrb[54].mxu1 %vm1746_vm0, %v13430_v56  ;;  %3130 = vmatprep.mubr.f32.mxu0 %v15949_v60  ;;  %v13460_v56 = vmul.f32 %v12852_v45, %v457_v24  ;;  %v475_v24 = vld [vmem:[%s9913_s28 + $0x940] sm:$0xff] }
 0x2ce   : > { %4445 = vmatprep.mubr.f32.mxu1 %v15949_v60 }
 0x2cf   : > { %16212 = vst [vmem:[#allocation246_spill] sm:$0xff] %v13460_v56 }
 0x2d0   : > { %7267 = vmatmul.mubr.msk.f32.gmra.mrb[56].mxu0 %vm1746_vm0, %v13440_v18 }
 0x2d1   : > { %7300 = vmatmul.mubr.msk.f32.gmra.mrb[56].mxu1 %vm1746_vm0, %v13440_v18  ;;  %3136 = vmatprep.mubr.f32.mxu0 %v15949_v60  ;;  %v13470_v18 = vmul.f32 %v12852_v45, %v466_v17  ;;  %v1050_v17 = vld [vmem:[%s15467_s2 + $0x720] sm:$0xff] }
 0x2d2   : > { %4451 = vmatprep.mubr.f32.mxu1 %v15949_v60 }
 0x2d3   : > { %16213 = vst [vmem:[#allocation247_spill] sm:$0xff] %v13470_v18 }
 0x2d4   : > { %7268 = vmatmul.mubr.msk.f32.gmra.mrb[58].mxu0 %vm1746_vm0, %v13450_v63 }
 0x2d5   : > { %7301 = vmatmul.mubr.msk.f32.gmra.mrb[58].mxu1 %vm1746_vm0, %v13450_v63  ;;  %3142 = vmatprep.mubr.f32.mxu0 %v15949_v60  ;;  %v13480_v63 = vmul.f32 %v12852_v45, %v475_v24  ;;  %v1052_v45 = vld [vmem:[%s15467_s2 + $0x730] sm:$0xff]  ;;  %v1059_v24 = vld [vmem:[%s15467_s2 + $0x768] sm:$0xff] }
 0x2d6   : > { %4457 = vmatprep.mubr.f32.mxu1 %v15949_v60  ;;  %v8358_v30 = vpack.c.bf16 %v1059_v24, %v1052_v45  ;;  %v1078_v24 = vld [vmem:[%s15467_s2 + $0x800] sm:$0xff] }
 0x2d7   : > { %16214 = vst [vmem:[#allocation248_spill] sm:$0xff] %v13480_v63 }
 0x2d8   : > { %7269 = vmatmul.mubr.msk.f32.gmra.mrb[60].mxu0 %vm1746_vm0, %v13460_v56 }
 0x2d9   : > { %7302 = vmatmul.mubr.msk.f32.gmra.mrb[60].mxu1 %vm1746_vm0, %v13460_v56  ;;  %3148 = vmatprep.mubr.f32.mxu0 %v15949_v60  ;;  %v1057_v56 = vld [vmem:[%s15467_s2 + $0x758] sm:$0xff] }
 0x2da   : > { %4463 = vmatprep.mubr.f32.mxu1 %v15949_v60  ;;  %v8111_v9 = vpack.c.bf16 %v1057_v56, %v1050_v17  ;;  %v1086_v56 = vld [vmem:[%s15467_s2 + $0x840] sm:$0xff] }
 0x2dc   : > { %7270 = vmatmul.mubr.msk.f32.gmra.mrb[62].mxu0 %vm1746_vm0, %v13470_v18 }
 0x2dd   : > { %7303 = vmatmul.mubr.msk.f32.gmra.mrb[62].mxu1 %vm1746_vm0, %v13470_v18  ;;  %3154 = vmatprep.mubr.f32.mxu0 %v15949_v60  ;;  %v1072_v18 = vld [vmem:[%s15467_s2 + $0x7d0] sm:$0xff] }
 0x2de   : > { %4469 = vmatprep.mubr.f32.mxu1 %v15949_v60  ;;  %v1065_v60 = vld [vmem:[%s15467_s2 + $0x798] sm:$0xff] }
 0x2df   : > { %v8113_v61 = vpack.c.bf16 %v1072_v18, %v1065_v60  ;;  %v1079_v60 = vld [vmem:[%s15467_s2 + $0x808] sm:$0xff]  ;;  %v8115_v18 = vpack.c.bf16 %v1071_v53, %v1064_v40  ;;  %v1100_v53 = vld [vmem:[%s15467_s2 + $0x8b0] sm:$0xff] }
 0x2e0   : > { %7271 = vmatmul.mubr.msk.f32.gmra.mrb[64].mxu0 %vm1746_vm0, %v13480_v63  ;;  %v8117_v45 = vpack.c.bf16 %v1086_v56, %v1079_v60  ;;  %v1114_v60 = vld [vmem:[%s15467_s2 + $0x920] sm:$0xff] }
 0x2e1   : > { %7304 = vmatmul.mubr.msk.f32.gmra.mrb[64].mxu1 %vm1746_vm0, %v13480_v63  ;;  %4540 = vmatprep.mubr.f32.mxu0 %v9965_v34  ;;  %v1085_v63 = vld [vmem:[%s15467_s2 + $0x838] sm:$0xff] }
 0x2e2   : > { %5855 = vmatprep.mubr.f32.mxu1 %v9965_v34  ;;  %v1073_v34 = vld [vmem:[%s15467_s2 + $0x7d8] sm:$0xff]  ;;  %v8119_v40 = vpack.c.bf16 %v1085_v63, %v1078_v24  ;;  %v1107_v63 = vld [vmem:[%s15467_s2 + $0x8e8] sm:$0xff] }
 0x2e3   : > { %v8361_v17 = vpack.c.bf16 %v1073_v34, %v1066_v36  ;;  %v1093_v36 = vld [vmem:[%s15467_s2 + $0x878] sm:$0xff]  ;;  %v1099_v34 = vld [vmem:[%s15467_s2 + $0x8a8] sm:$0xff] }
 0x2e4   : > { %4541 = vmatmul.mubr.f32.vlgmr.msra.gmra.mrb[66].mxu0 %v10066_v22  ;;  %v1113_v24 = vld [vmem:[%s15467_s2 + $0x918] sm:$0xff] }
 0x2e5   : > { %5856 = vmatmul.mubr.f32.vlgmr.msra.gmra.mrb[66].mxu1 %v10066_v22  ;;  %8112 = vmatpush1.bf16.msra.mxu0 %v8111_v9  ;;  %v1080_v22 = vld [vmem:[%s15467_s2 + $0x810] sm:$0xff] }
 0x2e6   : > { %8359 = vmatpush1.bf16.msra.mxu1 %v8358_v30  ;;  %4546 = vmatprep.mubr.f32.mxu0 %v10082_v31  ;;  %v8121_v30 = vpack.c.bf16 %v1100_v53, %v1093_v36  ;;  %v1092_v9 = vld [vmem:[%s15467_s2 + $0x870] sm:$0xff] }
 0x2e7   : > { %5860 = vmatprep.mubr.f32.mxu1 %v10082_v31  ;;  %8114 = vmatprep.subr.bf16.mxu0 %v8113_v61  ;;  %v1087_v31 = vld [vmem:[%s15467_s2 + $0x848] sm:$0xff]  ;;  %v8123_v56 = vpack.c.bf16 %v1099_v34, %v1092_v9  ;;  %v1142_v34 = vld [vmem:[%s15467_s2 + $0xa00] sm:$0xff] }
 0x2e8   : > { %4547 = vmatmul.mubr.f32.gmra.mrb[68].mxu0 %v10096_v38  ;;  %8360 = vmatprep.subr.bf16.mxu1 %v16190_v47  ;;  %v8364_v61 = vpack.c.bf16 %v1087_v31, %v1080_v22  ;;  %v1121_v22 = vld [vmem:[%s15467_s2 + $0x958] sm:$0xff]  ;;  %v1128_v31 = vld [vmem:[%s15467_s2 + $0x990] sm:$0xff]  ;;  %v1135_v9 = vld [vmem:[%s15467_s2 + $0x9c8] sm:$0xff] }
 0x2e9   : > { %5861 = vmatmul.mubr.f32.gmra.mrb[68].mxu1 %v10096_v38  ;;  %4552 = vmatprep.mubr.f32.mxu0 %v10109_v43  ;;  %v1094_v38 = vld [vmem:[%s15467_s2 + $0x880] sm:$0xff] }
 0x2ea   : > { %5865 = vmatprep.mubr.f32.mxu1 %v10109_v43  ;;  %8116 = vmatpush1.bf16.msra.mxu0 %v8115_v18  ;;  %v1101_v43 = vld [vmem:[%s15467_s2 + $0x8b8] sm:$0xff] }
 0x2eb   : > { %8362 = vmatpush1.bf16.msra.mxu1 %v8361_v17  ;;  %8118 = vmatprep.subr.bf16.mxu0 %v8117_v45  ;;  %v8367_v18 = vpack.c.bf16 %v1101_v43, %v1094_v38  ;;  %v8125_v17 = vpack.c.bf16 %v1114_v60, %v1107_v63  ;;  %v1106_v45 = vld [vmem:[%s15467_s2 + $0x8e0] sm:$0xff]  ;;  %v8133_v63 = vpack.c.bf16 %v1142_v34, %v1135_v9  ;;  %v1184_v9 = vld [vmem:[%s15467_s2 + $0xb50] sm:$0xff] }
 0x2ec   : > { %4553 = vmatmul.mubr.f32.gmra.mrb[70].mxu0 %v10132_v54  ;;  %8363 = vmatprep.subr.bf16.mxu1 %v16190_v47  ;;  %v8127_v36 = vpack.c.bf16 %v1113_v24, %v1106_v45  ;;  %v1134_v60 = vld [vmem:[%s15467_s2 + $0x9c0] sm:$0xff] }
 0x2ed   : > { %5866 = vmatmul.mubr.f32.gmra.mrb[70].mxu1 %v10132_v54  ;;  %4558 = vmatprep.mubr.f32.mxu0 %v10146_v59  ;;  %v1108_v54 = vld [vmem:[%s15467_s2 + $0x8f0] sm:$0xff] }
 0x2ee   : > { %5870 = vmatprep.mubr.f32.mxu1 %v10146_v59  ;;  %8120 = vmatpush1.bf16.msra.mxu0 %v8119_v40  ;;  %v1115_v59 = vld [vmem:[%s15467_s2 + $0x928] sm:$0xff]  ;;  %v8129_v40 = vpack.c.bf16 %v1128_v31, %v1121_v22 }
 0x2ef   : > { %8365 = vmatpush1.bf16.msra.mxu1 %v8364_v61  ;;  %8122 = vmatprep.subr.bf16.mxu0 %v8121_v30  ;;  %v8370_v53 = vpack.c.bf16 %v1115_v59, %v1108_v54  ;;  %v1120_v61 = vld [vmem:[%s15467_s2 + $0x950] sm:$0xff]  ;;  %v1127_v30 = vld [vmem:[%s15467_s2 + $0x988] sm:$0xff] }
 0x2f0   : > { %4559 = vmatmul.mubr.f32.gmra.mrb[72].mxu0 %v10168_v7  ;;  %8366 = vmatprep.subr.bf16.mxu1 %v16190_v47  ;;  %v8131_v38 = vpack.c.bf16 %v1127_v30, %v1120_v61  ;;  %v1148_v59 = vld [vmem:[%s15467_s2 + $0xa30] sm:$0xff]  ;;  %v1155_v22 = vld [vmem:[%s15467_s2 + $0xa68] sm:$0xff]  ;;  %v1162_v30 = vld [vmem:[%s15467_s2 + $0xaa0] sm:$0xff] }
 0x2f1   : > { %5871 = vmatmul.mubr.f32.gmra.mrb[72].mxu1 %v10168_v7  ;;  %4564 = vmatprep.mubr.f32.mxu0 %v10182_v13  ;;  %v1122_v7 = vld [vmem:[%s15467_s2 + $0x960] sm:$0xff]  ;;  %v1163_v31 = vld [vmem:[%s15467_s2 + $0xaa8] sm:$0xff] }
 0x2f2   : > { %5875 = vmatprep.mubr.f32.mxu1 %v10182_v13  ;;  %8124 = vmatpush1.bf16.msra.mxu0 %v8123_v56  ;;  %v1129_v13 = vld [vmem:[%s15467_s2 + $0x998] sm:$0xff] }
 0x2f3   : > { %8368 = vmatpush1.bf16.msra.mxu1 %v8367_v18  ;;  %8126 = vmatprep.subr.bf16.mxu0 %v8125_v17  ;;  %v8373_v43 = vpack.c.bf16 %v1129_v13, %v1122_v7  ;;  %v1141_v56 = vld [vmem:[%s15467_s2 + $0x9f8] sm:$0xff]  ;;  %v1156_v17 = vld [vmem:[%s15467_s2 + $0xa70] sm:$0xff] }
 0x2f4   : > { %4565 = vmatmul.mubr.f32.gmra.mrb[74].mxu0 %v10204_v26  ;;  %8369 = vmatprep.subr.bf16.mxu1 %v16190_v47  ;;  %v1149_v18 = vld [vmem:[%s15467_s2 + $0xa38] sm:$0xff]  ;;  %v8135_v45 = vpack.c.bf16 %v1141_v56, %v1134_v60  ;;  %v1183_v60 = vld [vmem:[%s15467_s2 + $0xb48] sm:$0xff] }
 0x2f5   : > { %5876 = vmatmul.mubr.f32.gmra.mrb[74].mxu1 %v10204_v26  ;;  %4570 = vmatprep.mubr.f32.mxu0 %v10218_v32  ;;  %v1136_v26 = vld [vmem:[%s15467_s2 + $0x9d0] sm:$0xff]  ;;  %v8137_v54 = vpack.c.bf16 %v1156_v17, %v1149_v18  ;;  %v1169_v7 = vld [vmem:[%s15467_s2 + $0xad8] sm:$0xff]  ;;  %v1191_v56 = vld [vmem:[%s15467_s2 + $0xb88] sm:$0xff] }
 0x2f6   : > { %5880 = vmatprep.mubr.f32.mxu1 %v10218_v32  ;;  %8128 = vmatpush1.bf16.msra.mxu0 %v8127_v36  ;;  %v1143_v32 = vld [vmem:[%s15467_s2 + $0xa08] sm:$0xff]  ;;  %v1170_v36 = vld [vmem:[%s15467_s2 + $0xae0] sm:$0xff]  ;;  %v1177_v13 = vld [vmem:[%s15467_s2 + $0xb18] sm:$0xff]  ;;  %v8143_v34 = vpack.c.bf16 %v1169_v7, %v1162_v30 }
 0x2f7   : > { %8371 = vmatpush1.bf16.msra.mxu1 %v8370_v53  ;;  %8130 = vmatprep.subr.bf16.mxu0 %v8129_v40  ;;  %v8376_v24 = vpack.c.bf16 %v1143_v32, %v1136_v26  ;;  %v8139_v53 = vpack.c.bf16 %v1155_v22, %v1148_v59  ;;  %v8141_v61 = vpack.c.bf16 %v1170_v36, %v1163_v31  ;;  %v1198_v26 = vld [vmem:[%s15467_s2 + $0xbc0] sm:$0xff]  ;;  %v1212_v59 = vld [vmem:[%s15467_s2 + $0xc30] sm:$0xff]  ;;  %v1211_v36 = vld [vmem:[%s15467_s2 + $0xc28] sm:$0xff] }
 0x2f8   : > { %4571 = vmatmul.mubr.f32.gmra.mrb[76].mxu0 %v10240_v46  ;;  %8372 = vmatprep.subr.bf16.mxu1 %v16190_v47  ;;  %v8149_v17 = vpack.c.bf16 %v1198_v26, %v1191_v56  ;;  %v1204_v31 = vld [vmem:[%s15467_s2 + $0xbf0] sm:$0xff] }
 0x2f9   : > { %5881 = vmatmul.mubr.f32.gmra.mrb[76].mxu1 %v10240_v46  ;;  %4576 = vmatprep.mubr.f32.mxu0 %v10254_v51  ;;  %v1150_v46 = vld [vmem:[%s15467_s2 + $0xa40] sm:$0xff] }
 0x2fa   : > { %5885 = vmatprep.mubr.f32.mxu1 %v10254_v51  ;;  %8132 = vmatpush1.bf16.msra.mxu0 %v8131_v38  ;;  %v1157_v51 = vld [vmem:[%s15467_s2 + $0xa78] sm:$0xff] }
 0x2fb   : > { %8374 = vmatpush1.bf16.msra.mxu1 %v8373_v43  ;;  %8134 = vmatprep.subr.bf16.mxu0 %v8133_v63  ;;  %v8379_v40 = vpack.c.bf16 %v1157_v51, %v1150_v46  ;;  %v8145_v43 = vpack.c.bf16 %v1184_v9, %v1177_v13  ;;  %v1176_v63 = vld [vmem:[%s15467_s2 + $0xb10] sm:$0xff]  ;;  %v1233_v13 = vld [vmem:[%s15467_s2 + $0xcd8] sm:$0xff] }
 0x2fc   : > { %4577 = vmatmul.mubr.f32.gmra.mrb[78].mxu0 %v10276_v1  ;;  %8375 = vmatprep.subr.bf16.mxu1 %v16190_v47  ;;  %v8147_v32 = vpack.c.bf16 %v1183_v60, %v1176_v63  ;;  %v1240_v9 = vld [vmem:[%s15467_s2 + $0xd10] sm:$0xff]  ;;  %v1239_v60 = vld [vmem:[%s15467_s2 + $0xd08] sm:$0xff] }
 0x2fd   : > { %5886 = vmatmul.mubr.f32.gmra.mrb[78].mxu1 %v10276_v1  ;;  %4582 = vmatprep.mubr.f32.mxu0 %v10290_v6  ;;  %v1164_v1 = vld [vmem:[%s15467_s2 + $0xab0] sm:$0xff] }
 0x2fe   : > { %5890 = vmatprep.mubr.f32.mxu1 %v10290_v6  ;;  %8136 = vmatpush1.bf16.msra.mxu0 %v8135_v45  ;;  %v1171_v6 = vld [vmem:[%s15467_s2 + $0xae8] sm:$0xff]  ;;  %v1190_v45 = vld [vmem:[%s15467_s2 + $0xb80] sm:$0xff]  ;;  %v1232_v63 = vld [vmem:[%s15467_s2 + $0xcd0] sm:$0xff] }
 0x2ff   : > { %8377 = vmatpush1.bf16.msra.mxu1 %v8376_v24  ;;  %8138 = vmatprep.subr.bf16.mxu0 %v8137_v54  ;;  %v8382_v38 = vpack.c.bf16 %v1171_v6, %v1164_v1  ;;  %v1197_v24 = vld [vmem:[%s15467_s2 + $0xbb8] sm:$0xff]  ;;  %v1218_v1 = vld [vmem:[%s15467_s2 + $0xc60] sm:$0xff]  ;;  %v8163_v56 = vpack.c.bf16 %v1239_v60, %v1232_v63  ;;  %v16224_v63 = vld [vmem:[#allocation11_spill] sm:$0xff] }
 0x300   : > { %4583 = vmatmul.mubr.f32.gmra.mrb[80].mxu0 %v10312_v20  ;;  %8378 = vmatprep.subr.bf16.mxu1 %v16190_v47  ;;  %v1205_v54 = vld [vmem:[%s15467_s2 + $0xbf8] sm:$0xff]  ;;  %v8151_v22 = vpack.c.bf16 %v1197_v24, %v1190_v45  ;;  %v1268_v24 = vld [vmem:[%s15467_s2 + $0xdf0] sm:$0xff] }
 0x301   : > { %5891 = vmatmul.mubr.f32.gmra.mrb[80].mxu1 %v10312_v20  ;;  %4588 = vmatprep.mubr.f32.mxu0 %v10326_v28  ;;  %v1178_v20 = vld [vmem:[%s15467_s2 + $0xb20] sm:$0xff]  ;;  %v8153_v51 = vpack.c.bf16 %v1212_v59, %v1205_v54  ;;  %v1225_v6 = vld [vmem:[%s15467_s2 + $0xc98] sm:$0xff]  ;;  %v1260_v59 = vld [vmem:[%s15467_s2 + $0xdb0] sm:$0xff] }
 0x302   : > { %5895 = vmatprep.mubr.f32.mxu1 %v10326_v28  ;;  %8140 = vmatpush1.bf16.msra.mxu0 %v8139_v53  ;;  %v1185_v28 = vld [vmem:[%s15467_s2 + $0xb58] sm:$0xff]  ;;  %v1219_v53 = vld [vmem:[%s15467_s2 + $0xc68] sm:$0xff] }
 0x303   : > { %8380 = vmatpush1.bf16.msra.mxu1 %v8379_v40  ;;  %8142 = vmatprep.subr.bf16.mxu0 %v8141_v61  ;;  %v8385_v18 = vpack.c.bf16 %v1185_v28, %v1178_v20  ;;  %v1226_v40 = vld [vmem:[%s15467_s2 + $0xca0] sm:$0xff]  ;;  %v8155_v61 = vpack.c.bf16 %v1211_v36, %v1204_v31  ;;  %v1247_v20 = vld [vmem:[%s15467_s2 + $0xd48] sm:$0xff]  ;;  %v1261_v45 = vld [vmem:[%s15467_s2 + $0xdb8] sm:$0xff] }
 0x304   : > { %4589 = vmatmul.mubr.f32.gmra.mrb[82].mxu0 %v10348_v44  ;;  %8381 = vmatprep.subr.bf16.mxu1 %v16190_v47  ;;  %v8157_v7 = vpack.c.bf16 %v1226_v40, %v1219_v53  ;;  %v1254_v28 = vld [vmem:[%s15467_s2 + $0xd80] sm:$0xff]  ;;  %v8169_v54 = vpack.c.bf16 %v1268_v24, %v1261_v45 }
 0x305   : > { %5896 = vmatmul.mubr.f32.gmra.mrb[82].mxu1 %v10348_v44  ;;  %4594 = vmatprep.mubr.f32.mxu0 %v10362_v50  ;;  %v1192_v44 = vld [vmem:[%s15467_s2 + $0xb90] sm:$0xff]  ;;  %v16219_v53 = vld [vmem:[#allocation6_spill] sm:$0xff] }
 0x306   : > { %5900 = vmatprep.mubr.f32.mxu1 %v10362_v50  ;;  %8144 = vmatpush1.bf16.msra.mxu0 %v8143_v34  ;;  %v1199_v50 = vld [vmem:[%s15467_s2 + $0xbc8] sm:$0xff]  ;;  %v8159_v34 = vpack.c.bf16 %v1225_v6, %v1218_v1  ;;  %v16221_v6 = vld [vmem:[#allocation8_spill] sm:$0xff] }
 0x307   : > { %8383 = vmatpush1.bf16.msra.mxu1 %v8382_v38  ;;  %8146 = vmatprep.subr.bf16.mxu0 %v8145_v43  ;;  %v8388_v46 = vpack.c.bf16 %v1199_v50, %v1192_v44  ;;  %v8161_v43 = vpack.c.bf16 %v1240_v9, %v1233_v13 }
 0x308   : > { %4595 = vmatmul.mubr.f32.gmra.mrb[84].mxu0 %v10384_v2  ;;  %8384 = vmatprep.subr.bf16.mxu1 %v16190_v47 }
 0x309   : > { %5901 = vmatmul.mubr.f32.gmra.mrb[84].mxu1 %v10384_v2  ;;  %4600 = vmatprep.mubr.f32.mxu0 %v10398_v10  ;;  %v1206_v2 = vld [vmem:[%s15467_s2 + $0xc00] sm:$0xff] }
 0x30a   : > { %5905 = vmatprep.mubr.f32.mxu1 %v10398_v10  ;;  %8148 = vmatpush1.bf16.msra.mxu0 %v8147_v32  ;;  %v1213_v10 = vld [vmem:[%s15467_s2 + $0xc38] sm:$0xff]  ;;  %v8165_v32 = vpack.c.bf16 %v1254_v28, %v1247_v20  ;;  %v16225_v20 = vld [vmem:[#allocation12_spill] sm:$0xff] }
 0x30b   : > { %8386 = vmatpush1.bf16.msra.mxu1 %v8385_v18  ;;  %8150 = vmatprep.subr.bf16.mxu0 %v8149_v17  ;;  %v8391_v30 = vpack.c.bf16 %v1213_v10, %v1206_v2  ;;  %v1246_v18 = vld [vmem:[%s15467_s2 + $0xd40] sm:$0xff]  ;;  %v1253_v17 = vld [vmem:[%s15467_s2 + $0xd78] sm:$0xff] }
 0x30c   : > { %4601 = vmatmul.mubr.f32.gmra.mrb[86].mxu0 %v10420_v25  ;;  %8387 = vmatprep.subr.bf16.mxu1 %v16190_v47  ;;  %v8167_v44 = vpack.c.bf16 %v1253_v17, %v1246_v18  ;;  %v16227_v17 = vld [vmem:[#allocation14_spill] sm:$0xff] }
 0x30d   : > { %5906 = vmatmul.mubr.f32.gmra.mrb[86].mxu1 %v10420_v25  ;;  %4606 = vmatprep.mubr.f32.mxu0 %v10434_v35  ;;  %v1220_v25 = vld [vmem:[%s15467_s2 + $0xc70] sm:$0xff] }
 0x30e   : > { %5910 = vmatprep.mubr.f32.mxu1 %v10434_v35  ;;  %8152 = vmatpush1.bf16.msra.mxu0 %v8151_v22  ;;  %v1227_v35 = vld [vmem:[%s15467_s2 + $0xca8] sm:$0xff] }
 0x30f   : > { %8389 = vmatpush1.bf16.msra.mxu1 %v8388_v46  ;;  %8154 = vmatprep.subr.bf16.mxu0 %v8153_v51  ;;  %v8394_v38 = vpack.c.bf16 %v1227_v35, %v1220_v25  ;;  %v1267_v22 = vld [vmem:[%s15467_s2 + $0xde8] sm:$0xff]  ;;  %v1282_v51 = vld [vmem:[%s15467_s2 + $0xe60] sm:$0xff]  ;;  %v16222_v35 = vld [vmem:[#allocation9_spill] sm:$0xff] }
 0x310   : > { %4607 = vmatmul.mubr.f32.gmra.mrb[88].mxu0 %v10456_v52  ;;  %8390 = vmatprep.subr.bf16.mxu1 %v16190_v47  ;;  %v1275_v46 = vld [vmem:[%s15467_s2 + $0xe28] sm:$0xff]  ;;  %v8171_v31 = vpack.c.bf16 %v1267_v22, %v1260_v59  ;;  %v16230_v59 = vld [vmem:[#allocation17_spill] sm:$0xff] }
 0x311   : > { %5911 = vmatmul.mubr.f32.gmra.mrb[88].mxu1 %v10456_v52  ;;  %4612 = vmatprep.mubr.f32.mxu0 %v10470_v58  ;;  %v1234_v52 = vld [vmem:[%s15467_s2 + $0xce0] sm:$0xff]  ;;  %v8173_v2 = vpack.c.bf16 %v1282_v51, %v1275_v46 }
 0x312   : > { %5915 = vmatprep.mubr.f32.mxu1 %v10470_v58  ;;  %8156 = vmatpush1.bf16.msra.mxu0 %v8155_v61  ;;  %v1241_v58 = vld [vmem:[%s15467_s2 + $0xd18] sm:$0xff]  ;;  %v16220_v61 = vld [vmem:[#allocation7_spill] sm:$0xff]  ;;  %v16231_v46 = vld [vmem:[#allocation18_spill] sm:$0xff] }
 0x313   : > { %8392 = vmatpush1.bf16.msra.mxu1 %v8391_v30  ;;  %8158 = vmatprep.subr.bf16.mxu0 %v8157_v7  ;;  %v8397_v26 = vpack.c.bf16 %v1241_v58, %v1234_v52 }
 0x314   : > { %4613 = vmatmul.mubr.f32.gmra.mrb[90].mxu0 %v10492_v14  ;;  %8393 = vmatprep.subr.bf16.mxu1 %v16190_v47 }
 0x315   : > { %5916 = vmatmul.mubr.f32.gmra.mrb[90].mxu1 %v10492_v14  ;;  %4618 = vmatprep.mubr.f32.mxu0 %v10506_v19  ;;  %v1248_v14 = vld [vmem:[%s15467_s2 + $0xd50] sm:$0xff] }
 0x316   : > { %5920 = vmatprep.mubr.f32.mxu1 %v10506_v19  ;;  %8160 = vmatpush1.bf16.msra.mxu0 %v8159_v34  ;;  %v1255_v19 = vld [vmem:[%s15467_s2 + $0xd88] sm:$0xff] }
 0x317   : > { %8395 = vmatpush1.bf16.msra.mxu1 %v8394_v38  ;;  %8162 = vmatprep.subr.bf16.mxu0 %v8161_v43  ;;  %v8400_v50 = vpack.c.bf16 %v1255_v19, %v1248_v14  ;;  %v16223_v38 = vld [vmem:[#allocation10_spill] sm:$0xff]  ;;  %v16228_v19 = vld [vmem:[#allocation15_spill] sm:$0xff] }
 0x318   : > { %4619 = vmatmul.mubr.f32.gmra.mrb[92].mxu0 %v10528_v41  ;;  %8396 = vmatprep.subr.bf16.mxu1 %v16190_v47 }
 0x319   : > { %5921 = vmatmul.mubr.f32.gmra.mrb[92].mxu1 %v10528_v41  ;;  %4624 = vmatprep.mubr.f32.mxu0 %v10542_v49  ;;  %v1262_v41 = vld [vmem:[%s15467_s2 + $0xdc0] sm:$0xff] }
 0x31a   : > { %5925 = vmatprep.mubr.f32.mxu1 %v10542_v49  ;;  %8164 = vmatpush1.bf16.msra.mxu0 %v8163_v56  ;;  %v1269_v49 = vld [vmem:[%s15467_s2 + $0xdf8] sm:$0xff] }
 0x31b   : > { %8398 = vmatpush1.bf16.msra.mxu1 %v8397_v26  ;;  %8166 = vmatprep.subr.bf16.mxu0 %v8165_v32  ;;  %v8403_v36 = vpack.c.bf16 %v1269_v49, %v1262_v41  ;;  %v16226_v56 = vld [vmem:[#allocation13_spill] sm:$0xff] }
 0x31c   : > { %4625 = vmatmul.mubr.f32.gmra.mrb[94].mxu0 %v10564_v5  ;;  %8399 = vmatprep.subr.bf16.mxu1 %v16190_v47 }
 0x31d   : > { %5926 = vmatmul.mubr.f32.gmra.mrb[94].mxu1 %v10564_v5  ;;  %4630 = vmatprep.mubr.f32.mxu0 %v10578_v16  ;;  %v16215_v5 = vld [vmem:[#allocation2_spill] sm:$0xff] }
 0x31e   : > { %5930 = vmatprep.mubr.f32.mxu1 %v10578_v16  ;;  %8168 = vmatpush1.bf16.msra.mxu0 %v8167_v44  ;;  %v16216_v16 = vld [vmem:[#allocation3_spill] sm:$0xff] }
 0x31f   : > { %8401 = vmatpush1.bf16.msra.mxu1 %v8400_v50  ;;  %8170 = vmatprep.subr.bf16.mxu0 %v8169_v54  ;;  %v16229_v50 = vld [vmem:[#allocation16_spill] sm:$0xff] }
 0x320   : > { %4631 = vmatmul.mubr.f32.gmra.mrb[96].mxu0 %v10600_v39  ;;  %8402 = vmatprep.subr.bf16.mxu1 %v16190_v47 }
 0x321   : > { %5931 = vmatmul.mubr.f32.gmra.mrb[96].mxu1 %v10600_v39  ;;  %4636 = vmatprep.mubr.f32.mxu0 %v10614_v48 }
 0x322   : > { %5935 = vmatprep.mubr.f32.mxu1 %v10614_v48  ;;  %8172 = vmatpush1.bf16.msra.mxu0 %v8171_v31  ;;  %v16232_v31 = vld [vmem:[#allocation19_spill] sm:$0xff] }
 0x323   : > { %8404 = vmatpush1.bf16.msra.mxu1 %v8403_v36  ;;  %8174 = vmatprep.subr.bf16.mxu0 %v8173_v2 }
 0x324   : > { %4637 = vmatmul.mubr.f32.gmra.mrb[98].mxu0 %v10627_v0  ;;  %8405 = vmatprep.subr.bf16.mxu1 %v16190_v47 }
 0x325   : > { %5936 = vmatmul.mubr.f32.gmra.mrb[98].mxu1 %v10627_v0  ;;  %4642 = vmatprep.mubr.f32.mxu0 %v10632_v4 }
 0x326   : > { %5940 = vmatprep.mubr.f32.mxu1 %v10632_v4  ;;  %v16217_v4 = vld [vmem:[#allocation4_spill] sm:$0xff] }
 0x328   : > { %4643 = vmatmul.mubr.f32.gmra.mrb[100].mxu0 %v10639_v12 }
 0x329   : > { %5941 = vmatmul.mubr.f32.gmra.mrb[100].mxu1 %v10639_v12  ;;  %4648 = vmatprep.mubr.f32.mxu0 %v10644_v15 }
 0x32a   : > { %5945 = vmatprep.mubr.f32.mxu1 %v10644_v15  ;;  %v16218_v15 = vld [vmem:[#allocation5_spill] sm:$0xff] }
 0x32c   : > { %4649 = vmatmul.mubr.f32.gmra.mrb[102].mxu0 %v10651_v21 }
 0x32d   : > { %5946 = vmatmul.mubr.f32.gmra.mrb[102].mxu1 %v10651_v21  ;;  %4654 = vmatprep.mubr.f32.mxu0 %v10656_v23 }
 0x32e   : > { %5950 = vmatprep.mubr.f32.mxu1 %v10656_v23 }
 0x330   : > { %4655 = vmatmul.mubr.f32.gmra.mrb[104].mxu0 %v16215_v5 }
 0x331   : > { %5951 = vmatmul.mubr.f32.gmra.mrb[104].mxu1 %v16215_v5  ;;  %4660 = vmatprep.mubr.f32.mxu0 %v16216_v16 }
 0x332   : > { %5955 = vmatprep.mubr.f32.mxu1 %v16216_v16  ;;  %v16233_v16 = vld [vmem:[#allocation20_spill] sm:$0xff] }
 0x333   : > { %v2964_v39 = vpop.f32.mrb[0].mxu0 }
 0x334   : > { %6941 = vst [vmem:[%s13878_s19] sm:$0xff] %v2964_v39  ;;  %v4279_v48 = vpop.f32.mrb[0].mxu1  ;;  %v2966_v0 = vpop.f32.mrb[1].mxu0  ;;  %4661 = vmatmul.mubr.f32.gmra.mrb[106].mxu0 %v16217_v4 }
 0x335   : > { %6943 = vst [vmem:[%s13878_s19 + $0x10] sm:$0xff] %v4279_v48  ;;  %6942 = vst [vmem:[%s13878_s19 + $0x8] sm:$0xff] %v2966_v0  ;;  %v4281_v12 = vpop.f32.mrb[1].mxu1  ;;  %5956 = vmatmul.mubr.f32.gmra.mrb[106].mxu1 %v16217_v4  ;;  %4666 = vmatprep.mubr.f32.mxu0 %v16218_v15  ;;  %v16234_v48 = vld [vmem:[#allocation21_spill] sm:$0xff] }
 0x336   : > { %6944 = vst [vmem:[%s13878_s19 + $0x18] sm:$0xff] %v4281_v12  ;;  %5960 = vmatprep.mubr.f32.mxu1 %v16218_v15  ;;  %v16235_v15 = vld [vmem:[#allocation22_spill] sm:$0xff] }
 0x337   : > { %v2970_v21 = vpop.f32.mrb[2].mxu0 }
 0x338   : > { %6949 = vst [vmem:[%s13878_s19 + $0x38] sm:$0xff] %v2970_v21  ;;  %v4285_v23 = vpop.f32.mrb[2].mxu1  ;;  %v2972_v10 = vpop.f32.mrb[3].mxu0  ;;  %4667 = vmatmul.mubr.f32.gmra.mrb[108].mxu0 %v16219_v53 }
 0x339   : > { %6951 = vst [vmem:[%s13878_s19 + $0x48] sm:$0xff] %v4285_v23  ;;  %6950 = vst [vmem:[%s13878_s19 + $0x40] sm:$0xff] %v2972_v10  ;;  %v4287_v40 = vpop.f32.mrb[3].mxu1  ;;  %5961 = vmatmul.mubr.f32.gmra.mrb[108].mxu1 %v16219_v53  ;;  %4672 = vmatprep.mubr.f32.mxu0 %v16220_v61  ;;  %v16236_v23 = vld [vmem:[#allocation23_spill] sm:$0xff] }
 0x33a   : > { %6952 = vst [vmem:[%s13878_s19 + $0x50] sm:$0xff] %v4287_v40  ;;  %5965 = vmatprep.mubr.f32.mxu1 %v16220_v61  ;;  %v16237_v61 = vld [vmem:[#allocation24_spill] sm:$0xff] }
 0x33b   : > { %v2976_v30 = vpop.f32.mrb[4].mxu0 }
 0x33c   : > { %6956 = vst [vmem:[%s13878_s19 + $0x70] sm:$0xff] %v2976_v30  ;;  %v4291_v7 = vpop.f32.mrb[4].mxu1  ;;  %v2978_v1 = vpop.f32.mrb[5].mxu0  ;;  %4673 = vmatmul.mubr.f32.gmra.mrb[110].mxu0 %v16221_v6 }
 0x33d   : > { %6958 = vst [vmem:[%s13878_s19 + $0x80] sm:$0xff] %v4291_v7  ;;  %6957 = vst [vmem:[%s13878_s19 + $0x78] sm:$0xff] %v2978_v1  ;;  %v4293_v25 = vpop.f32.mrb[5].mxu1  ;;  %5966 = vmatmul.mubr.f32.gmra.mrb[110].mxu1 %v16221_v6  ;;  %4678 = vmatprep.mubr.f32.mxu0 %v16222_v35  ;;  %v16238_v7 = vld [vmem:[#allocation25_spill] sm:$0xff] }
 0x33e   : > { %6959 = vst [vmem:[%s13878_s19 + $0x88] sm:$0xff] %v4293_v25  ;;  %5970 = vmatprep.mubr.f32.mxu1 %v16222_v35  ;;  %v16239_v35 = vld [vmem:[#allocation26_spill] sm:$0xff] }
 0x33f   : > { %v2982_v13 = vpop.f32.mrb[6].mxu0 }
 0x340   : > { %6963 = vst [vmem:[%s13878_s19 + $0xa8] sm:$0xff] %v2982_v13  ;;  %v4297_v9 = vpop.f32.mrb[6].mxu1  ;;  %v2984_v34 = vpop.f32.mrb[7].mxu0  ;;  %4679 = vmatmul.mubr.f32.gmra.mrb[112].mxu0 %v16223_v38 }
 0x341   : > { %6965 = vst [vmem:[%s13878_s19 + $0xb8] sm:$0xff] %v4297_v9  ;;  %6964 = vst [vmem:[%s13878_s19 + $0xb0] sm:$0xff] %v2984_v34  ;;  %v4299_v43 = vpop.f32.mrb[7].mxu1  ;;  %5971 = vmatmul.mubr.f32.gmra.mrb[112].mxu1 %v16223_v38  ;;  %4684 = vmatprep.mubr.f32.mxu0 %v16224_v63  ;;  %v16240_v9 = vld [vmem:[#allocation27_spill] sm:$0xff]  ;;  %v1274_v34 = vld [vmem:[%s15467_s2 + $0xe20] sm:$0xff] }
 0x342   : > { %6966 = vst [vmem:[%s13878_s19 + $0xc0] sm:$0xff] %v4299_v43  ;;  %5975 = vmatprep.mubr.f32.mxu1 %v16224_v63  ;;  %v1281_v38 = vld [vmem:[%s15467_s2 + $0xe58] sm:$0xff]  ;;  %v1276_v63 = vld [vmem:[%s15467_s2 + $0xe30] sm:$0xff] }
 0x343   : > { %v2988_v60 = vpop.f32.mrb[8].mxu0 }
 0x344   : > { %6970 = vst [vmem:[%s13878_s19 + $0xe0] sm:$0xff] %v2988_v60  ;;  %v4303_v52 = vpop.f32.mrb[8].mxu1  ;;  %v2990_v58 = vpop.f32.mrb[9].mxu0  ;;  %4685 = vmatmul.mubr.f32.gmra.mrb[114].mxu0 %v16225_v20  ;;  %v1283_v60 = vld [vmem:[%s15467_s2 + $0xe68] sm:$0xff] }
 0x345   : > { %6972 = vst [vmem:[%s13878_s19 + $0xf0] sm:$0xff] %v4303_v52  ;;  %6971 = vst [vmem:[%s13878_s19 + $0xe8] sm:$0xff] %v2990_v58  ;;  %v4305_v28 = vpop.f32.mrb[9].mxu1  ;;  %5976 = vmatmul.mubr.f32.gmra.mrb[114].mxu1 %v16225_v20  ;;  %4690 = vmatprep.mubr.f32.mxu0 %v16226_v56  ;;  %v16241_v20 = vld [vmem:[#allocation28_spill] sm:$0xff] }
 0x346   : > { %6973 = vst [vmem:[%s13878_s19 + $0xf8] sm:$0xff] %v4305_v28  ;;  %5980 = vmatprep.mubr.f32.mxu1 %v16226_v56  ;;  %v1289_v28 = vld [vmem:[%s15467_s2 + $0xe98] sm:$0xff]  ;;  %v1296_v56 = vld [vmem:[%s15467_s2 + $0xed0] sm:$0xff] }
 0x347   : > { %v2994_v26 = vpop.f32.mrb[10].mxu0 }
 0x348   : > { %6977 = vst [vmem:[%s13878_s19 + $0x118] sm:$0xff] %v2994_v26  ;;  %v4309_v32 = vpop.f32.mrb[10].mxu1  ;;  %v2996_v18 = vpop.f32.mrb[11].mxu0  ;;  %4691 = vmatmul.mubr.f32.gmra.mrb[116].mxu0 %v16227_v17 }
 0x349   : > { %6979 = vst [vmem:[%s13878_s19 + $0x128] sm:$0xff] %v4309_v32  ;;  %6978 = vst [vmem:[%s13878_s19 + $0x120] sm:$0xff] %v2996_v18  ;;  %v4311_v14 = vpop.f32.mrb[11].mxu1  ;;  %5981 = vmatmul.mubr.f32.gmra.mrb[116].mxu1 %v16227_v17  ;;  %4696 = vmatprep.mubr.f32.mxu0 %v16228_v19  ;;  %v16242_v32 = vld [vmem:[#allocation29_spill] sm:$0xff]  ;;  %v8175_v18 = vpack.c.bf16 %v1281_v38, %v1274_v34  ;;  %v8406_v17 = vpack.c.bf16 %v1283_v60, %v1276_v63  ;;  %v1331_v38 = vld [vmem:[%s15467_s2 + $0xfe8] sm:$0xff] }
 0x34a   : > { %6980 = vst [vmem:[%s13878_s19 + $0x130] sm:$0xff] %v4311_v14  ;;  %5985 = vmatprep.mubr.f32.mxu1 %v16228_v19  ;;  %v8177_v19 = vpack.c.bf16 %v1296_v56, %v1289_v28  ;;  %v1325_v34 = vld [vmem:[%s15467_s2 + $0xfb8] sm:$0xff]  ;;  %v16248_v60 = vld [vmem:[#allocation35_spill] sm:$0xff]  ;;  %v1330_v56 = vld [vmem:[%s15467_s2 + $0xfe0] sm:$0xff] }
 0x34b   : > { %v3000_v45 = vpop.f32.mrb[12].mxu0 }
 0x34c   : > { %6984 = vst [vmem:[%s13878_s19 + $0x150] sm:$0xff] %v3000_v45  ;;  %v4315_v24 = vpop.f32.mrb[12].mxu1  ;;  %v3002_v44 = vpop.f32.mrb[13].mxu0  ;;  %4697 = vmatmul.mubr.f32.gmra.mrb[118].mxu0 %v16229_v50  ;;  %v1288_v45 = vld [vmem:[%s15467_s2 + $0xe90] sm:$0xff] }
 0x34d   : > { %6986 = vst [vmem:[%s13878_s19 + $0x160] sm:$0xff] %v4315_v24  ;;  %6985 = vst [vmem:[%s13878_s19 + $0x158] sm:$0xff] %v3002_v44  ;;  %v4317_v54 = vpop.f32.mrb[13].mxu1  ;;  %5986 = vmatmul.mubr.f32.gmra.mrb[118].mxu1 %v16229_v50  ;;  %4702 = vmatprep.mubr.f32.mxu0 %v16230_v59  ;;  %v1295_v24 = vld [vmem:[%s15467_s2 + $0xec8] sm:$0xff]  ;;  %v1290_v44 = vld [vmem:[%s15467_s2 + $0xea0] sm:$0xff] }
 0x34e   : > { %6987 = vst [vmem:[%s13878_s19 + $0x168] sm:$0xff] %v4317_v54  ;;  %5990 = vmatprep.mubr.f32.mxu1 %v16230_v59  ;;  %v16243_v59 = vld [vmem:[#allocation30_spill] sm:$0xff] }
 0x34f   : > { %v3006_v22 = vpop.f32.mrb[14].mxu0 }
 0x350   : > { %6991 = vst [vmem:[%s13878_s19 + $0x188] sm:$0xff] %v3006_v22  ;;  %v4321_v41 = vpop.f32.mrb[14].mxu1  ;;  %v3008_v49 = vpop.f32.mrb[15].mxu0  ;;  %4703 = vmatmul.mubr.f32.gmra.mrb[120].mxu0 %v16231_v46  ;;  %v1297_v22 = vld [vmem:[%s15467_s2 + $0xed8] sm:$0xff] }
 0x351   : > { %6993 = vst [vmem:[%s13878_s19 + $0x198] sm:$0xff] %v4321_v41  ;;  %6992 = vst [vmem:[%s13878_s19 + $0x190] sm:$0xff] %v3008_v49  ;;  %v4323_v51 = vpop.f32.mrb[15].mxu1  ;;  %5991 = vmatmul.mubr.f32.gmra.mrb[120].mxu1 %v16231_v46  ;;  %4708 = vmatprep.mubr.f32.mxu0 %v16232_v31  ;;  %v1303_v41 = vld [vmem:[%s15467_s2 + $0xf08] sm:$0xff]  ;;  %v1310_v49 = vld [vmem:[%s15467_s2 + $0xf40] sm:$0xff] }
 0x352   : > { %6994 = vst [vmem:[%s13878_s19 + $0x1a0] sm:$0xff] %v4323_v51  ;;  %5995 = vmatprep.mubr.f32.mxu1 %v16232_v31  ;;  %v16244_v51 = vld [vmem:[#allocation31_spill] sm:$0xff]  ;;  %v8179_v31 = vpack.c.bf16 %v1295_v24, %v1288_v45  ;;  %v1345_v45 = vld [vmem:[%s15467_s2 + $0x1058] sm:$0xff]  ;;  %v1352_v24 = vld [vmem:[%s15467_s2 + $0x1090] sm:$0xff] }
 0x353   : > { %v3012_v36 = vpop.f32.mrb[16].mxu0 }
 0x354   : > { %6998 = vst [vmem:[%s13878_s19 + $0x1c0] sm:$0xff] %v3012_v36  ;;  %v4327_v2 = vpop.f32.mrb[16].mxu1  ;;  %v3014_v5 = vpop.f32.mrb[17].mxu0  ;;  %4709 = vmatmul.mubr.f32.gmra.mrb[122].mxu0 %v16233_v16 }
 0x355   : > { %7000 = vst [vmem:[%s13878_s19 + $0x1d0] sm:$0xff] %v4327_v2  ;;  %6999 = vst [vmem:[%s13878_s19 + $0x1c8] sm:$0xff] %v3014_v5  ;;  %v4329_v39 = vpop.f32.mrb[17].mxu1  ;;  %5996 = vmatmul.mubr.f32.gmra.mrb[122].mxu1 %v16233_v16  ;;  %4714 = vmatprep.mubr.f32.mxu0 %v16234_v48  ;;  %v8409_v2 = vpack.c.bf16 %v1297_v22, %v1290_v44  ;;  %v8181_v5 = vpack.c.bf16 %v1310_v49, %v1303_v41  ;;  %v1302_v16 = vld [vmem:[%s15467_s2 + $0xf00] sm:$0xff]  ;;  %v1344_v49 = vld [vmem:[%s15467_s2 + $0x1050] sm:$0xff] }
 0x356   : > { %7001 = vst [vmem:[%s13878_s19 + $0x1d8] sm:$0xff] %v4329_v39  ;;  %6000 = vmatprep.mubr.f32.mxu1 %v16234_v48  ;;  %v1309_v39 = vld [vmem:[%s15467_s2 + $0xf38] sm:$0xff]  ;;  %v1304_v48 = vld [vmem:[%s15467_s2 + $0xf10] sm:$0xff]  ;;  %v8193_v41 = vpack.c.bf16 %v1352_v24, %v1345_v45  ;;  %v1386_v24 = vld [vmem:[%s15467_s2 + $0x11a0] sm:$0xff] }
 0x357   : > { %v3018_v0 = vpop.f32.mrb[18].mxu0 }
 0x358   : > { %7005 = vst [vmem:[%s13878_s19 + $0x1f8] sm:$0xff] %v3018_v0  ;;  %v4333_v4 = vpop.f32.mrb[18].mxu1  ;;  %v3020_v12 = vpop.f32.mrb[19].mxu0  ;;  %4715 = vmatmul.mubr.f32.gmra.mrb[124].mxu0 %v16235_v15 }
 0x359   : > { %7007 = vst [vmem:[%s13878_s19 + $0x208] sm:$0xff] %v4333_v4  ;;  %7006 = vst [vmem:[%s13878_s19 + $0x200] sm:$0xff] %v3020_v12  ;;  %v4335_v21 = vpop.f32.mrb[19].mxu1  ;;  %6001 = vmatmul.mubr.f32.gmra.mrb[124].mxu1 %v16235_v15  ;;  %4720 = vmatprep.mubr.f32.mxu0 %v16236_v23  ;;  %v16245_v12 = vld [vmem:[#allocation32_spill] sm:$0xff]  ;;  %v1311_v15 = vld [vmem:[%s15467_s2 + $0xf48] sm:$0xff] }
 0x35a   : > { %7008 = vst [vmem:[%s13878_s19 + $0x210] sm:$0xff] %v4335_v21  ;;  %6005 = vmatprep.mubr.f32.mxu1 %v16236_v23  ;;  %v1317_v21 = vld [vmem:[%s15467_s2 + $0xf78] sm:$0xff]  ;;  %v1324_v23 = vld [vmem:[%s15467_s2 + $0xfb0] sm:$0xff] }
 0x35b   : > { %v3024_v10 = vpop.f32.mrb[20].mxu0 }
 0x35c   : > { %7012 = vst [vmem:[%s13878_s19 + $0x230] sm:$0xff] %v3024_v10  ;;  %v4339_v53 = vpop.f32.mrb[20].mxu1  ;;  %v3026_v40 = vpop.f32.mrb[21].mxu0  ;;  %4721 = vmatmul.mubr.f32.gmra.mrb[126].mxu0 %v16237_v61 }
 0x35d   : > { %7014 = vst [vmem:[%s13878_s19 + $0x240] sm:$0xff] %v4339_v53  ;;  %7013 = vst [vmem:[%s13878_s19 + $0x238] sm:$0xff] %v3026_v40  ;;  %v4341_v30 = vpop.f32.mrb[21].mxu1  ;;  %6006 = vmatmul.mubr.f32.gmra.mrb[126].mxu1 %v16237_v61  ;;  %4726 = vmatprep.mubr.f32.mxu0 %v16238_v7  ;;  %v16246_v53 = vld [vmem:[#allocation33_spill] sm:$0xff]  ;;  %v8183_v40 = vpack.c.bf16 %v1309_v39, %v1302_v16  ;;  %v1359_v16 = vld [vmem:[%s15467_s2 + $0x10c8] sm:$0xff] }
 0x35e   : > { %7015 = vst [vmem:[%s13878_s19 + $0x248] sm:$0xff] %v4341_v30  ;;  %6010 = vmatprep.mubr.f32.mxu1 %v16238_v7  ;;  %v8412_v30 = vpack.c.bf16 %v1311_v15, %v1304_v48  ;;  %v8185_v7 = vpack.c.bf16 %v1324_v23, %v1317_v21  ;;  %v1366_v39 = vld [vmem:[%s15467_s2 + $0x1100] sm:$0xff] }
 0x35f   : > { %v3030_v1 = vpop.f32.mrb[22].mxu0  ;;  %v8197_v21 = vpack.c.bf16 %v1366_v39, %v1359_v16  ;;  %v1358_v23 = vld [vmem:[%s15467_s2 + $0x10c0] sm:$0xff]  ;;  %v1400_v39 = vld [vmem:[%s15467_s2 + $0x1210] sm:$0xff] }
 0x360   : > { %7019 = vst [vmem:[%s13878_s19 + $0x268] sm:$0xff] %v3030_v1  ;;  %v4345_v6 = vpop.f32.mrb[22].mxu1  ;;  %v3032_v25 = vpop.f32.mrb[23].mxu0  ;;  %4727 = vmatmul.mubr.f32.gmra.mrb[128].mxu0 %v16239_v35  ;;  %v1316_v1 = vld [vmem:[%s15467_s2 + $0xf70] sm:$0xff] }
 0x361   : > { %7021 = vst [vmem:[%s13878_s19 + $0x278] sm:$0xff] %v4345_v6  ;;  %7020 = vst [vmem:[%s13878_s19 + $0x270] sm:$0xff] %v3032_v25  ;;  %v4347_v13 = vpop.f32.mrb[23].mxu1  ;;  %6011 = vmatmul.mubr.f32.gmra.mrb[128].mxu1 %v16239_v35  ;;  %4732 = vmatprep.mubr.f32.mxu0 %v16240_v9  ;;  %v1323_v6 = vld [vmem:[%s15467_s2 + $0xfa8] sm:$0xff]  ;;  %v1318_v25 = vld [vmem:[%s15467_s2 + $0xf80] sm:$0xff] }
 0x362   : > { %7022 = vst [vmem:[%s13878_s19 + $0x280] sm:$0xff] %v4347_v13  ;;  %6015 = vmatprep.mubr.f32.mxu1 %v16240_v9  ;;  %v16247_v9 = vld [vmem:[#allocation34_spill] sm:$0xff] }
 0x363   : > { %v3036_v43 = vpop.f32.mrb[24].mxu0 }
 0x364   : > { %7026 = vst [vmem:[%s13878_s19 + $0x2a0] sm:$0xff] %v3036_v43  ;;  %v4351_v52 = vpop.f32.mrb[24].mxu1  ;;  %v3038_v58 = vpop.f32.mrb[25].mxu0  ;;  %4733 = vmatmul.mubr.f32.gmra.mrb[130].mxu0 %v16241_v20  ;;  %v1338_v43 = vld [vmem:[%s15467_s2 + $0x1020] sm:$0xff] }
 0x365   : > { %7028 = vst [vmem:[%s13878_s19 + $0x2b0] sm:$0xff] %v4351_v52  ;;  %7027 = vst [vmem:[%s13878_s19 + $0x2a8] sm:$0xff] %v3038_v58  ;;  %v4353_v26 = vpop.f32.mrb[25].mxu1  ;;  %6016 = vmatmul.mubr.f32.gmra.mrb[130].mxu1 %v16241_v20  ;;  %4803 = vmatprep.mubr.f32.mxu0 %v16242_v32  ;;  %v8187_v52 = vpack.c.bf16 %v1323_v6, %v1316_v1  ;;  %v8415_v20 = vpack.c.bf16 %v1325_v34, %v1318_v25  ;;  %v1373_v1 = vld [vmem:[%s15467_s2 + $0x1138] sm:$0xff]  ;;  %v1380_v6 = vld [vmem:[%s15467_s2 + $0x1170] sm:$0xff] }
 0x366   : > { %7029 = vst [vmem:[%s13878_s19 + $0x2b8] sm:$0xff] %v4353_v26  ;;  %6085 = vmatprep.mubr.f32.mxu1 %v16242_v32  ;;  %v8189_v28 = vpack.c.bf16 %v1338_v43, %v1331_v38  ;;  %v1337_v26 = vld [vmem:[%s15467_s2 + $0x1018] sm:$0xff]  ;;  %v1332_v32 = vld [vmem:[%s15467_s2 + $0xff0] sm:$0xff]  ;;  %v8201_v38 = vpack.c.bf16 %v1380_v6, %v1373_v1  ;;  %v1414_v6 = vld [vmem:[%s15467_s2 + $0x1280] sm:$0xff] }
 0x367   : > { %v3042_v14 = vpop.f32.mrb[26].mxu0  ;;  %v1372_v43 = vld [vmem:[%s15467_s2 + $0x1130] sm:$0xff] }
 0x368   : > { %7033 = vst [vmem:[%s13878_s19 + $0x2d8] sm:$0xff] %v3042_v14  ;;  %v4357_v50 = vpop.f32.mrb[26].mxu1  ;;  %v3044_v54 = vpop.f32.mrb[27].mxu0  ;;  %4804 = vmatmul.mubr.f32.vlgmr.msra.gmra.mrb[66].mxu0 %v16243_v59  ;;  %v16249_v14 = vld [vmem:[#allocation36_spill] sm:$0xff] }
 0x369   : > { %7035 = vst [vmem:[%s13878_s19 + $0x2e8] sm:$0xff] %v4357_v50  ;;  %7034 = vst [vmem:[%s13878_s19 + $0x2e0] sm:$0xff] %v3044_v54  ;;  %v4359_v46 = vpop.f32.mrb[27].mxu1  ;;  %6086 = vmatmul.mubr.f32.vlgmr.msra.gmra.mrb[66].mxu1 %v16243_v59  ;;  %8176 = vmatpush1.bf16.msra.mxu0 %v8175_v18  ;;  %v16250_v50 = vld [vmem:[#allocation37_spill] sm:$0xff]  ;;  %v8191_v54 = vpack.c.bf16 %v1337_v26, %v1330_v56  ;;  %v1387_v56 = vld [vmem:[%s15467_s2 + $0x11a8] sm:$0xff] }
 0x36a   : > { %7036 = vst [vmem:[%s13878_s19 + $0x2f0] sm:$0xff] %v4359_v46  ;;  %8407 = vmatpush1.bf16.msra.mxu1 %v8406_v17  ;;  %4809 = vmatprep.mubr.f32.mxu0 %v16244_v51  ;;  %v1351_v46 = vld [vmem:[%s15467_s2 + $0x1088] sm:$0xff]  ;;  %v1394_v26 = vld [vmem:[%s15467_s2 + $0x11e0] sm:$0xff] }
 0x36b   : > { %v3048_v36 = vpop.f32.mrb[28].mxu0  ;;  %6090 = vmatprep.mubr.f32.mxu1 %v16244_v51  ;;  %8178 = vmatprep.subr.bf16.mxu0 %v8177_v19  ;;  %v1339_v19 = vld [vmem:[%s15467_s2 + $0x1028] sm:$0xff]  ;;  %v1346_v51 = vld [vmem:[%s15467_s2 + $0x1060] sm:$0xff]  ;;  %v8205_v45 = vpack.c.bf16 %v1394_v26, %v1387_v56  ;;  %v1428_v26 = vld [vmem:[%s15467_s2 + $0x12f0] sm:$0xff] }
 0x36c   : > { %7040 = vst [vmem:[%s13878_s19 + $0x310] sm:$0xff] %v3048_v36  ;;  %v4363_v0 = vpop.f32.mrb[28].mxu1  ;;  %v3050_v4 = vpop.f32.mrb[29].mxu0  ;;  %4810 = vmatmul.mubr.f32.gmra.mrb[68].mxu0 %v16245_v12  ;;  %8408 = vmatprep.subr.bf16.mxu1 %v16190_v47  ;;  %v8418_v22 = vpack.c.bf16 %v1339_v19, %v1332_v32 }
 0x36d   : > { %7042 = vst [vmem:[%s13878_s19 + $0x320] sm:$0xff] %v4363_v0  ;;  %7041 = vst [vmem:[%s13878_s19 + $0x318] sm:$0xff] %v3050_v4  ;;  %v4365_v10 = vpop.f32.mrb[29].mxu1  ;;  %6091 = vmatmul.mubr.f32.gmra.mrb[68].mxu1 %v16245_v12  ;;  %4815 = vmatprep.mubr.f32.mxu0 %v16246_v53  ;;  %v16252_v0 = vld [vmem:[#allocation39_spill] sm:$0xff]  ;;  %v8195_v4 = vpack.c.bf16 %v1351_v46, %v1344_v49  ;;  %v1401_v49 = vld [vmem:[%s15467_s2 + $0x1218] sm:$0xff] }
 0x36e   : > { %7043 = vst [vmem:[%s13878_s19 + $0x328] sm:$0xff] %v4365_v10  ;;  %6095 = vmatprep.mubr.f32.mxu1 %v16246_v53  ;;  %8180 = vmatpush1.bf16.msra.mxu0 %v8179_v31  ;;  %v1365_v10 = vld [vmem:[%s15467_s2 + $0x10f8] sm:$0xff]  ;;  %v1360_v53 = vld [vmem:[%s15467_s2 + $0x10d0] sm:$0xff] }
 0x36f   : > { %v3054_v61 = vpop.f32.mrb[30].mxu0  ;;  %8410 = vmatpush1.bf16.msra.mxu1 %v8409_v2  ;;  %8182 = vmatprep.subr.bf16.mxu0 %v8181_v5  ;;  %v16251_v2 = vld [vmem:[#allocation38_spill] sm:$0xff]  ;;  %v1353_v5 = vld [vmem:[%s15467_s2 + $0x1098] sm:$0xff]  ;;  %v1408_v46 = vld [vmem:[%s15467_s2 + $0x1250] sm:$0xff] }
 0x370   : > { %7047 = vst [vmem:[%s13878_s19 + $0x348] sm:$0xff] %v3054_v61  ;;  %v4369_v35 = vpop.f32.mrb[30].mxu1  ;;  %v3056_v13 = vpop.f32.mrb[31].mxu0  ;;  %4816 = vmatmul.mubr.f32.gmra.mrb[70].mxu0 %v16247_v9  ;;  %8411 = vmatprep.subr.bf16.mxu1 %v16190_v47  ;;  %v8421_v15 = vpack.c.bf16 %v1353_v5, %v1346_v51  ;;  %v8209_v16 = vpack.c.bf16 %v1408_v46, %v1401_v49  ;;  %v1442_v46 = vld [vmem:[%s15467_s2 + $0x1360] sm:$0xff] }
 0x371   : > { %7049 = vst [vmem:[%s13878_s19 + $0x358] sm:$0xff] %v4369_v35  ;;  %7048 = vst [vmem:[%s13878_s19 + $0x350] sm:$0xff] %v3056_v13  ;;  %v4371_v63 = vpop.f32.mrb[31].mxu1  ;;  %6096 = vmatmul.mubr.f32.gmra.mrb[70].mxu1 %v16247_v9  ;;  %4821 = vmatprep.mubr.f32.mxu0 %v16248_v60  ;;  %v16254_v35 = vld [vmem:[#allocation41_spill] sm:$0xff]  ;;  %v8199_v13 = vpack.c.bf16 %v1365_v10, %v1358_v23  ;;  %v1415_v23 = vld [vmem:[%s15467_s2 + $0x1288] sm:$0xff] }
 0x372   : > { %7050 = vst [vmem:[%s13878_s19 + $0x360] sm:$0xff] %v4371_v63  ;;  %6100 = vmatprep.mubr.f32.mxu1 %v16248_v60  ;;  %8184 = vmatpush1.bf16.msra.mxu0 %v8183_v40  ;;  %v1379_v63 = vld [vmem:[%s15467_s2 + $0x1168] sm:$0xff]  ;;  %v1374_v60 = vld [vmem:[%s15467_s2 + $0x1140] sm:$0xff] }
 0x373   : > { %v3060_v58 = vpop.f32.mrb[32].mxu0  ;;  %8413 = vmatpush1.bf16.msra.mxu1 %v8412_v30  ;;  %8186 = vmatprep.subr.bf16.mxu0 %v8185_v7  ;;  %v16253_v30 = vld [vmem:[#allocation40_spill] sm:$0xff]  ;;  %v1367_v7 = vld [vmem:[%s15467_s2 + $0x1108] sm:$0xff]  ;;  %v1422_v10 = vld [vmem:[%s15467_s2 + $0x12c0] sm:$0xff] }
 0x374   : > { %7054 = vst [vmem:[%s13878_s19 + $0x380] sm:$0xff] %v3060_v58  ;;  %v4375_v18 = vpop.f32.mrb[32].mxu1  ;;  %v3062_v17 = vpop.f32.mrb[33].mxu0  ;;  %4822 = vmatmul.mubr.f32.gmra.mrb[72].mxu0 %v16249_v14  ;;  %8414 = vmatprep.subr.bf16.mxu1 %v16190_v47  ;;  %v8424_v34 = vpack.c.bf16 %v1367_v7, %v1360_v53  ;;  %v8213_v1 = vpack.c.bf16 %v1422_v10, %v1415_v23  ;;  %v1456_v10 = vld [vmem:[%s15467_s2 + $0x13d0] sm:$0xff] }
 0x375   : > { %7056 = vst [vmem:[%s13878_s19 + $0x390] sm:$0xff] %v4375_v18  ;;  %7055 = vst [vmem:[%s13878_s19 + $0x388] sm:$0xff] %v3062_v17  ;;  %v4377_v44 = vpop.f32.mrb[33].mxu1  ;;  %6101 = vmatmul.mubr.f32.gmra.mrb[72].mxu1 %v16249_v14  ;;  %4827 = vmatprep.mubr.f32.mxu0 %v16250_v50  ;;  %v16256_v18 = vld [vmem:[#allocation43_spill] sm:$0xff]  ;;  %v8203_v17 = vpack.c.bf16 %v1379_v63, %v1372_v43  ;;  %v1429_v43 = vld [vmem:[%s15467_s2 + $0x12f8] sm:$0xff] }
 0x376   : > { %7057 = vst [vmem:[%s13878_s19 + $0x398] sm:$0xff] %v4377_v44  ;;  %6105 = vmatprep.mubr.f32.mxu1 %v16250_v50  ;;  %8188 = vmatpush1.bf16.msra.mxu0 %v8187_v52  ;;  %v1393_v44 = vld [vmem:[%s15467_s2 + $0x11d8] sm:$0xff]  ;;  %v1388_v50 = vld [vmem:[%s15467_s2 + $0x11b0] sm:$0xff] }
 0x377   : > { %v3066_v59 = vpop.f32.mrb[34].mxu0  ;;  %8416 = vmatpush1.bf16.msra.mxu1 %v8415_v20  ;;  %8190 = vmatprep.subr.bf16.mxu0 %v8189_v28  ;;  %v16255_v20 = vld [vmem:[#allocation42_spill] sm:$0xff]  ;;  %v1381_v28 = vld [vmem:[%s15467_s2 + $0x1178] sm:$0xff]  ;;  %v1436_v63 = vld [vmem:[%s15467_s2 + $0x1330] sm:$0xff] }
 0x378   : > { %7061 = vst [vmem:[%s13878_s19 + $0x3b8] sm:$0xff] %v3066_v59  ;;  %v4381_v31 = vpop.f32.mrb[34].mxu1  ;;  %v3068_v36 = vpop.f32.mrb[35].mxu0  ;;  %4828 = vmatmul.mubr.f32.gmra.mrb[74].mxu0 %v16251_v2  ;;  %8417 = vmatprep.subr.bf16.mxu1 %v16190_v47  ;;  %v8427_v19 = vpack.c.bf16 %v1381_v28, %v1374_v60  ;;  %v8217_v56 = vpack.c.bf16 %v1436_v63, %v1429_v43  ;;  %v1470_v63 = vld [vmem:[%s15467_s2 + $0x1440] sm:$0xff] }
 0x379   : > { %7063 = vst [vmem:[%s13878_s19 + $0x3c8] sm:$0xff] %v4381_v31  ;;  %7062 = vst [vmem:[%s13878_s19 + $0x3c0] sm:$0xff] %v3068_v36  ;;  %v4383_v48 = vpop.f32.mrb[35].mxu1  ;;  %6106 = vmatmul.mubr.f32.gmra.mrb[74].mxu1 %v16251_v2  ;;  %4833 = vmatprep.mubr.f32.mxu0 %v16252_v0  ;;  %v16258_v31 = vld [vmem:[#allocation45_spill] sm:$0xff]  ;;  %v8207_v36 = vpack.c.bf16 %v1393_v44, %v1386_v24  ;;  %v1443_v24 = vld [vmem:[%s15467_s2 + $0x1368] sm:$0xff] }
 0x37a   : > { %7064 = vst [vmem:[%s13878_s19 + $0x3d0] sm:$0xff] %v4383_v48  ;;  %6110 = vmatprep.mubr.f32.mxu1 %v16252_v0  ;;  %8192 = vmatpush1.bf16.msra.mxu0 %v8191_v54  ;;  %v1407_v48 = vld [vmem:[%s15467_s2 + $0x1248] sm:$0xff]  ;;  %v1402_v0 = vld [vmem:[%s15467_s2 + $0x1220] sm:$0xff] }
 0x37b   : > { %v3072_v12 = vpop.f32.mrb[36].mxu0  ;;  %8419 = vmatpush1.bf16.msra.mxu1 %v8418_v22  ;;  %8194 = vmatprep.subr.bf16.mxu0 %v8193_v41  ;;  %v16257_v22 = vld [vmem:[#allocation44_spill] sm:$0xff]  ;;  %v1395_v41 = vld [vmem:[%s15467_s2 + $0x11e8] sm:$0xff]  ;;  %v1450_v44 = vld [vmem:[%s15467_s2 + $0x13a0] sm:$0xff] }
 0x37c   : > { %7068 = vst [vmem:[%s13878_s19 + $0x3f0] sm:$0xff] %v3072_v12  ;;  %v4387_v40 = vpop.f32.mrb[36].mxu1  ;;  %v3074_v61 = vpop.f32.mrb[37].mxu0  ;;  %4834 = vmatmul.mubr.f32.gmra.mrb[76].mxu0 %v16253_v30  ;;  %8420 = vmatprep.subr.bf16.mxu1 %v16190_v47  ;;  %v8430_v5 = vpack.c.bf16 %v1395_v41, %v1388_v50  ;;  %v8221_v49 = vpack.c.bf16 %v1450_v44, %v1443_v24  ;;  %v1484_v44 = vld [vmem:[%s15467_s2 + $0x14b0] sm:$0xff] }
 0x37d   : > { %7070 = vst [vmem:[%s13878_s19 + $0x400] sm:$0xff] %v4387_v40  ;;  %7069 = vst [vmem:[%s13878_s19 + $0x3f8] sm:$0xff] %v3074_v61  ;;  %v4389_v25 = vpop.f32.mrb[37].mxu1  ;;  %6111 = vmatmul.mubr.f32.gmra.mrb[76].mxu1 %v16253_v30  ;;  %4839 = vmatprep.mubr.f32.mxu0 %v16254_v35  ;;  %v16260_v40 = vld [vmem:[#allocation47_spill] sm:$0xff]  ;;  %v8211_v61 = vpack.c.bf16 %v1407_v48, %v1400_v39  ;;  %v1457_v39 = vld [vmem:[%s15467_s2 + $0x13d8] sm:$0xff] }
 0x37e   : > { %7071 = vst [vmem:[%s13878_s19 + $0x408] sm:$0xff] %v4389_v25  ;;  %6115 = vmatprep.mubr.f32.mxu1 %v16254_v35  ;;  %8196 = vmatpush1.bf16.msra.mxu0 %v8195_v4  ;;  %v1421_v25 = vld [vmem:[%s15467_s2 + $0x12b8] sm:$0xff]  ;;  %v1416_v35 = vld [vmem:[%s15467_s2 + $0x1290] sm:$0xff] }
 0x37f   : > { %v3078_v9 = vpop.f32.mrb[38].mxu0  ;;  %8422 = vmatpush1.bf16.msra.mxu1 %v8421_v15  ;;  %8198 = vmatprep.subr.bf16.mxu0 %v8197_v21  ;;  %v16259_v15 = vld [vmem:[#allocation46_spill] sm:$0xff]  ;;  %v1409_v21 = vld [vmem:[%s15467_s2 + $0x1258] sm:$0xff]  ;;  %v1464_v48 = vld [vmem:[%s15467_s2 + $0x1410] sm:$0xff] }
 0x380   : > { %7075 = vst [vmem:[%s13878_s19 + $0x428] sm:$0xff] %v3078_v9  ;;  %v4393_v52 = vpop.f32.mrb[38].mxu1  ;;  %v3080_v58 = vpop.f32.mrb[39].mxu0  ;;  %4840 = vmatmul.mubr.f32.gmra.mrb[78].mxu0 %v16255_v20  ;;  %8423 = vmatprep.subr.bf16.mxu1 %v16190_v47  ;;  %v8433_v7 = vpack.c.bf16 %v1409_v21, %v1402_v0  ;;  %v8225_v23 = vpack.c.bf16 %v1464_v48, %v1457_v39 }
 0x381   : > { %7077 = vst [vmem:[%s13878_s19 + $0x438] sm:$0xff] %v4393_v52  ;;  %7076 = vst [vmem:[%s13878_s19 + $0x430] sm:$0xff] %v3080_v58  ;;  %v4395_v32 = vpop.f32.mrb[39].mxu1  ;;  %6116 = vmatmul.mubr.f32.gmra.mrb[78].mxu1 %v16255_v20  ;;  %4845 = vmatprep.mubr.f32.mxu0 %v16256_v18  ;;  %v16262_v52 = vld [vmem:[#allocation49_spill] sm:$0xff]  ;;  %v8215_v58 = vpack.c.bf16 %v1421_v25, %v1414_v6  ;;  %v1471_v6 = vld [vmem:[%s15467_s2 + $0x1448] sm:$0xff] }
 0x382   : > { %7078 = vst [vmem:[%s13878_s19 + $0x440] sm:$0xff] %v4395_v32  ;;  %6120 = vmatprep.mubr.f32.mxu1 %v16256_v18  ;;  %8200 = vmatpush1.bf16.msra.mxu0 %v8199_v13  ;;  %v1435_v32 = vld [vmem:[%s15467_s2 + $0x1328] sm:$0xff]  ;;  %v1430_v18 = vld [vmem:[%s15467_s2 + $0x1300] sm:$0xff] }
 0x383   : > { %v3084_v14 = vpop.f32.mrb[40].mxu0  ;;  %8425 = vmatpush1.bf16.msra.mxu1 %v8424_v34  ;;  %8202 = vmatprep.subr.bf16.mxu0 %v8201_v38  ;;  %v16261_v34 = vld [vmem:[#allocation48_spill] sm:$0xff]  ;;  %v1423_v38 = vld [vmem:[%s15467_s2 + $0x12c8] sm:$0xff]  ;;  %v1478_v25 = vld [vmem:[%s15467_s2 + $0x1480] sm:$0xff] }
 0x384   : > { %7082 = vst [vmem:[%s13878_s19 + $0x460] sm:$0xff] %v3084_v14  ;;  %v4399_v54 = vpop.f32.mrb[40].mxu1  ;;  %v3086_v59 = vpop.f32.mrb[41].mxu0  ;;  %4846 = vmatmul.mubr.f32.gmra.mrb[80].mxu0 %v16257_v22  ;;  %8426 = vmatprep.subr.bf16.mxu1 %v16190_v47  ;;  %v8436_v28 = vpack.c.bf16 %v1423_v38, %v1416_v35  ;;  %v8229_v43 = vpack.c.bf16 %v1478_v25, %v1471_v6  ;;  %v16277_v6 = vld [vmem:[#allocation64_spill] sm:$0xff] }
 0x385   : > { %7084 = vst [vmem:[%s13878_s19 + $0x470] sm:$0xff] %v4399_v54  ;;  %7083 = vst [vmem:[%s13878_s19 + $0x468] sm:$0xff] %v3086_v59  ;;  %v4401_v51 = vpop.f32.mrb[41].mxu1  ;;  %6121 = vmatmul.mubr.f32.gmra.mrb[80].mxu1 %v16257_v22  ;;  %4851 = vmatprep.mubr.f32.mxu0 %v16258_v31  ;;  %v16264_v54 = vld [vmem:[#allocation51_spill] sm:$0xff]  ;;  %v8219_v59 = vpack.c.bf16 %v1435_v32, %v1428_v26  ;;  %v1485_v26 = vld [vmem:[%s15467_s2 + $0x14b8] sm:$0xff] }
 0x386   : > { %7085 = vst [vmem:[%s13878_s19 + $0x478] sm:$0xff] %v4401_v51  ;;  %6125 = vmatprep.mubr.f32.mxu1 %v16258_v31  ;;  %8204 = vmatpush1.bf16.msra.mxu0 %v8203_v17  ;;  %v1449_v51 = vld [vmem:[%s15467_s2 + $0x1398] sm:$0xff]  ;;  %v1444_v31 = vld [vmem:[%s15467_s2 + $0x1370] sm:$0xff] }
 0x387   : > { %v3090_v2 = vpop.f32.mrb[42].mxu0  ;;  %8428 = vmatpush1.bf16.msra.mxu1 %v8427_v19  ;;  %8206 = vmatprep.subr.bf16.mxu0 %v8205_v45  ;;  %v16263_v19 = vld [vmem:[#allocation50_spill] sm:$0xff]  ;;  %v1437_v45 = vld [vmem:[%s15467_s2 + $0x1338] sm:$0xff]  ;;  %v1492_v32 = vld [vmem:[%s15467_s2 + $0x14f0] sm:$0xff] }
 0x388   : > { %7089 = vst [vmem:[%s13878_s19 + $0x498] sm:$0xff] %v3090_v2  ;;  %v4405_v4 = vpop.f32.mrb[42].mxu1  ;;  %v3092_v12 = vpop.f32.mrb[43].mxu0  ;;  %4852 = vmatmul.mubr.f32.gmra.mrb[82].mxu0 %v16259_v15  ;;  %8429 = vmatprep.subr.bf16.mxu1 %v16190_v47  ;;  %v8439_v41 = vpack.c.bf16 %v1437_v45, %v1430_v18  ;;  %v8233_v24 = vpack.c.bf16 %v1492_v32, %v1485_v26  ;;  %v16283_v26 = vld [vmem:[#allocation70_spill] sm:$0xff]  ;;  %v16284_v32 = vld [vmem:[#allocation71_spill] sm:$0xff] }
 0x389   : > { %7091 = vst [vmem:[%s13878_s19 + $0x4a8] sm:$0xff] %v4405_v4  ;;  %7090 = vst [vmem:[%s13878_s19 + $0x4a0] sm:$0xff] %v3092_v12  ;;  %v4407_v53 = vpop.f32.mrb[43].mxu1  ;;  %6126 = vmatmul.mubr.f32.gmra.mrb[82].mxu1 %v16259_v15  ;;  %4857 = vmatprep.mubr.f32.mxu0 %v16260_v40  ;;  %v16266_v4 = vld [vmem:[#allocation53_spill] sm:$0xff]  ;;  %v8223_v12 = vpack.c.bf16 %v1449_v51, %v1442_v46  ;;  %v1499_v46 = vld [vmem:[%s15467_s2 + $0x1528] sm:$0xff] }
 0x38a   : > { %7092 = vst [vmem:[%s13878_s19 + $0x4b0] sm:$0xff] %v4407_v53  ;;  %6130 = vmatprep.mubr.f32.mxu1 %v16260_v40  ;;  %8208 = vmatpush1.bf16.msra.mxu0 %v8207_v36  ;;  %v1463_v53 = vld [vmem:[%s15467_s2 + $0x1408] sm:$0xff]  ;;  %v1458_v40 = vld [vmem:[%s15467_s2 + $0x13e0] sm:$0xff] }
 0x38b   : > { %v3096_v30 = vpop.f32.mrb[44].mxu0  ;;  %8431 = vmatpush1.bf16.msra.mxu1 %v8430_v5  ;;  %8210 = vmatprep.subr.bf16.mxu0 %v8209_v16  ;;  %v16265_v5 = vld [vmem:[#allocation52_spill] sm:$0xff]  ;;  %v1451_v16 = vld [vmem:[%s15467_s2 + $0x13a8] sm:$0xff]  ;;  %v1506_v51 = vld [vmem:[%s15467_s2 + $0x1560] sm:$0xff] }
 0x38c   : > { %7096 = vst [vmem:[%s13878_s19 + $0x4d0] sm:$0xff] %v3096_v30  ;;  %v4411_v13 = vpop.f32.mrb[44].mxu1  ;;  %v3098_v9 = vpop.f32.mrb[45].mxu0  ;;  %4858 = vmatmul.mubr.f32.gmra.mrb[84].mxu0 %v16261_v34  ;;  %8432 = vmatprep.subr.bf16.mxu1 %v16190_v47  ;;  %v8442_v21 = vpack.c.bf16 %v1451_v16, %v1444_v31  ;;  %v8237_v39 = vpack.c.bf16 %v1506_v51, %v1499_v46  ;;  %v16298_v46 = vld [vmem:[#allocation85_spill] sm:$0xff]  ;;  %v16299_v51 = vld [vmem:[#allocation86_spill] sm:$0xff] }
 0x38d   : > { %7098 = vst [vmem:[%s13878_s19 + $0x4e0] sm:$0xff] %v4411_v13  ;;  %7097 = vst [vmem:[%s13878_s19 + $0x4d8] sm:$0xff] %v3098_v9  ;;  %v4413_v60 = vpop.f32.mrb[45].mxu1  ;;  %6131 = vmatmul.mubr.f32.gmra.mrb[84].mxu1 %v16261_v34  ;;  %4863 = vmatprep.mubr.f32.mxu0 %v16262_v52  ;;  %v16268_v13 = vld [vmem:[#allocation55_spill] sm:$0xff]  ;;  %v8227_v9 = vpack.c.bf16 %v1463_v53, %v1456_v10  ;;  %v16275_v53 = vld [vmem:[#allocation62_spill] sm:$0xff] }
 0x38e   : > { %7099 = vst [vmem:[%s13878_s19 + $0x4e8] sm:$0xff] %v4413_v60  ;;  %6135 = vmatprep.mubr.f32.mxu1 %v16262_v52  ;;  %8212 = vmatpush1.bf16.msra.mxu0 %v8211_v61  ;;  %v1477_v60 = vld [vmem:[%s15467_s2 + $0x1478] sm:$0xff]  ;;  %v1472_v52 = vld [vmem:[%s15467_s2 + $0x1450] sm:$0xff] }
 0x38f   : > { %v3102_v20 = vpop.f32.mrb[46].mxu0  ;;  %8434 = vmatpush1.bf16.msra.mxu1 %v8433_v7  ;;  %8214 = vmatprep.subr.bf16.mxu0 %v8213_v1  ;;  %v16267_v7 = vld [vmem:[#allocation54_spill] sm:$0xff]  ;;  %v1465_v1 = vld [vmem:[%s15467_s2 + $0x1418] sm:$0xff] }
 0x390   : > { %7103 = vst [vmem:[%s13878_s19 + $0x508] sm:$0xff] %v3102_v20  ;;  %v4417_v17 = vpop.f32.mrb[46].mxu1  ;;  %v3104_v14 = vpop.f32.mrb[47].mxu0  ;;  %4864 = vmatmul.mubr.f32.gmra.mrb[86].mxu0 %v16263_v19  ;;  %8435 = vmatprep.subr.bf16.mxu1 %v16190_v47  ;;  %v8445_v38 = vpack.c.bf16 %v1465_v1, %v1458_v40 }
 0x391   : > { %7105 = vst [vmem:[%s13878_s19 + $0x518] sm:$0xff] %v4417_v17  ;;  %7104 = vst [vmem:[%s13878_s19 + $0x510] sm:$0xff] %v3104_v14  ;;  %v4419_v50 = vpop.f32.mrb[47].mxu1  ;;  %6136 = vmatmul.mubr.f32.gmra.mrb[86].mxu1 %v16263_v19  ;;  %4869 = vmatprep.mubr.f32.mxu0 %v16264_v54  ;;  %v16270_v17 = vld [vmem:[#allocation57_spill] sm:$0xff]  ;;  %v8231_v14 = vpack.c.bf16 %v1477_v60, %v1470_v63  ;;  %v16280_v63 = vld [vmem:[#allocation67_spill] sm:$0xff] }
 0x392   : > { %7106 = vst [vmem:[%s13878_s19 + $0x520] sm:$0xff] %v4419_v50  ;;  %6140 = vmatprep.mubr.f32.mxu1 %v16264_v54  ;;  %8216 = vmatpush1.bf16.msra.mxu0 %v8215_v58  ;;  %v1491_v50 = vld [vmem:[%s15467_s2 + $0x14e8] sm:$0xff]  ;;  %v1486_v54 = vld [vmem:[%s15467_s2 + $0x14c0] sm:$0xff] }
 0x393   : > { %v3108_v22 = vpop.f32.mrb[48].mxu0  ;;  %8437 = vmatpush1.bf16.msra.mxu1 %v8436_v28  ;;  %8218 = vmatprep.subr.bf16.mxu0 %v8217_v56  ;;  %v16269_v28 = vld [vmem:[#allocation56_spill] sm:$0xff]  ;;  %v1479_v56 = vld [vmem:[%s15467_s2 + $0x1488] sm:$0xff] }
 0x394   : > { %7110 = vst [vmem:[%s13878_s19 + $0x540] sm:$0xff] %v3108_v22  ;;  %v4423_v36 = vpop.f32.mrb[48].mxu1  ;;  %v3110_v2 = vpop.f32.mrb[49].mxu0  ;;  %4870 = vmatmul.mubr.f32.gmra.mrb[88].mxu0 %v16265_v5  ;;  %8438 = vmatprep.subr.bf16.mxu1 %v16190_v47  ;;  %v8448_v45 = vpack.c.bf16 %v1479_v56, %v1472_v52  ;;  %v16282_v56 = vld [vmem:[#allocation69_spill] sm:$0xff] }
 0x395   : > { %7112 = vst [vmem:[%s13878_s19 + $0x550] sm:$0xff] %v4423_v36  ;;  %7111 = vst [vmem:[%s13878_s19 + $0x548] sm:$0xff] %v3110_v2  ;;  %v4425_v0 = vpop.f32.mrb[49].mxu1  ;;  %6141 = vmatmul.mubr.f32.gmra.mrb[88].mxu1 %v16265_v5  ;;  %4875 = vmatprep.mubr.f32.mxu0 %v16266_v4  ;;  %v16272_v36 = vld [vmem:[#allocation59_spill] sm:$0xff]  ;;  %v8235_v2 = vpack.c.bf16 %v1491_v50, %v1484_v44  ;;  %v16291_v44 = vld [vmem:[#allocation78_spill] sm:$0xff] }
 0x396   : > { %7113 = vst [vmem:[%s13878_s19 + $0x558] sm:$0xff] %v4425_v0  ;;  %6145 = vmatprep.mubr.f32.mxu1 %v16266_v4  ;;  %8220 = vmatpush1.bf16.msra.mxu0 %v8219_v59  ;;  %v16273_v4 = vld [vmem:[#allocation60_spill] sm:$0xff]  ;;  %v16292_v50 = vld [vmem:[#allocation79_spill] sm:$0xff] }
 0x397   : > { %v3114_v15 = vpop.f32.mrb[50].mxu0  ;;  %8440 = vmatpush1.bf16.msra.mxu1 %v8439_v41  ;;  %8222 = vmatprep.subr.bf16.mxu0 %v8221_v49  ;;  %v16271_v41 = vld [vmem:[#allocation58_spill] sm:$0xff]  ;;  %v1493_v49 = vld [vmem:[%s15467_s2 + $0x14f8] sm:$0xff] }
 0x398   : > { %7117 = vst [vmem:[%s13878_s19 + $0x578] sm:$0xff] %v3114_v15  ;;  %v4429_v61 = vpop.f32.mrb[50].mxu1  ;;  %v3116_v30 = vpop.f32.mrb[51].mxu0  ;;  %4876 = vmatmul.mubr.f32.gmra.mrb[90].mxu0 %v16267_v7  ;;  %8441 = vmatprep.subr.bf16.mxu1 %v16190_v47  ;;  %v8451_v16 = vpack.c.bf16 %v1493_v49, %v1486_v54  ;;  %v16274_v15 = vld [vmem:[#allocation61_spill] sm:$0xff]  ;;  %v16293_v54 = vld [vmem:[#allocation80_spill] sm:$0xff] }
 0x399   : > { %7119 = vst [vmem:[%s13878_s19 + $0x588] sm:$0xff] %v4429_v61  ;;  %7118 = vst [vmem:[%s13878_s19 + $0x580] sm:$0xff] %v3116_v30  ;;  %v4431_v35 = vpop.f32.mrb[51].mxu1  ;;  %6146 = vmatmul.mubr.f32.gmra.mrb[90].mxu1 %v16267_v7  ;;  %4881 = vmatprep.mubr.f32.mxu0 %v16268_v13  ;;  %v16276_v61 = vld [vmem:[#allocation63_spill] sm:$0xff]  ;;  %v16297_v49 = vld [vmem:[#allocation84_spill] sm:$0xff] }
 0x39a   : > { %7120 = vst [vmem:[%s13878_s19 + $0x590] sm:$0xff] %v4431_v35  ;;  %6150 = vmatprep.mubr.f32.mxu1 %v16268_v13  ;;  %8224 = vmatpush1.bf16.msra.mxu0 %v8223_v12  ;;  %v16278_v35 = vld [vmem:[#allocation65_spill] sm:$0xff] }
 0x39b   : > { %v3120_v34 = vpop.f32.mrb[52].mxu0  ;;  %8443 = vmatpush1.bf16.msra.mxu1 %v8442_v21  ;;  %8226 = vmatprep.subr.bf16.mxu0 %v8225_v23 }
 0x39c   : > { %7124 = vst [vmem:[%s13878_s19 + $0x5b0] sm:$0xff] %v3120_v34  ;;  %v4435_v58 = vpop.f32.mrb[52].mxu1  ;;  %v3122_v20 = vpop.f32.mrb[53].mxu0  ;;  %4882 = vmatmul.mubr.f32.gmra.mrb[92].mxu0 %v16269_v28  ;;  %8444 = vmatprep.subr.bf16.mxu1 %v16190_v47 }
 0x39d   : > { %7126 = vst [vmem:[%s13878_s19 + $0x5c0] sm:$0xff] %v4435_v58  ;;  %7125 = vst [vmem:[%s13878_s19 + $0x5b8] sm:$0xff] %v3122_v20  ;;  %v4437_v18 = vpop.f32.mrb[53].mxu1  ;;  %6151 = vmatmul.mubr.f32.gmra.mrb[92].mxu1 %v16269_v28  ;;  %4887 = vmatprep.mubr.f32.mxu0 %v16270_v17  ;;  %v16281_v20 = vld [vmem:[#allocation68_spill] sm:$0xff] }
 0x39e   : > { %7127 = vst [vmem:[%s13878_s19 + $0x5c8] sm:$0xff] %v4437_v18  ;;  %6155 = vmatprep.mubr.f32.mxu1 %v16270_v17  ;;  %8228 = vmatpush1.bf16.msra.mxu0 %v8227_v9  ;;  %v16285_v18 = vld [vmem:[#allocation72_spill] sm:$0xff]  ;;  %v16286_v17 = vld [vmem:[#allocation73_spill] sm:$0xff] }
 0x39f   : > { %v3126_v19 = vpop.f32.mrb[54].mxu0  ;;  %8446 = vmatpush1.bf16.msra.mxu1 %v8445_v38  ;;  %8230 = vmatprep.subr.bf16.mxu0 %v8229_v43  ;;  %v16279_v38 = vld [vmem:[#allocation66_spill] sm:$0xff] }
 0x3a0   : > { %7131 = vst [vmem:[%s13878_s19 + $0x5e8] sm:$0xff] %v3126_v19  ;;  %v4441_v59 = vpop.f32.mrb[54].mxu1  ;;  %v3128_v22 = vpop.f32.mrb[55].mxu0  ;;  %4888 = vmatmul.mubr.f32.gmra.mrb[94].mxu0 %v16271_v41  ;;  %8447 = vmatprep.subr.bf16.mxu1 %v16190_v47  ;;  %v16288_v19 = vld [vmem:[#allocation75_spill] sm:$0xff] }
 0x3a1   : > { %7133 = vst [vmem:[%s13878_s19 + $0x5f8] sm:$0xff] %v4441_v59  ;;  %7132 = vst [vmem:[%s13878_s19 + $0x5f0] sm:$0xff] %v3128_v22  ;;  %v4443_v31 = vpop.f32.mrb[55].mxu1  ;;  %6156 = vmatmul.mubr.f32.gmra.mrb[94].mxu1 %v16271_v41  ;;  %4893 = vmatprep.mubr.f32.mxu0 %v16272_v36  ;;  %v16294_v59 = vld [vmem:[#allocation81_spill] sm:$0xff]  ;;  %v16295_v22 = vld [vmem:[#allocation82_spill] sm:$0xff] }
 0x3a2   : > { %7134 = vst [vmem:[%s13878_s19 + $0x600] sm:$0xff] %v4443_v31  ;;  %6160 = vmatprep.mubr.f32.mxu1 %v16272_v36  ;;  %8232 = vmatpush1.bf16.msra.mxu0 %v8231_v14  ;;  %v16287_v14 = vld [vmem:[#allocation74_spill] sm:$0xff]  ;;  %v16296_v41 = vld [vmem:[#allocation83_spill] sm:$0xff]  ;;  %v16301_v36 = vld [vmem:[#allocation88_spill] sm:$0xff] }
 0x3a3   : > { %v3132_v5 = vpop.f32.mrb[56].mxu0  ;;  %8449 = vmatpush1.bf16.msra.mxu1 %v8448_v45  ;;  %8234 = vmatprep.subr.bf16.mxu0 %v8233_v24  ;;  %v16289_v45 = vld [vmem:[#allocation76_spill] sm:$0xff]  ;;  %v16290_v24 = vld [vmem:[#allocation77_spill] sm:$0xff]  ;;  %v16300_v31 = vld [vmem:[#allocation87_spill] sm:$0xff] }
 0x3a4   : > { %7138 = vst [vmem:[%s13878_s19 + $0x620] sm:$0xff] %v3132_v5  ;;  %v4447_v48 = vpop.f32.mrb[56].mxu1  ;;  %v3134_v0 = vpop.f32.mrb[57].mxu0  ;;  %4894 = vmatmul.mubr.f32.gmra.mrb[96].mxu0 %v16273_v4  ;;  %8450 = vmatprep.subr.bf16.mxu1 %v16190_v47  ;;  %v16303_v5 = vld [vmem:[#allocation90_spill] sm:$0xff] }
 0x3a5   : > { %7140 = vst [vmem:[%s13878_s19 + $0x630] sm:$0xff] %v4447_v48  ;;  %7139 = vst [vmem:[%s13878_s19 + $0x628] sm:$0xff] %v3134_v0  ;;  %v4449_v12 = vpop.f32.mrb[57].mxu1  ;;  %6161 = vmatmul.mubr.f32.gmra.mrb[96].mxu1 %v16273_v4  ;;  %4899 = vmatprep.mubr.f32.mxu0 %v16274_v15  ;;  %v16306_v48 = vld [vmem:[#allocation93_spill] sm:$0xff]  ;;  %v1498_v0 = vld [vmem:[%s15467_s2 + $0x1520] sm:$0xff] }
 0x3a6   : > { %7141 = vst [vmem:[%s13878_s19 + $0x638] sm:$0xff] %v4449_v12  ;;  %6165 = vmatprep.mubr.f32.mxu1 %v16274_v15  ;;  %8236 = vmatpush1.bf16.msra.mxu0 %v8235_v2  ;;  %v16302_v2 = vld [vmem:[#allocation89_spill] sm:$0xff]  ;;  %v1500_v12 = vld [vmem:[%s15467_s2 + $0x1530] sm:$0xff]  ;;  %v1507_v15 = vld [vmem:[%s15467_s2 + $0x1568] sm:$0xff] }
 0x3a7   : > { %v3138_v21 = vpop.f32.mrb[58].mxu0  ;;  %8452 = vmatpush1.bf16.msra.mxu1 %v8451_v16  ;;  %8238 = vmatprep.subr.bf16.mxu0 %v8237_v39  ;;  %v16304_v16 = vld [vmem:[#allocation91_spill] sm:$0xff]  ;;  %v16305_v39 = vld [vmem:[#allocation92_spill] sm:$0xff]  ;;  %v1505_v4 = vld [vmem:[%s15467_s2 + $0x1558] sm:$0xff] }
 0x3a8   : > { %7145 = vst [vmem:[%s13878_s19 + $0x658] sm:$0xff] %v3138_v21  ;;  %v4453_v23 = vpop.f32.mrb[58].mxu1  ;;  %v3140_v10 = vpop.f32.mrb[59].mxu0  ;;  %4900 = vmatmul.mubr.f32.gmra.mrb[98].mxu0 %v16275_v53  ;;  %8453 = vmatprep.subr.bf16.mxu1 %v16190_v47  ;;  %v16307_v21 = vld [vmem:[#allocation94_spill] sm:$0xff] }
 0x3a9   : > { %7147 = vst [vmem:[%s13878_s19 + $0x668] sm:$0xff] %v4453_v23  ;;  %7146 = vst [vmem:[%s13878_s19 + $0x660] sm:$0xff] %v3140_v10  ;;  %v4455_v40 = vpop.f32.mrb[59].mxu1  ;;  %6166 = vmatmul.mubr.f32.gmra.mrb[98].mxu1 %v16275_v53  ;;  %4905 = vmatprep.mubr.f32.mxu0 %v16276_v61  ;;  %v1513_v23 = vld [vmem:[%s15467_s2 + $0x1598] sm:$0xff]  ;;  %v1520_v10 = vld [vmem:[%s15467_s2 + $0x15d0] sm:$0xff] }
 0x3aa   : > { %7148 = vst [vmem:[%s13878_s19 + $0x670] sm:$0xff] %v4455_v40  ;;  %6170 = vmatprep.mubr.f32.mxu1 %v16276_v61  ;;  %v16308_v53 = vld [vmem:[#allocation95_spill] sm:$0xff]  ;;  %v8239_v40 = vpack.c.bf16 %v1505_v4, %v1498_v0  ;;  %v8454_v61 = vpack.c.bf16 %v1507_v15, %v1500_v12  ;;  %v1568_v15 = vld [vmem:[%s15467_s2 + $0x1750] sm:$0xff] }
 0x3ab   : > { %v3144_v30 = vpop.f32.mrb[60].mxu0 }
 0x3ac   : > { %7152 = vst [vmem:[%s13878_s19 + $0x690] sm:$0xff] %v3144_v30  ;;  %v4459_v7 = vpop.f32.mrb[60].mxu1  ;;  %v3146_v1 = vpop.f32.mrb[61].mxu0  ;;  %4906 = vmatmul.mubr.f32.gmra.mrb[100].mxu0 %v16277_v6  ;;  %v8241_v30 = vpack.c.bf16 %v1520_v10, %v1513_v23  ;;  %v1570_v23 = vld [vmem:[%s15467_s2 + $0x1760] sm:$0xff]  ;;  %v16317_v10 = vld [vmem:[#allocation104_spill] sm:$0xff] }
 0x3ad   : > { %7154 = vst [vmem:[%s13878_s19 + $0x6a0] sm:$0xff] %v4459_v7  ;;  %7153 = vst [vmem:[%s13878_s19 + $0x698] sm:$0xff] %v3146_v1  ;;  %v4461_v25 = vpop.f32.mrb[61].mxu1  ;;  %6171 = vmatmul.mubr.f32.gmra.mrb[100].mxu1 %v16277_v6  ;;  %4911 = vmatprep.mubr.f32.mxu0 %v16278_v35  ;;  %v1512_v7 = vld [vmem:[%s15467_s2 + $0x1590] sm:$0xff]  ;;  %v1519_v1 = vld [vmem:[%s15467_s2 + $0x15c8] sm:$0xff] }
 0x3ae   : > { %7155 = vst [vmem:[%s13878_s19 + $0x6a8] sm:$0xff] %v4461_v25  ;;  %6175 = vmatprep.mubr.f32.mxu1 %v16278_v35  ;;  %v1514_v6 = vld [vmem:[%s15467_s2 + $0x15a0] sm:$0xff]  ;;  %v16309_v25 = vld [vmem:[#allocation96_spill] sm:$0xff]  ;;  %v1521_v35 = vld [vmem:[%s15467_s2 + $0x15d8] sm:$0xff] }
 0x3af   : > { %v3150_v13 = vpop.f32.mrb[62].mxu0 }
 0x3b0   : > { %7159 = vst [vmem:[%s13878_s19 + $0x6c8] sm:$0xff] %v3150_v13  ;;  %v4465_v9 = vpop.f32.mrb[62].mxu1  ;;  %v3152_v34 = vpop.f32.mrb[63].mxu0  ;;  %4912 = vmatmul.mubr.f32.gmra.mrb[102].mxu0 %v16279_v38  ;;  %v1527_v13 = vld [vmem:[%s15467_s2 + $0x1608] sm:$0xff] }
 0x3b1   : > { %7161 = vst [vmem:[%s13878_s19 + $0x6d8] sm:$0xff] %v4465_v9  ;;  %7160 = vst [vmem:[%s13878_s19 + $0x6d0] sm:$0xff] %v3152_v34  ;;  %v4467_v43 = vpop.f32.mrb[63].mxu1  ;;  %6176 = vmatmul.mubr.f32.gmra.mrb[102].mxu1 %v16279_v38  ;;  %4917 = vmatprep.mubr.f32.mxu0 %v16280_v63  ;;  %v1534_v9 = vld [vmem:[%s15467_s2 + $0x1640] sm:$0xff]  ;;  %v16310_v34 = vld [vmem:[#allocation97_spill] sm:$0xff]  ;;  %v8243_v38 = vpack.c.bf16 %v1519_v1, %v1512_v7 }
 0x3b2   : > { %7162 = vst [vmem:[%s13878_s19 + $0x6e0] sm:$0xff] %v4467_v43  ;;  %6180 = vmatprep.mubr.f32.mxu1 %v16280_v63  ;;  %v8457_v43 = vpack.c.bf16 %v1521_v35, %v1514_v6  ;;  %v8245_v63 = vpack.c.bf16 %v1534_v9, %v1527_v13  ;;  %v1589_v35 = vld [vmem:[%s15467_s2 + $0x17f8] sm:$0xff]  ;;  %v1584_v13 = vld [vmem:[%s15467_s2 + $0x17d0] sm:$0xff]  ;;  %v16319_v9 = vld [vmem:[#allocation106_spill] sm:$0xff] }
 0x3b3   : > { %v3156_v60 = vpop.f32.mrb[64].mxu0 }
 0x3b4   : > { %7166 = vst [vmem:[%s13878_s19 + $0x700] sm:$0xff] %v3156_v60  ;;  %v4471_v52 = vpop.f32.mrb[64].mxu1  ;;  %v3158_v58 = vpop.f32.mrb[65].mxu0  ;;  %4918 = vmatmul.mubr.f32.gmra.mrb[104].mxu0 %v16281_v20  ;;  %v1526_v60 = vld [vmem:[%s15467_s2 + $0x1600] sm:$0xff] }
 0x3b5   : > { %7168 = vst [vmem:[%s13878_s19 + $0x710] sm:$0xff] %v4471_v52  ;;  %7167 = vst [vmem:[%s13878_s19 + $0x708] sm:$0xff] %v3158_v58  ;;  %v4473_v28 = vpop.f32.mrb[65].mxu1  ;;  %6181 = vmatmul.mubr.f32.gmra.mrb[104].mxu1 %v16281_v20  ;;  %4923 = vmatprep.mubr.f32.mxu0 %v16282_v56  ;;  %v1533_v52 = vld [vmem:[%s15467_s2 + $0x1638] sm:$0xff]  ;;  %v1528_v58 = vld [vmem:[%s15467_s2 + $0x1610] sm:$0xff] }
 0x3b6   : > { %7169 = vst [vmem:[%s13878_s19 + $0x718] sm:$0xff] %v4473_v28  ;;  %6185 = vmatprep.mubr.f32.mxu1 %v16282_v56  ;;  %v16311_v20 = vld [vmem:[#allocation98_spill] sm:$0xff]  ;;  %v1535_v28 = vld [vmem:[%s15467_s2 + $0x1648] sm:$0xff]  ;;  %v1541_v56 = vld [vmem:[%s15467_s2 + $0x1678] sm:$0xff] }
 0x3b8   : > { %4924 = vmatmul.mubr.f32.gmra.mrb[106].mxu0 %v16283_v26 }
 0x3b9   : > { %6186 = vmatmul.mubr.f32.gmra.mrb[106].mxu1 %v16283_v26  ;;  %4929 = vmatprep.mubr.f32.mxu0 %v16284_v32  ;;  %v1548_v26 = vld [vmem:[%s15467_s2 + $0x16b0] sm:$0xff] }
 0x3ba   : > { %6190 = vmatprep.mubr.f32.mxu1 %v16284_v32  ;;  %v16312_v32 = vld [vmem:[#allocation99_spill] sm:$0xff] }
 0x3bc   : > { %4930 = vmatmul.mubr.f32.gmra.mrb[108].mxu0 %v16285_v18 }
 0x3bd   : > { %6191 = vmatmul.mubr.f32.gmra.mrb[108].mxu1 %v16285_v18  ;;  %4935 = vmatprep.mubr.f32.mxu0 %v16286_v17  ;;  %v8247_v18 = vpack.c.bf16 %v1533_v52, %v1526_v60 }
 0x3be   : > { %6195 = vmatprep.mubr.f32.mxu1 %v16286_v17  ;;  %v8460_v17 = vpack.c.bf16 %v1535_v28, %v1528_v58  ;;  %v1603_v28 = vld [vmem:[%s15467_s2 + $0x1868] sm:$0xff] }
 0x3c0   : > { %4936 = vmatmul.mubr.f32.gmra.mrb[110].mxu0 %v16287_v14 }
 0x3c1   : > { %6196 = vmatmul.mubr.f32.gmra.mrb[110].mxu1 %v16287_v14  ;;  %4941 = vmatprep.mubr.f32.mxu0 %v16288_v19  ;;  %v8249_v14 = vpack.c.bf16 %v1548_v26, %v1541_v56  ;;  %v1598_v56 = vld [vmem:[%s15467_s2 + $0x1840] sm:$0xff]  ;;  %v16321_v26 = vld [vmem:[#allocation108_spill] sm:$0xff] }
 0x3c2   : > { %6200 = vmatprep.mubr.f32.mxu1 %v16288_v19  ;;  %v1540_v19 = vld [vmem:[%s15467_s2 + $0x1670] sm:$0xff] }
 0x3c4   : > { %4942 = vmatmul.mubr.f32.gmra.mrb[112].mxu0 %v16289_v45 }
 0x3c5   : > { %6201 = vmatmul.mubr.f32.gmra.mrb[112].mxu1 %v16289_v45  ;;  %4947 = vmatprep.mubr.f32.mxu0 %v16290_v24  ;;  %v1547_v45 = vld [vmem:[%s15467_s2 + $0x16a8] sm:$0xff] }
 0x3c6   : > { %6205 = vmatprep.mubr.f32.mxu1 %v16290_v24  ;;  %v1542_v24 = vld [vmem:[%s15467_s2 + $0x1680] sm:$0xff] }
 0x3c8   : > { %4948 = vmatmul.mubr.f32.gmra.mrb[114].mxu0 %v16291_v44 }
 0x3c9   : > { %6206 = vmatmul.mubr.f32.gmra.mrb[114].mxu1 %v16291_v44  ;;  %4953 = vmatprep.mubr.f32.mxu0 %v16292_v50  ;;  %v16313_v44 = vld [vmem:[#allocation100_spill] sm:$0xff] }
 0x3ca   : > { %6210 = vmatprep.mubr.f32.mxu1 %v16292_v50  ;;  %v1549_v50 = vld [vmem:[%s15467_s2 + $0x16b8] sm:$0xff] }
 0x3cc   : > { %4954 = vmatmul.mubr.f32.gmra.mrb[116].mxu0 %v16293_v54 }
 0x3cd   : > { %6211 = vmatmul.mubr.f32.gmra.mrb[116].mxu1 %v16293_v54  ;;  %4959 = vmatprep.mubr.f32.mxu0 %v16294_v59  ;;  %v1555_v54 = vld [vmem:[%s15467_s2 + $0x16e8] sm:$0xff] }
 0x3ce   : > { %6215 = vmatprep.mubr.f32.mxu1 %v16294_v59  ;;  %v1562_v59 = vld [vmem:[%s15467_s2 + $0x1720] sm:$0xff] }
 0x3d0   : > { %4960 = vmatmul.mubr.f32.gmra.mrb[118].mxu0 %v16295_v22 }
 0x3d1   : > { %6216 = vmatmul.mubr.f32.gmra.mrb[118].mxu1 %v16295_v22  ;;  %4965 = vmatprep.mubr.f32.mxu0 %v16296_v41  ;;  %v16314_v22 = vld [vmem:[#allocation101_spill] sm:$0xff] }
 0x3d2   : > { %6220 = vmatprep.mubr.f32.mxu1 %v16296_v41  ;;  %v8251_v41 = vpack.c.bf16 %v1547_v45, %v1540_v19 }
 0x3d4   : > { %4966 = vmatmul.mubr.f32.gmra.mrb[120].mxu0 %v16297_v49 }
 0x3d5   : > { %6221 = vmatmul.mubr.f32.gmra.mrb[120].mxu1 %v16297_v49  ;;  %4971 = vmatprep.mubr.f32.mxu0 %v16298_v46  ;;  %v8463_v49 = vpack.c.bf16 %v1549_v50, %v1542_v24  ;;  %v1617_v50 = vld [vmem:[%s15467_s2 + $0x18d8] sm:$0xff] }
 0x3d6   : > { %6225 = vmatprep.mubr.f32.mxu1 %v16298_v46  ;;  %v8253_v46 = vpack.c.bf16 %v1562_v59, %v1555_v54  ;;  %v1612_v54 = vld [vmem:[%s15467_s2 + $0x18b0] sm:$0xff]  ;;  %v16323_v59 = vld [vmem:[#allocation110_spill] sm:$0xff] }
 0x3d8   : > { %4972 = vmatmul.mubr.f32.gmra.mrb[122].mxu0 %v16299_v51 }
 0x3d9   : > { %6226 = vmatmul.mubr.f32.gmra.mrb[122].mxu1 %v16299_v51  ;;  %4977 = vmatprep.mubr.f32.mxu0 %v16300_v31  ;;  %v1554_v51 = vld [vmem:[%s15467_s2 + $0x16e0] sm:$0xff] }
 0x3da   : > { %6230 = vmatprep.mubr.f32.mxu1 %v16300_v31  ;;  %v1561_v31 = vld [vmem:[%s15467_s2 + $0x1718] sm:$0xff] }
 0x3db   : > { %v8255_v0 = vpack.c.bf16 %v1561_v31, %v1554_v51 }
 0x3dc   : > { %4978 = vmatmul.mubr.f32.gmra.mrb[124].mxu0 %v16301_v36 }
 0x3dd   : > { %6231 = vmatmul.mubr.f32.gmra.mrb[124].mxu1 %v16301_v36  ;;  %4983 = vmatprep.mubr.f32.mxu0 %v16302_v2  ;;  %v1556_v36 = vld [vmem:[%s15467_s2 + $0x16f0] sm:$0xff] }
 0x3de   : > { %6235 = vmatprep.mubr.f32.mxu1 %v16302_v2  ;;  %v16315_v2 = vld [vmem:[#allocation102_spill] sm:$0xff] }
 0x3e0   : > { %4984 = vmatmul.mubr.f32.gmra.mrb[126].mxu0 %v16303_v5 }
 0x3e1   : > { %6236 = vmatmul.mubr.f32.gmra.mrb[126].mxu1 %v16303_v5  ;;  %4989 = vmatprep.mubr.f32.mxu0 %v16304_v16  ;;  %v1563_v5 = vld [vmem:[%s15467_s2 + $0x1728] sm:$0xff] }
 0x3e2   : > { %6240 = vmatprep.mubr.f32.mxu1 %v16304_v16  ;;  %v1569_v16 = vld [vmem:[%s15467_s2 + $0x1758] sm:$0xff]  ;;  %v8466_v4 = vpack.c.bf16 %v1563_v5, %v1556_v36  ;;  %v1631_v5 = vld [vmem:[%s15467_s2 + $0x1948] sm:$0xff] }
 0x3e4   : > { %4990 = vmatmul.mubr.f32.gmra.mrb[128].mxu0 %v16305_v39 }
 0x3e5   : > { %6241 = vmatmul.mubr.f32.gmra.mrb[128].mxu1 %v16305_v39  ;;  %4995 = vmatprep.mubr.f32.mxu0 %v16306_v48  ;;  %v1576_v39 = vld [vmem:[%s15467_s2 + $0x1790] sm:$0xff] }
 0x3e6   : > { %6245 = vmatprep.mubr.f32.mxu1 %v16306_v48  ;;  %v16316_v48 = vld [vmem:[#allocation103_spill] sm:$0xff]  ;;  %v8257_v12 = vpack.c.bf16 %v1576_v39, %v1569_v16  ;;  %v1626_v16 = vld [vmem:[%s15467_s2 + $0x1920] sm:$0xff]  ;;  %v16325_v39 = vld [vmem:[#allocation112_spill] sm:$0xff] }
 0x3e8   : > { %4996 = vmatmul.mubr.f32.gmra.mrb[130].mxu0 %v16307_v21 }
 0x3e9   : > { %6246 = vmatmul.mubr.f32.gmra.mrb[130].mxu1 %v16307_v21  ;;  %5066 = vmatprep.mubr.f32.mxu0 %v16308_v53  ;;  %v1575_v21 = vld [vmem:[%s15467_s2 + $0x1788] sm:$0xff] }
 0x3ea   : > { %6315 = vmatprep.mubr.f32.mxu1 %v16308_v53  ;;  %v1577_v53 = vld [vmem:[%s15467_s2 + $0x1798] sm:$0xff]  ;;  %v8259_v7 = vpack.c.bf16 %v1575_v21, %v1568_v15 }
 0x3eb   : > { %v8469_v1 = vpack.c.bf16 %v1577_v53, %v1570_v23  ;;  %v1645_v53 = vld [vmem:[%s15467_s2 + $0x19b8] sm:$0xff] }
 0x3ec   : > { %5067 = vmatmul.mubr.f32.vlgmr.msra.gmra.mrb[66].mxu0 %v16309_v25 }
 0x3ed   : > { %6316 = vmatmul.mubr.f32.vlgmr.msra.gmra.mrb[66].mxu1 %v16309_v25  ;;  %8240 = vmatpush1.bf16.msra.mxu0 %v8239_v40  ;;  %v1583_v40 = vld [vmem:[%s15467_s2 + $0x17c8] sm:$0xff]  ;;  %v1582_v25 = vld [vmem:[%s15467_s2 + $0x17c0] sm:$0xff] }
 0x3ee   : > { %8455 = vmatpush1.bf16.msra.mxu1 %v8454_v61  ;;  %5072 = vmatprep.mubr.f32.mxu0 %v16310_v34  ;;  %v1590_v61 = vld [vmem:[%s15467_s2 + $0x1800] sm:$0xff]  ;;  %v8263_v60 = vpack.c.bf16 %v1589_v35, %v1582_v25 }
 0x3ef   : > { %6320 = vmatprep.mubr.f32.mxu1 %v16310_v34  ;;  %8242 = vmatprep.subr.bf16.mxu0 %v8241_v30  ;;  %v16318_v30 = vld [vmem:[#allocation105_spill] sm:$0xff]  ;;  %v8261_v6 = vpack.c.bf16 %v1590_v61, %v1583_v40  ;;  %v1591_v34 = vld [vmem:[%s15467_s2 + $0x1808] sm:$0xff]  ;;  %v1640_v40 = vld [vmem:[%s15467_s2 + $0x1990] sm:$0xff] }
 0x3f0   : > { %5073 = vmatmul.mubr.f32.gmra.mrb[68].mxu0 %v16311_v20  ;;  %8456 = vmatprep.subr.bf16.mxu1 %v16190_v47  ;;  %v8472_v52 = vpack.c.bf16 %v1591_v34, %v1584_v13  ;;  %v16327_v61 = vld [vmem:[#allocation114_spill] sm:$0xff]  ;;  %v1659_v34 = vld [vmem:[%s15467_s2 + $0x1a28] sm:$0xff] }
 0x3f1   : > { %6321 = vmatmul.mubr.f32.gmra.mrb[68].mxu1 %v16311_v20  ;;  %5078 = vmatprep.mubr.f32.mxu0 %v16312_v32  ;;  %v1596_v20 = vld [vmem:[%s15467_s2 + $0x1830] sm:$0xff] }
 0x3f2   : > { %6325 = vmatprep.mubr.f32.mxu1 %v16312_v32  ;;  %8244 = vmatpush1.bf16.msra.mxu0 %v8243_v38  ;;  %v1597_v38 = vld [vmem:[%s15467_s2 + $0x1838] sm:$0xff]  ;;  %v8267_v19 = vpack.c.bf16 %v1603_v28, %v1596_v20 }
 0x3f3   : > { %8458 = vmatpush1.bf16.msra.mxu1 %v8457_v43  ;;  %8246 = vmatprep.subr.bf16.mxu0 %v8245_v63  ;;  %v1604_v43 = vld [vmem:[%s15467_s2 + $0x1870] sm:$0xff]  ;;  %v16320_v63 = vld [vmem:[#allocation107_spill] sm:$0xff]  ;;  %v1605_v32 = vld [vmem:[%s15467_s2 + $0x1878] sm:$0xff] }
 0x3f4   : > { %5079 = vmatmul.mubr.f32.gmra.mrb[70].mxu0 %v16313_v44  ;;  %8459 = vmatprep.subr.bf16.mxu1 %v16190_v47  ;;  %v8265_v58 = vpack.c.bf16 %v1604_v43, %v1597_v38  ;;  %v8475_v45 = vpack.c.bf16 %v1605_v32, %v1598_v56  ;;  %v1654_v38 = vld [vmem:[%s15467_s2 + $0x1a00] sm:$0xff]  ;;  %v16329_v43 = vld [vmem:[#allocation116_spill] sm:$0xff]  ;;  %v1673_v32 = vld [vmem:[%s15467_s2 + $0x1a98] sm:$0xff] }
 0x3f5   : > { %6326 = vmatmul.mubr.f32.gmra.mrb[70].mxu1 %v16313_v44  ;;  %5084 = vmatprep.mubr.f32.mxu0 %v16314_v22  ;;  %v1610_v44 = vld [vmem:[%s15467_s2 + $0x18a0] sm:$0xff] }
 0x3f6   : > { %6330 = vmatprep.mubr.f32.mxu1 %v16314_v22  ;;  %8248 = vmatpush1.bf16.msra.mxu0 %v8247_v18  ;;  %v1611_v18 = vld [vmem:[%s15467_s2 + $0x18a8] sm:$0xff]  ;;  %v8271_v51 = vpack.c.bf16 %v1617_v50, %v1610_v44 }
 0x3f7   : > { %8461 = vmatpush1.bf16.msra.mxu1 %v8460_v17  ;;  %8250 = vmatprep.subr.bf16.mxu0 %v8249_v14  ;;  %v1618_v17 = vld [vmem:[%s15467_s2 + $0x18e0] sm:$0xff]  ;;  %v16322_v14 = vld [vmem:[#allocation109_spill] sm:$0xff]  ;;  %v1619_v22 = vld [vmem:[%s15467_s2 + $0x18e8] sm:$0xff] }
 0x3f8   : > { %5085 = vmatmul.mubr.f32.gmra.mrb[72].mxu0 %v16315_v2  ;;  %8462 = vmatprep.subr.bf16.mxu1 %v16190_v47  ;;  %v8269_v24 = vpack.c.bf16 %v1618_v17, %v1611_v18  ;;  %v8478_v31 = vpack.c.bf16 %v1619_v22, %v1612_v54  ;;  %v1668_v18 = vld [vmem:[%s15467_s2 + $0x1a70] sm:$0xff]  ;;  %v16331_v17 = vld [vmem:[#allocation118_spill] sm:$0xff]  ;;  %v1687_v22 = vld [vmem:[%s15467_s2 + $0x1b08] sm:$0xff] }
 0x3f9   : > { %6331 = vmatmul.mubr.f32.gmra.mrb[72].mxu1 %v16315_v2  ;;  %5090 = vmatprep.mubr.f32.mxu0 %v16316_v48  ;;  %v1624_v2 = vld [vmem:[%s15467_s2 + $0x1910] sm:$0xff] }
 0x3fa   : > { %6335 = vmatprep.mubr.f32.mxu1 %v16316_v48  ;;  %8252 = vmatpush1.bf16.msra.mxu0 %v8251_v41  ;;  %v1625_v41 = vld [vmem:[%s15467_s2 + $0x1918] sm:$0xff]  ;;  %v8275_v15 = vpack.c.bf16 %v1631_v5, %v1624_v2 }
 0x3fb   : > { %8464 = vmatpush1.bf16.msra.mxu1 %v8463_v49  ;;  %8254 = vmatprep.subr.bf16.mxu0 %v8253_v46  ;;  %v1632_v49 = vld [vmem:[%s15467_s2 + $0x1950] sm:$0xff]  ;;  %v16324_v46 = vld [vmem:[#allocation111_spill] sm:$0xff]  ;;  %v1633_v48 = vld [vmem:[%s15467_s2 + $0x1958] sm:$0xff] }
 0x3fc   : > { %5091 = vmatmul.mubr.f32.gmra.mrb[74].mxu0 %v16317_v10  ;;  %8465 = vmatprep.subr.bf16.mxu1 %v16190_v47  ;;  %v8273_v36 = vpack.c.bf16 %v1632_v49, %v1625_v41  ;;  %v8481_v21 = vpack.c.bf16 %v1633_v48, %v1626_v16  ;;  %v1682_v41 = vld [vmem:[%s15467_s2 + $0x1ae0] sm:$0xff]  ;;  %v16333_v49 = vld [vmem:[#allocation120_spill] sm:$0xff]  ;;  %v1701_v48 = vld [vmem:[%s15467_s2 + $0x1b78] sm:$0xff] }
 0x3fd   : > { %6336 = vmatmul.mubr.f32.gmra.mrb[74].mxu1 %v16317_v10  ;;  %5096 = vmatprep.mubr.f32.mxu0 %v16318_v30  ;;  %v1638_v10 = vld [vmem:[%s15467_s2 + $0x1980] sm:$0xff] }
 0x3fe   : > { %6340 = vmatprep.mubr.f32.mxu1 %v16318_v30  ;;  %8256 = vmatpush1.bf16.msra.mxu0 %v8255_v0  ;;  %v1639_v0 = vld [vmem:[%s15467_s2 + $0x1988] sm:$0xff]  ;;  %v8279_v25 = vpack.c.bf16 %v1645_v53, %v1638_v10 }
 0x3ff   : > { %8467 = vmatpush1.bf16.msra.mxu1 %v8466_v4  ;;  %8258 = vmatprep.subr.bf16.mxu0 %v8257_v12  ;;  %v1646_v4 = vld [vmem:[%s15467_s2 + $0x19c0] sm:$0xff]  ;;  %v16326_v12 = vld [vmem:[#allocation113_spill] sm:$0xff]  ;;  %v1647_v30 = vld [vmem:[%s15467_s2 + $0x19c8] sm:$0xff] }
 0x400   : > { %5097 = vmatmul.mubr.f32.gmra.mrb[76].mxu0 %v16319_v9  ;;  %8468 = vmatprep.subr.bf16.mxu1 %v16190_v47  ;;  %v8277_v23 = vpack.c.bf16 %v1646_v4, %v1639_v0  ;;  %v8484_v35 = vpack.c.bf16 %v1647_v30, %v1640_v40  ;;  %v1696_v0 = vld [vmem:[%s15467_s2 + $0x1b50] sm:$0xff]  ;;  %v16335_v4 = vld [vmem:[#allocation122_spill] sm:$0xff]  ;;  %v1715_v30 = vld [vmem:[%s15467_s2 + $0x1be8] sm:$0xff] }
 0x401   : > { %6341 = vmatmul.mubr.f32.gmra.mrb[76].mxu1 %v16319_v9  ;;  %5102 = vmatprep.mubr.f32.mxu0 %v16320_v63  ;;  %v1652_v9 = vld [vmem:[%s15467_s2 + $0x19f0] sm:$0xff] }
 0x402   : > { %6345 = vmatprep.mubr.f32.mxu1 %v16320_v63  ;;  %8260 = vmatpush1.bf16.msra.mxu0 %v8259_v7  ;;  %v1653_v7 = vld [vmem:[%s15467_s2 + $0x19f8] sm:$0xff]  ;;  %v8283_v20 = vpack.c.bf16 %v1659_v34, %v1652_v9 }
 0x403   : > { %8470 = vmatpush1.bf16.msra.mxu1 %v8469_v1  ;;  %8262 = vmatprep.subr.bf16.mxu0 %v8261_v6  ;;  %v1660_v1 = vld [vmem:[%s15467_s2 + $0x1a30] sm:$0xff]  ;;  %v16328_v6 = vld [vmem:[#allocation115_spill] sm:$0xff]  ;;  %v1661_v63 = vld [vmem:[%s15467_s2 + $0x1a38] sm:$0xff] }
 0x404   : > { %5103 = vmatmul.mubr.f32.gmra.mrb[78].mxu0 %v16321_v26  ;;  %8471 = vmatprep.subr.bf16.mxu1 %v16190_v47  ;;  %v8281_v13 = vpack.c.bf16 %v1660_v1, %v1653_v7  ;;  %v8487_v28 = vpack.c.bf16 %v1661_v63, %v1654_v38  ;;  %v1710_v7 = vld [vmem:[%s15467_s2 + $0x1bc0] sm:$0xff]  ;;  %v16337_v1 = vld [vmem:[#allocation124_spill] sm:$0xff] }
 0x405   : > { %6346 = vmatmul.mubr.f32.gmra.mrb[78].mxu1 %v16321_v26  ;;  %5108 = vmatprep.mubr.f32.mxu0 %v16322_v14  ;;  %v1666_v26 = vld [vmem:[%s15467_s2 + $0x1a60] sm:$0xff]  ;;  %v16341_v38 = vld [vmem:[#allocation128_spill] sm:$0xff] }
 0x406   : > { %6350 = vmatprep.mubr.f32.mxu1 %v16322_v14  ;;  %8264 = vmatpush1.bf16.msra.mxu0 %v8263_v60  ;;  %v1667_v60 = vld [vmem:[%s15467_s2 + $0x1a68] sm:$0xff]  ;;  %v8287_v44 = vpack.c.bf16 %v1673_v32, %v1666_v26  ;;  %v16345_v63 = vld [vmem:[#allocation132_spill] sm:$0xff] }
 0x407   : > { %8473 = vmatpush1.bf16.msra.mxu1 %v8472_v52  ;;  %8266 = vmatprep.subr.bf16.mxu0 %v8265_v58  ;;  %v1674_v52 = vld [vmem:[%s15467_s2 + $0x1aa0] sm:$0xff]  ;;  %v16330_v58 = vld [vmem:[#allocation117_spill] sm:$0xff]  ;;  %v1675_v14 = vld [vmem:[%s15467_s2 + $0x1aa8] sm:$0xff] }
 0x408   : > { %5109 = vmatmul.mubr.f32.gmra.mrb[80].mxu0 %v16323_v59  ;;  %8474 = vmatprep.subr.bf16.mxu1 %v16190_v47  ;;  %v8285_v56 = vpack.c.bf16 %v1674_v52, %v1667_v60  ;;  %v8490_v50 = vpack.c.bf16 %v1675_v14, %v1668_v18  ;;  %v16346_v60 = vld [vmem:[#allocation133_spill] sm:$0xff]  ;;  %v16347_v52 = vld [vmem:[#allocation134_spill] sm:$0xff]  ;;  %v16352_v26 = vld [vmem:[#allocation139_spill] sm:$0xff] }
 0x409   : > { %6351 = vmatmul.mubr.f32.gmra.mrb[80].mxu1 %v16323_v59  ;;  %5114 = vmatprep.mubr.f32.mxu0 %v16324_v46  ;;  %v1680_v59 = vld [vmem:[%s15467_s2 + $0x1ad0] sm:$0xff]  ;;  %v16354_v18 = vld [vmem:[#allocation141_spill] sm:$0xff]  ;;  %v16356_v14 = vld [vmem:[#allocation143_spill] sm:$0xff] }
 0x40a   : > { %6355 = vmatprep.mubr.f32.mxu1 %v16324_v46  ;;  %8268 = vmatpush1.bf16.msra.mxu0 %v8267_v19  ;;  %v1681_v19 = vld [vmem:[%s15467_s2 + $0x1ad8] sm:$0xff]  ;;  %v8291_v2 = vpack.c.bf16 %v1687_v22, %v1680_v59  ;;  %v16353_v32 = vld [vmem:[#allocation140_spill] sm:$0xff]  ;;  %v16363_v59 = vld [vmem:[#allocation150_spill] sm:$0xff] }
 0x40b   : > { %8476 = vmatpush1.bf16.msra.mxu1 %v8475_v45  ;;  %8270 = vmatprep.subr.bf16.mxu0 %v8269_v24  ;;  %v1688_v45 = vld [vmem:[%s15467_s2 + $0x1b10] sm:$0xff]  ;;  %v16332_v24 = vld [vmem:[#allocation119_spill] sm:$0xff]  ;;  %v1689_v46 = vld [vmem:[%s15467_s2 + $0x1b18] sm:$0xff] }
 0x40c   : > { %5115 = vmatmul.mubr.f32.gmra.mrb[82].mxu0 %v16325_v39  ;;  %8477 = vmatprep.subr.bf16.mxu1 %v16190_v47  ;;  %v8289_v54 = vpack.c.bf16 %v1688_v45, %v1681_v19  ;;  %v8493_v5 = vpack.c.bf16 %v1689_v46, %v1682_v41  ;;  %v16357_v19 = vld [vmem:[#allocation144_spill] sm:$0xff]  ;;  %v16358_v45 = vld [vmem:[#allocation145_spill] sm:$0xff]  ;;  %v16364_v22 = vld [vmem:[#allocation151_spill] sm:$0xff] }
 0x40d   : > { %6356 = vmatmul.mubr.f32.gmra.mrb[82].mxu1 %v16325_v39  ;;  %5120 = vmatprep.mubr.f32.mxu0 %v16326_v12  ;;  %v1694_v39 = vld [vmem:[%s15467_s2 + $0x1b40] sm:$0xff]  ;;  %v16365_v41 = vld [vmem:[#allocation152_spill] sm:$0xff] }
 0x40e   : > { %6360 = vmatprep.mubr.f32.mxu1 %v16326_v12  ;;  %8272 = vmatpush1.bf16.msra.mxu0 %v8271_v51  ;;  %v1695_v51 = vld [vmem:[%s15467_s2 + $0x1b48] sm:$0xff]  ;;  %v8295_v10 = vpack.c.bf16 %v1701_v48, %v1694_v39  ;;  %v16367_v46 = vld [vmem:[#allocation154_spill] sm:$0xff]  ;;  %v1744_v39 = vld [vmem:[%s15467_s2 + $0x1cd0] sm:$0xff] }
 0x40f   : > { %8479 = vmatpush1.bf16.msra.mxu1 %v8478_v31  ;;  %8274 = vmatprep.subr.bf16.mxu0 %v8273_v36  ;;  %v1702_v31 = vld [vmem:[%s15467_s2 + $0x1b80] sm:$0xff]  ;;  %v16334_v36 = vld [vmem:[#allocation121_spill] sm:$0xff]  ;;  %v1703_v12 = vld [vmem:[%s15467_s2 + $0x1b88] sm:$0xff] }
 0x410   : > { %5121 = vmatmul.mubr.f32.gmra.mrb[84].mxu0 %v16327_v61  ;;  %8480 = vmatprep.subr.bf16.mxu1 %v16190_v47  ;;  %v8293_v16 = vpack.c.bf16 %v1702_v31, %v1695_v51  ;;  %v8496_v53 = vpack.c.bf16 %v1703_v12, %v1696_v0  ;;  %v1722_v51 = vld [vmem:[%s15467_s2 + $0x1c20] sm:$0xff]  ;;  %v1729_v31 = vld [vmem:[%s15467_s2 + $0x1c58] sm:$0xff]  ;;  %v16369_v48 = vld [vmem:[#allocation156_spill] sm:$0xff] }
 0x411   : > { %6361 = vmatmul.mubr.f32.gmra.mrb[84].mxu1 %v16327_v61  ;;  %5126 = vmatprep.mubr.f32.mxu0 %v16328_v6  ;;  %v1708_v61 = vld [vmem:[%s15467_s2 + $0x1bb0] sm:$0xff]  ;;  %v8303_v0 = vpack.c.bf16 %v1729_v31, %v1722_v51  ;;  %v16411_v51 = vld [vmem:[#allocation198_spill] sm:$0xff]  ;;  %v16412_v31 = vld [vmem:[#allocation199_spill] sm:$0xff] }
 0x412   : > { %6365 = vmatprep.mubr.f32.mxu1 %v16328_v6  ;;  %8276 = vmatpush1.bf16.msra.mxu0 %v8275_v15  ;;  %v1709_v15 = vld [vmem:[%s15467_s2 + $0x1bb8] sm:$0xff] }
 0x413   : > { %8482 = vmatpush1.bf16.msra.mxu1 %v8481_v21  ;;  %8278 = vmatprep.subr.bf16.mxu0 %v8277_v23  ;;  %v1716_v21 = vld [vmem:[%s15467_s2 + $0x1bf0] sm:$0xff]  ;;  %v16336_v23 = vld [vmem:[#allocation123_spill] sm:$0xff]  ;;  %v1717_v6 = vld [vmem:[%s15467_s2 + $0x1bf8] sm:$0xff] }
 0x414   : > { %5127 = vmatmul.mubr.f32.gmra.mrb[86].mxu0 %v16329_v43  ;;  %8483 = vmatprep.subr.bf16.mxu1 %v16190_v47  ;;  %v8297_v40 = vpack.c.bf16 %v1716_v21, %v1709_v15  ;;  %v8499_v9 = vpack.c.bf16 %v1717_v6, %v1710_v7  ;;  %v1736_v15 = vld [vmem:[%s15467_s2 + $0x1c90] sm:$0xff]  ;;  %v1743_v21 = vld [vmem:[%s15467_s2 + $0x1cc8] sm:$0xff]  ;;  %v16374_v6 = vld [vmem:[#allocation161_spill] sm:$0xff] }
 0x415   : > { %6366 = vmatmul.mubr.f32.gmra.mrb[86].mxu1 %v16329_v43  ;;  %5132 = vmatprep.mubr.f32.mxu0 %v16330_v58  ;;  %v16344_v43 = vld [vmem:[#allocation131_spill] sm:$0xff] }
 0x416   : > { %6370 = vmatprep.mubr.f32.mxu1 %v16330_v58  ;;  %8280 = vmatpush1.bf16.msra.mxu0 %v8279_v25  ;;  %v1723_v25 = vld [vmem:[%s15467_s2 + $0x1c28] sm:$0xff] }
 0x417   : > { %8485 = vmatpush1.bf16.msra.mxu1 %v8484_v35  ;;  %8282 = vmatprep.subr.bf16.mxu0 %v8281_v13  ;;  %v1730_v35 = vld [vmem:[%s15467_s2 + $0x1c60] sm:$0xff]  ;;  %v8299_v13 = vpack.c.bf16 %v1715_v30, %v1708_v61  ;;  %v16348_v58 = vld [vmem:[#allocation135_spill] sm:$0xff]  ;;  %v8307_v61 = vpack.c.bf16 %v1743_v21, %v1736_v15  ;;  %v16422_v15 = vld [vmem:[#allocation209_spill] sm:$0xff] }
 0x418   : > { %5133 = vmatmul.mubr.f32.gmra.mrb[88].mxu0 %v16331_v17  ;;  %8486 = vmatprep.subr.bf16.mxu1 %v16190_v47  ;;  %v8301_v34 = vpack.c.bf16 %v1730_v35, %v1723_v25  ;;  %v16372_v7 = vld [vmem:[#allocation159_spill] sm:$0xff]  ;;  %v16375_v25 = vld [vmem:[#allocation162_spill] sm:$0xff] }
 0x419   : > { %6371 = vmatmul.mubr.f32.gmra.mrb[88].mxu1 %v16331_v17  ;;  %5138 = vmatprep.mubr.f32.mxu0 %v16332_v24  ;;  %v16355_v17 = vld [vmem:[#allocation142_spill] sm:$0xff]  ;;  %v16376_v35 = vld [vmem:[#allocation163_spill] sm:$0xff] }
 0x41a   : > { %6375 = vmatprep.mubr.f32.mxu1 %v16332_v24  ;;  %8284 = vmatpush1.bf16.msra.mxu0 %v8283_v20  ;;  %v16349_v20 = vld [vmem:[#allocation136_spill] sm:$0xff]  ;;  %v16359_v24 = vld [vmem:[#allocation146_spill] sm:$0xff] }
 0x41b   : > { %8488 = vmatpush1.bf16.msra.mxu1 %v8487_v28  ;;  %8286 = vmatprep.subr.bf16.mxu0 %v8285_v56  ;;  %v16350_v28 = vld [vmem:[#allocation137_spill] sm:$0xff]  ;;  %v16351_v56 = vld [vmem:[#allocation138_spill] sm:$0xff] }
 0x41c   : > { %5139 = vmatmul.mubr.f32.gmra.mrb[90].mxu0 %v16333_v49  ;;  %8489 = vmatprep.subr.bf16.mxu1 %v16190_v47  ;;  %v16423_v21 = vld [vmem:[#allocation210_spill] sm:$0xff] }
 0x41d   : > { %6376 = vmatmul.mubr.f32.gmra.mrb[90].mxu1 %v16333_v49  ;;  %5144 = vmatprep.mubr.f32.mxu0 %v16334_v36  ;;  %v16366_v49 = vld [vmem:[#allocation153_spill] sm:$0xff] }
 0x41e   : > { %6380 = vmatprep.mubr.f32.mxu1 %v16334_v36  ;;  %8288 = vmatpush1.bf16.msra.mxu0 %v8287_v44  ;;  %v16360_v44 = vld [vmem:[#allocation147_spill] sm:$0xff]  ;;  %v1724_v36 = vld [vmem:[%s15467_s2 + $0x1c30] sm:$0xff] }
 0x41f   : > { %8491 = vmatpush1.bf16.msra.mxu1 %v8490_v50  ;;  %8290 = vmatprep.subr.bf16.mxu0 %v8289_v54  ;;  %v16361_v50 = vld [vmem:[#allocation148_spill] sm:$0xff]  ;;  %v16362_v54 = vld [vmem:[#allocation149_spill] sm:$0xff] }
 0x420   : > { %5145 = vmatmul.mubr.f32.gmra.mrb[92].mxu0 %v16335_v4  ;;  %8492 = vmatprep.subr.bf16.mxu1 %v16190_v47 }
 0x421   : > { %6381 = vmatmul.mubr.f32.gmra.mrb[92].mxu1 %v16335_v4  ;;  %5150 = vmatprep.mubr.f32.mxu0 %v16336_v23 }
 0x422   : > { %6385 = vmatprep.mubr.f32.mxu1 %v16336_v23  ;;  %8292 = vmatpush1.bf16.msra.mxu0 %v8291_v2  ;;  %v1731_v2 = vld [vmem:[%s15467_s2 + $0x1c68] sm:$0xff]  ;;  %v16370_v23 = vld [vmem:[#allocation157_spill] sm:$0xff] }
 0x423   : > { %8494 = vmatpush1.bf16.msra.mxu1 %v8493_v5  ;;  %8294 = vmatprep.subr.bf16.mxu0 %v8293_v16  ;;  %v16368_v5 = vld [vmem:[#allocation155_spill] sm:$0xff]  ;;  %v1737_v16 = vld [vmem:[%s15467_s2 + $0x1c98] sm:$0xff]  ;;  %v8502_v4 = vpack.c.bf16 %v1731_v2, %v1724_v36  ;;  %v16413_v36 = vld [vmem:[#allocation200_spill] sm:$0xff] }
 0x424   : > { %5151 = vmatmul.mubr.f32.gmra.mrb[94].mxu0 %v16337_v1  ;;  %8495 = vmatprep.subr.bf16.mxu1 %v16190_v47  ;;  %v8305_v12 = vpack.c.bf16 %v1744_v39, %v1737_v16  ;;  %v16414_v2 = vld [vmem:[#allocation201_spill] sm:$0xff]  ;;  %v16416_v16 = vld [vmem:[#allocation203_spill] sm:$0xff]  ;;  %v16417_v39 = vld [vmem:[#allocation204_spill] sm:$0xff] }
 0x425   : > { %6386 = vmatmul.mubr.f32.gmra.mrb[94].mxu1 %v16337_v1  ;;  %5156 = vmatprep.mubr.f32.mxu0 %v12156_v42  ;;  %v16373_v1 = vld [vmem:[#allocation160_spill] sm:$0xff] }
 0x426   : > { %6390 = vmatprep.mubr.f32.mxu1 %v12156_v42  ;;  %8296 = vmatpush1.bf16.msra.mxu0 %v8295_v10  ;;  %v16338_v42 = vld [vmem:[#allocation125_spill] sm:$0xff]  ;;  %v1738_v10 = vld [vmem:[%s15467_s2 + $0x1ca0] sm:$0xff] }
 0x427   : > { %8497 = vmatpush1.bf16.msra.mxu1 %v8496_v53  ;;  %8298 = vmatprep.subr.bf16.mxu0 %v8297_v40  ;;  %v1745_v53 = vld [vmem:[%s15467_s2 + $0x1cd8] sm:$0xff]  ;;  %v16371_v40 = vld [vmem:[#allocation158_spill] sm:$0xff] }
 0x428   : > { %5157 = vmatmul.mubr.f32.gmra.mrb[96].mxu0 %v12178_v62  ;;  %8498 = vmatprep.subr.bf16.mxu1 %v16190_v47  ;;  %v8505_v30 = vpack.c.bf16 %v1745_v53, %v1738_v10  ;;  %v16425_v10 = vld [vmem:[#allocation212_spill] sm:$0xff]  ;;  %v16426_v53 = vld [vmem:[#allocation213_spill] sm:$0xff] }
 0x429   : > { %6391 = vmatmul.mubr.f32.gmra.mrb[96].mxu1 %v12178_v62  ;;  %5162 = vmatprep.mubr.f32.mxu0 %v12192_v11  ;;  %v16339_v62 = vld [vmem:[#allocation126_spill] sm:$0xff] }
 0x42a   : > { %6395 = vmatprep.mubr.f32.mxu1 %v12192_v11  ;;  %8300 = vmatpush1.bf16.msra.mxu0 %v8299_v13  ;;  %v16340_v11 = vld [vmem:[#allocation127_spill] sm:$0xff]  ;;  %v16378_v13 = vld [vmem:[#allocation165_spill] sm:$0xff] }
 0x42b   : > { %8500 = vmatpush1.bf16.msra.mxu1 %v8499_v9  ;;  %8302 = vmatprep.subr.bf16.mxu0 %v8301_v34  ;;  %v16379_v9 = vld [vmem:[#allocation166_spill] sm:$0xff]  ;;  %v16380_v34 = vld [vmem:[#allocation167_spill] sm:$0xff] }
 0x42c   : > { %5163 = vmatmul.mubr.f32.gmra.mrb[98].mxu0 %v12205_v33  ;;  %8501 = vmatprep.subr.bf16.mxu1 %v16190_v47 }
 0x42d   : > { %6396 = vmatmul.mubr.f32.gmra.mrb[98].mxu1 %v12205_v33  ;;  %5168 = vmatprep.mubr.f32.mxu0 %v12210_v55  ;;  %v16342_v33 = vld [vmem:[#allocation129_spill] sm:$0xff] }
 0x42e   : > { %6400 = vmatprep.mubr.f32.mxu1 %v12210_v55  ;;  %v16343_v55 = vld [vmem:[#allocation130_spill] sm:$0xff] }
 0x430   : > { %5169 = vmatmul.mubr.f32.gmra.mrb[100].mxu0 %v16338_v42 }
 0x431   : > { %6401 = vmatmul.mubr.f32.gmra.mrb[100].mxu1 %v16338_v42  ;;  %5174 = vmatprep.mubr.f32.mxu0 %v16339_v62  ;;  %v16381_v42 = vld [vmem:[#allocation168_spill] sm:$0xff] }
 0x432   : > { %6405 = vmatprep.mubr.f32.mxu1 %v16339_v62  ;;  %v16382_v62 = vld [vmem:[#allocation169_spill] sm:$0xff] }
 0x434   : > { %5175 = vmatmul.mubr.f32.gmra.mrb[102].mxu0 %v16340_v11 }
 0x435   : > { %6406 = vmatmul.mubr.f32.gmra.mrb[102].mxu1 %v16340_v11  ;;  %5180 = vmatprep.mubr.f32.mxu0 %v16341_v38  ;;  %v16383_v11 = vld [vmem:[#allocation170_spill] sm:$0xff] }
 0x436   : > { %6410 = vmatprep.mubr.f32.mxu1 %v16341_v38  ;;  %v16384_v38 = vld [vmem:[#allocation171_spill] sm:$0xff] }
 0x438   : > { %5181 = vmatmul.mubr.f32.gmra.mrb[104].mxu0 %v16342_v33 }
 0x439   : > { %6411 = vmatmul.mubr.f32.gmra.mrb[104].mxu1 %v16342_v33  ;;  %5186 = vmatprep.mubr.f32.mxu0 %v16343_v55  ;;  %v16385_v33 = vld [vmem:[#allocation172_spill] sm:$0xff] }
 0x43a   : > { %6415 = vmatprep.mubr.f32.mxu1 %v16343_v55  ;;  %v16386_v55 = vld [vmem:[#allocation173_spill] sm:$0xff] }
 0x43c   : > { %5187 = vmatmul.mubr.f32.gmra.mrb[106].mxu0 %v16344_v43 }
 0x43d   : > { %6416 = vmatmul.mubr.f32.gmra.mrb[106].mxu1 %v16344_v43  ;;  %5192 = vmatprep.mubr.f32.mxu0 %v16345_v63  ;;  %v16387_v43 = vld [vmem:[#allocation174_spill] sm:$0xff] }
 0x43e   : > { %6420 = vmatprep.mubr.f32.mxu1 %v16345_v63  ;;  %v16388_v63 = vld [vmem:[#allocation175_spill] sm:$0xff] }
 0x440   : > { %5193 = vmatmul.mubr.f32.gmra.mrb[108].mxu0 %v16346_v60 }
 0x441   : > { %6421 = vmatmul.mubr.f32.gmra.mrb[108].mxu1 %v16346_v60  ;;  %5198 = vmatprep.mubr.f32.mxu0 %v16347_v52  ;;  %v16389_v60 = vld [vmem:[#allocation176_spill] sm:$0xff] }
 0x442   : > { %6425 = vmatprep.mubr.f32.mxu1 %v16347_v52  ;;  %v16390_v52 = vld [vmem:[#allocation177_spill] sm:$0xff] }
 0x444   : > { %5199 = vmatmul.mubr.f32.gmra.mrb[110].mxu0 %v16348_v58 }
 0x445   : > { %6426 = vmatmul.mubr.f32.gmra.mrb[110].mxu1 %v16348_v58  ;;  %5204 = vmatprep.mubr.f32.mxu0 %v16349_v20  ;;  %v16391_v58 = vld [vmem:[#allocation178_spill] sm:$0xff] }
 0x446   : > { %6430 = vmatprep.mubr.f32.mxu1 %v16349_v20  ;;  %v16392_v20 = vld [vmem:[#allocation179_spill] sm:$0xff] }
 0x448   : > { %5205 = vmatmul.mubr.f32.gmra.mrb[112].mxu0 %v16350_v28 }
 0x449   : > { %6431 = vmatmul.mubr.f32.gmra.mrb[112].mxu1 %v16350_v28  ;;  %5210 = vmatprep.mubr.f32.mxu0 %v16351_v56  ;;  %v16393_v28 = vld [vmem:[#allocation180_spill] sm:$0xff] }
 0x44a   : > { %6435 = vmatprep.mubr.f32.mxu1 %v16351_v56  ;;  %v16394_v56 = vld [vmem:[#allocation181_spill] sm:$0xff] }
 0x44c   : > { %5211 = vmatmul.mubr.f32.gmra.mrb[114].mxu0 %v16352_v26 }
 0x44d   : > { %6436 = vmatmul.mubr.f32.gmra.mrb[114].mxu1 %v16352_v26  ;;  %5216 = vmatprep.mubr.f32.mxu0 %v16353_v32  ;;  %v16395_v26 = vld [vmem:[#allocation182_spill] sm:$0xff] }
 0x44e   : > { %6440 = vmatprep.mubr.f32.mxu1 %v16353_v32  ;;  %v16396_v32 = vld [vmem:[#allocation183_spill] sm:$0xff] }
 0x450   : > { %5217 = vmatmul.mubr.f32.gmra.mrb[116].mxu0 %v16354_v18 }
 0x451   : > { %6441 = vmatmul.mubr.f32.gmra.mrb[116].mxu1 %v16354_v18  ;;  %5222 = vmatprep.mubr.f32.mxu0 %v16355_v17  ;;  %v16397_v18 = vld [vmem:[#allocation184_spill] sm:$0xff] }
 0x452   : > { %6445 = vmatprep.mubr.f32.mxu1 %v16355_v17  ;;  %v16398_v17 = vld [vmem:[#allocation185_spill] sm:$0xff] }
 0x454   : > { %5223 = vmatmul.mubr.f32.gmra.mrb[118].mxu0 %v16356_v14 }
 0x455   : > { %6446 = vmatmul.mubr.f32.gmra.mrb[118].mxu1 %v16356_v14  ;;  %5228 = vmatprep.mubr.f32.mxu0 %v16357_v19  ;;  %v16399_v14 = vld [vmem:[#allocation186_spill] sm:$0xff] }
 0x456   : > { %6450 = vmatprep.mubr.f32.mxu1 %v16357_v19  ;;  %v16400_v19 = vld [vmem:[#allocation187_spill] sm:$0xff] }
 0x458   : > { %5229 = vmatmul.mubr.f32.gmra.mrb[120].mxu0 %v16358_v45 }
 0x459   : > { %6451 = vmatmul.mubr.f32.gmra.mrb[120].mxu1 %v16358_v45  ;;  %5234 = vmatprep.mubr.f32.mxu0 %v16359_v24  ;;  %v16401_v45 = vld [vmem:[#allocation188_spill] sm:$0xff] }
 0x45a   : > { %6455 = vmatprep.mubr.f32.mxu1 %v16359_v24  ;;  %v16402_v24 = vld [vmem:[#allocation189_spill] sm:$0xff] }
 0x45c   : > { %5235 = vmatmul.mubr.f32.gmra.mrb[122].mxu0 %v16360_v44 }
 0x45d   : > { %6456 = vmatmul.mubr.f32.gmra.mrb[122].mxu1 %v16360_v44  ;;  %5240 = vmatprep.mubr.f32.mxu0 %v16361_v50  ;;  %v16403_v44 = vld [vmem:[#allocation190_spill] sm:$0xff] }
 0x45e   : > { %6460 = vmatprep.mubr.f32.mxu1 %v16361_v50  ;;  %v16404_v50 = vld [vmem:[#allocation191_spill] sm:$0xff] }
 0x460   : > { %5241 = vmatmul.mubr.f32.gmra.mrb[124].mxu0 %v16362_v54 }
 0x461   : > { %6461 = vmatmul.mubr.f32.gmra.mrb[124].mxu1 %v16362_v54  ;;  %5246 = vmatprep.mubr.f32.mxu0 %v16363_v59  ;;  %v16405_v54 = vld [vmem:[#allocation192_spill] sm:$0xff] }
 0x462   : > { %6465 = vmatprep.mubr.f32.mxu1 %v16363_v59  ;;  %v16406_v59 = vld [vmem:[#allocation193_spill] sm:$0xff] }
 0x464   : > { %5247 = vmatmul.mubr.f32.gmra.mrb[126].mxu0 %v16364_v22 }
 0x465   : > { %6466 = vmatmul.mubr.f32.gmra.mrb[126].mxu1 %v16364_v22  ;;  %5252 = vmatprep.mubr.f32.mxu0 %v16365_v41  ;;  %v16407_v22 = vld [vmem:[#allocation194_spill] sm:$0xff] }
 0x466   : > { %6470 = vmatprep.mubr.f32.mxu1 %v16365_v41  ;;  %v16408_v41 = vld [vmem:[#allocation195_spill] sm:$0xff] }
 0x468   : > { %5253 = vmatmul.mubr.f32.gmra.mrb[128].mxu0 %v16366_v49 }
 0x469   : > { %6471 = vmatmul.mubr.f32.gmra.mrb[128].mxu1 %v16366_v49  ;;  %5258 = vmatprep.mubr.f32.mxu0 %v16367_v46  ;;  %v16409_v49 = vld [vmem:[#allocation196_spill] sm:$0xff] }
 0x46a   : > { %6475 = vmatprep.mubr.f32.mxu1 %v16367_v46  ;;  %v16410_v46 = vld [vmem:[#allocation197_spill] sm:$0xff] }
 0x46c   : > { %5259 = vmatmul.mubr.f32.gmra.mrb[130].mxu0 %v16368_v5 }
 0x46d   : > { %6476 = vmatmul.mubr.f32.gmra.mrb[130].mxu1 %v16368_v5  ;;  %5329 = vmatprep.mubr.f32.mxu0 %v16369_v48  ;;  %v16415_v5 = vld [vmem:[#allocation202_spill] sm:$0xff] }
 0x46e   : > { %6545 = vmatprep.mubr.f32.mxu1 %v16369_v48  ;;  %v16418_v48 = vld [vmem:[#allocation205_spill] sm:$0xff] }
 0x470   : > { %5330 = vmatmul.mubr.f32.vlgmr.msra.gmra.mrb[66].mxu0 %v16370_v23 }
 0x471   : > { %6546 = vmatmul.mubr.f32.vlgmr.msra.gmra.mrb[66].mxu1 %v16370_v23  ;;  %8304 = vmatpush1.bf16.msra.mxu0 %v8303_v0  ;;  %v16419_v0 = vld [vmem:[#allocation206_spill] sm:$0xff]  ;;  %v16424_v23 = vld [vmem:[#allocation211_spill] sm:$0xff] }
 0x472   : > { %8503 = vmatpush3.bf16.msra.mxu1 %v8502_v4  ;;  %5335 = vmatprep.mubr.f32.mxu0 %v16371_v40  ;;  %v16420_v4 = vld [vmem:[#allocation207_spill] sm:$0xff] }
 0x473   : > { %6550 = vmatprep.mubr.f32.mxu1 %v16371_v40  ;;  %8306 = vmatprep.subr.bf16.mxu0 %v8305_v12  ;;  %v16421_v12 = vld [vmem:[#allocation208_spill] sm:$0xff]  ;;  %v16427_v40 = vld [vmem:[#allocation214_spill] sm:$0xff] }
 0x474   : > { %5336 = vmatmul.mubr.f32.gmra.mrb[68].mxu0 %v16372_v7  ;;  %8504 = vmatprep.subr.bf16.mxu1 %v16190_v47  ;;  %v16377_v47 = vld [vmem:[#allocation164_spill] sm:$0xff] }
 0x475   : > { %6551 = vmatmul.mubr.f32.gmra.mrb[68].mxu1 %v16372_v7  ;;  %5341 = vmatprep.mubr.f32.mxu0 %v16373_v1  ;;  %v16430_v7 = vld [vmem:[#allocation217_spill] sm:$0xff] }
 0x476   : > { %6555 = vmatprep.mubr.f32.mxu1 %v16373_v1  ;;  %8308 = vmatpush1.bf16.msra.mxu0 %v8307_v61  ;;  %v16428_v61 = vld [vmem:[#allocation215_spill] sm:$0xff]  ;;  %v16431_v1 = vld [vmem:[#allocation218_spill] sm:$0xff] }
 0x477   : > { %8506 = vmatpush3.bf16.msra.mxu1 %v8505_v30  ;;  %v16429_v30 = vld [vmem:[#allocation216_spill] sm:$0xff] }
 0x478   : > { %5342 = vmatmul.mubr.f32.gmra.mrb[70].mxu0 %v16374_v6 }
 0x479   : > { %6556 = vmatmul.mubr.f32.gmra.mrb[70].mxu1 %v16374_v6  ;;  %5347 = vmatprep.mubr.f32.mxu0 %v16375_v25  ;;  %v16432_v6 = vld [vmem:[#allocation219_spill] sm:$0xff] }
 0x47a   : > { %6560 = vmatprep.mubr.f32.mxu1 %v16375_v25  ;;  %v16433_v25 = vld [vmem:[#allocation220_spill] sm:$0xff] }
 0x47c   : > { %5348 = vmatmul.mubr.f32.gmra.mrb[72].mxu0 %v16376_v35 }
 0x47d   : > { %6561 = vmatmul.mubr.f32.gmra.mrb[72].mxu1 %v16376_v35  ;;  %5353 = vmatprep.mubr.f32.mxu0 %v16377_v47  ;;  %v16434_v35 = vld [vmem:[#allocation221_spill] sm:$0xff] }
 0x47e   : > { %6565 = vmatprep.mubr.f32.mxu1 %v16377_v47  ;;  %v16435_v47 = vmov 0.0  }
 0x480   : > { %5354 = vmatmul.mubr.f32.gmra.mrb[74].mxu0 %v16378_v13 }
 0x481   : > { %6566 = vmatmul.mubr.f32.gmra.mrb[74].mxu1 %v16378_v13  ;;  %5359 = vmatprep.mubr.f32.mxu0 %v16379_v9  ;;  %v16436_v13 = vld [vmem:[#allocation222_spill] sm:$0xff] }
 0x482   : > { %6570 = vmatprep.mubr.f32.mxu1 %v16379_v9  ;;  %v16437_v9 = vld [vmem:[#allocation223_spill] sm:$0xff] }
 0x484   : > { %5360 = vmatmul.mubr.f32.gmra.mrb[76].mxu0 %v16380_v34 }
 0x485   : > { %6571 = vmatmul.mubr.f32.gmra.mrb[76].mxu1 %v16380_v34  ;;  %5365 = vmatprep.mubr.f32.mxu0 %v16381_v42  ;;  %v16438_v34 = vld [vmem:[#allocation224_spill] sm:$0xff] }
 0x486   : > { %6575 = vmatprep.mubr.f32.mxu1 %v16381_v42  ;;  %v16439_v42 = vld [vmem:[#allocation225_spill] sm:$0xff] }
 0x488   : > { %5366 = vmatmul.mubr.f32.gmra.mrb[78].mxu0 %v16382_v62 }
 0x489   : > { %6576 = vmatmul.mubr.f32.gmra.mrb[78].mxu1 %v16382_v62  ;;  %5371 = vmatprep.mubr.f32.mxu0 %v16383_v11  ;;  %v16440_v62 = vld [vmem:[#allocation226_spill] sm:$0xff] }
 0x48a   : > { %6580 = vmatprep.mubr.f32.mxu1 %v16383_v11  ;;  %v16441_v11 = vld [vmem:[#allocation227_spill] sm:$0xff] }
 0x48c   : > { %5372 = vmatmul.mubr.f32.gmra.mrb[80].mxu0 %v16384_v38 }
 0x48d   : > { %6581 = vmatmul.mubr.f32.gmra.mrb[80].mxu1 %v16384_v38  ;;  %5377 = vmatprep.mubr.f32.mxu0 %v16385_v33  ;;  %v16442_v38 = vld [vmem:[#allocation228_spill] sm:$0xff] }
 0x48e   : > { %6585 = vmatprep.mubr.f32.mxu1 %v16385_v33  ;;  %v16443_v33 = vld [vmem:[#allocation229_spill] sm:$0xff] }
 0x490   : > { %5378 = vmatmul.mubr.f32.gmra.mrb[82].mxu0 %v16386_v55 }
 0x491   : > { %6586 = vmatmul.mubr.f32.gmra.mrb[82].mxu1 %v16386_v55  ;;  %5383 = vmatprep.mubr.f32.mxu0 %v16387_v43  ;;  %v16444_v55 = vld [vmem:[#allocation230_spill] sm:$0xff] }
 0x492   : > { %6590 = vmatprep.mubr.f32.mxu1 %v16387_v43  ;;  %v16445_v43 = vld [vmem:[#allocation231_spill] sm:$0xff] }
 0x494   : > { %5384 = vmatmul.mubr.f32.gmra.mrb[84].mxu0 %v16388_v63 }
 0x495   : > { %6591 = vmatmul.mubr.f32.gmra.mrb[84].mxu1 %v16388_v63  ;;  %5389 = vmatprep.mubr.f32.mxu0 %v16389_v60  ;;  %v16446_v63 = vld [vmem:[#allocation232_spill] sm:$0xff] }
 0x496   : > { %6595 = vmatprep.mubr.f32.mxu1 %v16389_v60  ;;  %v16447_v60 = vld [vmem:[#allocation233_spill] sm:$0xff] }
 0x498   : > { %5390 = vmatmul.mubr.f32.gmra.mrb[86].mxu0 %v16390_v52 }
 0x499   : > { %6596 = vmatmul.mubr.f32.gmra.mrb[86].mxu1 %v16390_v52  ;;  %5395 = vmatprep.mubr.f32.mxu0 %v16391_v58  ;;  %v16448_v52 = vld [vmem:[#allocation234_spill] sm:$0xff] }
 0x49a   : > { %6600 = vmatprep.mubr.f32.mxu1 %v16391_v58  ;;  %v16449_v58 = vld [vmem:[#allocation235_spill] sm:$0xff] }
 0x49c   : > { %5396 = vmatmul.mubr.f32.gmra.mrb[88].mxu0 %v16392_v20 }
 0x49d   : > { %6601 = vmatmul.mubr.f32.gmra.mrb[88].mxu1 %v16392_v20  ;;  %5401 = vmatprep.mubr.f32.mxu0 %v16393_v28  ;;  %v16456_v20 = vld [vmem:[#allocation242_spill] sm:$0xff] }
 0x49e   : > { %6605 = vmatprep.mubr.f32.mxu1 %v16393_v28  ;;  %v16457_v28 = vld [vmem:[#allocation243_spill] sm:$0xff] }
 0x4a0   : > { %5402 = vmatmul.mubr.f32.gmra.mrb[90].mxu0 %v16394_v56 }
 0x4a1   : > { %6606 = vmatmul.mubr.f32.gmra.mrb[90].mxu1 %v16394_v56  ;;  %5407 = vmatprep.mubr.f32.mxu0 %v16395_v26  ;;  %v16458_v56 = vld [vmem:[#allocation244_spill] sm:$0xff] }
 0x4a2   : > { %6610 = vmatprep.mubr.f32.mxu1 %v16395_v26  ;;  %v16459_v26 = vld [vmem:[#allocation245_spill] sm:$0xff] }
 0x4a4   : > { %5408 = vmatmul.mubr.f32.gmra.mrb[92].mxu0 %v16396_v32 }
 0x4a5   : > { %6611 = vmatmul.mubr.f32.gmra.mrb[92].mxu1 %v16396_v32  ;;  %5413 = vmatprep.mubr.f32.mxu0 %v16397_v18  ;;  %v16460_v32 = vld [vmem:[#allocation246_spill] sm:$0xff] }
 0x4a6   : > { %6615 = vmatprep.mubr.f32.mxu1 %v16397_v18  ;;  %v16461_v18 = vld [vmem:[#allocation247_spill] sm:$0xff] }
 0x4a8   : > { %5414 = vmatmul.mubr.f32.gmra.mrb[94].mxu0 %v16398_v17 }
 0x4a9   : > { %6616 = vmatmul.mubr.f32.gmra.mrb[94].mxu1 %v16398_v17  ;;  %5419 = vmatprep.mubr.f32.mxu0 %v16399_v14  ;;  %v16462_v17 = vld [vmem:[#allocation248_spill] sm:$0xff] }
 0x4aa   : > { %6620 = vmatprep.mubr.f32.mxu1 %v16399_v14 }
 0x4ac   : > { %5420 = vmatmul.mubr.f32.gmra.mrb[96].mxu0 %v16400_v19 }
 0x4ad   : > { %6621 = vmatmul.mubr.f32.gmra.mrb[96].mxu1 %v16400_v19  ;;  %5425 = vmatprep.mubr.f32.mxu0 %v16401_v45 }
 0x4ae   : > { %6625 = vmatprep.mubr.f32.mxu1 %v16401_v45 }
 0x4b0   : > { %5426 = vmatmul.mubr.f32.gmra.mrb[98].mxu0 %v16402_v24 }
 0x4b1   : > { %6626 = vmatmul.mubr.f32.gmra.mrb[98].mxu1 %v16402_v24  ;;  %5431 = vmatprep.mubr.f32.mxu0 %v16403_v44 }
 0x4b2   : > { %6630 = vmatprep.mubr.f32.mxu1 %v16403_v44 }
 0x4b4   : > { %5432 = vmatmul.mubr.f32.gmra.mrb[100].mxu0 %v16404_v50 }
 0x4b5   : > { %6631 = vmatmul.mubr.f32.gmra.mrb[100].mxu1 %v16404_v50  ;;  %5437 = vmatprep.mubr.f32.mxu0 %v16405_v54 }
 0x4b6   : > { %6635 = vmatprep.mubr.f32.mxu1 %v16405_v54 }
 0x4b8   : > { %5438 = vmatmul.mubr.f32.gmra.mrb[102].mxu0 %v16406_v59 }
 0x4b9   : > { %6636 = vmatmul.mubr.f32.gmra.mrb[102].mxu1 %v16406_v59  ;;  %5443 = vmatprep.mubr.f32.mxu0 %v16407_v22 }
 0x4ba   : > { %6640 = vmatprep.mubr.f32.mxu1 %v16407_v22 }
 0x4bc   : > { %5444 = vmatmul.mubr.f32.gmra.mrb[104].mxu0 %v16408_v41 }
 0x4bd   : > { %6641 = vmatmul.mubr.f32.gmra.mrb[104].mxu1 %v16408_v41  ;;  %5449 = vmatprep.mubr.f32.mxu0 %v16409_v49 }
 0x4be   : > { %6645 = vmatprep.mubr.f32.mxu1 %v16409_v49 }
 0x4c0   : > { %5450 = vmatmul.mubr.f32.gmra.mrb[106].mxu0 %v16410_v46 }
 0x4c1   : > { %6646 = vmatmul.mubr.f32.gmra.mrb[106].mxu1 %v16410_v46  ;;  %5455 = vmatprep.mubr.f32.mxu0 %v16411_v51 }
 0x4c2   : > { %6650 = vmatprep.mubr.f32.mxu1 %v16411_v51 }
 0x4c4   : > { %5456 = vmatmul.mubr.f32.gmra.mrb[108].mxu0 %v16412_v31 }
 0x4c5   : > { %6651 = vmatmul.mubr.f32.gmra.mrb[108].mxu1 %v16412_v31  ;;  %5461 = vmatprep.mubr.f32.mxu0 %v16413_v36 }
 0x4c6   : > { %6655 = vmatprep.mubr.f32.mxu1 %v16413_v36 }
 0x4c8   : > { %5462 = vmatmul.mubr.f32.gmra.mrb[110].mxu0 %v16414_v2 }
 0x4c9   : > { %6656 = vmatmul.mubr.f32.gmra.mrb[110].mxu1 %v16414_v2  ;;  %5467 = vmatprep.mubr.f32.mxu0 %v16415_v5 }
 0x4ca   : > { %6660 = vmatprep.mubr.f32.mxu1 %v16415_v5 }
 0x4cc   : > { %5468 = vmatmul.mubr.f32.gmra.mrb[112].mxu0 %v16416_v16 }
 0x4cd   : > { %6661 = vmatmul.mubr.f32.gmra.mrb[112].mxu1 %v16416_v16  ;;  %5473 = vmatprep.mubr.f32.mxu0 %v16417_v39 }
 0x4ce   : > { %6665 = vmatprep.mubr.f32.mxu1 %v16417_v39 }
 0x4d0   : > { %5474 = vmatmul.mubr.f32.gmra.mrb[114].mxu0 %v16418_v48 }
 0x4d1   : > { %6666 = vmatmul.mubr.f32.gmra.mrb[114].mxu1 %v16418_v48  ;;  %5479 = vmatprep.mubr.f32.mxu0 %v16419_v0 }
 0x4d2   : > { %6670 = vmatprep.mubr.f32.mxu1 %v16419_v0 }
 0x4d4   : > { %5480 = vmatmul.mubr.f32.gmra.mrb[116].mxu0 %v16420_v4 }
 0x4d5   : > { %6671 = vmatmul.mubr.f32.gmra.mrb[116].mxu1 %v16420_v4  ;;  %5485 = vmatprep.mubr.f32.mxu0 %v16421_v12 }
 0x4d6   : > { %6675 = vmatprep.mubr.f32.mxu1 %v16421_v12 }
 0x4d8   : > { %5486 = vmatmul.mubr.f32.gmra.mrb[118].mxu0 %v16422_v15 }
 0x4d9   : > { %6676 = vmatmul.mubr.f32.gmra.mrb[118].mxu1 %v16422_v15  ;;  %5491 = vmatprep.mubr.f32.mxu0 %v16423_v21 }
 0x4da   : > { %6680 = vmatprep.mubr.f32.mxu1 %v16423_v21 }
 0x4dc   : > { %5492 = vmatmul.mubr.f32.gmra.mrb[120].mxu0 %v16424_v23 }
 0x4dd   : > { %6681 = vmatmul.mubr.f32.gmra.mrb[120].mxu1 %v16424_v23  ;;  %5497 = vmatprep.mubr.f32.mxu0 %v16425_v10 }
 0x4de   : > { %6685 = vmatprep.mubr.f32.mxu1 %v16425_v10 }
 0x4e0   : > { %5498 = vmatmul.mubr.f32.gmra.mrb[122].mxu0 %v16426_v53 }
 0x4e1   : > { %6686 = vmatmul.mubr.f32.gmra.mrb[122].mxu1 %v16426_v53  ;;  %5503 = vmatprep.mubr.f32.mxu0 %v16427_v40 }
 0x4e2   : > { %6690 = vmatprep.mubr.f32.mxu1 %v16427_v40 }
 0x4e4   : > { %5504 = vmatmul.mubr.f32.gmra.mrb[124].mxu0 %v16428_v61 }
 0x4e5   : > { %6691 = vmatmul.mubr.f32.gmra.mrb[124].mxu1 %v16428_v61  ;;  %5509 = vmatprep.mubr.f32.mxu0 %v16429_v30 }
 0x4e6   : > { %6695 = vmatprep.mubr.f32.mxu1 %v16429_v30 }
 0x4e8   : > { %5510 = vmatmul.mubr.f32.gmra.mrb[126].mxu0 %v16430_v7 }
 0x4e9   : > { %6696 = vmatmul.mubr.f32.gmra.mrb[126].mxu1 %v16430_v7  ;;  %5515 = vmatprep.mubr.f32.mxu0 %v16431_v1 }
 0x4ea   : > { %6700 = vmatprep.mubr.f32.mxu1 %v16431_v1 }
 0x4ec   : > { %5516 = vmatmul.mubr.f32.gmra.mrb[128].mxu0 %v16432_v6 }
 0x4ed   : > { %6701 = vmatmul.mubr.f32.gmra.mrb[128].mxu1 %v16432_v6  ;;  %5521 = vmatprep.mubr.f32.mxu0 %v16433_v25 }
 0x4ee   : > { %6705 = vmatprep.mubr.f32.mxu1 %v16433_v25 }
 0x4f0   : > { %5522 = vmatmul.mubr.f32.gmra.mrb[130].mxu0 %v16434_v35 }
 0x4f1   : > { %6706 = vmatmul.mubr.f32.gmra.mrb[130].mxu1 %v16434_v35  ;;  %5592 = vmatprep.mubr.f32.mxu0 %v16435_v47 }
 0x4f2   : > { %7418 = vmatprep.mubr.msk.f32.mxu1 %vm9589_vm1, %v16435_v47 }
 0x4f4   : > { %7305 = vmatmul.mubr.msk.f32.vlgmr.msra.gmra.mrb[66].mxu0 %vm1746_vm0, %v16436_v13 }
 0x4f5   : > { %7419 = vmatmul.mubr.msk.f32.vlgmr.msra.gmra.mrb[66].mxu1 %vm1746_vm0, %v16436_v13  ;;  %5598 = vmatprep.mubr.f32.mxu0 %v16435_v47 }
 0x4f6   : > { %7421 = vmatprep.mubr.msk.f32.mxu1 %vm9589_vm1, %v16435_v47 }
 0x4f8   : > { %7306 = vmatmul.mubr.msk.f32.gmra.mrb[68].mxu0 %vm1746_vm0, %v16437_v9 }
 0x4f9   : > { %7422 = vmatmul.mubr.msk.f32.gmra.mrb[68].mxu1 %vm1746_vm0, %v16437_v9  ;;  %5604 = vmatprep.mubr.f32.mxu0 %v16435_v47 }
 0x4fa   : > { %7424 = vmatprep.mubr.msk.f32.mxu1 %vm9589_vm1, %v16435_v47 }
 0x4fc   : > { %7307 = vmatmul.mubr.msk.f32.gmra.mrb[70].mxu0 %vm1746_vm0, %v16438_v34 }
 0x4fd   : > { %7425 = vmatmul.mubr.msk.f32.gmra.mrb[70].mxu1 %vm1746_vm0, %v16438_v34  ;;  %5610 = vmatprep.mubr.f32.mxu0 %v16435_v47 }
 0x4fe   : > { %7427 = vmatprep.mubr.msk.f32.mxu1 %vm9589_vm1, %v16435_v47 }
 0x500   : > { %7308 = vmatmul.mubr.msk.f32.gmra.mrb[72].mxu0 %vm1746_vm0, %v16439_v42 }
 0x501   : > { %7428 = vmatmul.mubr.msk.f32.gmra.mrb[72].mxu1 %vm1746_vm0, %v16439_v42  ;;  %5616 = vmatprep.mubr.f32.mxu0 %v16435_v47 }
 0x502   : > { %7430 = vmatprep.mubr.msk.f32.mxu1 %vm9589_vm1, %v16435_v47 }
 0x504   : > { %7309 = vmatmul.mubr.msk.f32.gmra.mrb[74].mxu0 %vm1746_vm0, %v16440_v62 }
 0x505   : > { %7431 = vmatmul.mubr.msk.f32.gmra.mrb[74].mxu1 %vm1746_vm0, %v16440_v62  ;;  %5622 = vmatprep.mubr.f32.mxu0 %v16435_v47 }
 0x506   : > { %7433 = vmatprep.mubr.msk.f32.mxu1 %vm9589_vm1, %v16435_v47 }
 0x508   : > { %7310 = vmatmul.mubr.msk.f32.gmra.mrb[76].mxu0 %vm1746_vm0, %v16441_v11 }
 0x509   : > { %7434 = vmatmul.mubr.msk.f32.gmra.mrb[76].mxu1 %vm1746_vm0, %v16441_v11  ;;  %5628 = vmatprep.mubr.f32.mxu0 %v16435_v47 }
 0x50a   : > { %7436 = vmatprep.mubr.msk.f32.mxu1 %vm9589_vm1, %v16435_v47 }
 0x50c   : > { %7311 = vmatmul.mubr.msk.f32.gmra.mrb[78].mxu0 %vm1746_vm0, %v16442_v38 }
 0x50d   : > { %7437 = vmatmul.mubr.msk.f32.gmra.mrb[78].mxu1 %vm1746_vm0, %v16442_v38  ;;  %5634 = vmatprep.mubr.f32.mxu0 %v16435_v47 }
 0x50e   : > { %7439 = vmatprep.mubr.msk.f32.mxu1 %vm9589_vm1, %v16435_v47 }
 0x510   : > { %7312 = vmatmul.mubr.msk.f32.gmra.mrb[80].mxu0 %vm1746_vm0, %v16443_v33 }
 0x511   : > { %7440 = vmatmul.mubr.msk.f32.gmra.mrb[80].mxu1 %vm1746_vm0, %v16443_v33  ;;  %5640 = vmatprep.mubr.f32.mxu0 %v16435_v47 }
 0x512   : > { %7442 = vmatprep.mubr.msk.f32.mxu1 %vm9589_vm1, %v16435_v47 }
 0x514   : > { %7313 = vmatmul.mubr.msk.f32.gmra.mrb[82].mxu0 %vm1746_vm0, %v16444_v55 }
 0x515   : > { %7443 = vmatmul.mubr.msk.f32.gmra.mrb[82].mxu1 %vm1746_vm0, %v16444_v55  ;;  %5646 = vmatprep.mubr.f32.mxu0 %v16435_v47 }
 0x516   : > { %7445 = vmatprep.mubr.msk.f32.mxu1 %vm9589_vm1, %v16435_v47 }
 0x518   : > { %7314 = vmatmul.mubr.msk.f32.gmra.mrb[84].mxu0 %vm1746_vm0, %v16445_v43 }
 0x519   : > { %7446 = vmatmul.mubr.msk.f32.gmra.mrb[84].mxu1 %vm1746_vm0, %v16445_v43  ;;  %5652 = vmatprep.mubr.f32.mxu0 %v16435_v47 }
 0x51a   : > { %7448 = vmatprep.mubr.msk.f32.mxu1 %vm9589_vm1, %v16435_v47 }
 0x51c   : > { %7315 = vmatmul.mubr.msk.f32.gmra.mrb[86].mxu0 %vm1746_vm0, %v16446_v63 }
 0x51d   : > { %7449 = vmatmul.mubr.msk.f32.gmra.mrb[86].mxu1 %vm1746_vm0, %v16446_v63  ;;  %5658 = vmatprep.mubr.f32.mxu0 %v16435_v47 }
 0x51e   : > { %7451 = vmatprep.mubr.msk.f32.mxu1 %vm9589_vm1, %v16435_v47 }
 0x520   : > { %7316 = vmatmul.mubr.msk.f32.gmra.mrb[88].mxu0 %vm1746_vm0, %v16447_v60 }
 0x521   : > { %7452 = vmatmul.mubr.msk.f32.gmra.mrb[88].mxu1 %vm1746_vm0, %v16447_v60  ;;  %5664 = vmatprep.mubr.f32.mxu0 %v16435_v47 }
 0x522   : > { %7454 = vmatprep.mubr.msk.f32.mxu1 %vm9589_vm1, %v16435_v47 }
 0x524   : > { %7317 = vmatmul.mubr.msk.f32.gmra.mrb[90].mxu0 %vm1746_vm0, %v16448_v52 }
 0x525   : > { %7455 = vmatmul.mubr.msk.f32.gmra.mrb[90].mxu1 %vm1746_vm0, %v16448_v52  ;;  %5670 = vmatprep.mubr.f32.mxu0 %v16435_v47 }
 0x526   : > { %7457 = vmatprep.mubr.msk.f32.mxu1 %vm9589_vm1, %v16435_v47 }
 0x528   : > { %7318 = vmatmul.mubr.msk.f32.gmra.mrb[92].mxu0 %vm1746_vm0, %v16449_v58 }
 0x529   : > { %7458 = vmatmul.mubr.msk.f32.gmra.mrb[92].mxu1 %vm1746_vm0, %v16449_v58  ;;  %5676 = vmatprep.mubr.f32.mxu0 %v16435_v47 }
 0x52a   : > { %7460 = vmatprep.mubr.msk.f32.mxu1 %vm9589_vm1, %v16435_v47 }
 0x52c   : > { %7319 = vmatmul.mubr.msk.f32.gmra.mrb[94].mxu0 %vm1746_vm0, %v13269_v3 }
 0x52d   : > { %7461 = vmatmul.mubr.msk.f32.gmra.mrb[94].mxu1 %vm1746_vm0, %v13269_v3  ;;  %5682 = vmatprep.mubr.f32.mxu0 %v16435_v47  ;;  %v16450_v3 = vld [vmem:[#allocation236_spill] sm:$0xff] }
 0x52e   : > { %7463 = vmatprep.mubr.msk.f32.mxu1 %vm9589_vm1, %v16435_v47 }
 0x530   : > { %7320 = vmatmul.mubr.msk.f32.gmra.mrb[96].mxu0 %vm1746_vm0, %v13298_v27 }
 0x531   : > { %7464 = vmatmul.mubr.msk.f32.gmra.mrb[96].mxu1 %vm1746_vm0, %v13298_v27  ;;  %5688 = vmatprep.mubr.f32.mxu0 %v16435_v47  ;;  %v16451_v27 = vld [vmem:[#allocation237_spill] sm:$0xff] }
 0x532   : > { %7466 = vmatprep.mubr.msk.f32.mxu1 %vm9589_vm1, %v16435_v47 }
 0x534   : > { %7321 = vmatmul.mubr.msk.f32.gmra.mrb[98].mxu0 %vm1746_vm0, %v13318_v8 }
 0x535   : > { %7467 = vmatmul.mubr.msk.f32.gmra.mrb[98].mxu1 %vm1746_vm0, %v13318_v8  ;;  %5694 = vmatprep.mubr.f32.mxu0 %v16435_v47  ;;  %v16452_v8 = vld [vmem:[#allocation238_spill] sm:$0xff] }
 0x536   : > { %7469 = vmatprep.mubr.msk.f32.mxu1 %vm9589_vm1, %v16435_v47 }
 0x538   : > { %7322 = vmatmul.mubr.msk.f32.gmra.mrb[100].mxu0 %vm1746_vm0, %v13329_v29 }
 0x539   : > { %7470 = vmatmul.mubr.msk.f32.gmra.mrb[100].mxu1 %vm1746_vm0, %v13329_v29  ;;  %5700 = vmatprep.mubr.f32.mxu0 %v16435_v47  ;;  %v16453_v29 = vld [vmem:[#allocation239_spill] sm:$0xff] }
 0x53a   : > { %7472 = vmatprep.mubr.msk.f32.mxu1 %vm9589_vm1, %v16435_v47 }
 0x53c   : > { %7323 = vmatmul.mubr.msk.f32.gmra.mrb[102].mxu0 %vm1746_vm0, %v13340_v57 }
 0x53d   : > { %7473 = vmatmul.mubr.msk.f32.gmra.mrb[102].mxu1 %vm1746_vm0, %v13340_v57  ;;  %5706 = vmatprep.mubr.f32.mxu0 %v16435_v47  ;;  %v16454_v57 = vld [vmem:[#allocation240_spill] sm:$0xff] }
 0x53e   : > { %7475 = vmatprep.mubr.msk.f32.mxu1 %vm9589_vm1, %v16435_v47 }
 0x540   : > { %7324 = vmatmul.mubr.msk.f32.gmra.mrb[104].mxu0 %vm1746_vm0, %v13350_v37 }
 0x541   : > { %7476 = vmatmul.mubr.msk.f32.gmra.mrb[104].mxu1 %vm1746_vm0, %v13350_v37  ;;  %5712 = vmatprep.mubr.f32.mxu0 %v16435_v47  ;;  %v16455_v37 = vld [vmem:[#allocation241_spill] sm:$0xff] }
 0x542   : > { %7478 = vmatprep.mubr.msk.f32.mxu1 %vm9589_vm1, %v16435_v47 }
 0x544   : > { %7325 = vmatmul.mubr.msk.f32.gmra.mrb[106].mxu0 %vm1746_vm0, %v16450_v3 }
 0x545   : > { %7479 = vmatmul.mubr.msk.f32.gmra.mrb[106].mxu1 %vm1746_vm0, %v16450_v3  ;;  %5718 = vmatprep.mubr.f32.mxu0 %v16435_v47 }
 0x546   : > { %7481 = vmatprep.mubr.msk.f32.mxu1 %vm9589_vm1, %v16435_v47 }
 0x548   : > { %7326 = vmatmul.mubr.msk.f32.gmra.mrb[108].mxu0 %vm1746_vm0, %v16451_v27 }
 0x549   : > { %7482 = vmatmul.mubr.msk.f32.gmra.mrb[108].mxu1 %vm1746_vm0, %v16451_v27  ;;  %5724 = vmatprep.mubr.f32.mxu0 %v16435_v47 }
 0x54a   : > { %7484 = vmatprep.mubr.msk.f32.mxu1 %vm9589_vm1, %v16435_v47 }
 0x54c   : > { %7327 = vmatmul.mubr.msk.f32.gmra.mrb[110].mxu0 %vm1746_vm0, %v16452_v8 }
 0x54d   : > { %7485 = vmatmul.mubr.msk.f32.gmra.mrb[110].mxu1 %vm1746_vm0, %v16452_v8  ;;  %5730 = vmatprep.mubr.f32.mxu0 %v16435_v47 }
 0x54e   : > { %7487 = vmatprep.mubr.msk.f32.mxu1 %vm9589_vm1, %v16435_v47 }
 0x550   : > { %7328 = vmatmul.mubr.msk.f32.gmra.mrb[112].mxu0 %vm1746_vm0, %v16453_v29 }
 0x551   : > { %7488 = vmatmul.mubr.msk.f32.gmra.mrb[112].mxu1 %vm1746_vm0, %v16453_v29  ;;  %5736 = vmatprep.mubr.f32.mxu0 %v16435_v47 }
 0x552   : > { %7490 = vmatprep.mubr.msk.f32.mxu1 %vm9589_vm1, %v16435_v47 }
 0x554   : > { %7329 = vmatmul.mubr.msk.f32.gmra.mrb[114].mxu0 %vm1746_vm0, %v16454_v57 }
 0x555   : > { %7491 = vmatmul.mubr.msk.f32.gmra.mrb[114].mxu1 %vm1746_vm0, %v16454_v57  ;;  %5742 = vmatprep.mubr.f32.mxu0 %v16435_v47 }
 0x556   : > { %7493 = vmatprep.mubr.msk.f32.mxu1 %vm9589_vm1, %v16435_v47 }
 0x558   : > { %7330 = vmatmul.mubr.msk.f32.gmra.mrb[116].mxu0 %vm1746_vm0, %v16455_v37 }
 0x559   : > { %7494 = vmatmul.mubr.msk.f32.gmra.mrb[116].mxu1 %vm1746_vm0, %v16455_v37  ;;  %5748 = vmatprep.mubr.f32.mxu0 %v16435_v47 }
 0x55a   : > { %7496 = vmatprep.mubr.msk.f32.mxu1 %vm9589_vm1, %v16435_v47 }
 0x55c   : > { %7331 = vmatmul.mubr.msk.f32.gmra.mrb[118].mxu0 %vm1746_vm0, %v16456_v20 }
 0x55d   : > { %7497 = vmatmul.mubr.msk.f32.gmra.mrb[118].mxu1 %vm1746_vm0, %v16456_v20  ;;  %5754 = vmatprep.mubr.f32.mxu0 %v16435_v47 }
 0x55e   : > { %7499 = vmatprep.mubr.msk.f32.mxu1 %vm9589_vm1, %v16435_v47 }
 0x560   : > { %7332 = vmatmul.mubr.msk.f32.gmra.mrb[120].mxu0 %vm1746_vm0, %v16457_v28 }
 0x561   : > { %7500 = vmatmul.mubr.msk.f32.gmra.mrb[120].mxu1 %vm1746_vm0, %v16457_v28  ;;  %5760 = vmatprep.mubr.f32.mxu0 %v16435_v47 }
 0x562   : > { %7502 = vmatprep.mubr.msk.f32.mxu1 %vm9589_vm1, %v16435_v47 }
 0x564   : > { %7333 = vmatmul.mubr.msk.f32.gmra.mrb[122].mxu0 %vm1746_vm0, %v16458_v56 }
 0x565   : > { %7503 = vmatmul.mubr.msk.f32.gmra.mrb[122].mxu1 %vm1746_vm0, %v16458_v56  ;;  %5766 = vmatprep.mubr.f32.mxu0 %v16435_v47 }
 0x566   : > { %7505 = vmatprep.mubr.msk.f32.mxu1 %vm9589_vm1, %v16435_v47 }
 0x568   : > { %7334 = vmatmul.mubr.msk.f32.gmra.mrb[124].mxu0 %vm1746_vm0, %v16459_v26 }
 0x569   : > { %7506 = vmatmul.mubr.msk.f32.gmra.mrb[124].mxu1 %vm1746_vm0, %v16459_v26  ;;  %5772 = vmatprep.mubr.f32.mxu0 %v16435_v47 }
 0x56a   : > { %7508 = vmatprep.mubr.msk.f32.mxu1 %vm9589_vm1, %v16435_v47 }
 0x56c   : > { %7335 = vmatmul.mubr.msk.f32.gmra.mrb[126].mxu0 %vm1746_vm0, %v16460_v32 }
 0x56d   : > { %7509 = vmatmul.mubr.msk.f32.gmra.mrb[126].mxu1 %vm1746_vm0, %v16460_v32  ;;  %5778 = vmatprep.mubr.f32.mxu0 %v16435_v47 }
 0x56e   : > { %7511 = vmatprep.mubr.msk.f32.mxu1 %vm9589_vm1, %v16435_v47 }
 0x570   : > { %7336 = vmatmul.mubr.msk.f32.gmra.mrb[128].mxu0 %vm1746_vm0, %v16461_v18 }
 0x571   : > { %7512 = vmatmul.mubr.msk.f32.gmra.mrb[128].mxu1 %vm1746_vm0, %v16461_v18  ;;  %5784 = vmatprep.mubr.f32.mxu0 %v16435_v47 }
 0x572   : > { %7514 = vmatprep.mubr.msk.f32.mxu1 %vm9589_vm1, %v16435_v47 }
 0x574   : > { %7337 = vmatmul.mubr.msk.f32.gmra.mrb[130].mxu0 %vm1746_vm0, %v16462_v17 }
 0x575   : > { %7515 = vmatmul.mubr.msk.f32.gmra.mrb[130].mxu1 %vm1746_vm0, %v16462_v17 }
 0x5c7   : > { %v5594_v14 = vpop.f32.mrb[66].mxu0 }
 0x5c8   : > { %6945 = vst [vmem:[%s13878_s19 + $0x20] sm:$0xff] %v5594_v14  ;;  %v6777_v19 = vpop.f32.mrb[66].mxu1  ;;  %v5596_v45 = vpop.f32.mrb[67].mxu0 }
 0x5c9   : > { %6948 = vst.msk [vmem:[%s13878_s19 + $0x30] sm:$0xff] %vm6947_vm2, %v6777_v19  ;;  %6946 = vst [vmem:[%s13878_s19 + $0x28] sm:$0xff] %v5596_v45  ;;  %v7420_v24 = vpop.f32.mrb[67].mxu1 }
 0x5cb   : > { %v5600_v44 = vpop.f32.mrb[68].mxu0 }
 0x5cc   : > { %6953 = vst [vmem:[%s13878_s19 + $0x58] sm:$0xff] %v5600_v44  ;;  %v6782_v50 = vpop.f32.mrb[68].mxu1  ;;  %v5602_v54 = vpop.f32.mrb[69].mxu0 }
 0x5cd   : > { %6955 = vst.msk [vmem:[%s13878_s19 + $0x68] sm:$0xff] %vm6947_vm2, %v6782_v50  ;;  %6954 = vst [vmem:[%s13878_s19 + $0x60] sm:$0xff] %v5602_v54  ;;  %v7423_v59 = vpop.f32.mrb[69].mxu1 }
 0x5cf   : > { %v5606_v22 = vpop.f32.mrb[70].mxu0 }
 0x5d0   : > { %6960 = vst [vmem:[%s13878_s19 + $0x90] sm:$0xff] %v5606_v22  ;;  %v6787_v41 = vpop.f32.mrb[70].mxu1  ;;  %v5608_v49 = vpop.f32.mrb[71].mxu0 }
 0x5d1   : > { %6962 = vst.msk [vmem:[%s13878_s19 + $0xa0] sm:$0xff] %vm6947_vm2, %v6787_v41  ;;  %6961 = vst [vmem:[%s13878_s19 + $0x98] sm:$0xff] %v5608_v49  ;;  %v7426_v46 = vpop.f32.mrb[71].mxu1 }
 0x5d3   : > { %v5612_v51 = vpop.f32.mrb[72].mxu0 }
 0x5d4   : > { %6967 = vst [vmem:[%s13878_s19 + $0xc8] sm:$0xff] %v5612_v51  ;;  %v6792_v31 = vpop.f32.mrb[72].mxu1  ;;  %v5614_v36 = vpop.f32.mrb[73].mxu0 }
 0x5d5   : > { %6969 = vst.msk [vmem:[%s13878_s19 + $0xd8] sm:$0xff] %vm6947_vm2, %v6792_v31  ;;  %6968 = vst [vmem:[%s13878_s19 + $0xd0] sm:$0xff] %v5614_v36  ;;  %v7429_v2 = vpop.f32.mrb[73].mxu1 }
 0x5d7   : > { %v5618_v5 = vpop.f32.mrb[74].mxu0 }
 0x5d8   : > { %6974 = vst [vmem:[%s13878_s19 + $0x100] sm:$0xff] %v5618_v5  ;;  %v6797_v16 = vpop.f32.mrb[74].mxu1  ;;  %v5620_v39 = vpop.f32.mrb[75].mxu0 }
 0x5d9   : > { %6976 = vst.msk [vmem:[%s13878_s19 + $0x110] sm:$0xff] %vm6947_vm2, %v6797_v16  ;;  %6975 = vst [vmem:[%s13878_s19 + $0x108] sm:$0xff] %v5620_v39  ;;  %v7432_v48 = vpop.f32.mrb[75].mxu1 }
 0x5db   : > { %v5624_v0 = vpop.f32.mrb[76].mxu0 }
 0x5dc   : > { %6981 = vst [vmem:[%s13878_s19 + $0x138] sm:$0xff] %v5624_v0  ;;  %v6802_v4 = vpop.f32.mrb[76].mxu1  ;;  %v5626_v12 = vpop.f32.mrb[77].mxu0 }
 0x5dd   : > { %6983 = vst.msk [vmem:[%s13878_s19 + $0x148] sm:$0xff] %vm6947_vm2, %v6802_v4  ;;  %6982 = vst [vmem:[%s13878_s19 + $0x140] sm:$0xff] %v5626_v12  ;;  %v7435_v15 = vpop.f32.mrb[77].mxu1 }
 0x5df   : > { %v5630_v21 = vpop.f32.mrb[78].mxu0 }
 0x5e0   : > { %6988 = vst [vmem:[%s13878_s19 + $0x170] sm:$0xff] %v5630_v21  ;;  %v6807_v23 = vpop.f32.mrb[78].mxu1  ;;  %v5632_v10 = vpop.f32.mrb[79].mxu0 }
 0x5e1   : > { %6990 = vst.msk [vmem:[%s13878_s19 + $0x180] sm:$0xff] %vm6947_vm2, %v6807_v23  ;;  %6989 = vst [vmem:[%s13878_s19 + $0x178] sm:$0xff] %v5632_v10  ;;  %v7438_v53 = vpop.f32.mrb[79].mxu1 }
 0x5e3   : > { %v5636_v40 = vpop.f32.mrb[80].mxu0 }
 0x5e4   : > { %6995 = vst [vmem:[%s13878_s19 + $0x1a8] sm:$0xff] %v5636_v40  ;;  %v6812_v61 = vpop.f32.mrb[80].mxu1  ;;  %v5638_v30 = vpop.f32.mrb[81].mxu0 }
 0x5e5   : > { %6997 = vst.msk [vmem:[%s13878_s19 + $0x1b8] sm:$0xff] %vm6947_vm2, %v6812_v61  ;;  %6996 = vst [vmem:[%s13878_s19 + $0x1b0] sm:$0xff] %v5638_v30  ;;  %v7441_v7 = vpop.f32.mrb[81].mxu1 }
 0x5e7   : > { %v5642_v1 = vpop.f32.mrb[82].mxu0 }
 0x5e8   : > { %7002 = vst [vmem:[%s13878_s19 + $0x1e0] sm:$0xff] %v5642_v1  ;;  %v6817_v6 = vpop.f32.mrb[82].mxu1  ;;  %v5644_v25 = vpop.f32.mrb[83].mxu0 }
 0x5e9   : > { %7004 = vst.msk [vmem:[%s13878_s19 + $0x1f0] sm:$0xff] %vm6947_vm2, %v6817_v6  ;;  %7003 = vst [vmem:[%s13878_s19 + $0x1e8] sm:$0xff] %v5644_v25  ;;  %v7444_v35 = vpop.f32.mrb[83].mxu1 }
 0x5eb   : > { %v5648_v47 = vpop.f32.mrb[84].mxu0 }
 0x5ec   : > { %7009 = vst [vmem:[%s13878_s19 + $0x218] sm:$0xff] %v5648_v47  ;;  %v6822_v13 = vpop.f32.mrb[84].mxu1  ;;  %v5650_v9 = vpop.f32.mrb[85].mxu0 }
 0x5ed   : > { %7011 = vst.msk [vmem:[%s13878_s19 + $0x228] sm:$0xff] %vm6947_vm2, %v6822_v13  ;;  %7010 = vst [vmem:[%s13878_s19 + $0x220] sm:$0xff] %v5650_v9  ;;  %v7447_v34 = vpop.f32.mrb[85].mxu1 }
 0x5ef   : > { %v5654_v42 = vpop.f32.mrb[86].mxu0 }
 0x5f0   : > { %7016 = vst [vmem:[%s13878_s19 + $0x250] sm:$0xff] %v5654_v42  ;;  %v6827_v62 = vpop.f32.mrb[86].mxu1  ;;  %v5656_v11 = vpop.f32.mrb[87].mxu0 }
 0x5f1   : > { %7018 = vst.msk [vmem:[%s13878_s19 + $0x260] sm:$0xff] %vm6947_vm2, %v6827_v62  ;;  %7017 = vst [vmem:[%s13878_s19 + $0x258] sm:$0xff] %v5656_v11  ;;  %v7450_v38 = vpop.f32.mrb[87].mxu1 }
 0x5f3   : > { %v5660_v33 = vpop.f32.mrb[88].mxu0 }
 0x5f4   : > { %7023 = vst [vmem:[%s13878_s19 + $0x288] sm:$0xff] %v5660_v33  ;;  %v6832_v55 = vpop.f32.mrb[88].mxu1  ;;  %v5662_v43 = vpop.f32.mrb[89].mxu0 }
 0x5f5   : > { %7025 = vst.msk [vmem:[%s13878_s19 + $0x298] sm:$0xff] %vm6947_vm2, %v6832_v55  ;;  %7024 = vst [vmem:[%s13878_s19 + $0x290] sm:$0xff] %v5662_v43  ;;  %v7453_v63 = vpop.f32.mrb[89].mxu1 }
 0x5f7   : > { %v5666_v60 = vpop.f32.mrb[90].mxu0 }
 0x5f8   : > { %7030 = vst [vmem:[%s13878_s19 + $0x2c0] sm:$0xff] %v5666_v60  ;;  %v6837_v52 = vpop.f32.mrb[90].mxu1  ;;  %v5668_v58 = vpop.f32.mrb[91].mxu0 }
 0x5f9   : > { %7032 = vst.msk [vmem:[%s13878_s19 + $0x2d0] sm:$0xff] %vm6947_vm2, %v6837_v52  ;;  %7031 = vst [vmem:[%s13878_s19 + $0x2c8] sm:$0xff] %v5668_v58  ;;  %v7456_v3 = vpop.f32.mrb[91].mxu1 }
 0x5fb   : > { %v5672_v27 = vpop.f32.mrb[92].mxu0 }
 0x5fc   : > { %7037 = vst [vmem:[%s13878_s19 + $0x2f8] sm:$0xff] %v5672_v27  ;;  %v6842_v8 = vpop.f32.mrb[92].mxu1  ;;  %v5674_v29 = vpop.f32.mrb[93].mxu0 }
 0x5fd   : > { %7039 = vst.msk [vmem:[%s13878_s19 + $0x308] sm:$0xff] %vm6947_vm2, %v6842_v8  ;;  %7038 = vst [vmem:[%s13878_s19 + $0x300] sm:$0xff] %v5674_v29  ;;  %v7459_v57 = vpop.f32.mrb[93].mxu1 }
 0x5ff   : > { %v5678_v37 = vpop.f32.mrb[94].mxu0 }
 0x600   : > { %7044 = vst [vmem:[%s13878_s19 + $0x330] sm:$0xff] %v5678_v37  ;;  %v6847_v20 = vpop.f32.mrb[94].mxu1  ;;  %v5680_v28 = vpop.f32.mrb[95].mxu0 }
 0x601   : > { %7046 = vst.msk [vmem:[%s13878_s19 + $0x340] sm:$0xff] %vm6947_vm2, %v6847_v20  ;;  %7045 = vst [vmem:[%s13878_s19 + $0x338] sm:$0xff] %v5680_v28  ;;  %v7462_v56 = vpop.f32.mrb[95].mxu1 }
 0x603   : > { %v5684_v26 = vpop.f32.mrb[96].mxu0 }
 0x604   : > { %7051 = vst [vmem:[%s13878_s19 + $0x368] sm:$0xff] %v5684_v26  ;;  %v6852_v32 = vpop.f32.mrb[96].mxu1  ;;  %v5686_v18 = vpop.f32.mrb[97].mxu0 }
 0x605   : > { %7053 = vst.msk [vmem:[%s13878_s19 + $0x378] sm:$0xff] %vm6947_vm2, %v6852_v32  ;;  %7052 = vst [vmem:[%s13878_s19 + $0x370] sm:$0xff] %v5686_v18  ;;  %v7465_v17 = vpop.f32.mrb[97].mxu1 }
 0x607   : > { %v5690_v14 = vpop.f32.mrb[98].mxu0 }
 0x608   : > { %7058 = vst [vmem:[%s13878_s19 + $0x3a0] sm:$0xff] %v5690_v14  ;;  %v6857_v19 = vpop.f32.mrb[98].mxu1  ;;  %v5692_v45 = vpop.f32.mrb[99].mxu0 }
 0x609   : > { %7060 = vst.msk [vmem:[%s13878_s19 + $0x3b0] sm:$0xff] %vm6947_vm2, %v6857_v19  ;;  %7059 = vst [vmem:[%s13878_s19 + $0x3a8] sm:$0xff] %v5692_v45  ;;  %v7468_v24 = vpop.f32.mrb[99].mxu1 }
 0x60b   : > { %v5696_v44 = vpop.f32.mrb[100].mxu0 }
 0x60c   : > { %7065 = vst [vmem:[%s13878_s19 + $0x3d8] sm:$0xff] %v5696_v44  ;;  %v6862_v50 = vpop.f32.mrb[100].mxu1  ;;  %v5698_v54 = vpop.f32.mrb[101].mxu0 }
 0x60d   : > { %7067 = vst.msk [vmem:[%s13878_s19 + $0x3e8] sm:$0xff] %vm6947_vm2, %v6862_v50  ;;  %7066 = vst [vmem:[%s13878_s19 + $0x3e0] sm:$0xff] %v5698_v54  ;;  %v7471_v59 = vpop.f32.mrb[101].mxu1 }
 0x60f   : > { %v5702_v22 = vpop.f32.mrb[102].mxu0 }
 0x610   : > { %7072 = vst [vmem:[%s13878_s19 + $0x410] sm:$0xff] %v5702_v22  ;;  %v6867_v41 = vpop.f32.mrb[102].mxu1  ;;  %v5704_v49 = vpop.f32.mrb[103].mxu0 }
 0x611   : > { %7074 = vst.msk [vmem:[%s13878_s19 + $0x420] sm:$0xff] %vm6947_vm2, %v6867_v41  ;;  %7073 = vst [vmem:[%s13878_s19 + $0x418] sm:$0xff] %v5704_v49  ;;  %v7474_v46 = vpop.f32.mrb[103].mxu1 }
 0x613   : > { %v5708_v51 = vpop.f32.mrb[104].mxu0 }
 0x614   : > { %7079 = vst [vmem:[%s13878_s19 + $0x448] sm:$0xff] %v5708_v51  ;;  %v6872_v31 = vpop.f32.mrb[104].mxu1  ;;  %v5710_v36 = vpop.f32.mrb[105].mxu0 }
 0x615   : > { %7081 = vst.msk [vmem:[%s13878_s19 + $0x458] sm:$0xff] %vm6947_vm2, %v6872_v31  ;;  %7080 = vst [vmem:[%s13878_s19 + $0x450] sm:$0xff] %v5710_v36  ;;  %v7477_v2 = vpop.f32.mrb[105].mxu1 }
 0x617   : > { %v5714_v5 = vpop.f32.mrb[106].mxu0 }
 0x618   : > { %7086 = vst [vmem:[%s13878_s19 + $0x480] sm:$0xff] %v5714_v5  ;;  %v6877_v16 = vpop.f32.mrb[106].mxu1  ;;  %v5716_v39 = vpop.f32.mrb[107].mxu0 }
 0x619   : > { %7088 = vst.msk [vmem:[%s13878_s19 + $0x490] sm:$0xff] %vm6947_vm2, %v6877_v16  ;;  %7087 = vst [vmem:[%s13878_s19 + $0x488] sm:$0xff] %v5716_v39  ;;  %v7480_v48 = vpop.f32.mrb[107].mxu1 }
 0x61b   : > { %v5720_v0 = vpop.f32.mrb[108].mxu0 }
 0x61c   : > { %7093 = vst [vmem:[%s13878_s19 + $0x4b8] sm:$0xff] %v5720_v0  ;;  %v6882_v4 = vpop.f32.mrb[108].mxu1  ;;  %v5722_v12 = vpop.f32.mrb[109].mxu0 }
 0x61d   : > { %7095 = vst.msk [vmem:[%s13878_s19 + $0x4c8] sm:$0xff] %vm6947_vm2, %v6882_v4  ;;  %7094 = vst [vmem:[%s13878_s19 + $0x4c0] sm:$0xff] %v5722_v12  ;;  %v7483_v15 = vpop.f32.mrb[109].mxu1 }
 0x61f   : > { %v5726_v21 = vpop.f32.mrb[110].mxu0 }
 0x620   : > { %7100 = vst [vmem:[%s13878_s19 + $0x4f0] sm:$0xff] %v5726_v21  ;;  %v6887_v23 = vpop.f32.mrb[110].mxu1  ;;  %v5728_v10 = vpop.f32.mrb[111].mxu0 }
 0x621   : > { %7102 = vst.msk [vmem:[%s13878_s19 + $0x500] sm:$0xff] %vm6947_vm2, %v6887_v23  ;;  %7101 = vst [vmem:[%s13878_s19 + $0x4f8] sm:$0xff] %v5728_v10  ;;  %v7486_v53 = vpop.f32.mrb[111].mxu1 }
 0x623   : > { %v5732_v40 = vpop.f32.mrb[112].mxu0 }
 0x624   : > { %7107 = vst [vmem:[%s13878_s19 + $0x528] sm:$0xff] %v5732_v40  ;;  %v6892_v61 = vpop.f32.mrb[112].mxu1  ;;  %v5734_v30 = vpop.f32.mrb[113].mxu0 }
 0x625   : > { %7109 = vst.msk [vmem:[%s13878_s19 + $0x538] sm:$0xff] %vm6947_vm2, %v6892_v61  ;;  %7108 = vst [vmem:[%s13878_s19 + $0x530] sm:$0xff] %v5734_v30  ;;  %v7489_v7 = vpop.f32.mrb[113].mxu1 }
 0x627   : > { %v5738_v1 = vpop.f32.mrb[114].mxu0 }
 0x628   : > { %7114 = vst [vmem:[%s13878_s19 + $0x560] sm:$0xff] %v5738_v1  ;;  %v6897_v6 = vpop.f32.mrb[114].mxu1  ;;  %v5740_v25 = vpop.f32.mrb[115].mxu0 }
 0x629   : > { %7116 = vst.msk [vmem:[%s13878_s19 + $0x570] sm:$0xff] %vm6947_vm2, %v6897_v6  ;;  %7115 = vst [vmem:[%s13878_s19 + $0x568] sm:$0xff] %v5740_v25  ;;  %v7492_v35 = vpop.f32.mrb[115].mxu1 }
 0x62b   : > { %v5744_v47 = vpop.f32.mrb[116].mxu0 }
 0x62c   : > { %7121 = vst [vmem:[%s13878_s19 + $0x598] sm:$0xff] %v5744_v47  ;;  %v6902_v13 = vpop.f32.mrb[116].mxu1  ;;  %v5746_v9 = vpop.f32.mrb[117].mxu0 }
 0x62d   : > { %7123 = vst.msk [vmem:[%s13878_s19 + $0x5a8] sm:$0xff] %vm6947_vm2, %v6902_v13  ;;  %7122 = vst [vmem:[%s13878_s19 + $0x5a0] sm:$0xff] %v5746_v9  ;;  %v7495_v34 = vpop.f32.mrb[117].mxu1 }
 0x62f   : > { %v5750_v42 = vpop.f32.mrb[118].mxu0 }
 0x630   : > { %7128 = vst [vmem:[%s13878_s19 + $0x5d0] sm:$0xff] %v5750_v42  ;;  %v6907_v62 = vpop.f32.mrb[118].mxu1  ;;  %v5752_v11 = vpop.f32.mrb[119].mxu0 }
 0x631   : > { %7130 = vst.msk [vmem:[%s13878_s19 + $0x5e0] sm:$0xff] %vm6947_vm2, %v6907_v62  ;;  %7129 = vst [vmem:[%s13878_s19 + $0x5d8] sm:$0xff] %v5752_v11  ;;  %v7498_v38 = vpop.f32.mrb[119].mxu1 }
 0x633   : > { %v5756_v33 = vpop.f32.mrb[120].mxu0 }
 0x634   : > { %7135 = vst [vmem:[%s13878_s19 + $0x608] sm:$0xff] %v5756_v33  ;;  %v6912_v55 = vpop.f32.mrb[120].mxu1  ;;  %v5758_v43 = vpop.f32.mrb[121].mxu0 }
 0x635   : > { %7137 = vst.msk [vmem:[%s13878_s19 + $0x618] sm:$0xff] %vm6947_vm2, %v6912_v55  ;;  %7136 = vst [vmem:[%s13878_s19 + $0x610] sm:$0xff] %v5758_v43  ;;  %v7501_v63 = vpop.f32.mrb[121].mxu1 }
 0x637   : > { %v5762_v60 = vpop.f32.mrb[122].mxu0 }
 0x638   : > { %7142 = vst [vmem:[%s13878_s19 + $0x640] sm:$0xff] %v5762_v60  ;;  %v6917_v52 = vpop.f32.mrb[122].mxu1  ;;  %v5764_v58 = vpop.f32.mrb[123].mxu0 }
 0x639   : > { %7144 = vst.msk [vmem:[%s13878_s19 + $0x650] sm:$0xff] %vm6947_vm2, %v6917_v52  ;;  %7143 = vst [vmem:[%s13878_s19 + $0x648] sm:$0xff] %v5764_v58  ;;  %v7504_v3 = vpop.f32.mrb[123].mxu1 }
 0x63b   : > { %v5768_v27 = vpop.f32.mrb[124].mxu0 }
 0x63c   : > { %7149 = vst [vmem:[%s13878_s19 + $0x678] sm:$0xff] %v5768_v27  ;;  %v6922_v8 = vpop.f32.mrb[124].mxu1  ;;  %v5770_v29 = vpop.f32.mrb[125].mxu0 }
 0x63d   : > { %7151 = vst.msk [vmem:[%s13878_s19 + $0x688] sm:$0xff] %vm6947_vm2, %v6922_v8  ;;  %7150 = vst [vmem:[%s13878_s19 + $0x680] sm:$0xff] %v5770_v29  ;;  %v7507_v57 = vpop.f32.mrb[125].mxu1 }
 0x63f   : > { %v5774_v37 = vpop.f32.mrb[126].mxu0 }
 0x640   : > { %7156 = vst [vmem:[%s13878_s19 + $0x6b0] sm:$0xff] %v5774_v37  ;;  %v6927_v20 = vpop.f32.mrb[126].mxu1  ;;  %v5776_v28 = vpop.f32.mrb[127].mxu0 }
 0x641   : > { %7158 = vst.msk [vmem:[%s13878_s19 + $0x6c0] sm:$0xff] %vm6947_vm2, %v6927_v20  ;;  %7157 = vst [vmem:[%s13878_s19 + $0x6b8] sm:$0xff] %v5776_v28  ;;  %v7510_v56 = vpop.f32.mrb[127].mxu1 }
 0x643   : > { %v5780_v26 = vpop.f32.mrb[128].mxu0 }
 0x644   : > { %7163 = vst [vmem:[%s13878_s19 + $0x6e8] sm:$0xff] %v5780_v26  ;;  %v6932_v32 = vpop.f32.mrb[128].mxu1  ;;  %v5782_v18 = vpop.f32.mrb[129].mxu0 }
 0x645   : > { %7165 = vst.msk [vmem:[%s13878_s19 + $0x6f8] sm:$0xff] %vm6947_vm2, %v6932_v32  ;;  %7164 = vst [vmem:[%s13878_s19 + $0x6f0] sm:$0xff] %v5782_v18  ;;  %v7513_v17 = vpop.f32.mrb[129].mxu1 }
 0x647   : > { %v5786_v14 = vpop.f32.mrb[130].mxu0 }
 0x648   : > { %7170 = vst [vmem:[%s13878_s19 + $0x720] sm:$0xff] %v5786_v14  ;;  %v6937_v19 = vpop.f32.mrb[130].mxu1  ;;  %v5788_v45 = vpop.f32.mrb[131].mxu0 }
 0x649   : > { %7172 = vst.msk [vmem:[%s13878_s19 + $0x730] sm:$0xff] %vm6947_vm2, %v6937_v19  ;;  %7171 = vst [vmem:[%s13878_s19 + $0x728] sm:$0xff] %v5788_v45  ;;  %v7516_v24 = vpop.f32.mrb[131].mxu1 }
 0x64a PF: > { %s13_s12 = sadd.s32 1, %s9585_s12  }
 0x64b   : > { %p10_p4 = scmp.ge.s32.totalorder %s13_s12, 6  }
 0x64d   :  { %12 = sbr.rel (!%p10_p4) target bundleno = 1 (0x1), region = 62 }

</bundles_post_ra>
